<compile_context>
chip_gen: v5e
topology: v5e:2x2
jax: 0.10.0
libtpu: 0.0.40
codegen_flags: <defaults>
</compile_context>

<pallas_src>
import functools

import numpy as np
import jax
import jax.numpy as jnp
from jax.experimental import pallas as pl
from jax.experimental.pallas import tpu as pltpu


_CPARAMS = pltpu.CompilerParams(dimension_semantics=("parallel",))


# ----------------------------------------------------------------------------
# Pallas kernels
# ----------------------------------------------------------------------------
def conv_block_kernel(*refs, n_inputs, width, apply_relu):
    """Fused [3x3 conv (taps folded to K=9*Cin) + 1x1 conv + biases
    + optional ReLU + BN partial statistics], in (C, P) layout (P on lanes).

    refs layout:
      x_refs[i]  : (1, Cin_i, P + 2*(W+1))  flat zero-padded activation (f32)
      w1_refs[i] : (Cout, 9*Cin_i)          folded 3x3 weight (bf16)
      b1_ref     : (Cout, 1) f32
      w2_ref     : (Cout, Cout) bf16        1x1 conv weight
      b2_ref     : (Cout, 1) f32
      o_ref      : (1, Cout, P) f32         block output (pre-BN)
      sum_ref    : (1, Cout, 1) f32         per-image per-channel sum
      ssq_ref    : (1, Cout, 1) f32         per-image per-channel sum of squares
    """
    x_refs = refs[:n_inputs]
    w1_refs = refs[n_inputs:2 * n_inputs]
    b1_ref, w2_ref, b2_ref, o_ref, sum_ref, ssq_ref = refs[2 * n_inputs:]

    P = o_ref.shape[2]
    W = width
    cout = w2_ref.shape[0]

    # Column-wrap validity masks (the flat zero-pad handles the row direction).
    j = jax.lax.broadcasted_iota(jnp.int32, (1, P), 1) % W
    left_ok = j >= 1          # tap dw = -1 valid
    right_ok = j <= (W - 2)   # tap dw = +1 valid

    h = jnp.zeros((cout, P), jnp.float32) + b1_ref[...]
    for x_ref, w1_ref in zip(x_refs, w1_refs):
        xz = x_ref[0]                                     # (Cin, P + 2*(W+1))
        taps = []
        for dh in (-1, 0, 1):
            for dw in (-1, 0, 1):
                start = (W + 1) + dh * W + dw             # static offset
                t = xz[:, start:start + P]
                if dw == -1:
                    t = jnp.where(left_ok, t, 0.0)
                elif dw == 1:
                    t = jnp.where(right_ok, t, 0.0)
                taps.append(t)
        # Fold the 9 taps into one contraction: (Cout,9*Cin) @ (9*Cin,P) on MXU.
        patches = jnp.concatenate(taps, axis=0).astype(jnp.bfloat16)
        h = h + jnp.dot(w1_ref[...], patches, preferred_element_type=jnp.float32)

    z = jnp.dot(w2_ref[...], h.astype(jnp.bfloat16),
                preferred_element_type=jnp.float32) + b2_ref[...]
    if apply_relu:
        z = jnp.maximum(z, 0.0)

    o_ref[0] = z
    sum_ref[0] = jnp.sum(z, axis=1, keepdims=True)
    ssq_ref[0] = jnp.sum(z * z, axis=1, keepdims=True)


def final_kernel(x_ref, w_ref, b_ref, o_ref):
    """Fused final 1x1 conv + LogSoftmax over channels (sublane axis)."""
    logits = jnp.dot(w_ref[...], x_ref[0],
                     preferred_element_type=jnp.float32) + b_ref[...]
    m = jnp.max(logits, axis=0, keepdims=True)
    z = logits - m
    lse = jnp.log(jnp.sum(jnp.exp(z), axis=0, keepdims=True))
    o_ref[0] = z - lse


# ----------------------------------------------------------------------------
# pallas_call wrappers
# ----------------------------------------------------------------------------
def conv_block(xs, w1s, b1, w2, b2, *, width, apply_relu):
    """xs: list of (N, Cin_i, P) post-BN activations; returns (y, sum, sumsq)."""
    n, _, P = xs[0].shape
    cout = w2.shape[0]
    pad = width + 1
    # Flat zero-pad of W+1 on each side; XLA fuses this with the producing
    # BN-affine, so it costs one pass that was needed anyway.
    xzs = [jnp.pad(x, ((0, 0), (0, 0), (pad, pad))) for x in xs]

    in_specs = [pl.BlockSpec((1,) + xz.shape[1:], lambda i: (i, 0, 0)) for xz in xzs]
    in_specs += [pl.BlockSpec(w1.shape, lambda i: (0, 0)) for w1 in w1s]
    in_specs += [pl.BlockSpec((cout, 1), lambda i: (0, 0)),
                 pl.BlockSpec((cout, cout), lambda i: (0, 0)),
                 pl.BlockSpec((cout, 1), lambda i: (0, 0))]
    out_specs = (pl.BlockSpec((1, cout, P), lambda i: (i, 0, 0)),
                 pl.BlockSpec((1, cout, 1), lambda i: (i, 0, 0)),
                 pl.BlockSpec((1, cout, 1), lambda i: (i, 0, 0)))
    out_shape = (jax.ShapeDtypeStruct((n, cout, P), jnp.float32),
                 jax.ShapeDtypeStruct((n, cout, 1), jnp.float32),
                 jax.ShapeDtypeStruct((n, cout, 1), jnp.float32))

    kernel = functools.partial(conv_block_kernel, n_inputs=len(xs),
                               width=width, apply_relu=apply_relu)
    return pl.pallas_call(
        kernel,
        out_shape=out_shape,
        grid=(n,),
        in_specs=in_specs,
        out_specs=out_specs,
        compiler_params=_CPARAMS,
    )(*xzs, *list(w1s), b1.reshape(cout, 1), w2, b2.reshape(cout, 1))


def final_conv_logsoftmax(x, w, b):
    """x: (N, C, P); w: (K, C); b: (K,) -> (N, K, P) log-probabilities."""
    n, c, P = x.shape
    k = w.shape[0]
    return pl.pallas_call(
        final_kernel,
        out_shape=jax.ShapeDtypeStruct((n, k, P), jnp.float32),
        grid=(n,),
        in_specs=[pl.BlockSpec((1, c, P), lambda i: (i, 0, 0)),
                  pl.BlockSpec((k, c), lambda i: (0, 0)),
                  pl.BlockSpec((k, 1), lambda i: (0, 0))],
        out_specs=pl.BlockSpec((1, k, P), lambda i: (i, 0, 0)),
        compiler_params=_CPARAMS,
    )(x, w, b.reshape(k, 1))


# ----------------------------------------------------------------------------
# MaxPool2d(2, return_indices=True) / MaxUnpool2d(2)  (XLA glue, NCP layout)
# ----------------------------------------------------------------------------
def maxpool2x2(x, hw):
    n, c, _ = x.shape
    h, w = hw
    xw = (x.reshape(n, c, h // 2, 2, w // 2, 2)
           .transpose(0, 1, 2, 4, 3, 5)
           .reshape(n, c, (h // 2) * (w // 2), 4))
    return jnp.max(xw, axis=-1), jnp.argmax(xw, axis=-1)


def maxunpool2x2(x, idx, hw):
    n, c, _ = x.shape
    h, w = hw
    sel = idx[..., None] == jnp.arange(4, dtype=idx.dtype).reshape(1, 1, 1, 4)
    outw = jnp.where(sel, x[..., None], 0.0)            # (n, c, h*w, 4)
    return (outw.reshape(n, c, h, w, 2, 2)
                .transpose(0, 1, 2, 4, 3, 5)
                .reshape(n, c, (2 * h) * (2 * w)))


# ----------------------------------------------------------------------------
# Parameter construction (deterministic, synthetic)
# ----------------------------------------------------------------------------
def _conv2d_params(key, cout, cin, ksize):
    kw, kb = jax.random.split(key)
    bound = 1.0 / np.sqrt(cin * ksize * ksize)
    w = jax.random.uniform(kw, (cout, cin, ksize, ksize), jnp.float32, -bound, bound)
    b = jax.random.uniform(kb, (cout,), jnp.float32, -bound, bound)
    return w, b


def _fold_w3(w_oihw):
    """(Cout, Cin, 3, 3) -> (Cout, 9*Cin), tap-major (kh,kw) then cin, bf16."""
    cout, cin = w_oihw.shape[:2]
    return (w_oihw.transpose(0, 2, 3, 1).reshape(cout, 9 * cin)).astype(jnp.bfloat16)


def _block_params(key, cin_splits, cout, *, transposed):
    cin = sum(cin_splits)
    k1, k2 = jax.random.split(key)
    if transposed:
        # ConvTranspose2d(cin, cout, 3, stride=1, padding=1) == Conv2d(padding=1)
        # with the kernel spatially flipped and in/out channel axes swapped.
        kw, kb = jax.random.split(k1)
        bound = 1.0 / np.sqrt(cin * 9)
        wt = jax.random.uniform(kw, (cin, cout, 3, 3), jnp.float32, -bound, bound)
        b1 = jax.random.uniform(kb, (cout,), jnp.float32, -bound, bound)
        w1 = jnp.flip(wt, axis=(2, 3)).transpose(1, 0, 2, 3)   # OIHW equivalent
    else:
        w1, b1 = _conv2d_params(k1, cout, cin, 3)
    # Split along Cin so torch.cat([x, skip], 1) is never materialized.
    w1s, off = [], 0
    for c in cin_splits:
        w1s.append(_fold_w3(w1[:, off:off + c]))
        off += c
    w2, b2 = _conv2d_params(k2, cout, cout, 1)
    return dict(w1s=tuple(w1s), b1=b1,
                w2=w2.reshape(cout, cout).astype(jnp.bfloat16), b2=b2,
                gamma=jnp.ones((cout,), jnp.float32),
                beta=jnp.zeros((cout,), jnp.float32))


def init_panelnet_params(key, n_classes, in_channels, lyr1_kernels, growth_rate):
    L, G = lyr1_kernels, growth_rate
    ks = jax.random.split(key, 10)
    params = {
        "down1": _block_params(ks[0], (in_channels,), L, transposed=False),
        "down2": _block_params(ks[1], (L,), L + G, transposed=False),
        "down3": _block_params(ks[2], (L + G,), L + 2 * G, transposed=False),
        "down4": _block_params(ks[3], (L + 2 * G,), L + 3 * G, transposed=False),
        "mid":   _block_params(ks[4], (L + 3 * G,), L + 3 * G, transposed=False),
        "up1":   _block_params(ks[5], (L + 3 * G, L + 3 * G), L + 2 * G, transposed=True),
        "up2":   _block_params(ks[6], (L + 2 * G, L + 2 * G), L + G, transposed=True),
        "up3":   _block_params(ks[7], (L + G, L + G), L + G, transposed=True),
        "up4":   _block_params(ks[8], (L + G, L), L + G, transposed=True),
    }
    kwf, kbf = jax.random.split(ks[9])
    bound = 1.0 / np.sqrt(L + G)
    wf = jax.random.uniform(kwf, (n_classes, L + G), jnp.float32, -bound, bound)
    bf = jax.random.uniform(kbf, (n_classes,), jnp.float32, -bound, bound)
    params["final"] = dict(w=wf, b=bf)
    return params


# ----------------------------------------------------------------------------
# Forward pass (mirrors PanelNet.forward)
# ----------------------------------------------------------------------------
def _conv_bn_block(p, inputs, *, width, mid=False):
    """Runs the fused conv kernel; returns (pre-BN output, BN scale, BN shift).

    Down/up blocks: conv3x3(+T), conv1x1, ReLU, BN  -> kernel applies the ReLU.
    Mid block:      conv3x3, conv1x1, BN, ReLU      -> ReLU applied after BN.
    BN uses batch statistics (training-mode semantics, biased variance) built
    from the kernel's fused per-image sum / sum-of-squares outputs.
    """
    y, ssum, ssq = conv_block(inputs, p["w1s"], p["b1"], p["w2"], p["b2"],
                              width=width, apply_relu=not mid)
    n, _, P = y.shape
    cnt = n * P
    mean = jnp.sum(ssum[:, :, 0], axis=0) / cnt
    var = jnp.maximum(jnp.sum(ssq[:, :, 0], axis=0) / cnt - mean * mean, 0.0)
    scale = p["gamma"] * jax.lax.rsqrt(var + 1e-5)
    shift = p["beta"] - mean * scale
    return y, scale, shift


def _affine(y, scale, shift):
    # Applied lazily in XLA; fuses into the next pad / pool / unpool consumer.
    return y * scale[None, :, None] + shift[None, :, None]


def panelnet_forward(params, x_nchw):
    n, cin, H, W = x_nchw.shape
    x = x_nchw.reshape(n, cin, H * W)            # NCHW -> (N, C, P), no transpose
    W1, W2, W3, W4 = W, W // 2, W // 4, W // 8

    y, s, t = _conv_bn_block(params["down1"], [x], width=W1)
    skip1 = _affine(y, s, t)
    y, s, t = _conv_bn_block(params["down2"], [skip1], width=W1)
    skip2 = _affine(y, s, t)
    xp, idx1 = maxpool2x2(skip2, (H, W1))
    y, s, t = _conv_bn_block(params["down3"], [xp], width=W2)
    skip3 = _affine(y, s, t)
    xp, idx2 = maxpool2x2(skip3, (H // 2, W2))
    y, s, t = _conv_bn_block(params["down4"], [xp], width=W3)
    skip4 = _affine(y, s, t)
    xp, idx3 = maxpool2x2(skip4, (H // 4, W3))

    y, s, t = _conv_bn_block(params["mid"], [xp], width=W4, mid=True)
    xm = jnp.maximum(_affine(y, s, t), 0.0)

    xu = maxunpool2x2(xm, idx3, (H // 8, W4))
    y, s, t = _conv_bn_block(params["up1"], [xu, skip4], width=W3)
    xb = _affine(y, s, t)
    xu = maxunpool2x2(xb, idx2, (H // 4, W3))
    y, s, t = _conv_bn_block(params["up2"], [xu, skip3], width=W2)
    xb = _affine(y, s, t)
    xu = maxunpool2x2(xb, idx1, (H // 2, W2))
    y, s, t = _conv_bn_block(params["up3"], [xu, skip2], width=W1)
    xb = _affine(y, s, t)
    y, s, t = _conv_bn_block(params["up4"], [xb, skip1], width=W1)

    # Fold up4's BatchNorm affine into the final 1x1 conv (affine-then-1x1 is
    # linear and involves no spatial padding), then fused conv + LogSoftmax.
    wf, bf = params["final"]["w"], params["final"]["b"]
    wf_f = wf * s[None, :]
    bf_f = bf + wf @ t
    out = final_conv_logsoftmax(y, wf_f, bf_f)   # (N, n_classes, H*W)
    return out.reshape(n, -1, H, W)              # NCHW


# ----------------------------------------------------------------------------
if __name__ == "__main__":
    N_CLASSES, IN_CH, LYR1, GROWTH = 3, 4, 8, 4
    N, H, W = 2, 16, 16                          # 3 pooling levels: 16->8->4->2

    key = jax.random.PRNGKey(0)
    kparams, kx = jax.random.split(key)
    params = init_panelnet_params(kparams, N_CLASSES, IN_CH, LYR1, GROWTH)
    x = jax.random.normal(kx, (N, IN_CH, H, W), jnp.float32)

    out = jax.jit(panelnet_forward)(params, x)
    out = jax.block_until_ready(out)

    assert out.shape == (N, N_CLASSES, H, W), out.shape
    assert bool(jnp.all(jnp.isfinite(out)))
    # log-softmax sanity: per-pixel probabilities sum to 1
    probs_sum = np.exp(np.asarray(out)).sum(axis=1)
    assert np.allclose(probs_sum, 1.0, atol=1e-4), probs_sum

    print("KERNEL_OK")
</pallas_src>

<mosaic_0001>
module attributes {stable_mosaic.version = 11 : i64} {
  func.func @conv_block_kernel(%arg0: i32, %arg1: memref<1x4x290xf32, #tpu.memory_space<vmem>>, %arg2: memref<8x36xbf16, #tpu.memory_space<vmem>>, %arg3: memref<8x1xf32, #tpu.memory_space<vmem>>, %arg4: memref<8x8xbf16, #tpu.memory_space<vmem>>, %arg5: memref<8x1xf32, #tpu.memory_space<vmem>>, %arg6: memref<1x8x256xf32, #tpu.memory_space<vmem>>, %arg7: memref<1x8x1xf32, #tpu.memory_space<vmem>>, %arg8: memref<1x8x1xf32, #tpu.memory_space<vmem>>) attributes {dimension_semantics = [#tpu.dimension_semantics<parallel>], iteration_bounds = array<i64: 2>, scalar_prefetch = 0 : i64, scratch_operands = 0 : i64, tpu.core_type = #tpu.core_type<tc>, window_params = [{transform_indices = @transform_0, window_bounds = array<i64: 1, 4, 290>}, {pipeline_mode = #tpu.pipeline_mode<synchronous>, transform_indices = @transform_1, window_bounds = array<i64: 8, 36>}, {pipeline_mode = #tpu.pipeline_mode<synchronous>, transform_indices = @transform_2, window_bounds = array<i64: 8, 1>}, {pipeline_mode = #tpu.pipeline_mode<synchronous>, transform_indices = @transform_3, window_bounds = array<i64: 8, 8>}, {pipeline_mode = #tpu.pipeline_mode<synchronous>, transform_indices = @transform_4, window_bounds = array<i64: 8, 1>}, {transform_indices = @transform_5, window_bounds = array<i64: 1, 8, 256>}, {transform_indices = @transform_6, window_bounds = array<i64: 1, 8, 1>}, {transform_indices = @transform_7, window_bounds = array<i64: 1, 8, 1>}]} {
    %0 = tpu.iota {dimensions = array<i32: 1>} : vector<1x256xi32>
    %c16_i32 = arith.constant 16 : i32
    %c0_i32 = arith.constant 0 : i32
    %1 = arith.cmpi eq, %c16_i32, %c0_i32 : i32
    %c1_i32 = arith.constant 1 : i32
    %2 = arith.select %1, %c1_i32, %c16_i32 : i32
    %3 = vector.broadcast %2 : i32 to vector<1x256xi32>
    %4 = arith.remsi %0, %3 : vector<1x256xi32>
    %c0_i32_0 = arith.constant 0 : i32
    %5 = vector.broadcast %c0_i32_0 : i32 to vector<1x256xi32>
    %6 = arith.cmpi ne, %4, %5 : vector<1x256xi32>
    %c0_i32_1 = arith.constant 0 : i32
    %7 = vector.broadcast %c0_i32_1 : i32 to vector<1x256xi32>
    %8 = arith.cmpi slt, %4, %7 : vector<1x256xi32>
    %c0_i32_2 = arith.constant 0 : i32
    %9 = arith.cmpi slt, %2, %c0_i32_2 : i32
    %10 = vector.broadcast %9 : i1 to vector<1x256xi1>
    %11 = vector.broadcast %10 : vector<1x256xi1> to vector<1x256xi1>
    %12 = arith.xori %8, %11 : vector<1x256xi1>
    %13 = arith.andi %12, %6 : vector<1x256xi1>
    %14 = vector.broadcast %2 : i32 to vector<1x256xi32>
    %15 = arith.addi %4, %14 : vector<1x256xi32>
    %16 = arith.select %13, %15, %4 : vector<1x256xi1>, vector<1x256xi32>
    %c1_i32_3 = arith.constant 1 : i32
    %17 = vector.broadcast %c1_i32_3 : i32 to vector<1x256xi32>
    %18 = arith.cmpi sge, %16, %17 : vector<1x256xi32>
    %c14_i32 = arith.constant 14 : i32
    %19 = vector.broadcast %c14_i32 : i32 to vector<1x256xi32>
    %20 = arith.cmpi sle, %16, %19 : vector<1x256xi32>
    %cst = arith.constant 0.000000e+00 : f32
    %21 = vector.broadcast %cst : f32 to vector<8x256xf32>
    %c0 = arith.constant 0 : index
    %c0_4 = arith.constant 0 : index
    %22 = vector.load %arg3[%c0, %c0_4] : memref<8x1xf32, #tpu.memory_space<vmem>>, vector<8x1xf32>
    %23 = vector.broadcast %22 : vector<8x1xf32> to vector<8x256xf32>
    %24 = arith.addf %21, %23 : vector<8x256xf32>
    %c0_5 = arith.constant 0 : index
    %c0_6 = arith.constant 0 : index
    %c0_7 = arith.constant 0 : index
    %25 = vector.load %arg1[%c0_5, %c0_6, %c0_7] : memref<1x4x290xf32, #tpu.memory_space<vmem>>, vector<1x4x290xf32>
    %26 = vector.shape_cast %25 : vector<1x4x290xf32> to vector<4x290xf32>
    %27 = vector.extract_strided_slice %26 {offsets = [0, 0], sizes = [4, 256], strides = [1, 1]} : vector<4x290xf32> to vector<4x256xf32>
    %cst_8 = arith.constant 0.000000e+00 : f32
    %28 = vector.shape_cast %18 : vector<1x256xi1> to vector<1x256xi1>
    %29 = vector.broadcast %28 : vector<1x256xi1> to vector<4x256xi1>
    %30 = vector.broadcast %cst_8 : f32 to vector<4x256xf32>
    %31 = arith.select %29, %27, %30 : vector<4x256xi1>, vector<4x256xf32>
    %32 = vector.extract_strided_slice %26 {offsets = [0, 1], sizes = [4, 256], strides = [1, 1]} : vector<4x290xf32> to vector<4x256xf32>
    %33 = vector.extract_strided_slice %26 {offsets = [0, 2], sizes = [4, 256], strides = [1, 1]} : vector<4x290xf32> to vector<4x256xf32>
    %cst_9 = arith.constant 0.000000e+00 : f32
    %34 = vector.shape_cast %20 : vector<1x256xi1> to vector<1x256xi1>
    %35 = vector.broadcast %34 : vector<1x256xi1> to vector<4x256xi1>
    %36 = vector.broadcast %cst_9 : f32 to vector<4x256xf32>
    %37 = arith.select %35, %33, %36 : vector<4x256xi1>, vector<4x256xf32>
    %38 = vector.extract_strided_slice %26 {offsets = [0, 16], sizes = [4, 256], strides = [1, 1]} : vector<4x290xf32> to vector<4x256xf32>
    %cst_10 = arith.constant 0.000000e+00 : f32
    %39 = vector.shape_cast %18 : vector<1x256xi1> to vector<1x256xi1>
    %40 = vector.broadcast %39 : vector<1x256xi1> to vector<4x256xi1>
    %41 = vector.broadcast %cst_10 : f32 to vector<4x256xf32>
    %42 = arith.select %40, %38, %41 : vector<4x256xi1>, vector<4x256xf32>
    %43 = vector.extract_strided_slice %26 {offsets = [0, 17], sizes = [4, 256], strides = [1, 1]} : vector<4x290xf32> to vector<4x256xf32>
    %44 = vector.extract_strided_slice %26 {offsets = [0, 18], sizes = [4, 256], strides = [1, 1]} : vector<4x290xf32> to vector<4x256xf32>
    %cst_11 = arith.constant 0.000000e+00 : f32
    %45 = vector.shape_cast %20 : vector<1x256xi1> to vector<1x256xi1>
    %46 = vector.broadcast %45 : vector<1x256xi1> to vector<4x256xi1>
    %47 = vector.broadcast %cst_11 : f32 to vector<4x256xf32>
    %48 = arith.select %46, %44, %47 : vector<4x256xi1>, vector<4x256xf32>
    %49 = vector.extract_strided_slice %26 {offsets = [0, 32], sizes = [4, 256], strides = [1, 1]} : vector<4x290xf32> to vector<4x256xf32>
    %cst_12 = arith.constant 0.000000e+00 : f32
    %50 = vector.shape_cast %18 : vector<1x256xi1> to vector<1x256xi1>
    %51 = vector.broadcast %50 : vector<1x256xi1> to vector<4x256xi1>
    %52 = vector.broadcast %cst_12 : f32 to vector<4x256xf32>
    %53 = arith.select %51, %49, %52 : vector<4x256xi1>, vector<4x256xf32>
    %54 = vector.extract_strided_slice %26 {offsets = [0, 33], sizes = [4, 256], strides = [1, 1]} : vector<4x290xf32> to vector<4x256xf32>
    %55 = vector.extract_strided_slice %26 {offsets = [0, 34], sizes = [4, 256], strides = [1, 1]} : vector<4x290xf32> to vector<4x256xf32>
    %cst_13 = arith.constant 0.000000e+00 : f32
    %56 = vector.shape_cast %20 : vector<1x256xi1> to vector<1x256xi1>
    %57 = vector.broadcast %56 : vector<1x256xi1> to vector<4x256xi1>
    %58 = vector.broadcast %cst_13 : f32 to vector<4x256xf32>
    %59 = arith.select %57, %55, %58 : vector<4x256xi1>, vector<4x256xf32>
    %60 = tpu.concatenate %31, %32, %37, %42, %43, %48, %53, %54, %59 in 0 : vector<4x256xf32>, vector<4x256xf32>, vector<4x256xf32>, vector<4x256xf32>, vector<4x256xf32>, vector<4x256xf32>, vector<4x256xf32>, vector<4x256xf32>, vector<4x256xf32> -> vector<36x256xf32>
    %61 = arith.truncf %60 : vector<36x256xf32> to vector<36x256xbf16>
    %c0_14 = arith.constant 0 : index
    %c0_15 = arith.constant 0 : index
    %62 = vector.load %arg2[%c0_14, %c0_15] : memref<8x36xbf16, #tpu.memory_space<vmem>>, vector<8x36xbf16>
    %cst_16 = arith.constant dense<0.000000e+00> : vector<8x256xf32>
    %63 = tpu.matmul %62, %61, %cst_16 {dimension_numbers = #tpu.dot_dimension_numbers<[1], [0], [0], [1], [0, 0, 1, 1], [], []>} : vector<8x36xbf16>, vector<36x256xbf16>, vector<8x256xf32> -> vector<8x256xf32>
    %64 = arith.addf %24, %63 : vector<8x256xf32>
    %c0_17 = arith.constant 0 : index
    %c0_18 = arith.constant 0 : index
    %65 = vector.load %arg4[%c0_17, %c0_18] : memref<8x8xbf16, #tpu.memory_space<vmem>>, vector<8x8xbf16>
    %66 = arith.truncf %64 : vector<8x256xf32> to vector<8x256xbf16>
    %cst_19 = arith.constant dense<0.000000e+00> : vector<8x256xf32>
    %67 = tpu.matmul %65, %66, %cst_19 {dimension_numbers = #tpu.dot_dimension_numbers<[1], [0], [0], [1], [0, 0, 1, 1], [], []>} : vector<8x8xbf16>, vector<8x256xbf16>, vector<8x256xf32> -> vector<8x256xf32>
    %c0_20 = arith.constant 0 : index
    %c0_21 = arith.constant 0 : index
    %68 = vector.load %arg5[%c0_20, %c0_21] : memref<8x1xf32, #tpu.memory_space<vmem>>, vector<8x1xf32>
    %69 = vector.broadcast %68 : vector<8x1xf32> to vector<8x256xf32>
    %70 = arith.addf %67, %69 : vector<8x256xf32>
    %cst_22 = arith.constant 0.000000e+00 : f32
    %71 = vector.broadcast %cst_22 : f32 to vector<8x256xf32>
    %72 = arith.maximumf %70, %71 : vector<8x256xf32>
    %c0_23 = arith.constant 0 : index
    %c0_24 = arith.constant 0 : index
    %c0_25 = arith.constant 0 : index
    %73 = vector.load %arg6[%c0_23, %c0_24, %c0_25] : memref<1x8x256xf32, #tpu.memory_space<vmem>>, vector<1x8x256xf32>
    %74 = vector.shape_cast %73 : vector<1x8x256xf32> to vector<8x256xf32>
    %75 = vector.shape_cast %72 : vector<8x256xf32> to vector<1x8x256xf32>
    tpu.vector_store %arg6[%c0_23, %c0_24, %c0_25], %75 {strides = array<i32>} : memref<1x8x256xf32, #tpu.memory_space<vmem>>, vector<1x8x256xf32>,
    %cst_26 = arith.constant dense<0.000000e+00> : vector<8xf32>
    %76 = vector.multi_reduction <add>, %72, %cst_26 [1] : vector<8x256xf32> to vector<8xf32>
    %77 = vector.shape_cast %76 : vector<8xf32> to vector<8x1xf32>
    %c0_27 = arith.constant 0 : index
    %c0_28 = arith.constant 0 : index
    %c0_29 = arith.constant 0 : index
    %78 = vector.load %arg7[%c0_27, %c0_28, %c0_29] : memref<1x8x1xf32, #tpu.memory_space<vmem>>, vector<1x8x1xf32>
    %79 = vector.shape_cast %78 : vector<1x8x1xf32> to vector<8x1xf32>
    %80 = vector.shape_cast %77 : vector<8x1xf32> to vector<1x8x1xf32>
    tpu.vector_store %arg7[%c0_27, %c0_28, %c0_29], %80 {strides = array<i32>} : memref<1x8x1xf32, #tpu.memory_space<vmem>>, vector<1x8x1xf32>,
    %81 = arith.mulf %72, %72 : vector<8x256xf32>
    %cst_30 = arith.constant dense<0.000000e+00> : vector<8xf32>
    %82 = vector.multi_reduction <add>, %81, %cst_30 [1] : vector<8x256xf32> to vector<8xf32>
    %83 = vector.shape_cast %82 : vector<8xf32> to vector<8x1xf32>
    %c0_31 = arith.constant 0 : index
    %c0_32 = arith.constant 0 : index
    %c0_33 = arith.constant 0 : index
    %84 = vector.load %arg8[%c0_31, %c0_32, %c0_33] : memref<1x8x1xf32, #tpu.memory_space<vmem>>, vector<1x8x1xf32>
    %85 = vector.shape_cast %84 : vector<1x8x1xf32> to vector<8x1xf32>
    %86 = vector.shape_cast %83 : vector<8x1xf32> to vector<1x8x1xf32>
    tpu.vector_store %arg8[%c0_31, %c0_32, %c0_33], %86 {strides = array<i32>} : memref<1x8x1xf32, #tpu.memory_space<vmem>>, vector<1x8x1xf32>,
    return
  }
  func.func @transform_0(%arg0: i32) -> (i32, i32, i32) {
    %c0_i32 = arith.constant 0 : i32
    %c0_i32_0 = arith.constant 0 : i32
    %c0_i32_1 = arith.constant 0 : i32
    return %arg0, %c0_i32, %c0_i32_0 : i32, i32, i32
  }
  func.func @transform_1(%arg0: i32) -> (i32, i32) {
    %c0_i32 = arith.constant 0 : i32
    %c0_i32_0 = arith.constant 0 : i32
    %c0_i32_1 = arith.constant 0 : i32
    return %c0_i32, %c0_i32_0 : i32, i32
  }
  func.func @transform_2(%arg0: i32) -> (i32, i32) {
    %c0_i32 = arith.constant 0 : i32
    %c0_i32_0 = arith.constant 0 : i32
    %c0_i32_1 = arith.constant 0 : i32
    return %c0_i32, %c0_i32_0 : i32, i32
  }
  func.func @transform_3(%arg0: i32) -> (i32, i32) {
    %c0_i32 = arith.constant 0 : i32
    %c0_i32_0 = arith.constant 0 : i32
    %c0_i32_1 = arith.constant 0 : i32
    return %c0_i32, %c0_i32_0 : i32, i32
  }
  func.func @transform_4(%arg0: i32) -> (i32, i32) {
    %c0_i32 = arith.constant 0 : i32
    %c0_i32_0 = arith.constant 0 : i32
    %c0_i32_1 = arith.constant 0 : i32
    return %c0_i32, %c0_i32_0 : i32, i32
  }
  func.func @transform_5(%arg0: i32) -> (i32, i32, i32) {
    %c0_i32 = arith.constant 0 : i32
    %c0_i32_0 = arith.constant 0 : i32
    %c0_i32_1 = arith.constant 0 : i32
    return %arg0, %c0_i32, %c0_i32_0 : i32, i32, i32
  }
  func.func @transform_6(%arg0: i32) -> (i32, i32, i32) {
    %c0_i32 = arith.constant 0 : i32
    %c0_i32_0 = arith.constant 0 : i32
    %c0_i32_1 = arith.constant 0 : i32
    return %arg0, %c0_i32, %c0_i32_0 : i32, i32, i32
  }
  func.func @transform_7(%arg0: i32) -> (i32, i32, i32) {
    %c0_i32 = arith.constant 0 : i32
    %c0_i32_0 = arith.constant 0 : i32
    %c0_i32_1 = arith.constant 0 : i32
    return %arg0, %c0_i32, %c0_i32_0 : i32, i32, i32
  }
}

module attributes {stable_mosaic.version = 11 : i64} {
  func.func @conv_block_kernel(%arg0: i32, %arg1: memref<1x8x290xf32, #tpu.memory_space<vmem>>, %arg2: memref<12x72xbf16, #tpu.memory_space<vmem>>, %arg3: memref<12x1xf32, #tpu.memory_space<vmem>>, %arg4: memref<12x12xbf16, #tpu.memory_space<vmem>>, %arg5: memref<12x1xf32, #tpu.memory_space<vmem>>, %arg6: memref<1x12x256xf32, #tpu.memory_space<vmem>>, %arg7: memref<1x12x1xf32, #tpu.memory_space<vmem>>, %arg8: memref<1x12x1xf32, #tpu.memory_space<vmem>>) attributes {dimension_semantics = [#tpu.dimension_semantics<parallel>], iteration_bounds = array<i64: 2>, scalar_prefetch = 0 : i64, scratch_operands = 0 : i64, tpu.core_type = #tpu.core_type<tc>, window_params = [{transform_indices = @transform_0, window_bounds = array<i64: 1, 8, 290>}, {pipeline_mode = #tpu.pipeline_mode<synchronous>, transform_indices = @transform_1, window_bounds = array<i64: 12, 72>}, {pipeline_mode = #tpu.pipeline_mode<synchronous>, transform_indices = @transform_2, window_bounds = array<i64: 12, 1>}, {pipeline_mode = #tpu.pipeline_mode<synchronous>, transform_indices = @transform_3, window_bounds = array<i64: 12, 12>}, {pipeline_mode = #tpu.pipeline_mode<synchronous>, transform_indices = @transform_4, window_bounds = array<i64: 12, 1>}, {transform_indices = @transform_5, window_bounds = array<i64: 1, 12, 256>}, {transform_indices = @transform_6, window_bounds = array<i64: 1, 12, 1>}, {transform_indices = @transform_7, window_bounds = array<i64: 1, 12, 1>}]} {
    %0 = tpu.iota {dimensions = array<i32: 1>} : vector<1x256xi32>
    %c16_i32 = arith.constant 16 : i32
    %c0_i32 = arith.constant 0 : i32
    %1 = arith.cmpi eq, %c16_i32, %c0_i32 : i32
    %c1_i32 = arith.constant 1 : i32
    %2 = arith.select %1, %c1_i32, %c16_i32 : i32
    %3 = vector.broadcast %2 : i32 to vector<1x256xi32>
    %4 = arith.remsi %0, %3 : vector<1x256xi32>
    %c0_i32_0 = arith.constant 0 : i32
    %5 = vector.broadcast %c0_i32_0 : i32 to vector<1x256xi32>
    %6 = arith.cmpi ne, %4, %5 : vector<1x256xi32>
    %c0_i32_1 = arith.constant 0 : i32
    %7 = vector.broadcast %c0_i32_1 : i32 to vector<1x256xi32>
    %8 = arith.cmpi slt, %4, %7 : vector<1x256xi32>
    %c0_i32_2 = arith.constant 0 : i32
    %9 = arith.cmpi slt, %2, %c0_i32_2 : i32
    %10 = vector.broadcast %9 : i1 to vector<1x256xi1>
    %11 = vector.broadcast %10 : vector<1x256xi1> to vector<1x256xi1>
    %12 = arith.xori %8, %11 : vector<1x256xi1>
    %13 = arith.andi %12, %6 : vector<1x256xi1>
    %14 = vector.broadcast %2 : i32 to vector<1x256xi32>
    %15 = arith.addi %4, %14 : vector<1x256xi32>
    %16 = arith.select %13, %15, %4 : vector<1x256xi1>, vector<1x256xi32>
    %c1_i32_3 = arith.constant 1 : i32
    %17 = vector.broadcast %c1_i32_3 : i32 to vector<1x256xi32>
    %18 = arith.cmpi sge, %16, %17 : vector<1x256xi32>
    %c14_i32 = arith.constant 14 : i32
    %19 = vector.broadcast %c14_i32 : i32 to vector<1x256xi32>
    %20 = arith.cmpi sle, %16, %19 : vector<1x256xi32>
    %cst = arith.constant 0.000000e+00 : f32
    %21 = vector.broadcast %cst : f32 to vector<12x256xf32>
    %c0 = arith.constant 0 : index
    %c0_4 = arith.constant 0 : index
    %22 = vector.load %arg3[%c0, %c0_4] : memref<12x1xf32, #tpu.memory_space<vmem>>, vector<12x1xf32>
    %23 = vector.broadcast %22 : vector<12x1xf32> to vector<12x256xf32>
    %24 = arith.addf %21, %23 : vector<12x256xf32>
    %c0_5 = arith.constant 0 : index
    %c0_6 = arith.constant 0 : index
    %c0_7 = arith.constant 0 : index
    %25 = vector.load %arg1[%c0_5, %c0_6, %c0_7] : memref<1x8x290xf32, #tpu.memory_space<vmem>>, vector<1x8x290xf32>
    %26 = vector.shape_cast %25 : vector<1x8x290xf32> to vector<8x290xf32>
    %27 = vector.extract_strided_slice %26 {offsets = [0, 0], sizes = [8, 256], strides = [1, 1]} : vector<8x290xf32> to vector<8x256xf32>
    %cst_8 = arith.constant 0.000000e+00 : f32
    %28 = vector.shape_cast %18 : vector<1x256xi1> to vector<1x256xi1>
    %29 = vector.broadcast %28 : vector<1x256xi1> to vector<8x256xi1>
    %30 = vector.broadcast %cst_8 : f32 to vector<8x256xf32>
    %31 = arith.select %29, %27, %30 : vector<8x256xi1>, vector<8x256xf32>
    %32 = vector.extract_strided_slice %26 {offsets = [0, 1], sizes = [8, 256], strides = [1, 1]} : vector<8x290xf32> to vector<8x256xf32>
    %33 = vector.extract_strided_slice %26 {offsets = [0, 2], sizes = [8, 256], strides = [1, 1]} : vector<8x290xf32> to vector<8x256xf32>
    %cst_9 = arith.constant 0.000000e+00 : f32
    %34 = vector.shape_cast %20 : vector<1x256xi1> to vector<1x256xi1>
    %35 = vector.broadcast %34 : vector<1x256xi1> to vector<8x256xi1>
    %36 = vector.broadcast %cst_9 : f32 to vector<8x256xf32>
    %37 = arith.select %35, %33, %36 : vector<8x256xi1>, vector<8x256xf32>
    %38 = vector.extract_strided_slice %26 {offsets = [0, 16], sizes = [8, 256], strides = [1, 1]} : vector<8x290xf32> to vector<8x256xf32>
    %cst_10 = arith.constant 0.000000e+00 : f32
    %39 = vector.shape_cast %18 : vector<1x256xi1> to vector<1x256xi1>
    %40 = vector.broadcast %39 : vector<1x256xi1> to vector<8x256xi1>
    %41 = vector.broadcast %cst_10 : f32 to vector<8x256xf32>
    %42 = arith.select %40, %38, %41 : vector<8x256xi1>, vector<8x256xf32>
    %43 = vector.extract_strided_slice %26 {offsets = [0, 17], sizes = [8, 256], strides = [1, 1]} : vector<8x290xf32> to vector<8x256xf32>
    %44 = vector.extract_strided_slice %26 {offsets = [0, 18], sizes = [8, 256], strides = [1, 1]} : vector<8x290xf32> to vector<8x256xf32>
    %cst_11 = arith.constant 0.000000e+00 : f32
    %45 = vector.shape_cast %20 : vector<1x256xi1> to vector<1x256xi1>
    %46 = vector.broadcast %45 : vector<1x256xi1> to vector<8x256xi1>
    %47 = vector.broadcast %cst_11 : f32 to vector<8x256xf32>
    %48 = arith.select %46, %44, %47 : vector<8x256xi1>, vector<8x256xf32>
    %49 = vector.extract_strided_slice %26 {offsets = [0, 32], sizes = [8, 256], strides = [1, 1]} : vector<8x290xf32> to vector<8x256xf32>
    %cst_12 = arith.constant 0.000000e+00 : f32
    %50 = vector.shape_cast %18 : vector<1x256xi1> to vector<1x256xi1>
    %51 = vector.broadcast %50 : vector<1x256xi1> to vector<8x256xi1>
    %52 = vector.broadcast %cst_12 : f32 to vector<8x256xf32>
    %53 = arith.select %51, %49, %52 : vector<8x256xi1>, vector<8x256xf32>
    %54 = vector.extract_strided_slice %26 {offsets = [0, 33], sizes = [8, 256], strides = [1, 1]} : vector<8x290xf32> to vector<8x256xf32>
    %55 = vector.extract_strided_slice %26 {offsets = [0, 34], sizes = [8, 256], strides = [1, 1]} : vector<8x290xf32> to vector<8x256xf32>
    %cst_13 = arith.constant 0.000000e+00 : f32
    %56 = vector.shape_cast %20 : vector<1x256xi1> to vector<1x256xi1>
    %57 = vector.broadcast %56 : vector<1x256xi1> to vector<8x256xi1>
    %58 = vector.broadcast %cst_13 : f32 to vector<8x256xf32>
    %59 = arith.select %57, %55, %58 : vector<8x256xi1>, vector<8x256xf32>
    %60 = tpu.concatenate %31, %32, %37, %42, %43, %48, %53, %54, %59 in 0 : vector<8x256xf32>, vector<8x256xf32>, vector<8x256xf32>, vector<8x256xf32>, vector<8x256xf32>, vector<8x256xf32>, vector<8x256xf32>, vector<8x256xf32>, vector<8x256xf32> -> vector<72x256xf32>
    %61 = arith.truncf %60 : vector<72x256xf32> to vector<72x256xbf16>
    %c0_14 = arith.constant 0 : index
    %c0_15 = arith.constant 0 : index
    %62 = vector.load %arg2[%c0_14, %c0_15] : memref<12x72xbf16, #tpu.memory_space<vmem>>, vector<12x72xbf16>
    %cst_16 = arith.constant dense<0.000000e+00> : vector<12x256xf32>
    %63 = tpu.matmul %62, %61, %cst_16 {dimension_numbers = #tpu.dot_dimension_numbers<[1], [0], [0], [1], [0, 0, 1, 1], [], []>} : vector<12x72xbf16>, vector<72x256xbf16>, vector<12x256xf32> -> vector<12x256xf32>
    %64 = arith.addf %24, %63 : vector<12x256xf32>
    %c0_17 = arith.constant 0 : index
    %c0_18 = arith.constant 0 : index
    %65 = vector.load %arg4[%c0_17, %c0_18] : memref<12x12xbf16, #tpu.memory_space<vmem>>, vector<12x12xbf16>
    %66 = arith.truncf %64 : vector<12x256xf32> to vector<12x256xbf16>
    %cst_19 = arith.constant dense<0.000000e+00> : vector<12x256xf32>
    %67 = tpu.matmul %65, %66, %cst_19 {dimension_numbers = #tpu.dot_dimension_numbers<[1], [0], [0], [1], [0, 0, 1, 1], [], []>} : vector<12x12xbf16>, vector<12x256xbf16>, vector<12x256xf32> -> vector<12x256xf32>
    %c0_20 = arith.constant 0 : index
    %c0_21 = arith.constant 0 : index
    %68 = vector.load %arg5[%c0_20, %c0_21] : memref<12x1xf32, #tpu.memory_space<vmem>>, vector<12x1xf32>
    %69 = vector.broadcast %68 : vector<12x1xf32> to vector<12x256xf32>
    %70 = arith.addf %67, %69 : vector<12x256xf32>
    %cst_22 = arith.constant 0.000000e+00 : f32
    %71 = vector.broadcast %cst_22 : f32 to vector<12x256xf32>
    %72 = arith.maximumf %70, %71 : vector<12x256xf32>
    %c0_23 = arith.constant 0 : index
    %c0_24 = arith.constant 0 : index
    %c0_25 = arith.constant 0 : index
    %73 = vector.load %arg6[%c0_23, %c0_24, %c0_25] : memref<1x12x256xf32, #tpu.memory_space<vmem>>, vector<1x12x256xf32>
    %74 = vector.shape_cast %73 : vector<1x12x256xf32> to vector<12x256xf32>
    %75 = vector.shape_cast %72 : vector<12x256xf32> to vector<1x12x256xf32>
    tpu.vector_store %arg6[%c0_23, %c0_24, %c0_25], %75 {strides = array<i32>} : memref<1x12x256xf32, #tpu.memory_space<vmem>>, vector<1x12x256xf32>,
    %cst_26 = arith.constant dense<0.000000e+00> : vector<12xf32>
    %76 = vector.multi_reduction <add>, %72, %cst_26 [1] : vector<12x256xf32> to vector<12xf32>
    %77 = vector.shape_cast %76 : vector<12xf32> to vector<12x1xf32>
    %c0_27 = arith.constant 0 : index
    %c0_28 = arith.constant 0 : index
    %c0_29 = arith.constant 0 : index
    %78 = vector.load %arg7[%c0_27, %c0_28, %c0_29] : memref<1x12x1xf32, #tpu.memory_space<vmem>>, vector<1x12x1xf32>
    %79 = vector.shape_cast %78 : vector<1x12x1xf32> to vector<12x1xf32>
    %80 = vector.shape_cast %77 : vector<12x1xf32> to vector<1x12x1xf32>
    tpu.vector_store %arg7[%c0_27, %c0_28, %c0_29], %80 {strides = array<i32>} : memref<1x12x1xf32, #tpu.memory_space<vmem>>, vector<1x12x1xf32>,
    %81 = arith.mulf %72, %72 : vector<12x256xf32>
    %cst_30 = arith.constant dense<0.000000e+00> : vector<12xf32>
    %82 = vector.multi_reduction <add>, %81, %cst_30 [1] : vector<12x256xf32> to vector<12xf32>
    %83 = vector.shape_cast %82 : vector<12xf32> to vector<12x1xf32>
    %c0_31 = arith.constant 0 : index
    %c0_32 = arith.constant 0 : index
    %c0_33 = arith.constant 0 : index
    %84 = vector.load %arg8[%c0_31, %c0_32, %c0_33] : memref<1x12x1xf32, #tpu.memory_space<vmem>>, vector<1x12x1xf32>
    %85 = vector.shape_cast %84 : vector<1x12x1xf32> to vector<12x1xf32>
    %86 = vector.shape_cast %83 : vector<12x1xf32> to vector<1x12x1xf32>
    tpu.vector_store %arg8[%c0_31, %c0_32, %c0_33], %86 {strides = array<i32>} : memref<1x12x1xf32, #tpu.memory_space<vmem>>, vector<1x12x1xf32>,
    return
  }
  func.func @transform_0(%arg0: i32) -> (i32, i32, i32) {
    %c0_i32 = arith.constant 0 : i32
    %c0_i32_0 = arith.constant 0 : i32
    %c0_i32_1 = arith.constant 0 : i32
    return %arg0, %c0_i32, %c0_i32_0 : i32, i32, i32
  }
  func.func @transform_1(%arg0: i32) -> (i32, i32) {
    %c0_i32 = arith.constant 0 : i32
    %c0_i32_0 = arith.constant 0 : i32
    %c0_i32_1 = arith.constant 0 : i32
    return %c0_i32, %c0_i32_0 : i32, i32
  }
  func.func @transform_2(%arg0: i32) -> (i32, i32) {
    %c0_i32 = arith.constant 0 : i32
    %c0_i32_0 = arith.constant 0 : i32
    %c0_i32_1 = arith.constant 0 : i32
    return %c0_i32, %c0_i32_0 : i32, i32
  }
  func.func @transform_3(%arg0: i32) -> (i32, i32) {
    %c0_i32 = arith.constant 0 : i32
    %c0_i32_0 = arith.constant 0 : i32
    %c0_i32_1 = arith.constant 0 : i32
    return %c0_i32, %c0_i32_0 : i32, i32
  }
  func.func @transform_4(%arg0: i32) -> (i32, i32) {
    %c0_i32 = arith.constant 0 : i32
    %c0_i32_0 = arith.constant 0 : i32
    %c0_i32_1 = arith.constant 0 : i32
    return %c0_i32, %c0_i32_0 : i32, i32
  }
  func.func @transform_5(%arg0: i32) -> (i32, i32, i32) {
    %c0_i32 = arith.constant 0 : i32
    %c0_i32_0 = arith.constant 0 : i32
    %c0_i32_1 = arith.constant 0 : i32
    return %arg0, %c0_i32, %c0_i32_0 : i32, i32, i32
  }
  func.func @transform_6(%arg0: i32) -> (i32, i32, i32) {
    %c0_i32 = arith.constant 0 : i32
    %c0_i32_0 = arith.constant 0 : i32
    %c0_i32_1 = arith.constant 0 : i32
    return %arg0, %c0_i32, %c0_i32_0 : i32, i32, i32
  }
  func.func @transform_7(%arg0: i32) -> (i32, i32, i32) {
    %c0_i32 = arith.constant 0 : i32
    %c0_i32_0 = arith.constant 0 : i32
    %c0_i32_1 = arith.constant 0 : i32
    return %arg0, %c0_i32, %c0_i32_0 : i32, i32, i32
  }
}

module attributes {stable_mosaic.version = 11 : i64} {
  func.func @conv_block_kernel(%arg0: i32, %arg1: memref<1x12x82xf32, #tpu.memory_space<vmem>>, %arg2: memref<16x108xbf16, #tpu.memory_space<vmem>>, %arg3: memref<16x1xf32, #tpu.memory_space<vmem>>, %arg4: memref<16x16xbf16, #tpu.memory_space<vmem>>, %arg5: memref<16x1xf32, #tpu.memory_space<vmem>>, %arg6: memref<1x16x64xf32, #tpu.memory_space<vmem>>, %arg7: memref<1x16x1xf32, #tpu.memory_space<vmem>>, %arg8: memref<1x16x1xf32, #tpu.memory_space<vmem>>) attributes {dimension_semantics = [#tpu.dimension_semantics<parallel>], iteration_bounds = array<i64: 2>, scalar_prefetch = 0 : i64, scratch_operands = 0 : i64, tpu.core_type = #tpu.core_type<tc>, window_params = [{transform_indices = @transform_0, window_bounds = array<i64: 1, 12, 82>}, {pipeline_mode = #tpu.pipeline_mode<synchronous>, transform_indices = @transform_1, window_bounds = array<i64: 16, 108>}, {pipeline_mode = #tpu.pipeline_mode<synchronous>, transform_indices = @transform_2, window_bounds = array<i64: 16, 1>}, {pipeline_mode = #tpu.pipeline_mode<synchronous>, transform_indices = @transform_3, window_bounds = array<i64: 16, 16>}, {pipeline_mode = #tpu.pipeline_mode<synchronous>, transform_indices = @transform_4, window_bounds = array<i64: 16, 1>}, {transform_indices = @transform_5, window_bounds = array<i64: 1, 16, 64>}, {transform_indices = @transform_6, window_bounds = array<i64: 1, 16, 1>}, {transform_indices = @transform_7, window_bounds = array<i64: 1, 16, 1>}]} {
    %0 = tpu.iota {dimensions = array<i32: 1>} : vector<1x64xi32>
    %c8_i32 = arith.constant 8 : i32
    %c0_i32 = arith.constant 0 : i32
    %1 = arith.cmpi eq, %c8_i32, %c0_i32 : i32
    %c1_i32 = arith.constant 1 : i32
    %2 = arith.select %1, %c1_i32, %c8_i32 : i32
    %3 = vector.broadcast %2 : i32 to vector<1x64xi32>
    %4 = arith.remsi %0, %3 : vector<1x64xi32>
    %c0_i32_0 = arith.constant 0 : i32
    %5 = vector.broadcast %c0_i32_0 : i32 to vector<1x64xi32>
    %6 = arith.cmpi ne, %4, %5 : vector<1x64xi32>
    %c0_i32_1 = arith.constant 0 : i32
    %7 = vector.broadcast %c0_i32_1 : i32 to vector<1x64xi32>
    %8 = arith.cmpi slt, %4, %7 : vector<1x64xi32>
    %c0_i32_2 = arith.constant 0 : i32
    %9 = arith.cmpi slt, %2, %c0_i32_2 : i32
    %10 = vector.broadcast %9 : i1 to vector<1x64xi1>
    %11 = vector.broadcast %10 : vector<1x64xi1> to vector<1x64xi1>
    %12 = arith.xori %8, %11 : vector<1x64xi1>
    %13 = arith.andi %12, %6 : vector<1x64xi1>
    %14 = vector.broadcast %2 : i32 to vector<1x64xi32>
    %15 = arith.addi %4, %14 : vector<1x64xi32>
    %16 = arith.select %13, %15, %4 : vector<1x64xi1>, vector<1x64xi32>
    %c1_i32_3 = arith.constant 1 : i32
    %17 = vector.broadcast %c1_i32_3 : i32 to vector<1x64xi32>
    %18 = arith.cmpi sge, %16, %17 : vector<1x64xi32>
    %c6_i32 = arith.constant 6 : i32
    %19 = vector.broadcast %c6_i32 : i32 to vector<1x64xi32>
    %20 = arith.cmpi sle, %16, %19 : vector<1x64xi32>
    %cst = arith.constant 0.000000e+00 : f32
    %21 = vector.broadcast %cst : f32 to vector<16x64xf32>
    %c0 = arith.constant 0 : index
    %c0_4 = arith.constant 0 : index
    %22 = vector.load %arg3[%c0, %c0_4] : memref<16x1xf32, #tpu.memory_space<vmem>>, vector<16x1xf32>
    %23 = vector.broadcast %22 : vector<16x1xf32> to vector<16x64xf32>
    %24 = arith.addf %21, %23 : vector<16x64xf32>
    %c0_5 = arith.constant 0 : index
    %c0_6 = arith.constant 0 : index
    %c0_7 = arith.constant 0 : index
    %25 = vector.load %arg1[%c0_5, %c0_6, %c0_7] : memref<1x12x82xf32, #tpu.memory_space<vmem>>, vector<1x12x82xf32>
    %26 = vector.shape_cast %25 : vector<1x12x82xf32> to vector<12x82xf32>
    %27 = vector.extract_strided_slice %26 {offsets = [0, 0], sizes = [12, 64], strides = [1, 1]} : vector<12x82xf32> to vector<12x64xf32>
    %cst_8 = arith.constant 0.000000e+00 : f32
    %28 = vector.shape_cast %18 : vector<1x64xi1> to vector<1x64xi1>
    %29 = vector.broadcast %28 : vector<1x64xi1> to vector<12x64xi1>
    %30 = vector.broadcast %cst_8 : f32 to vector<12x64xf32>
    %31 = arith.select %29, %27, %30 : vector<12x64xi1>, vector<12x64xf32>
    %32 = vector.extract_strided_slice %26 {offsets = [0, 1], sizes = [12, 64], strides = [1, 1]} : vector<12x82xf32> to vector<12x64xf32>
    %33 = vector.extract_strided_slice %26 {offsets = [0, 2], sizes = [12, 64], strides = [1, 1]} : vector<12x82xf32> to vector<12x64xf32>
    %cst_9 = arith.constant 0.000000e+00 : f32
    %34 = vector.shape_cast %20 : vector<1x64xi1> to vector<1x64xi1>
    %35 = vector.broadcast %34 : vector<1x64xi1> to vector<12x64xi1>
    %36 = vector.broadcast %cst_9 : f32 to vector<12x64xf32>
    %37 = arith.select %35, %33, %36 : vector<12x64xi1>, vector<12x64xf32>
    %38 = vector.extract_strided_slice %26 {offsets = [0, 8], sizes = [12, 64], strides = [1, 1]} : vector<12x82xf32> to vector<12x64xf32>
    %cst_10 = arith.constant 0.000000e+00 : f32
    %39 = vector.shape_cast %18 : vector<1x64xi1> to vector<1x64xi1>
    %40 = vector.broadcast %39 : vector<1x64xi1> to vector<12x64xi1>
    %41 = vector.broadcast %cst_10 : f32 to vector<12x64xf32>
    %42 = arith.select %40, %38, %41 : vector<12x64xi1>, vector<12x64xf32>
    %43 = vector.extract_strided_slice %26 {offsets = [0, 9], sizes = [12, 64], strides = [1, 1]} : vector<12x82xf32> to vector<12x64xf32>
    %44 = vector.extract_strided_slice %26 {offsets = [0, 10], sizes = [12, 64], strides = [1, 1]} : vector<12x82xf32> to vector<12x64xf32>
    %cst_11 = arith.constant 0.000000e+00 : f32
    %45 = vector.shape_cast %20 : vector<1x64xi1> to vector<1x64xi1>
    %46 = vector.broadcast %45 : vector<1x64xi1> to vector<12x64xi1>
    %47 = vector.broadcast %cst_11 : f32 to vector<12x64xf32>
    %48 = arith.select %46, %44, %47 : vector<12x64xi1>, vector<12x64xf32>
    %49 = vector.extract_strided_slice %26 {offsets = [0, 16], sizes = [12, 64], strides = [1, 1]} : vector<12x82xf32> to vector<12x64xf32>
    %cst_12 = arith.constant 0.000000e+00 : f32
    %50 = vector.shape_cast %18 : vector<1x64xi1> to vector<1x64xi1>
    %51 = vector.broadcast %50 : vector<1x64xi1> to vector<12x64xi1>
    %52 = vector.broadcast %cst_12 : f32 to vector<12x64xf32>
    %53 = arith.select %51, %49, %52 : vector<12x64xi1>, vector<12x64xf32>
    %54 = vector.extract_strided_slice %26 {offsets = [0, 17], sizes = [12, 64], strides = [1, 1]} : vector<12x82xf32> to vector<12x64xf32>
    %55 = vector.extract_strided_slice %26 {offsets = [0, 18], sizes = [12, 64], strides = [1, 1]} : vector<12x82xf32> to vector<12x64xf32>
    %cst_13 = arith.constant 0.000000e+00 : f32
    %56 = vector.shape_cast %20 : vector<1x64xi1> to vector<1x64xi1>
    %57 = vector.broadcast %56 : vector<1x64xi1> to vector<12x64xi1>
    %58 = vector.broadcast %cst_13 : f32 to vector<12x64xf32>
    %59 = arith.select %57, %55, %58 : vector<12x64xi1>, vector<12x64xf32>
    %60 = tpu.concatenate %31, %32, %37, %42, %43, %48, %53, %54, %59 in 0 : vector<12x64xf32>, vector<12x64xf32>, vector<12x64xf32>, vector<12x64xf32>, vector<12x64xf32>, vector<12x64xf32>, vector<12x64xf32>, vector<12x64xf32>, vector<12x64xf32> -> vector<108x64xf32>
    %61 = arith.truncf %60 : vector<108x64xf32> to vector<108x64xbf16>
    %c0_14 = arith.constant 0 : index
    %c0_15 = arith.constant 0 : index
    %62 = vector.load %arg2[%c0_14, %c0_15] : memref<16x108xbf16, #tpu.memory_space<vmem>>, vector<16x108xbf16>
    %cst_16 = arith.constant dense<0.000000e+00> : vector<16x64xf32>
    %63 = tpu.matmul %62, %61, %cst_16 {dimension_numbers = #tpu.dot_dimension_numbers<[1], [0], [0], [1], [0, 0, 1, 1], [], []>} : vector<16x108xbf16>, vector<108x64xbf16>, vector<16x64xf32> -> vector<16x64xf32>
    %64 = arith.addf %24, %63 : vector<16x64xf32>
    %c0_17 = arith.constant 0 : index
    %c0_18 = arith.constant 0 : index
    %65 = vector.load %arg4[%c0_17, %c0_18] : memref<16x16xbf16, #tpu.memory_space<vmem>>, vector<16x16xbf16>
    %66 = arith.truncf %64 : vector<16x64xf32> to vector<16x64xbf16>
    %cst_19 = arith.constant dense<0.000000e+00> : vector<16x64xf32>
    %67 = tpu.matmul %65, %66, %cst_19 {dimension_numbers = #tpu.dot_dimension_numbers<[1], [0], [0], [1], [0, 0, 1, 1], [], []>} : vector<16x16xbf16>, vector<16x64xbf16>, vector<16x64xf32> -> vector<16x64xf32>
    %c0_20 = arith.constant 0 : index
    %c0_21 = arith.constant 0 : index
    %68 = vector.load %arg5[%c0_20, %c0_21] : memref<16x1xf32, #tpu.memory_space<vmem>>, vector<16x1xf32>
    %69 = vector.broadcast %68 : vector<16x1xf32> to vector<16x64xf32>
    %70 = arith.addf %67, %69 : vector<16x64xf32>
    %cst_22 = arith.constant 0.000000e+00 : f32
    %71 = vector.broadcast %cst_22 : f32 to vector<16x64xf32>
    %72 = arith.maximumf %70, %71 : vector<16x64xf32>
    %c0_23 = arith.constant 0 : index
    %c0_24 = arith.constant 0 : index
    %c0_25 = arith.constant 0 : index
    %73 = vector.load %arg6[%c0_23, %c0_24, %c0_25] : memref<1x16x64xf32, #tpu.memory_space<vmem>>, vector<1x16x64xf32>
    %74 = vector.shape_cast %73 : vector<1x16x64xf32> to vector<16x64xf32>
    %75 = vector.shape_cast %72 : vector<16x64xf32> to vector<1x16x64xf32>
    tpu.vector_store %arg6[%c0_23, %c0_24, %c0_25], %75 {strides = array<i32>} : memref<1x16x64xf32, #tpu.memory_space<vmem>>, vector<1x16x64xf32>,
    %cst_26 = arith.constant dense<0.000000e+00> : vector<16xf32>
    %76 = vector.multi_reduction <add>, %72, %cst_26 [1] : vector<16x64xf32> to vector<16xf32>
    %77 = vector.shape_cast %76 : vector<16xf32> to vector<16x1xf32>
    %c0_27 = arith.constant 0 : index
    %c0_28 = arith.constant 0 : index
    %c0_29 = arith.constant 0 : index
    %78 = vector.load %arg7[%c0_27, %c0_28, %c0_29] : memref<1x16x1xf32, #tpu.memory_space<vmem>>, vector<1x16x1xf32>
    %79 = vector.shape_cast %78 : vector<1x16x1xf32> to vector<16x1xf32>
    %80 = vector.shape_cast %77 : vector<16x1xf32> to vector<1x16x1xf32>
    tpu.vector_store %arg7[%c0_27, %c0_28, %c0_29], %80 {strides = array<i32>} : memref<1x16x1xf32, #tpu.memory_space<vmem>>, vector<1x16x1xf32>,
    %81 = arith.mulf %72, %72 : vector<16x64xf32>
    %cst_30 = arith.constant dense<0.000000e+00> : vector<16xf32>
    %82 = vector.multi_reduction <add>, %81, %cst_30 [1] : vector<16x64xf32> to vector<16xf32>
    %83 = vector.shape_cast %82 : vector<16xf32> to vector<16x1xf32>
    %c0_31 = arith.constant 0 : index
    %c0_32 = arith.constant 0 : index
    %c0_33 = arith.constant 0 : index
    %84 = vector.load %arg8[%c0_31, %c0_32, %c0_33] : memref<1x16x1xf32, #tpu.memory_space<vmem>>, vector<1x16x1xf32>
    %85 = vector.shape_cast %84 : vector<1x16x1xf32> to vector<16x1xf32>
    %86 = vector.shape_cast %83 : vector<16x1xf32> to vector<1x16x1xf32>
    tpu.vector_store %arg8[%c0_31, %c0_32, %c0_33], %86 {strides = array<i32>} : memref<1x16x1xf32, #tpu.memory_space<vmem>>, vector<1x16x1xf32>,
    return
  }
  func.func @transform_0(%arg0: i32) -> (i32, i32, i32) {
    %c0_i32 = arith.constant 0 : i32
    %c0_i32_0 = arith.constant 0 : i32
    %c0_i32_1 = arith.constant 0 : i32
    return %arg0, %c0_i32, %c0_i32_0 : i32, i32, i32
  }
  func.func @transform_1(%arg0: i32) -> (i32, i32) {
    %c0_i32 = arith.constant 0 : i32
    %c0_i32_0 = arith.constant 0 : i32
    %c0_i32_1 = arith.constant 0 : i32
    return %c0_i32, %c0_i32_0 : i32, i32
  }
  func.func @transform_2(%arg0: i32) -> (i32, i32) {
    %c0_i32 = arith.constant 0 : i32
    %c0_i32_0 = arith.constant 0 : i32
    %c0_i32_1 = arith.constant 0 : i32
    return %c0_i32, %c0_i32_0 : i32, i32
  }
  func.func @transform_3(%arg0: i32) -> (i32, i32) {
    %c0_i32 = arith.constant 0 : i32
    %c0_i32_0 = arith.constant 0 : i32
    %c0_i32_1 = arith.constant 0 : i32
    return %c0_i32, %c0_i32_0 : i32, i32
  }
  func.func @transform_4(%arg0: i32) -> (i32, i32) {
    %c0_i32 = arith.constant 0 : i32
    %c0_i32_0 = arith.constant 0 : i32
    %c0_i32_1 = arith.constant 0 : i32
    return %c0_i32, %c0_i32_0 : i32, i32
  }
  func.func @transform_5(%arg0: i32) -> (i32, i32, i32) {
    %c0_i32 = arith.constant 0 : i32
    %c0_i32_0 = arith.constant 0 : i32
    %c0_i32_1 = arith.constant 0 : i32
    return %arg0, %c0_i32, %c0_i32_0 : i32, i32, i32
  }
  func.func @transform_6(%arg0: i32) -> (i32, i32, i32) {
    %c0_i32 = arith.constant 0 : i32
    %c0_i32_0 = arith.constant 0 : i32
    %c0_i32_1 = arith.constant 0 : i32
    return %arg0, %c0_i32, %c0_i32_0 : i32, i32, i32
  }
  func.func @transform_7(%arg0: i32) -> (i32, i32, i32) {
    %c0_i32 = arith.constant 0 : i32
    %c0_i32_0 = arith.constant 0 : i32
    %c0_i32_1 = arith.constant 0 : i32
    return %arg0, %c0_i32, %c0_i32_0 : i32, i32, i32
  }
}

module attributes {stable_mosaic.version = 11 : i64} {
  func.func @conv_block_kernel(%arg0: i32, %arg1: memref<1x16x26xf32, #tpu.memory_space<vmem>>, %arg2: memref<20x144xbf16, #tpu.memory_space<vmem>>, %arg3: memref<20x1xf32, #tpu.memory_space<vmem>>, %arg4: memref<20x20xbf16, #tpu.memory_space<vmem>>, %arg5: memref<20x1xf32, #tpu.memory_space<vmem>>, %arg6: memref<1x20x16xf32, #tpu.memory_space<vmem>>, %arg7: memref<1x20x1xf32, #tpu.memory_space<vmem>>, %arg8: memref<1x20x1xf32, #tpu.memory_space<vmem>>) attributes {dimension_semantics = [#tpu.dimension_semantics<parallel>], iteration_bounds = array<i64: 2>, scalar_prefetch = 0 : i64, scratch_operands = 0 : i64, tpu.core_type = #tpu.core_type<tc>, window_params = [{transform_indices = @transform_0, window_bounds = array<i64: 1, 16, 26>}, {pipeline_mode = #tpu.pipeline_mode<synchronous>, transform_indices = @transform_1, window_bounds = array<i64: 20, 144>}, {pipeline_mode = #tpu.pipeline_mode<synchronous>, transform_indices = @transform_2, window_bounds = array<i64: 20, 1>}, {pipeline_mode = #tpu.pipeline_mode<synchronous>, transform_indices = @transform_3, window_bounds = array<i64: 20, 20>}, {pipeline_mode = #tpu.pipeline_mode<synchronous>, transform_indices = @transform_4, window_bounds = array<i64: 20, 1>}, {transform_indices = @transform_5, window_bounds = array<i64: 1, 20, 16>}, {transform_indices = @transform_6, window_bounds = array<i64: 1, 20, 1>}, {transform_indices = @transform_7, window_bounds = array<i64: 1, 20, 1>}]} {
    %0 = tpu.iota {dimensions = array<i32: 1>} : vector<1x16xi32>
    %c4_i32 = arith.constant 4 : i32
    %c0_i32 = arith.constant 0 : i32
    %1 = arith.cmpi eq, %c4_i32, %c0_i32 : i32
    %c1_i32 = arith.constant 1 : i32
    %2 = arith.select %1, %c1_i32, %c4_i32 : i32
    %3 = vector.broadcast %2 : i32 to vector<1x16xi32>
    %4 = arith.remsi %0, %3 : vector<1x16xi32>
    %c0_i32_0 = arith.constant 0 : i32
    %5 = vector.broadcast %c0_i32_0 : i32 to vector<1x16xi32>
    %6 = arith.cmpi ne, %4, %5 : vector<1x16xi32>
    %c0_i32_1 = arith.constant 0 : i32
    %7 = vector.broadcast %c0_i32_1 : i32 to vector<1x16xi32>
    %8 = arith.cmpi slt, %4, %7 : vector<1x16xi32>
    %c0_i32_2 = arith.constant 0 : i32
    %9 = arith.cmpi slt, %2, %c0_i32_2 : i32
    %10 = vector.broadcast %9 : i1 to vector<1x16xi1>
    %11 = vector.broadcast %10 : vector<1x16xi1> to vector<1x16xi1>
    %12 = arith.xori %8, %11 : vector<1x16xi1>
    %13 = arith.andi %12, %6 : vector<1x16xi1>
    %14 = vector.broadcast %2 : i32 to vector<1x16xi32>
    %15 = arith.addi %4, %14 : vector<1x16xi32>
    %16 = arith.select %13, %15, %4 : vector<1x16xi1>, vector<1x16xi32>
    %c1_i32_3 = arith.constant 1 : i32
    %17 = vector.broadcast %c1_i32_3 : i32 to vector<1x16xi32>
    %18 = arith.cmpi sge, %16, %17 : vector<1x16xi32>
    %c2_i32 = arith.constant 2 : i32
    %19 = vector.broadcast %c2_i32 : i32 to vector<1x16xi32>
    %20 = arith.cmpi sle, %16, %19 : vector<1x16xi32>
    %cst = arith.constant 0.000000e+00 : f32
    %21 = vector.broadcast %cst : f32 to vector<20x16xf32>
    %c0 = arith.constant 0 : index
    %c0_4 = arith.constant 0 : index
    %22 = vector.load %arg3[%c0, %c0_4] : memref<20x1xf32, #tpu.memory_space<vmem>>, vector<20x1xf32>
    %23 = vector.broadcast %22 : vector<20x1xf32> to vector<20x16xf32>
    %24 = arith.addf %21, %23 : vector<20x16xf32>
    %c0_5 = arith.constant 0 : index
    %c0_6 = arith.constant 0 : index
    %c0_7 = arith.constant 0 : index
    %25 = vector.load %arg1[%c0_5, %c0_6, %c0_7] : memref<1x16x26xf32, #tpu.memory_space<vmem>>, vector<1x16x26xf32>
    %26 = vector.shape_cast %25 : vector<1x16x26xf32> to vector<16x26xf32>
    %27 = vector.extract_strided_slice %26 {offsets = [0, 0], sizes = [16, 16], strides = [1, 1]} : vector<16x26xf32> to vector<16x16xf32>
    %cst_8 = arith.constant 0.000000e+00 : f32
    %28 = vector.shape_cast %18 : vector<1x16xi1> to vector<1x16xi1>
    %29 = vector.broadcast %28 : vector<1x16xi1> to vector<16x16xi1>
    %30 = vector.broadcast %cst_8 : f32 to vector<16x16xf32>
    %31 = arith.select %29, %27, %30 : vector<16x16xi1>, vector<16x16xf32>
    %32 = vector.extract_strided_slice %26 {offsets = [0, 1], sizes = [16, 16], strides = [1, 1]} : vector<16x26xf32> to vector<16x16xf32>
    %33 = vector.extract_strided_slice %26 {offsets = [0, 2], sizes = [16, 16], strides = [1, 1]} : vector<16x26xf32> to vector<16x16xf32>
    %cst_9 = arith.constant 0.000000e+00 : f32
    %34 = vector.shape_cast %20 : vector<1x16xi1> to vector<1x16xi1>
    %35 = vector.broadcast %34 : vector<1x16xi1> to vector<16x16xi1>
    %36 = vector.broadcast %cst_9 : f32 to vector<16x16xf32>
    %37 = arith.select %35, %33, %36 : vector<16x16xi1>, vector<16x16xf32>
    %38 = vector.extract_strided_slice %26 {offsets = [0, 4], sizes = [16, 16], strides = [1, 1]} : vector<16x26xf32> to vector<16x16xf32>
    %cst_10 = arith.constant 0.000000e+00 : f32
    %39 = vector.shape_cast %18 : vector<1x16xi1> to vector<1x16xi1>
    %40 = vector.broadcast %39 : vector<1x16xi1> to vector<16x16xi1>
    %41 = vector.broadcast %cst_10 : f32 to vector<16x16xf32>
    %42 = arith.select %40, %38, %41 : vector<16x16xi1>, vector<16x16xf32>
    %43 = vector.extract_strided_slice %26 {offsets = [0, 5], sizes = [16, 16], strides = [1, 1]} : vector<16x26xf32> to vector<16x16xf32>
    %44 = vector.extract_strided_slice %26 {offsets = [0, 6], sizes = [16, 16], strides = [1, 1]} : vector<16x26xf32> to vector<16x16xf32>
    %cst_11 = arith.constant 0.000000e+00 : f32
    %45 = vector.shape_cast %20 : vector<1x16xi1> to vector<1x16xi1>
    %46 = vector.broadcast %45 : vector<1x16xi1> to vector<16x16xi1>
    %47 = vector.broadcast %cst_11 : f32 to vector<16x16xf32>
    %48 = arith.select %46, %44, %47 : vector<16x16xi1>, vector<16x16xf32>
    %49 = vector.extract_strided_slice %26 {offsets = [0, 8], sizes = [16, 16], strides = [1, 1]} : vector<16x26xf32> to vector<16x16xf32>
    %cst_12 = arith.constant 0.000000e+00 : f32
    %50 = vector.shape_cast %18 : vector<1x16xi1> to vector<1x16xi1>
    %51 = vector.broadcast %50 : vector<1x16xi1> to vector<16x16xi1>
    %52 = vector.broadcast %cst_12 : f32 to vector<16x16xf32>
    %53 = arith.select %51, %49, %52 : vector<16x16xi1>, vector<16x16xf32>
    %54 = vector.extract_strided_slice %26 {offsets = [0, 9], sizes = [16, 16], strides = [1, 1]} : vector<16x26xf32> to vector<16x16xf32>
    %55 = vector.extract_strided_slice %26 {offsets = [0, 10], sizes = [16, 16], strides = [1, 1]} : vector<16x26xf32> to vector<16x16xf32>
    %cst_13 = arith.constant 0.000000e+00 : f32
    %56 = vector.shape_cast %20 : vector<1x16xi1> to vector<1x16xi1>
    %57 = vector.broadcast %56 : vector<1x16xi1> to vector<16x16xi1>
    %58 = vector.broadcast %cst_13 : f32 to vector<16x16xf32>
    %59 = arith.select %57, %55, %58 : vector<16x16xi1>, vector<16x16xf32>
    %60 = tpu.concatenate %31, %32, %37, %42, %43, %48, %53, %54, %59 in 0 : vector<16x16xf32>, vector<16x16xf32>, vector<16x16xf32>, vector<16x16xf32>, vector<16x16xf32>, vector<16x16xf32>, vector<16x16xf32>, vector<16x16xf32>, vector<16x16xf32> -> vector<144x16xf32>
    %61 = arith.truncf %60 : vector<144x16xf32> to vector<144x16xbf16>
    %c0_14 = arith.constant 0 : index
    %c0_15 = arith.constant 0 : index
    %62 = vector.load %arg2[%c0_14, %c0_15] : memref<20x144xbf16, #tpu.memory_space<vmem>>, vector<20x144xbf16>
    %cst_16 = arith.constant dense<0.000000e+00> : vector<20x16xf32>
    %63 = tpu.matmul %62, %61, %cst_16 {dimension_numbers = #tpu.dot_dimension_numbers<[1], [0], [0], [1], [0, 0, 1, 1], [], []>} : vector<20x144xbf16>, vector<144x16xbf16>, vector<20x16xf32> -> vector<20x16xf32>
    %64 = arith.addf %24, %63 : vector<20x16xf32>
    %c0_17 = arith.constant 0 : index
    %c0_18 = arith.constant 0 : index
    %65 = vector.load %arg4[%c0_17, %c0_18] : memref<20x20xbf16, #tpu.memory_space<vmem>>, vector<20x20xbf16>
    %66 = arith.truncf %64 : vector<20x16xf32> to vector<20x16xbf16>
    %cst_19 = arith.constant dense<0.000000e+00> : vector<20x16xf32>
    %67 = tpu.matmul %65, %66, %cst_19 {dimension_numbers = #tpu.dot_dimension_numbers<[1], [0], [0], [1], [0, 0, 1, 1], [], []>} : vector<20x20xbf16>, vector<20x16xbf16>, vector<20x16xf32> -> vector<20x16xf32>
    %c0_20 = arith.constant 0 : index
    %c0_21 = arith.constant 0 : index
    %68 = vector.load %arg5[%c0_20, %c0_21] : memref<20x1xf32, #tpu.memory_space<vmem>>, vector<20x1xf32>
    %69 = vector.broadcast %68 : vector<20x1xf32> to vector<20x16xf32>
    %70 = arith.addf %67, %69 : vector<20x16xf32>
    %cst_22 = arith.constant 0.000000e+00 : f32
    %71 = vector.broadcast %cst_22 : f32 to vector<20x16xf32>
    %72 = arith.maximumf %70, %71 : vector<20x16xf32>
    %c0_23 = arith.constant 0 : index
    %c0_24 = arith.constant 0 : index
    %c0_25 = arith.constant 0 : index
    %73 = vector.load %arg6[%c0_23, %c0_24, %c0_25] : memref<1x20x16xf32, #tpu.memory_space<vmem>>, vector<1x20x16xf32>
    %74 = vector.shape_cast %73 : vector<1x20x16xf32> to vector<20x16xf32>
    %75 = vector.shape_cast %72 : vector<20x16xf32> to vector<1x20x16xf32>
    tpu.vector_store %arg6[%c0_23, %c0_24, %c0_25], %75 {strides = array<i32>} : memref<1x20x16xf32, #tpu.memory_space<vmem>>, vector<1x20x16xf32>,
    %cst_26 = arith.constant dense<0.000000e+00> : vector<20xf32>
    %76 = vector.multi_reduction <add>, %72, %cst_26 [1] : vector<20x16xf32> to vector<20xf32>
    %77 = vector.shape_cast %76 : vector<20xf32> to vector<20x1xf32>
    %c0_27 = arith.constant 0 : index
    %c0_28 = arith.constant 0 : index
    %c0_29 = arith.constant 0 : index
    %78 = vector.load %arg7[%c0_27, %c0_28, %c0_29] : memref<1x20x1xf32, #tpu.memory_space<vmem>>, vector<1x20x1xf32>
    %79 = vector.shape_cast %78 : vector<1x20x1xf32> to vector<20x1xf32>
    %80 = vector.shape_cast %77 : vector<20x1xf32> to vector<1x20x1xf32>
    tpu.vector_store %arg7[%c0_27, %c0_28, %c0_29], %80 {strides = array<i32>} : memref<1x20x1xf32, #tpu.memory_space<vmem>>, vector<1x20x1xf32>,
    %81 = arith.mulf %72, %72 : vector<20x16xf32>
    %cst_30 = arith.constant dense<0.000000e+00> : vector<20xf32>
    %82 = vector.multi_reduction <add>, %81, %cst_30 [1] : vector<20x16xf32> to vector<20xf32>
    %83 = vector.shape_cast %82 : vector<20xf32> to vector<20x1xf32>
    %c0_31 = arith.constant 0 : index
    %c0_32 = arith.constant 0 : index
    %c0_33 = arith.constant 0 : index
    %84 = vector.load %arg8[%c0_31, %c0_32, %c0_33] : memref<1x20x1xf32, #tpu.memory_space<vmem>>, vector<1x20x1xf32>
    %85 = vector.shape_cast %84 : vector<1x20x1xf32> to vector<20x1xf32>
    %86 = vector.shape_cast %83 : vector<20x1xf32> to vector<1x20x1xf32>
    tpu.vector_store %arg8[%c0_31, %c0_32, %c0_33], %86 {strides = array<i32>} : memref<1x20x1xf32, #tpu.memory_space<vmem>>, vector<1x20x1xf32>,
    return
  }
  func.func @transform_0(%arg0: i32) -> (i32, i32, i32) {
    %c0_i32 = arith.constant 0 : i32
    %c0_i32_0 = arith.constant 0 : i32
    %c0_i32_1 = arith.constant 0 : i32
    return %arg0, %c0_i32, %c0_i32_0 : i32, i32, i32
  }
  func.func @transform_1(%arg0: i32) -> (i32, i32) {
    %c0_i32 = arith.constant 0 : i32
    %c0_i32_0 = arith.constant 0 : i32
    %c0_i32_1 = arith.constant 0 : i32
    return %c0_i32, %c0_i32_0 : i32, i32
  }
  func.func @transform_2(%arg0: i32) -> (i32, i32) {
    %c0_i32 = arith.constant 0 : i32
    %c0_i32_0 = arith.constant 0 : i32
    %c0_i32_1 = arith.constant 0 : i32
    return %c0_i32, %c0_i32_0 : i32, i32
  }
  func.func @transform_3(%arg0: i32) -> (i32, i32) {
    %c0_i32 = arith.constant 0 : i32
    %c0_i32_0 = arith.constant 0 : i32
    %c0_i32_1 = arith.constant 0 : i32
    return %c0_i32, %c0_i32_0 : i32, i32
  }
  func.func @transform_4(%arg0: i32) -> (i32, i32) {
    %c0_i32 = arith.constant 0 : i32
    %c0_i32_0 = arith.constant 0 : i32
    %c0_i32_1 = arith.constant 0 : i32
    return %c0_i32, %c0_i32_0 : i32, i32
  }
  func.func @transform_5(%arg0: i32) -> (i32, i32, i32) {
    %c0_i32 = arith.constant 0 : i32
    %c0_i32_0 = arith.constant 0 : i32
    %c0_i32_1 = arith.constant 0 : i32
    return %arg0, %c0_i32, %c0_i32_0 : i32, i32, i32
  }
  func.func @transform_6(%arg0: i32) -> (i32, i32, i32) {
    %c0_i32 = arith.constant 0 : i32
    %c0_i32_0 = arith.constant 0 : i32
    %c0_i32_1 = arith.constant 0 : i32
    return %arg0, %c0_i32, %c0_i32_0 : i32, i32, i32
  }
  func.func @transform_7(%arg0: i32) -> (i32, i32, i32) {
    %c0_i32 = arith.constant 0 : i32
    %c0_i32_0 = arith.constant 0 : i32
    %c0_i32_1 = arith.constant 0 : i32
    return %arg0, %c0_i32, %c0_i32_0 : i32, i32, i32
  }
}

module attributes {stable_mosaic.version = 11 : i64} {
  func.func @conv_block_kernel(%arg0: i32, %arg1: memref<1x20x10xf32, #tpu.memory_space<vmem>>, %arg2: memref<20x180xbf16, #tpu.memory_space<vmem>>, %arg3: memref<20x1xf32, #tpu.memory_space<vmem>>, %arg4: memref<20x20xbf16, #tpu.memory_space<vmem>>, %arg5: memref<20x1xf32, #tpu.memory_space<vmem>>, %arg6: memref<1x20x4xf32, #tpu.memory_space<vmem>>, %arg7: memref<1x20x1xf32, #tpu.memory_space<vmem>>, %arg8: memref<1x20x1xf32, #tpu.memory_space<vmem>>) attributes {dimension_semantics = [#tpu.dimension_semantics<parallel>], iteration_bounds = array<i64: 2>, scalar_prefetch = 0 : i64, scratch_operands = 0 : i64, tpu.core_type = #tpu.core_type<tc>, window_params = [{transform_indices = @transform_0, window_bounds = array<i64: 1, 20, 10>}, {pipeline_mode = #tpu.pipeline_mode<synchronous>, transform_indices = @transform_1, window_bounds = array<i64: 20, 180>}, {pipeline_mode = #tpu.pipeline_mode<synchronous>, transform_indices = @transform_2, window_bounds = array<i64: 20, 1>}, {pipeline_mode = #tpu.pipeline_mode<synchronous>, transform_indices = @transform_3, window_bounds = array<i64: 20, 20>}, {pipeline_mode = #tpu.pipeline_mode<synchronous>, transform_indices = @transform_4, window_bounds = array<i64: 20, 1>}, {transform_indices = @transform_5, window_bounds = array<i64: 1, 20, 4>}, {transform_indices = @transform_6, window_bounds = array<i64: 1, 20, 1>}, {transform_indices = @transform_7, window_bounds = array<i64: 1, 20, 1>}]} {
    %0 = tpu.iota {dimensions = array<i32: 1>} : vector<1x4xi32>
    %c2_i32 = arith.constant 2 : i32
    %c0_i32 = arith.constant 0 : i32
    %1 = arith.cmpi eq, %c2_i32, %c0_i32 : i32
    %c1_i32 = arith.constant 1 : i32
    %2 = arith.select %1, %c1_i32, %c2_i32 : i32
    %3 = vector.broadcast %2 : i32 to vector<1x4xi32>
    %4 = arith.remsi %0, %3 : vector<1x4xi32>
    %c0_i32_0 = arith.constant 0 : i32
    %5 = vector.broadcast %c0_i32_0 : i32 to vector<1x4xi32>
    %6 = arith.cmpi ne, %4, %5 : vector<1x4xi32>
    %c0_i32_1 = arith.constant 0 : i32
    %7 = vector.broadcast %c0_i32_1 : i32 to vector<1x4xi32>
    %8 = arith.cmpi slt, %4, %7 : vector<1x4xi32>
    %c0_i32_2 = arith.constant 0 : i32
    %9 = arith.cmpi slt, %2, %c0_i32_2 : i32
    %10 = vector.broadcast %9 : i1 to vector<1x4xi1>
    %11 = vector.broadcast %10 : vector<1x4xi1> to vector<1x4xi1>
    %12 = arith.xori %8, %11 : vector<1x4xi1>
    %13 = arith.andi %12, %6 : vector<1x4xi1>
    %14 = vector.broadcast %2 : i32 to vector<1x4xi32>
    %15 = arith.addi %4, %14 : vector<1x4xi32>
    %16 = arith.select %13, %15, %4 : vector<1x4xi1>, vector<1x4xi32>
    %c1_i32_3 = arith.constant 1 : i32
    %17 = vector.broadcast %c1_i32_3 : i32 to vector<1x4xi32>
    %18 = arith.cmpi sge, %16, %17 : vector<1x4xi32>
    %c0_i32_4 = arith.constant 0 : i32
    %19 = vector.broadcast %c0_i32_4 : i32 to vector<1x4xi32>
    %20 = arith.cmpi sle, %16, %19 : vector<1x4xi32>
    %cst = arith.constant 0.000000e+00 : f32
    %21 = vector.broadcast %cst : f32 to vector<20x4xf32>
    %c0 = arith.constant 0 : index
    %c0_5 = arith.constant 0 : index
    %22 = vector.load %arg3[%c0, %c0_5] : memref<20x1xf32, #tpu.memory_space<vmem>>, vector<20x1xf32>
    %23 = vector.broadcast %22 : vector<20x1xf32> to vector<20x4xf32>
    %24 = arith.addf %21, %23 : vector<20x4xf32>
    %c0_6 = arith.constant 0 : index
    %c0_7 = arith.constant 0 : index
    %c0_8 = arith.constant 0 : index
    %25 = vector.load %arg1[%c0_6, %c0_7, %c0_8] : memref<1x20x10xf32, #tpu.memory_space<vmem>>, vector<1x20x10xf32>
    %26 = vector.shape_cast %25 : vector<1x20x10xf32> to vector<20x10xf32>
    %27 = vector.extract_strided_slice %26 {offsets = [0, 0], sizes = [20, 4], strides = [1, 1]} : vector<20x10xf32> to vector<20x4xf32>
    %cst_9 = arith.constant 0.000000e+00 : f32
    %28 = vector.shape_cast %18 : vector<1x4xi1> to vector<1x4xi1>
    %29 = vector.broadcast %28 : vector<1x4xi1> to vector<20x4xi1>
    %30 = vector.broadcast %cst_9 : f32 to vector<20x4xf32>
    %31 = arith.select %29, %27, %30 : vector<20x4xi1>, vector<20x4xf32>
    %32 = vector.extract_strided_slice %26 {offsets = [0, 1], sizes = [20, 4], strides = [1, 1]} : vector<20x10xf32> to vector<20x4xf32>
    %33 = vector.extract_strided_slice %26 {offsets = [0, 2], sizes = [20, 4], strides = [1, 1]} : vector<20x10xf32> to vector<20x4xf32>
    %cst_10 = arith.constant 0.000000e+00 : f32
    %34 = vector.shape_cast %20 : vector<1x4xi1> to vector<1x4xi1>
    %35 = vector.broadcast %34 : vector<1x4xi1> to vector<20x4xi1>
    %36 = vector.broadcast %cst_10 : f32 to vector<20x4xf32>
    %37 = arith.select %35, %33, %36 : vector<20x4xi1>, vector<20x4xf32>
    %38 = vector.extract_strided_slice %26 {offsets = [0, 2], sizes = [20, 4], strides = [1, 1]} : vector<20x10xf32> to vector<20x4xf32>
    %cst_11 = arith.constant 0.000000e+00 : f32
    %39 = vector.shape_cast %18 : vector<1x4xi1> to vector<1x4xi1>
    %40 = vector.broadcast %39 : vector<1x4xi1> to vector<20x4xi1>
    %41 = vector.broadcast %cst_11 : f32 to vector<20x4xf32>
    %42 = arith.select %40, %38, %41 : vector<20x4xi1>, vector<20x4xf32>
    %43 = vector.extract_strided_slice %26 {offsets = [0, 3], sizes = [20, 4], strides = [1, 1]} : vector<20x10xf32> to vector<20x4xf32>
    %44 = vector.extract_strided_slice %26 {offsets = [0, 4], sizes = [20, 4], strides = [1, 1]} : vector<20x10xf32> to vector<20x4xf32>
    %cst_12 = arith.constant 0.000000e+00 : f32
    %45 = vector.shape_cast %20 : vector<1x4xi1> to vector<1x4xi1>
    %46 = vector.broadcast %45 : vector<1x4xi1> to vector<20x4xi1>
    %47 = vector.broadcast %cst_12 : f32 to vector<20x4xf32>
    %48 = arith.select %46, %44, %47 : vector<20x4xi1>, vector<20x4xf32>
    %49 = vector.extract_strided_slice %26 {offsets = [0, 4], sizes = [20, 4], strides = [1, 1]} : vector<20x10xf32> to vector<20x4xf32>
    %cst_13 = arith.constant 0.000000e+00 : f32
    %50 = vector.shape_cast %18 : vector<1x4xi1> to vector<1x4xi1>
    %51 = vector.broadcast %50 : vector<1x4xi1> to vector<20x4xi1>
    %52 = vector.broadcast %cst_13 : f32 to vector<20x4xf32>
    %53 = arith.select %51, %49, %52 : vector<20x4xi1>, vector<20x4xf32>
    %54 = vector.extract_strided_slice %26 {offsets = [0, 5], sizes = [20, 4], strides = [1, 1]} : vector<20x10xf32> to vector<20x4xf32>
    %55 = vector.extract_strided_slice %26 {offsets = [0, 6], sizes = [20, 4], strides = [1, 1]} : vector<20x10xf32> to vector<20x4xf32>
    %cst_14 = arith.constant 0.000000e+00 : f32
    %56 = vector.shape_cast %20 : vector<1x4xi1> to vector<1x4xi1>
    %57 = vector.broadcast %56 : vector<1x4xi1> to vector<20x4xi1>
    %58 = vector.broadcast %cst_14 : f32 to vector<20x4xf32>
    %59 = arith.select %57, %55, %58 : vector<20x4xi1>, vector<20x4xf32>
    %60 = tpu.concatenate %31, %32, %37, %42, %43, %48, %53, %54, %59 in 0 : vector<20x4xf32>, vector<20x4xf32>, vector<20x4xf32>, vector<20x4xf32>, vector<20x4xf32>, vector<20x4xf32>, vector<20x4xf32>, vector<20x4xf32>, vector<20x4xf32> -> vector<180x4xf32>
    %61 = arith.truncf %60 : vector<180x4xf32> to vector<180x4xbf16>
    %c0_15 = arith.constant 0 : index
    %c0_16 = arith.constant 0 : index
    %62 = vector.load %arg2[%c0_15, %c0_16] : memref<20x180xbf16, #tpu.memory_space<vmem>>, vector<20x180xbf16>
    %cst_17 = arith.constant dense<0.000000e+00> : vector<20x4xf32>
    %63 = tpu.matmul %62, %61, %cst_17 {dimension_numbers = #tpu.dot_dimension_numbers<[1], [0], [0], [1], [0, 0, 1, 1], [], []>} : vector<20x180xbf16>, vector<180x4xbf16>, vector<20x4xf32> -> vector<20x4xf32>
    %64 = arith.addf %24, %63 : vector<20x4xf32>
    %c0_18 = arith.constant 0 : index
    %c0_19 = arith.constant 0 : index
    %65 = vector.load %arg4[%c0_18, %c0_19] : memref<20x20xbf16, #tpu.memory_space<vmem>>, vector<20x20xbf16>
    %66 = arith.truncf %64 : vector<20x4xf32> to vector<20x4xbf16>
    %cst_20 = arith.constant dense<0.000000e+00> : vector<20x4xf32>
    %67 = tpu.matmul %65, %66, %cst_20 {dimension_numbers = #tpu.dot_dimension_numbers<[1], [0], [0], [1], [0, 0, 1, 1], [], []>} : vector<20x20xbf16>, vector<20x4xbf16>, vector<20x4xf32> -> vector<20x4xf32>
    %c0_21 = arith.constant 0 : index
    %c0_22 = arith.constant 0 : index
    %68 = vector.load %arg5[%c0_21, %c0_22] : memref<20x1xf32, #tpu.memory_space<vmem>>, vector<20x1xf32>
    %69 = vector.broadcast %68 : vector<20x1xf32> to vector<20x4xf32>
    %70 = arith.addf %67, %69 : vector<20x4xf32>
    %c0_23 = arith.constant 0 : index
    %c0_24 = arith.constant 0 : index
    %c0_25 = arith.constant 0 : index
    %71 = vector.load %arg6[%c0_23, %c0_24, %c0_25] : memref<1x20x4xf32, #tpu.memory_space<vmem>>, vector<1x20x4xf32>
    %72 = vector.shape_cast %71 : vector<1x20x4xf32> to vector<20x4xf32>
    %73 = vector.shape_cast %70 : vector<20x4xf32> to vector<1x20x4xf32>
    tpu.vector_store %arg6[%c0_23, %c0_24, %c0_25], %73 {strides = array<i32>} : memref<1x20x4xf32, #tpu.memory_space<vmem>>, vector<1x20x4xf32>,
    %cst_26 = arith.constant dense<0.000000e+00> : vector<20xf32>
    %74 = vector.multi_reduction <add>, %70, %cst_26 [1] : vector<20x4xf32> to vector<20xf32>
    %75 = vector.shape_cast %74 : vector<20xf32> to vector<20x1xf32>
    %c0_27 = arith.constant 0 : index
    %c0_28 = arith.constant 0 : index
    %c0_29 = arith.constant 0 : index
    %76 = vector.load %arg7[%c0_27, %c0_28, %c0_29] : memref<1x20x1xf32, #tpu.memory_space<vmem>>, vector<1x20x1xf32>
    %77 = vector.shape_cast %76 : vector<1x20x1xf32> to vector<20x1xf32>
    %78 = vector.shape_cast %75 : vector<20x1xf32> to vector<1x20x1xf32>
    tpu.vector_store %arg7[%c0_27, %c0_28, %c0_29], %78 {strides = array<i32>} : memref<1x20x1xf32, #tpu.memory_space<vmem>>, vector<1x20x1xf32>,
    %79 = arith.mulf %70, %70 : vector<20x4xf32>
    %cst_30 = arith.constant dense<0.000000e+00> : vector<20xf32>
    %80 = vector.multi_reduction <add>, %79, %cst_30 [1] : vector<20x4xf32> to vector<20xf32>
    %81 = vector.shape_cast %80 : vector<20xf32> to vector<20x1xf32>
    %c0_31 = arith.constant 0 : index
    %c0_32 = arith.constant 0 : index
    %c0_33 = arith.constant 0 : index
    %82 = vector.load %arg8[%c0_31, %c0_32, %c0_33] : memref<1x20x1xf32, #tpu.memory_space<vmem>>, vector<1x20x1xf32>
    %83 = vector.shape_cast %82 : vector<1x20x1xf32> to vector<20x1xf32>
    %84 = vector.shape_cast %81 : vector<20x1xf32> to vector<1x20x1xf32>
    tpu.vector_store %arg8[%c0_31, %c0_32, %c0_33], %84 {strides = array<i32>} : memref<1x20x1xf32, #tpu.memory_space<vmem>>, vector<1x20x1xf32>,
    return
  }
  func.func @transform_0(%arg0: i32) -> (i32, i32, i32) {
    %c0_i32 = arith.constant 0 : i32
    %c0_i32_0 = arith.constant 0 : i32
    %c0_i32_1 = arith.constant 0 : i32
    return %arg0, %c0_i32, %c0_i32_0 : i32, i32, i32
  }
  func.func @transform_1(%arg0: i32) -> (i32, i32) {
    %c0_i32 = arith.constant 0 : i32
    %c0_i32_0 = arith.constant 0 : i32
    %c0_i32_1 = arith.constant 0 : i32
    return %c0_i32, %c0_i32_0 : i32, i32
  }
  func.func @transform_2(%arg0: i32) -> (i32, i32) {
    %c0_i32 = arith.constant 0 : i32
    %c0_i32_0 = arith.constant 0 : i32
    %c0_i32_1 = arith.constant 0 : i32
    return %c0_i32, %c0_i32_0 : i32, i32
  }
  func.func @transform_3(%arg0: i32) -> (i32, i32) {
    %c0_i32 = arith.constant 0 : i32
    %c0_i32_0 = arith.constant 0 : i32
    %c0_i32_1 = arith.constant 0 : i32
    return %c0_i32, %c0_i32_0 : i32, i32
  }
  func.func @transform_4(%arg0: i32) -> (i32, i32) {
    %c0_i32 = arith.constant 0 : i32
    %c0_i32_0 = arith.constant 0 : i32
    %c0_i32_1 = arith.constant 0 : i32
    return %c0_i32, %c0_i32_0 : i32, i32
  }
  func.func @transform_5(%arg0: i32) -> (i32, i32, i32) {
    %c0_i32 = arith.constant 0 : i32
    %c0_i32_0 = arith.constant 0 : i32
    %c0_i32_1 = arith.constant 0 : i32
    return %arg0, %c0_i32, %c0_i32_0 : i32, i32, i32
  }
  func.func @transform_6(%arg0: i32) -> (i32, i32, i32) {
    %c0_i32 = arith.constant 0 : i32
    %c0_i32_0 = arith.constant 0 : i32
    %c0_i32_1 = arith.constant 0 : i32
    return %arg0, %c0_i32, %c0_i32_0 : i32, i32, i32
  }
  func.func @transform_7(%arg0: i32) -> (i32, i32, i32) {
    %c0_i32 = arith.constant 0 : i32
    %c0_i32_0 = arith.constant 0 : i32
    %c0_i32_1 = arith.constant 0 : i32
    return %arg0, %c0_i32, %c0_i32_0 : i32, i32, i32
  }
}

module attributes {stable_mosaic.version = 11 : i64} {
  func.func @conv_block_kernel(%arg0: i32, %arg1: memref<1x20x26xf32, #tpu.memory_space<vmem>>, %arg2: memref<1x20x26xf32, #tpu.memory_space<vmem>>, %arg3: memref<16x180xbf16, #tpu.memory_space<vmem>>, %arg4: memref<16x180xbf16, #tpu.memory_space<vmem>>, %arg5: memref<16x1xf32, #tpu.memory_space<vmem>>, %arg6: memref<16x16xbf16, #tpu.memory_space<vmem>>, %arg7: memref<16x1xf32, #tpu.memory_space<vmem>>, %arg8: memref<1x16x16xf32, #tpu.memory_space<vmem>>, %arg9: memref<1x16x1xf32, #tpu.memory_space<vmem>>, %arg10: memref<1x16x1xf32, #tpu.memory_space<vmem>>) attributes {dimension_semantics = [#tpu.dimension_semantics<parallel>], iteration_bounds = array<i64: 2>, scalar_prefetch = 0 : i64, scratch_operands = 0 : i64, tpu.core_type = #tpu.core_type<tc>, window_params = [{transform_indices = @transform_0, window_bounds = array<i64: 1, 20, 26>}, {transform_indices = @transform_1, window_bounds = array<i64: 1, 20, 26>}, {pipeline_mode = #tpu.pipeline_mode<synchronous>, transform_indices = @transform_2, window_bounds = array<i64: 16, 180>}, {pipeline_mode = #tpu.pipeline_mode<synchronous>, transform_indices = @transform_3, window_bounds = array<i64: 16, 180>}, {pipeline_mode = #tpu.pipeline_mode<synchronous>, transform_indices = @transform_4, window_bounds = array<i64: 16, 1>}, {pipeline_mode = #tpu.pipeline_mode<synchronous>, transform_indices = @transform_5, window_bounds = array<i64: 16, 16>}, {pipeline_mode = #tpu.pipeline_mode<synchronous>, transform_indices = @transform_6, window_bounds = array<i64: 16, 1>}, {transform_indices = @transform_7, window_bounds = array<i64: 1, 16, 16>}, {transform_indices = @transform_8, window_bounds = array<i64: 1, 16, 1>}, {transform_indices = @transform_9, window_bounds = array<i64: 1, 16, 1>}]} {
    %0 = tpu.iota {dimensions = array<i32: 1>} : vector<1x16xi32>
    %c4_i32 = arith.constant 4 : i32
    %c0_i32 = arith.constant 0 : i32
    %1 = arith.cmpi eq, %c4_i32, %c0_i32 : i32
    %c1_i32 = arith.constant 1 : i32
    %2 = arith.select %1, %c1_i32, %c4_i32 : i32
    %3 = vector.broadcast %2 : i32 to vector<1x16xi32>
    %4 = arith.remsi %0, %3 : vector<1x16xi32>
    %c0_i32_0 = arith.constant 0 : i32
    %5 = vector.broadcast %c0_i32_0 : i32 to vector<1x16xi32>
    %6 = arith.cmpi ne, %4, %5 : vector<1x16xi32>
    %c0_i32_1 = arith.constant 0 : i32
    %7 = vector.broadcast %c0_i32_1 : i32 to vector<1x16xi32>
    %8 = arith.cmpi slt, %4, %7 : vector<1x16xi32>
    %c0_i32_2 = arith.constant 0 : i32
    %9 = arith.cmpi slt, %2, %c0_i32_2 : i32
    %10 = vector.broadcast %9 : i1 to vector<1x16xi1>
    %11 = vector.broadcast %10 : vector<1x16xi1> to vector<1x16xi1>
    %12 = arith.xori %8, %11 : vector<1x16xi1>
    %13 = arith.andi %12, %6 : vector<1x16xi1>
    %14 = vector.broadcast %2 : i32 to vector<1x16xi32>
    %15 = arith.addi %4, %14 : vector<1x16xi32>
    %16 = arith.select %13, %15, %4 : vector<1x16xi1>, vector<1x16xi32>
    %c1_i32_3 = arith.constant 1 : i32
    %17 = vector.broadcast %c1_i32_3 : i32 to vector<1x16xi32>
    %18 = arith.cmpi sge, %16, %17 : vector<1x16xi32>
    %c2_i32 = arith.constant 2 : i32
    %19 = vector.broadcast %c2_i32 : i32 to vector<1x16xi32>
    %20 = arith.cmpi sle, %16, %19 : vector<1x16xi32>
    %cst = arith.constant 0.000000e+00 : f32
    %21 = vector.broadcast %cst : f32 to vector<16x16xf32>
    %c0 = arith.constant 0 : index
    %c0_4 = arith.constant 0 : index
    %22 = vector.load %arg5[%c0, %c0_4] : memref<16x1xf32, #tpu.memory_space<vmem>>, vector<16x1xf32>
    %23 = vector.broadcast %22 : vector<16x1xf32> to vector<16x16xf32>
    %24 = arith.addf %21, %23 : vector<16x16xf32>
    %c0_5 = arith.constant 0 : index
    %c0_6 = arith.constant 0 : index
    %c0_7 = arith.constant 0 : index
    %25 = vector.load %arg1[%c0_5, %c0_6, %c0_7] : memref<1x20x26xf32, #tpu.memory_space<vmem>>, vector<1x20x26xf32>
    %26 = vector.shape_cast %25 : vector<1x20x26xf32> to vector<20x26xf32>
    %27 = vector.extract_strided_slice %26 {offsets = [0, 0], sizes = [20, 16], strides = [1, 1]} : vector<20x26xf32> to vector<20x16xf32>
    %cst_8 = arith.constant 0.000000e+00 : f32
    %28 = vector.shape_cast %18 : vector<1x16xi1> to vector<1x16xi1>
    %29 = vector.broadcast %28 : vector<1x16xi1> to vector<20x16xi1>
    %30 = vector.broadcast %cst_8 : f32 to vector<20x16xf32>
    %31 = arith.select %29, %27, %30 : vector<20x16xi1>, vector<20x16xf32>
    %32 = vector.extract_strided_slice %26 {offsets = [0, 1], sizes = [20, 16], strides = [1, 1]} : vector<20x26xf32> to vector<20x16xf32>
    %33 = vector.extract_strided_slice %26 {offsets = [0, 2], sizes = [20, 16], strides = [1, 1]} : vector<20x26xf32> to vector<20x16xf32>
    %cst_9 = arith.constant 0.000000e+00 : f32
    %34 = vector.shape_cast %20 : vector<1x16xi1> to vector<1x16xi1>
    %35 = vector.broadcast %34 : vector<1x16xi1> to vector<20x16xi1>
    %36 = vector.broadcast %cst_9 : f32 to vector<20x16xf32>
    %37 = arith.select %35, %33, %36 : vector<20x16xi1>, vector<20x16xf32>
    %38 = vector.extract_strided_slice %26 {offsets = [0, 4], sizes = [20, 16], strides = [1, 1]} : vector<20x26xf32> to vector<20x16xf32>
    %cst_10 = arith.constant 0.000000e+00 : f32
    %39 = vector.shape_cast %18 : vector<1x16xi1> to vector<1x16xi1>
    %40 = vector.broadcast %39 : vector<1x16xi1> to vector<20x16xi1>
    %41 = vector.broadcast %cst_10 : f32 to vector<20x16xf32>
    %42 = arith.select %40, %38, %41 : vector<20x16xi1>, vector<20x16xf32>
    %43 = vector.extract_strided_slice %26 {offsets = [0, 5], sizes = [20, 16], strides = [1, 1]} : vector<20x26xf32> to vector<20x16xf32>
    %44 = vector.extract_strided_slice %26 {offsets = [0, 6], sizes = [20, 16], strides = [1, 1]} : vector<20x26xf32> to vector<20x16xf32>
    %cst_11 = arith.constant 0.000000e+00 : f32
    %45 = vector.shape_cast %20 : vector<1x16xi1> to vector<1x16xi1>
    %46 = vector.broadcast %45 : vector<1x16xi1> to vector<20x16xi1>
    %47 = vector.broadcast %cst_11 : f32 to vector<20x16xf32>
    %48 = arith.select %46, %44, %47 : vector<20x16xi1>, vector<20x16xf32>
    %49 = vector.extract_strided_slice %26 {offsets = [0, 8], sizes = [20, 16], strides = [1, 1]} : vector<20x26xf32> to vector<20x16xf32>
    %cst_12 = arith.constant 0.000000e+00 : f32
    %50 = vector.shape_cast %18 : vector<1x16xi1> to vector<1x16xi1>
    %51 = vector.broadcast %50 : vector<1x16xi1> to vector<20x16xi1>
    %52 = vector.broadcast %cst_12 : f32 to vector<20x16xf32>
    %53 = arith.select %51, %49, %52 : vector<20x16xi1>, vector<20x16xf32>
    %54 = vector.extract_strided_slice %26 {offsets = [0, 9], sizes = [20, 16], strides = [1, 1]} : vector<20x26xf32> to vector<20x16xf32>
    %55 = vector.extract_strided_slice %26 {offsets = [0, 10], sizes = [20, 16], strides = [1, 1]} : vector<20x26xf32> to vector<20x16xf32>
    %cst_13 = arith.constant 0.000000e+00 : f32
    %56 = vector.shape_cast %20 : vector<1x16xi1> to vector<1x16xi1>
    %57 = vector.broadcast %56 : vector<1x16xi1> to vector<20x16xi1>
    %58 = vector.broadcast %cst_13 : f32 to vector<20x16xf32>
    %59 = arith.select %57, %55, %58 : vector<20x16xi1>, vector<20x16xf32>
    %60 = tpu.concatenate %31, %32, %37, %42, %43, %48, %53, %54, %59 in 0 : vector<20x16xf32>, vector<20x16xf32>, vector<20x16xf32>, vector<20x16xf32>, vector<20x16xf32>, vector<20x16xf32>, vector<20x16xf32>, vector<20x16xf32>, vector<20x16xf32> -> vector<180x16xf32>
    %61 = arith.truncf %60 : vector<180x16xf32> to vector<180x16xbf16>
    %c0_14 = arith.constant 0 : index
    %c0_15 = arith.constant 0 : index
    %62 = vector.load %arg3[%c0_14, %c0_15] : memref<16x180xbf16, #tpu.memory_space<vmem>>, vector<16x180xbf16>
    %cst_16 = arith.constant dense<0.000000e+00> : vector<16x16xf32>
    %63 = tpu.matmul %62, %61, %cst_16 {dimension_numbers = #tpu.dot_dimension_numbers<[1], [0], [0], [1], [0, 0, 1, 1], [], []>} : vector<16x180xbf16>, vector<180x16xbf16>, vector<16x16xf32> -> vector<16x16xf32>
    %64 = arith.addf %24, %63 : vector<16x16xf32>
    %c0_17 = arith.constant 0 : index
    %c0_18 = arith.constant 0 : index
    %c0_19 = arith.constant 0 : index
    %65 = vector.load %arg2[%c0_17, %c0_18, %c0_19] : memref<1x20x26xf32, #tpu.memory_space<vmem>>, vector<1x20x26xf32>
    %66 = vector.shape_cast %65 : vector<1x20x26xf32> to vector<20x26xf32>
    %67 = vector.extract_strided_slice %66 {offsets = [0, 0], sizes = [20, 16], strides = [1, 1]} : vector<20x26xf32> to vector<20x16xf32>
    %cst_20 = arith.constant 0.000000e+00 : f32
    %68 = vector.shape_cast %18 : vector<1x16xi1> to vector<1x16xi1>
    %69 = vector.broadcast %68 : vector<1x16xi1> to vector<20x16xi1>
    %70 = vector.broadcast %cst_20 : f32 to vector<20x16xf32>
    %71 = arith.select %69, %67, %70 : vector<20x16xi1>, vector<20x16xf32>
    %72 = vector.extract_strided_slice %66 {offsets = [0, 1], sizes = [20, 16], strides = [1, 1]} : vector<20x26xf32> to vector<20x16xf32>
    %73 = vector.extract_strided_slice %66 {offsets = [0, 2], sizes = [20, 16], strides = [1, 1]} : vector<20x26xf32> to vector<20x16xf32>
    %cst_21 = arith.constant 0.000000e+00 : f32
    %74 = vector.shape_cast %20 : vector<1x16xi1> to vector<1x16xi1>
    %75 = vector.broadcast %74 : vector<1x16xi1> to vector<20x16xi1>
    %76 = vector.broadcast %cst_21 : f32 to vector<20x16xf32>
    %77 = arith.select %75, %73, %76 : vector<20x16xi1>, vector<20x16xf32>
    %78 = vector.extract_strided_slice %66 {offsets = [0, 4], sizes = [20, 16], strides = [1, 1]} : vector<20x26xf32> to vector<20x16xf32>
    %cst_22 = arith.constant 0.000000e+00 : f32
    %79 = vector.shape_cast %18 : vector<1x16xi1> to vector<1x16xi1>
    %80 = vector.broadcast %79 : vector<1x16xi1> to vector<20x16xi1>
    %81 = vector.broadcast %cst_22 : f32 to vector<20x16xf32>
    %82 = arith.select %80, %78, %81 : vector<20x16xi1>, vector<20x16xf32>
    %83 = vector.extract_strided_slice %66 {offsets = [0, 5], sizes = [20, 16], strides = [1, 1]} : vector<20x26xf32> to vector<20x16xf32>
    %84 = vector.extract_strided_slice %66 {offsets = [0, 6], sizes = [20, 16], strides = [1, 1]} : vector<20x26xf32> to vector<20x16xf32>
    %cst_23 = arith.constant 0.000000e+00 : f32
    %85 = vector.shape_cast %20 : vector<1x16xi1> to vector<1x16xi1>
    %86 = vector.broadcast %85 : vector<1x16xi1> to vector<20x16xi1>
    %87 = vector.broadcast %cst_23 : f32 to vector<20x16xf32>
    %88 = arith.select %86, %84, %87 : vector<20x16xi1>, vector<20x16xf32>
    %89 = vector.extract_strided_slice %66 {offsets = [0, 8], sizes = [20, 16], strides = [1, 1]} : vector<20x26xf32> to vector<20x16xf32>
    %cst_24 = arith.constant 0.000000e+00 : f32
    %90 = vector.shape_cast %18 : vector<1x16xi1> to vector<1x16xi1>
    %91 = vector.broadcast %90 : vector<1x16xi1> to vector<20x16xi1>
    %92 = vector.broadcast %cst_24 : f32 to vector<20x16xf32>
    %93 = arith.select %91, %89, %92 : vector<20x16xi1>, vector<20x16xf32>
    %94 = vector.extract_strided_slice %66 {offsets = [0, 9], sizes = [20, 16], strides = [1, 1]} : vector<20x26xf32> to vector<20x16xf32>
    %95 = vector.extract_strided_slice %66 {offsets = [0, 10], sizes = [20, 16], strides = [1, 1]} : vector<20x26xf32> to vector<20x16xf32>
    %cst_25 = arith.constant 0.000000e+00 : f32
    %96 = vector.shape_cast %20 : vector<1x16xi1> to vector<1x16xi1>
    %97 = vector.broadcast %96 : vector<1x16xi1> to vector<20x16xi1>
    %98 = vector.broadcast %cst_25 : f32 to vector<20x16xf32>
    %99 = arith.select %97, %95, %98 : vector<20x16xi1>, vector<20x16xf32>
    %100 = tpu.concatenate %71, %72, %77, %82, %83, %88, %93, %94, %99 in 0 : vector<20x16xf32>, vector<20x16xf32>, vector<20x16xf32>, vector<20x16xf32>, vector<20x16xf32>, vector<20x16xf32>, vector<20x16xf32>, vector<20x16xf32>, vector<20x16xf32> -> vector<180x16xf32>
    %101 = arith.truncf %100 : vector<180x16xf32> to vector<180x16xbf16>
    %c0_26 = arith.constant 0 : index
    %c0_27 = arith.constant 0 : index
    %102 = vector.load %arg4[%c0_26, %c0_27] : memref<16x180xbf16, #tpu.memory_space<vmem>>, vector<16x180xbf16>
    %cst_28 = arith.constant dense<0.000000e+00> : vector<16x16xf32>
    %103 = tpu.matmul %102, %101, %cst_28 {dimension_numbers = #tpu.dot_dimension_numbers<[1], [0], [0], [1], [0, 0, 1, 1], [], []>} : vector<16x180xbf16>, vector<180x16xbf16>, vector<16x16xf32> -> vector<16x16xf32>
    %104 = arith.addf %64, %103 : vector<16x16xf32>
    %c0_29 = arith.constant 0 : index
    %c0_30 = arith.constant 0 : index
    %105 = vector.load %arg6[%c0_29, %c0_30] : memref<16x16xbf16, #tpu.memory_space<vmem>>, vector<16x16xbf16>
    %106 = arith.truncf %104 : vector<16x16xf32> to vector<16x16xbf16>
    %cst_31 = arith.constant dense<0.000000e+00> : vector<16x16xf32>
    %107 = tpu.matmul %105, %106, %cst_31 {dimension_numbers = #tpu.dot_dimension_numbers<[1], [0], [0], [1], [0, 0, 1, 1], [], []>} : vector<16x16xbf16>, vector<16x16xbf16>, vector<16x16xf32> -> vector<16x16xf32>
    %c0_32 = arith.constant 0 : index
    %c0_33 = arith.constant 0 : index
    %108 = vector.load %arg7[%c0_32, %c0_33] : memref<16x1xf32, #tpu.memory_space<vmem>>, vector<16x1xf32>
    %109 = vector.broadcast %108 : vector<16x1xf32> to vector<16x16xf32>
    %110 = arith.addf %107, %109 : vector<16x16xf32>
    %cst_34 = arith.constant 0.000000e+00 : f32
    %111 = vector.broadcast %cst_34 : f32 to vector<16x16xf32>
    %112 = arith.maximumf %110, %111 : vector<16x16xf32>
    %c0_35 = arith.constant 0 : index
    %c0_36 = arith.constant 0 : index
    %c0_37 = arith.constant 0 : index
    %113 = vector.load %arg8[%c0_35, %c0_36, %c0_37] : memref<1x16x16xf32, #tpu.memory_space<vmem>>, vector<1x16x16xf32>
    %114 = vector.shape_cast %113 : vector<1x16x16xf32> to vector<16x16xf32>
    %115 = vector.shape_cast %112 : vector<16x16xf32> to vector<1x16x16xf32>
    tpu.vector_store %arg8[%c0_35, %c0_36, %c0_37], %115 {strides = array<i32>} : memref<1x16x16xf32, #tpu.memory_space<vmem>>, vector<1x16x16xf32>,
    %cst_38 = arith.constant dense<0.000000e+00> : vector<16xf32>
    %116 = vector.multi_reduction <add>, %112, %cst_38 [1] : vector<16x16xf32> to vector<16xf32>
    %117 = vector.shape_cast %116 : vector<16xf32> to vector<16x1xf32>
    %c0_39 = arith.constant 0 : index
    %c0_40 = arith.constant 0 : index
    %c0_41 = arith.constant 0 : index
    %118 = vector.load %arg9[%c0_39, %c0_40, %c0_41] : memref<1x16x1xf32, #tpu.memory_space<vmem>>, vector<1x16x1xf32>
    %119 = vector.shape_cast %118 : vector<1x16x1xf32> to vector<16x1xf32>
    %120 = vector.shape_cast %117 : vector<16x1xf32> to vector<1x16x1xf32>
    tpu.vector_store %arg9[%c0_39, %c0_40, %c0_41], %120 {strides = array<i32>} : memref<1x16x1xf32, #tpu.memory_space<vmem>>, vector<1x16x1xf32>,
    %121 = arith.mulf %112, %112 : vector<16x16xf32>
    %cst_42 = arith.constant dense<0.000000e+00> : vector<16xf32>
    %122 = vector.multi_reduction <add>, %121, %cst_42 [1] : vector<16x16xf32> to vector<16xf32>
    %123 = vector.shape_cast %122 : vector<16xf32> to vector<16x1xf32>
    %c0_43 = arith.constant 0 : index
    %c0_44 = arith.constant 0 : index
    %c0_45 = arith.constant 0 : index
    %124 = vector.load %arg10[%c0_43, %c0_44, %c0_45] : memref<1x16x1xf32, #tpu.memory_space<vmem>>, vector<1x16x1xf32>
    %125 = vector.shape_cast %124 : vector<1x16x1xf32> to vector<16x1xf32>
    %126 = vector.shape_cast %123 : vector<16x1xf32> to vector<1x16x1xf32>
    tpu.vector_store %arg10[%c0_43, %c0_44, %c0_45], %126 {strides = array<i32>} : memref<1x16x1xf32, #tpu.memory_space<vmem>>, vector<1x16x1xf32>,
    return
  }
  func.func @transform_0(%arg0: i32) -> (i32, i32, i32) {
    %c0_i32 = arith.constant 0 : i32
    %c0_i32_0 = arith.constant 0 : i32
    %c0_i32_1 = arith.constant 0 : i32
    return %arg0, %c0_i32, %c0_i32_0 : i32, i32, i32
  }
  func.func @transform_1(%arg0: i32) -> (i32, i32, i32) {
    %c0_i32 = arith.constant 0 : i32
    %c0_i32_0 = arith.constant 0 : i32
    %c0_i32_1 = arith.constant 0 : i32
    return %arg0, %c0_i32, %c0_i32_0 : i32, i32, i32
  }
  func.func @transform_2(%arg0: i32) -> (i32, i32) {
    %c0_i32 = arith.constant 0 : i32
    %c0_i32_0 = arith.constant 0 : i32
    %c0_i32_1 = arith.constant 0 : i32
    return %c0_i32, %c0_i32_0 : i32, i32
  }
  func.func @transform_3(%arg0: i32) -> (i32, i32) {
    %c0_i32 = arith.constant 0 : i32
    %c0_i32_0 = arith.constant 0 : i32
    %c0_i32_1 = arith.constant 0 : i32
    return %c0_i32, %c0_i32_0 : i32, i32
  }
  func.func @transform_4(%arg0: i32) -> (i32, i32) {
    %c0_i32 = arith.constant 0 : i32
    %c0_i32_0 = arith.constant 0 : i32
    %c0_i32_1 = arith.constant 0 : i32
    return %c0_i32, %c0_i32_0 : i32, i32
  }
  func.func @transform_5(%arg0: i32) -> (i32, i32) {
    %c0_i32 = arith.constant 0 : i32
    %c0_i32_0 = arith.constant 0 : i32
    %c0_i32_1 = arith.constant 0 : i32
    return %c0_i32, %c0_i32_0 : i32, i32
  }
  func.func @transform_6(%arg0: i32) -> (i32, i32) {
    %c0_i32 = arith.constant 0 : i32
    %c0_i32_0 = arith.constant 0 : i32
    %c0_i32_1 = arith.constant 0 : i32
    return %c0_i32, %c0_i32_0 : i32, i32
  }
  func.func @transform_7(%arg0: i32) -> (i32, i32, i32) {
    %c0_i32 = arith.constant 0 : i32
    %c0_i32_0 = arith.constant 0 : i32
    %c0_i32_1 = arith.constant 0 : i32
    return %arg0, %c0_i32, %c0_i32_0 : i32, i32, i32
  }
  func.func @transform_8(%arg0: i32) -> (i32, i32, i32) {
    %c0_i32 = arith.constant 0 : i32
    %c0_i32_0 = arith.constant 0 : i32
    %c0_i32_1 = arith.constant 0 : i32
    return %arg0, %c0_i32, %c0_i32_0 : i32, i32, i32
  }
  func.func @transform_9(%arg0: i32) -> (i32, i32, i32) {
    %c0_i32 = arith.constant 0 : i32
    %c0_i32_0 = arith.constant 0 : i32
    %c0_i32_1 = arith.constant 0 : i32
    return %arg0, %c0_i32, %c0_i32_0 : i32, i32, i32
  }
}

module attributes {stable_mosaic.version = 11 : i64} {
  func.func @conv_block_kernel(%arg0: i32, %arg1: memref<1x16x82xf32, #tpu.memory_space<vmem>>, %arg2: memref<1x16x82xf32, #tpu.memory_space<vmem>>, %arg3: memref<12x144xbf16, #tpu.memory_space<vmem>>, %arg4: memref<12x144xbf16, #tpu.memory_space<vmem>>, %arg5: memref<12x1xf32, #tpu.memory_space<vmem>>, %arg6: memref<12x12xbf16, #tpu.memory_space<vmem>>, %arg7: memref<12x1xf32, #tpu.memory_space<vmem>>, %arg8: memref<1x12x64xf32, #tpu.memory_space<vmem>>, %arg9: memref<1x12x1xf32, #tpu.memory_space<vmem>>, %arg10: memref<1x12x1xf32, #tpu.memory_space<vmem>>) attributes {dimension_semantics = [#tpu.dimension_semantics<parallel>], iteration_bounds = array<i64: 2>, scalar_prefetch = 0 : i64, scratch_operands = 0 : i64, tpu.core_type = #tpu.core_type<tc>, window_params = [{transform_indices = @transform_0, window_bounds = array<i64: 1, 16, 82>}, {transform_indices = @transform_1, window_bounds = array<i64: 1, 16, 82>}, {pipeline_mode = #tpu.pipeline_mode<synchronous>, transform_indices = @transform_2, window_bounds = array<i64: 12, 144>}, {pipeline_mode = #tpu.pipeline_mode<synchronous>, transform_indices = @transform_3, window_bounds = array<i64: 12, 144>}, {pipeline_mode = #tpu.pipeline_mode<synchronous>, transform_indices = @transform_4, window_bounds = array<i64: 12, 1>}, {pipeline_mode = #tpu.pipeline_mode<synchronous>, transform_indices = @transform_5, window_bounds = array<i64: 12, 12>}, {pipeline_mode = #tpu.pipeline_mode<synchronous>, transform_indices = @transform_6, window_bounds = array<i64: 12, 1>}, {transform_indices = @transform_7, window_bounds = array<i64: 1, 12, 64>}, {transform_indices = @transform_8, window_bounds = array<i64: 1, 12, 1>}, {transform_indices = @transform_9, window_bounds = array<i64: 1, 12, 1>}]} {
    %0 = tpu.iota {dimensions = array<i32: 1>} : vector<1x64xi32>
    %c8_i32 = arith.constant 8 : i32
    %c0_i32 = arith.constant 0 : i32
    %1 = arith.cmpi eq, %c8_i32, %c0_i32 : i32
    %c1_i32 = arith.constant 1 : i32
    %2 = arith.select %1, %c1_i32, %c8_i32 : i32
    %3 = vector.broadcast %2 : i32 to vector<1x64xi32>
    %4 = arith.remsi %0, %3 : vector<1x64xi32>
    %c0_i32_0 = arith.constant 0 : i32
    %5 = vector.broadcast %c0_i32_0 : i32 to vector<1x64xi32>
    %6 = arith.cmpi ne, %4, %5 : vector<1x64xi32>
    %c0_i32_1 = arith.constant 0 : i32
    %7 = vector.broadcast %c0_i32_1 : i32 to vector<1x64xi32>
    %8 = arith.cmpi slt, %4, %7 : vector<1x64xi32>
    %c0_i32_2 = arith.constant 0 : i32
    %9 = arith.cmpi slt, %2, %c0_i32_2 : i32
    %10 = vector.broadcast %9 : i1 to vector<1x64xi1>
    %11 = vector.broadcast %10 : vector<1x64xi1> to vector<1x64xi1>
    %12 = arith.xori %8, %11 : vector<1x64xi1>
    %13 = arith.andi %12, %6 : vector<1x64xi1>
    %14 = vector.broadcast %2 : i32 to vector<1x64xi32>
    %15 = arith.addi %4, %14 : vector<1x64xi32>
    %16 = arith.select %13, %15, %4 : vector<1x64xi1>, vector<1x64xi32>
    %c1_i32_3 = arith.constant 1 : i32
    %17 = vector.broadcast %c1_i32_3 : i32 to vector<1x64xi32>
    %18 = arith.cmpi sge, %16, %17 : vector<1x64xi32>
    %c6_i32 = arith.constant 6 : i32
    %19 = vector.broadcast %c6_i32 : i32 to vector<1x64xi32>
    %20 = arith.cmpi sle, %16, %19 : vector<1x64xi32>
    %cst = arith.constant 0.000000e+00 : f32
    %21 = vector.broadcast %cst : f32 to vector<12x64xf32>
    %c0 = arith.constant 0 : index
    %c0_4 = arith.constant 0 : index
    %22 = vector.load %arg5[%c0, %c0_4] : memref<12x1xf32, #tpu.memory_space<vmem>>, vector<12x1xf32>
    %23 = vector.broadcast %22 : vector<12x1xf32> to vector<12x64xf32>
    %24 = arith.addf %21, %23 : vector<12x64xf32>
    %c0_5 = arith.constant 0 : index
    %c0_6 = arith.constant 0 : index
    %c0_7 = arith.constant 0 : index
    %25 = vector.load %arg1[%c0_5, %c0_6, %c0_7] : memref<1x16x82xf32, #tpu.memory_space<vmem>>, vector<1x16x82xf32>
    %26 = vector.shape_cast %25 : vector<1x16x82xf32> to vector<16x82xf32>
    %27 = vector.extract_strided_slice %26 {offsets = [0, 0], sizes = [16, 64], strides = [1, 1]} : vector<16x82xf32> to vector<16x64xf32>
    %cst_8 = arith.constant 0.000000e+00 : f32
    %28 = vector.shape_cast %18 : vector<1x64xi1> to vector<1x64xi1>
    %29 = vector.broadcast %28 : vector<1x64xi1> to vector<16x64xi1>
    %30 = vector.broadcast %cst_8 : f32 to vector<16x64xf32>
    %31 = arith.select %29, %27, %30 : vector<16x64xi1>, vector<16x64xf32>
    %32 = vector.extract_strided_slice %26 {offsets = [0, 1], sizes = [16, 64], strides = [1, 1]} : vector<16x82xf32> to vector<16x64xf32>
    %33 = vector.extract_strided_slice %26 {offsets = [0, 2], sizes = [16, 64], strides = [1, 1]} : vector<16x82xf32> to vector<16x64xf32>
    %cst_9 = arith.constant 0.000000e+00 : f32
    %34 = vector.shape_cast %20 : vector<1x64xi1> to vector<1x64xi1>
    %35 = vector.broadcast %34 : vector<1x64xi1> to vector<16x64xi1>
    %36 = vector.broadcast %cst_9 : f32 to vector<16x64xf32>
    %37 = arith.select %35, %33, %36 : vector<16x64xi1>, vector<16x64xf32>
    %38 = vector.extract_strided_slice %26 {offsets = [0, 8], sizes = [16, 64], strides = [1, 1]} : vector<16x82xf32> to vector<16x64xf32>
    %cst_10 = arith.constant 0.000000e+00 : f32
    %39 = vector.shape_cast %18 : vector<1x64xi1> to vector<1x64xi1>
    %40 = vector.broadcast %39 : vector<1x64xi1> to vector<16x64xi1>
    %41 = vector.broadcast %cst_10 : f32 to vector<16x64xf32>
    %42 = arith.select %40, %38, %41 : vector<16x64xi1>, vector<16x64xf32>
    %43 = vector.extract_strided_slice %26 {offsets = [0, 9], sizes = [16, 64], strides = [1, 1]} : vector<16x82xf32> to vector<16x64xf32>
    %44 = vector.extract_strided_slice %26 {offsets = [0, 10], sizes = [16, 64], strides = [1, 1]} : vector<16x82xf32> to vector<16x64xf32>
    %cst_11 = arith.constant 0.000000e+00 : f32
    %45 = vector.shape_cast %20 : vector<1x64xi1> to vector<1x64xi1>
    %46 = vector.broadcast %45 : vector<1x64xi1> to vector<16x64xi1>
    %47 = vector.broadcast %cst_11 : f32 to vector<16x64xf32>
    %48 = arith.select %46, %44, %47 : vector<16x64xi1>, vector<16x64xf32>
    %49 = vector.extract_strided_slice %26 {offsets = [0, 16], sizes = [16, 64], strides = [1, 1]} : vector<16x82xf32> to vector<16x64xf32>
    %cst_12 = arith.constant 0.000000e+00 : f32
    %50 = vector.shape_cast %18 : vector<1x64xi1> to vector<1x64xi1>
    %51 = vector.broadcast %50 : vector<1x64xi1> to vector<16x64xi1>
    %52 = vector.broadcast %cst_12 : f32 to vector<16x64xf32>
    %53 = arith.select %51, %49, %52 : vector<16x64xi1>, vector<16x64xf32>
    %54 = vector.extract_strided_slice %26 {offsets = [0, 17], sizes = [16, 64], strides = [1, 1]} : vector<16x82xf32> to vector<16x64xf32>
    %55 = vector.extract_strided_slice %26 {offsets = [0, 18], sizes = [16, 64], strides = [1, 1]} : vector<16x82xf32> to vector<16x64xf32>
    %cst_13 = arith.constant 0.000000e+00 : f32
    %56 = vector.shape_cast %20 : vector<1x64xi1> to vector<1x64xi1>
    %57 = vector.broadcast %56 : vector<1x64xi1> to vector<16x64xi1>
    %58 = vector.broadcast %cst_13 : f32 to vector<16x64xf32>
    %59 = arith.select %57, %55, %58 : vector<16x64xi1>, vector<16x64xf32>
    %60 = tpu.concatenate %31, %32, %37, %42, %43, %48, %53, %54, %59 in 0 : vector<16x64xf32>, vector<16x64xf32>, vector<16x64xf32>, vector<16x64xf32>, vector<16x64xf32>, vector<16x64xf32>, vector<16x64xf32>, vector<16x64xf32>, vector<16x64xf32> -> vector<144x64xf32>
    %61 = arith.truncf %60 : vector<144x64xf32> to vector<144x64xbf16>
    %c0_14 = arith.constant 0 : index
    %c0_15 = arith.constant 0 : index
    %62 = vector.load %arg3[%c0_14, %c0_15] : memref<12x144xbf16, #tpu.memory_space<vmem>>, vector<12x144xbf16>
    %cst_16 = arith.constant dense<0.000000e+00> : vector<12x64xf32>
    %63 = tpu.matmul %62, %61, %cst_16 {dimension_numbers = #tpu.dot_dimension_numbers<[1], [0], [0], [1], [0, 0, 1, 1], [], []>} : vector<12x144xbf16>, vector<144x64xbf16>, vector<12x64xf32> -> vector<12x64xf32>
    %64 = arith.addf %24, %63 : vector<12x64xf32>
    %c0_17 = arith.constant 0 : index
    %c0_18 = arith.constant 0 : index
    %c0_19 = arith.constant 0 : index
    %65 = vector.load %arg2[%c0_17, %c0_18, %c0_19] : memref<1x16x82xf32, #tpu.memory_space<vmem>>, vector<1x16x82xf32>
    %66 = vector.shape_cast %65 : vector<1x16x82xf32> to vector<16x82xf32>
    %67 = vector.extract_strided_slice %66 {offsets = [0, 0], sizes = [16, 64], strides = [1, 1]} : vector<16x82xf32> to vector<16x64xf32>
    %cst_20 = arith.constant 0.000000e+00 : f32
    %68 = vector.shape_cast %18 : vector<1x64xi1> to vector<1x64xi1>
    %69 = vector.broadcast %68 : vector<1x64xi1> to vector<16x64xi1>
    %70 = vector.broadcast %cst_20 : f32 to vector<16x64xf32>
    %71 = arith.select %69, %67, %70 : vector<16x64xi1>, vector<16x64xf32>
    %72 = vector.extract_strided_slice %66 {offsets = [0, 1], sizes = [16, 64], strides = [1, 1]} : vector<16x82xf32> to vector<16x64xf32>
    %73 = vector.extract_strided_slice %66 {offsets = [0, 2], sizes = [16, 64], strides = [1, 1]} : vector<16x82xf32> to vector<16x64xf32>
    %cst_21 = arith.constant 0.000000e+00 : f32
    %74 = vector.shape_cast %20 : vector<1x64xi1> to vector<1x64xi1>
    %75 = vector.broadcast %74 : vector<1x64xi1> to vector<16x64xi1>
    %76 = vector.broadcast %cst_21 : f32 to vector<16x64xf32>
    %77 = arith.select %75, %73, %76 : vector<16x64xi1>, vector<16x64xf32>
    %78 = vector.extract_strided_slice %66 {offsets = [0, 8], sizes = [16, 64], strides = [1, 1]} : vector<16x82xf32> to vector<16x64xf32>
    %cst_22 = arith.constant 0.000000e+00 : f32
    %79 = vector.shape_cast %18 : vector<1x64xi1> to vector<1x64xi1>
    %80 = vector.broadcast %79 : vector<1x64xi1> to vector<16x64xi1>
    %81 = vector.broadcast %cst_22 : f32 to vector<16x64xf32>
    %82 = arith.select %80, %78, %81 : vector<16x64xi1>, vector<16x64xf32>
    %83 = vector.extract_strided_slice %66 {offsets = [0, 9], sizes = [16, 64], strides = [1, 1]} : vector<16x82xf32> to vector<16x64xf32>
    %84 = vector.extract_strided_slice %66 {offsets = [0, 10], sizes = [16, 64], strides = [1, 1]} : vector<16x82xf32> to vector<16x64xf32>
    %cst_23 = arith.constant 0.000000e+00 : f32
    %85 = vector.shape_cast %20 : vector<1x64xi1> to vector<1x64xi1>
    %86 = vector.broadcast %85 : vector<1x64xi1> to vector<16x64xi1>
    %87 = vector.broadcast %cst_23 : f32 to vector<16x64xf32>
    %88 = arith.select %86, %84, %87 : vector<16x64xi1>, vector<16x64xf32>
    %89 = vector.extract_strided_slice %66 {offsets = [0, 16], sizes = [16, 64], strides = [1, 1]} : vector<16x82xf32> to vector<16x64xf32>
    %cst_24 = arith.constant 0.000000e+00 : f32
    %90 = vector.shape_cast %18 : vector<1x64xi1> to vector<1x64xi1>
    %91 = vector.broadcast %90 : vector<1x64xi1> to vector<16x64xi1>
    %92 = vector.broadcast %cst_24 : f32 to vector<16x64xf32>
    %93 = arith.select %91, %89, %92 : vector<16x64xi1>, vector<16x64xf32>
    %94 = vector.extract_strided_slice %66 {offsets = [0, 17], sizes = [16, 64], strides = [1, 1]} : vector<16x82xf32> to vector<16x64xf32>
    %95 = vector.extract_strided_slice %66 {offsets = [0, 18], sizes = [16, 64], strides = [1, 1]} : vector<16x82xf32> to vector<16x64xf32>
    %cst_25 = arith.constant 0.000000e+00 : f32
    %96 = vector.shape_cast %20 : vector<1x64xi1> to vector<1x64xi1>
    %97 = vector.broadcast %96 : vector<1x64xi1> to vector<16x64xi1>
    %98 = vector.broadcast %cst_25 : f32 to vector<16x64xf32>
    %99 = arith.select %97, %95, %98 : vector<16x64xi1>, vector<16x64xf32>
    %100 = tpu.concatenate %71, %72, %77, %82, %83, %88, %93, %94, %99 in 0 : vector<16x64xf32>, vector<16x64xf32>, vector<16x64xf32>, vector<16x64xf32>, vector<16x64xf32>, vector<16x64xf32>, vector<16x64xf32>, vector<16x64xf32>, vector<16x64xf32> -> vector<144x64xf32>
    %101 = arith.truncf %100 : vector<144x64xf32> to vector<144x64xbf16>
    %c0_26 = arith.constant 0 : index
    %c0_27 = arith.constant 0 : index
    %102 = vector.load %arg4[%c0_26, %c0_27] : memref<12x144xbf16, #tpu.memory_space<vmem>>, vector<12x144xbf16>
    %cst_28 = arith.constant dense<0.000000e+00> : vector<12x64xf32>
    %103 = tpu.matmul %102, %101, %cst_28 {dimension_numbers = #tpu.dot_dimension_numbers<[1], [0], [0], [1], [0, 0, 1, 1], [], []>} : vector<12x144xbf16>, vector<144x64xbf16>, vector<12x64xf32> -> vector<12x64xf32>
    %104 = arith.addf %64, %103 : vector<12x64xf32>
    %c0_29 = arith.constant 0 : index
    %c0_30 = arith.constant 0 : index
    %105 = vector.load %arg6[%c0_29, %c0_30] : memref<12x12xbf16, #tpu.memory_space<vmem>>, vector<12x12xbf16>
    %106 = arith.truncf %104 : vector<12x64xf32> to vector<12x64xbf16>
    %cst_31 = arith.constant dense<0.000000e+00> : vector<12x64xf32>
    %107 = tpu.matmul %105, %106, %cst_31 {dimension_numbers = #tpu.dot_dimension_numbers<[1], [0], [0], [1], [0, 0, 1, 1], [], []>} : vector<12x12xbf16>, vector<12x64xbf16>, vector<12x64xf32> -> vector<12x64xf32>
    %c0_32 = arith.constant 0 : index
    %c0_33 = arith.constant 0 : index
    %108 = vector.load %arg7[%c0_32, %c0_33] : memref<12x1xf32, #tpu.memory_space<vmem>>, vector<12x1xf32>
    %109 = vector.broadcast %108 : vector<12x1xf32> to vector<12x64xf32>
    %110 = arith.addf %107, %109 : vector<12x64xf32>
    %cst_34 = arith.constant 0.000000e+00 : f32
    %111 = vector.broadcast %cst_34 : f32 to vector<12x64xf32>
    %112 = arith.maximumf %110, %111 : vector<12x64xf32>
    %c0_35 = arith.constant 0 : index
    %c0_36 = arith.constant 0 : index
    %c0_37 = arith.constant 0 : index
    %113 = vector.load %arg8[%c0_35, %c0_36, %c0_37] : memref<1x12x64xf32, #tpu.memory_space<vmem>>, vector<1x12x64xf32>
    %114 = vector.shape_cast %113 : vector<1x12x64xf32> to vector<12x64xf32>
    %115 = vector.shape_cast %112 : vector<12x64xf32> to vector<1x12x64xf32>
    tpu.vector_store %arg8[%c0_35, %c0_36, %c0_37], %115 {strides = array<i32>} : memref<1x12x64xf32, #tpu.memory_space<vmem>>, vector<1x12x64xf32>,
    %cst_38 = arith.constant dense<0.000000e+00> : vector<12xf32>
    %116 = vector.multi_reduction <add>, %112, %cst_38 [1] : vector<12x64xf32> to vector<12xf32>
    %117 = vector.shape_cast %116 : vector<12xf32> to vector<12x1xf32>
    %c0_39 = arith.constant 0 : index
    %c0_40 = arith.constant 0 : index
    %c0_41 = arith.constant 0 : index
    %118 = vector.load %arg9[%c0_39, %c0_40, %c0_41] : memref<1x12x1xf32, #tpu.memory_space<vmem>>, vector<1x12x1xf32>
    %119 = vector.shape_cast %118 : vector<1x12x1xf32> to vector<12x1xf32>
    %120 = vector.shape_cast %117 : vector<12x1xf32> to vector<1x12x1xf32>
    tpu.vector_store %arg9[%c0_39, %c0_40, %c0_41], %120 {strides = array<i32>} : memref<1x12x1xf32, #tpu.memory_space<vmem>>, vector<1x12x1xf32>,
    %121 = arith.mulf %112, %112 : vector<12x64xf32>
    %cst_42 = arith.constant dense<0.000000e+00> : vector<12xf32>
    %122 = vector.multi_reduction <add>, %121, %cst_42 [1] : vector<12x64xf32> to vector<12xf32>
    %123 = vector.shape_cast %122 : vector<12xf32> to vector<12x1xf32>
    %c0_43 = arith.constant 0 : index
    %c0_44 = arith.constant 0 : index
    %c0_45 = arith.constant 0 : index
    %124 = vector.load %arg10[%c0_43, %c0_44, %c0_45] : memref<1x12x1xf32, #tpu.memory_space<vmem>>, vector<1x12x1xf32>
    %125 = vector.shape_cast %124 : vector<1x12x1xf32> to vector<12x1xf32>
    %126 = vector.shape_cast %123 : vector<12x1xf32> to vector<1x12x1xf32>
    tpu.vector_store %arg10[%c0_43, %c0_44, %c0_45], %126 {strides = array<i32>} : memref<1x12x1xf32, #tpu.memory_space<vmem>>, vector<1x12x1xf32>,
    return
  }
  func.func @transform_0(%arg0: i32) -> (i32, i32, i32) {
    %c0_i32 = arith.constant 0 : i32
    %c0_i32_0 = arith.constant 0 : i32
    %c0_i32_1 = arith.constant 0 : i32
    return %arg0, %c0_i32, %c0_i32_0 : i32, i32, i32
  }
  func.func @transform_1(%arg0: i32) -> (i32, i32, i32) {
    %c0_i32 = arith.constant 0 : i32
    %c0_i32_0 = arith.constant 0 : i32
    %c0_i32_1 = arith.constant 0 : i32
    return %arg0, %c0_i32, %c0_i32_0 : i32, i32, i32
  }
  func.func @transform_2(%arg0: i32) -> (i32, i32) {
    %c0_i32 = arith.constant 0 : i32
    %c0_i32_0 = arith.constant 0 : i32
    %c0_i32_1 = arith.constant 0 : i32
    return %c0_i32, %c0_i32_0 : i32, i32
  }
  func.func @transform_3(%arg0: i32) -> (i32, i32) {
    %c0_i32 = arith.constant 0 : i32
    %c0_i32_0 = arith.constant 0 : i32
    %c0_i32_1 = arith.constant 0 : i32
    return %c0_i32, %c0_i32_0 : i32, i32
  }
  func.func @transform_4(%arg0: i32) -> (i32, i32) {
    %c0_i32 = arith.constant 0 : i32
    %c0_i32_0 = arith.constant 0 : i32
    %c0_i32_1 = arith.constant 0 : i32
    return %c0_i32, %c0_i32_0 : i32, i32
  }
  func.func @transform_5(%arg0: i32) -> (i32, i32) {
    %c0_i32 = arith.constant 0 : i32
    %c0_i32_0 = arith.constant 0 : i32
    %c0_i32_1 = arith.constant 0 : i32
    return %c0_i32, %c0_i32_0 : i32, i32
  }
  func.func @transform_6(%arg0: i32) -> (i32, i32) {
    %c0_i32 = arith.constant 0 : i32
    %c0_i32_0 = arith.constant 0 : i32
    %c0_i32_1 = arith.constant 0 : i32
    return %c0_i32, %c0_i32_0 : i32, i32
  }
  func.func @transform_7(%arg0: i32) -> (i32, i32, i32) {
    %c0_i32 = arith.constant 0 : i32
    %c0_i32_0 = arith.constant 0 : i32
    %c0_i32_1 = arith.constant 0 : i32
    return %arg0, %c0_i32, %c0_i32_0 : i32, i32, i32
  }
  func.func @transform_8(%arg0: i32) -> (i32, i32, i32) {
    %c0_i32 = arith.constant 0 : i32
    %c0_i32_0 = arith.constant 0 : i32
    %c0_i32_1 = arith.constant 0 : i32
    return %arg0, %c0_i32, %c0_i32_0 : i32, i32, i32
  }
  func.func @transform_9(%arg0: i32) -> (i32, i32, i32) {
    %c0_i32 = arith.constant 0 : i32
    %c0_i32_0 = arith.constant 0 : i32
    %c0_i32_1 = arith.constant 0 : i32
    return %arg0, %c0_i32, %c0_i32_0 : i32, i32, i32
  }
}

module attributes {stable_mosaic.version = 11 : i64} {
  func.func @conv_block_kernel(%arg0: i32, %arg1: memref<1x12x290xf32, #tpu.memory_space<vmem>>, %arg2: memref<1x8x290xf32, #tpu.memory_space<vmem>>, %arg3: memref<12x108xbf16, #tpu.memory_space<vmem>>, %arg4: memref<12x72xbf16, #tpu.memory_space<vmem>>, %arg5: memref<12x1xf32, #tpu.memory_space<vmem>>, %arg6: memref<12x12xbf16, #tpu.memory_space<vmem>>, %arg7: memref<12x1xf32, #tpu.memory_space<vmem>>, %arg8: memref<1x12x256xf32, #tpu.memory_space<vmem>>, %arg9: memref<1x12x1xf32, #tpu.memory_space<vmem>>, %arg10: memref<1x12x1xf32, #tpu.memory_space<vmem>>) attributes {dimension_semantics = [#tpu.dimension_semantics<parallel>], iteration_bounds = array<i64: 2>, scalar_prefetch = 0 : i64, scratch_operands = 0 : i64, tpu.core_type = #tpu.core_type<tc>, window_params = [{transform_indices = @transform_0, window_bounds = array<i64: 1, 12, 290>}, {transform_indices = @transform_1, window_bounds = array<i64: 1, 8, 290>}, {pipeline_mode = #tpu.pipeline_mode<synchronous>, transform_indices = @transform_2, window_bounds = array<i64: 12, 108>}, {pipeline_mode = #tpu.pipeline_mode<synchronous>, transform_indices = @transform_3, window_bounds = array<i64: 12, 72>}, {pipeline_mode = #tpu.pipeline_mode<synchronous>, transform_indices = @transform_4, window_bounds = array<i64: 12, 1>}, {pipeline_mode = #tpu.pipeline_mode<synchronous>, transform_indices = @transform_5, window_bounds = array<i64: 12, 12>}, {pipeline_mode = #tpu.pipeline_mode<synchronous>, transform_indices = @transform_6, window_bounds = array<i64: 12, 1>}, {transform_indices = @transform_7, window_bounds = array<i64: 1, 12, 256>}, {transform_indices = @transform_8, window_bounds = array<i64: 1, 12, 1>}, {transform_indices = @transform_9, window_bounds = array<i64: 1, 12, 1>}]} {
    %0 = tpu.iota {dimensions = array<i32: 1>} : vector<1x256xi32>
    %c16_i32 = arith.constant 16 : i32
    %c0_i32 = arith.constant 0 : i32
    %1 = arith.cmpi eq, %c16_i32, %c0_i32 : i32
    %c1_i32 = arith.constant 1 : i32
    %2 = arith.select %1, %c1_i32, %c16_i32 : i32
    %3 = vector.broadcast %2 : i32 to vector<1x256xi32>
    %4 = arith.remsi %0, %3 : vector<1x256xi32>
    %c0_i32_0 = arith.constant 0 : i32
    %5 = vector.broadcast %c0_i32_0 : i32 to vector<1x256xi32>
    %6 = arith.cmpi ne, %4, %5 : vector<1x256xi32>
    %c0_i32_1 = arith.constant 0 : i32
    %7 = vector.broadcast %c0_i32_1 : i32 to vector<1x256xi32>
    %8 = arith.cmpi slt, %4, %7 : vector<1x256xi32>
    %c0_i32_2 = arith.constant 0 : i32
    %9 = arith.cmpi slt, %2, %c0_i32_2 : i32
    %10 = vector.broadcast %9 : i1 to vector<1x256xi1>
    %11 = vector.broadcast %10 : vector<1x256xi1> to vector<1x256xi1>
    %12 = arith.xori %8, %11 : vector<1x256xi1>
    %13 = arith.andi %12, %6 : vector<1x256xi1>
    %14 = vector.broadcast %2 : i32 to vector<1x256xi32>
    %15 = arith.addi %4, %14 : vector<1x256xi32>
    %16 = arith.select %13, %15, %4 : vector<1x256xi1>, vector<1x256xi32>
    %c1_i32_3 = arith.constant 1 : i32
    %17 = vector.broadcast %c1_i32_3 : i32 to vector<1x256xi32>
    %18 = arith.cmpi sge, %16, %17 : vector<1x256xi32>
    %c14_i32 = arith.constant 14 : i32
    %19 = vector.broadcast %c14_i32 : i32 to vector<1x256xi32>
    %20 = arith.cmpi sle, %16, %19 : vector<1x256xi32>
    %cst = arith.constant 0.000000e+00 : f32
    %21 = vector.broadcast %cst : f32 to vector<12x256xf32>
    %c0 = arith.constant 0 : index
    %c0_4 = arith.constant 0 : index
    %22 = vector.load %arg5[%c0, %c0_4] : memref<12x1xf32, #tpu.memory_space<vmem>>, vector<12x1xf32>
    %23 = vector.broadcast %22 : vector<12x1xf32> to vector<12x256xf32>
    %24 = arith.addf %21, %23 : vector<12x256xf32>
    %c0_5 = arith.constant 0 : index
    %c0_6 = arith.constant 0 : index
    %c0_7 = arith.constant 0 : index
    %25 = vector.load %arg1[%c0_5, %c0_6, %c0_7] : memref<1x12x290xf32, #tpu.memory_space<vmem>>, vector<1x12x290xf32>
    %26 = vector.shape_cast %25 : vector<1x12x290xf32> to vector<12x290xf32>
    %27 = vector.extract_strided_slice %26 {offsets = [0, 0], sizes = [12, 256], strides = [1, 1]} : vector<12x290xf32> to vector<12x256xf32>
    %cst_8 = arith.constant 0.000000e+00 : f32
    %28 = vector.shape_cast %18 : vector<1x256xi1> to vector<1x256xi1>
    %29 = vector.broadcast %28 : vector<1x256xi1> to vector<12x256xi1>
    %30 = vector.broadcast %cst_8 : f32 to vector<12x256xf32>
    %31 = arith.select %29, %27, %30 : vector<12x256xi1>, vector<12x256xf32>
    %32 = vector.extract_strided_slice %26 {offsets = [0, 1], sizes = [12, 256], strides = [1, 1]} : vector<12x290xf32> to vector<12x256xf32>
    %33 = vector.extract_strided_slice %26 {offsets = [0, 2], sizes = [12, 256], strides = [1, 1]} : vector<12x290xf32> to vector<12x256xf32>
    %cst_9 = arith.constant 0.000000e+00 : f32
    %34 = vector.shape_cast %20 : vector<1x256xi1> to vector<1x256xi1>
    %35 = vector.broadcast %34 : vector<1x256xi1> to vector<12x256xi1>
    %36 = vector.broadcast %cst_9 : f32 to vector<12x256xf32>
    %37 = arith.select %35, %33, %36 : vector<12x256xi1>, vector<12x256xf32>
    %38 = vector.extract_strided_slice %26 {offsets = [0, 16], sizes = [12, 256], strides = [1, 1]} : vector<12x290xf32> to vector<12x256xf32>
    %cst_10 = arith.constant 0.000000e+00 : f32
    %39 = vector.shape_cast %18 : vector<1x256xi1> to vector<1x256xi1>
    %40 = vector.broadcast %39 : vector<1x256xi1> to vector<12x256xi1>
    %41 = vector.broadcast %cst_10 : f32 to vector<12x256xf32>
    %42 = arith.select %40, %38, %41 : vector<12x256xi1>, vector<12x256xf32>
    %43 = vector.extract_strided_slice %26 {offsets = [0, 17], sizes = [12, 256], strides = [1, 1]} : vector<12x290xf32> to vector<12x256xf32>
    %44 = vector.extract_strided_slice %26 {offsets = [0, 18], sizes = [12, 256], strides = [1, 1]} : vector<12x290xf32> to vector<12x256xf32>
    %cst_11 = arith.constant 0.000000e+00 : f32
    %45 = vector.shape_cast %20 : vector<1x256xi1> to vector<1x256xi1>
    %46 = vector.broadcast %45 : vector<1x256xi1> to vector<12x256xi1>
    %47 = vector.broadcast %cst_11 : f32 to vector<12x256xf32>
    %48 = arith.select %46, %44, %47 : vector<12x256xi1>, vector<12x256xf32>
    %49 = vector.extract_strided_slice %26 {offsets = [0, 32], sizes = [12, 256], strides = [1, 1]} : vector<12x290xf32> to vector<12x256xf32>
    %cst_12 = arith.constant 0.000000e+00 : f32
    %50 = vector.shape_cast %18 : vector<1x256xi1> to vector<1x256xi1>
    %51 = vector.broadcast %50 : vector<1x256xi1> to vector<12x256xi1>
    %52 = vector.broadcast %cst_12 : f32 to vector<12x256xf32>
    %53 = arith.select %51, %49, %52 : vector<12x256xi1>, vector<12x256xf32>
    %54 = vector.extract_strided_slice %26 {offsets = [0, 33], sizes = [12, 256], strides = [1, 1]} : vector<12x290xf32> to vector<12x256xf32>
    %55 = vector.extract_strided_slice %26 {offsets = [0, 34], sizes = [12, 256], strides = [1, 1]} : vector<12x290xf32> to vector<12x256xf32>
    %cst_13 = arith.constant 0.000000e+00 : f32
    %56 = vector.shape_cast %20 : vector<1x256xi1> to vector<1x256xi1>
    %57 = vector.broadcast %56 : vector<1x256xi1> to vector<12x256xi1>
    %58 = vector.broadcast %cst_13 : f32 to vector<12x256xf32>
    %59 = arith.select %57, %55, %58 : vector<12x256xi1>, vector<12x256xf32>
    %60 = tpu.concatenate %31, %32, %37, %42, %43, %48, %53, %54, %59 in 0 : vector<12x256xf32>, vector<12x256xf32>, vector<12x256xf32>, vector<12x256xf32>, vector<12x256xf32>, vector<12x256xf32>, vector<12x256xf32>, vector<12x256xf32>, vector<12x256xf32> -> vector<108x256xf32>
    %61 = arith.truncf %60 : vector<108x256xf32> to vector<108x256xbf16>
    %c0_14 = arith.constant 0 : index
    %c0_15 = arith.constant 0 : index
    %62 = vector.load %arg3[%c0_14, %c0_15] : memref<12x108xbf16, #tpu.memory_space<vmem>>, vector<12x108xbf16>
    %cst_16 = arith.constant dense<0.000000e+00> : vector<12x256xf32>
    %63 = tpu.matmul %62, %61, %cst_16 {dimension_numbers = #tpu.dot_dimension_numbers<[1], [0], [0], [1], [0, 0, 1, 1], [], []>} : vector<12x108xbf16>, vector<108x256xbf16>, vector<12x256xf32> -> vector<12x256xf32>
    %64 = arith.addf %24, %63 : vector<12x256xf32>
    %c0_17 = arith.constant 0 : index
    %c0_18 = arith.constant 0 : index
    %c0_19 = arith.constant 0 : index
    %65 = vector.load %arg2[%c0_17, %c0_18, %c0_19] : memref<1x8x290xf32, #tpu.memory_space<vmem>>, vector<1x8x290xf32>
    %66 = vector.shape_cast %65 : vector<1x8x290xf32> to vector<8x290xf32>
    %67 = vector.extract_strided_slice %66 {offsets = [0, 0], sizes = [8, 256], strides = [1, 1]} : vector<8x290xf32> to vector<8x256xf32>
    %cst_20 = arith.constant 0.000000e+00 : f32
    %68 = vector.shape_cast %18 : vector<1x256xi1> to vector<1x256xi1>
    %69 = vector.broadcast %68 : vector<1x256xi1> to vector<8x256xi1>
    %70 = vector.broadcast %cst_20 : f32 to vector<8x256xf32>
    %71 = arith.select %69, %67, %70 : vector<8x256xi1>, vector<8x256xf32>
    %72 = vector.extract_strided_slice %66 {offsets = [0, 1], sizes = [8, 256], strides = [1, 1]} : vector<8x290xf32> to vector<8x256xf32>
    %73 = vector.extract_strided_slice %66 {offsets = [0, 2], sizes = [8, 256], strides = [1, 1]} : vector<8x290xf32> to vector<8x256xf32>
    %cst_21 = arith.constant 0.000000e+00 : f32
    %74 = vector.shape_cast %20 : vector<1x256xi1> to vector<1x256xi1>
    %75 = vector.broadcast %74 : vector<1x256xi1> to vector<8x256xi1>
    %76 = vector.broadcast %cst_21 : f32 to vector<8x256xf32>
    %77 = arith.select %75, %73, %76 : vector<8x256xi1>, vector<8x256xf32>
    %78 = vector.extract_strided_slice %66 {offsets = [0, 16], sizes = [8, 256], strides = [1, 1]} : vector<8x290xf32> to vector<8x256xf32>
    %cst_22 = arith.constant 0.000000e+00 : f32
    %79 = vector.shape_cast %18 : vector<1x256xi1> to vector<1x256xi1>
    %80 = vector.broadcast %79 : vector<1x256xi1> to vector<8x256xi1>
    %81 = vector.broadcast %cst_22 : f32 to vector<8x256xf32>
    %82 = arith.select %80, %78, %81 : vector<8x256xi1>, vector<8x256xf32>
    %83 = vector.extract_strided_slice %66 {offsets = [0, 17], sizes = [8, 256], strides = [1, 1]} : vector<8x290xf32> to vector<8x256xf32>
    %84 = vector.extract_strided_slice %66 {offsets = [0, 18], sizes = [8, 256], strides = [1, 1]} : vector<8x290xf32> to vector<8x256xf32>
    %cst_23 = arith.constant 0.000000e+00 : f32
    %85 = vector.shape_cast %20 : vector<1x256xi1> to vector<1x256xi1>
    %86 = vector.broadcast %85 : vector<1x256xi1> to vector<8x256xi1>
    %87 = vector.broadcast %cst_23 : f32 to vector<8x256xf32>
    %88 = arith.select %86, %84, %87 : vector<8x256xi1>, vector<8x256xf32>
    %89 = vector.extract_strided_slice %66 {offsets = [0, 32], sizes = [8, 256], strides = [1, 1]} : vector<8x290xf32> to vector<8x256xf32>
    %cst_24 = arith.constant 0.000000e+00 : f32
    %90 = vector.shape_cast %18 : vector<1x256xi1> to vector<1x256xi1>
    %91 = vector.broadcast %90 : vector<1x256xi1> to vector<8x256xi1>
    %92 = vector.broadcast %cst_24 : f32 to vector<8x256xf32>
    %93 = arith.select %91, %89, %92 : vector<8x256xi1>, vector<8x256xf32>
    %94 = vector.extract_strided_slice %66 {offsets = [0, 33], sizes = [8, 256], strides = [1, 1]} : vector<8x290xf32> to vector<8x256xf32>
    %95 = vector.extract_strided_slice %66 {offsets = [0, 34], sizes = [8, 256], strides = [1, 1]} : vector<8x290xf32> to vector<8x256xf32>
    %cst_25 = arith.constant 0.000000e+00 : f32
    %96 = vector.shape_cast %20 : vector<1x256xi1> to vector<1x256xi1>
    %97 = vector.broadcast %96 : vector<1x256xi1> to vector<8x256xi1>
    %98 = vector.broadcast %cst_25 : f32 to vector<8x256xf32>
    %99 = arith.select %97, %95, %98 : vector<8x256xi1>, vector<8x256xf32>
    %100 = tpu.concatenate %71, %72, %77, %82, %83, %88, %93, %94, %99 in 0 : vector<8x256xf32>, vector<8x256xf32>, vector<8x256xf32>, vector<8x256xf32>, vector<8x256xf32>, vector<8x256xf32>, vector<8x256xf32>, vector<8x256xf32>, vector<8x256xf32> -> vector<72x256xf32>
    %101 = arith.truncf %100 : vector<72x256xf32> to vector<72x256xbf16>
    %c0_26 = arith.constant 0 : index
    %c0_27 = arith.constant 0 : index
    %102 = vector.load %arg4[%c0_26, %c0_27] : memref<12x72xbf16, #tpu.memory_space<vmem>>, vector<12x72xbf16>
    %cst_28 = arith.constant dense<0.000000e+00> : vector<12x256xf32>
    %103 = tpu.matmul %102, %101, %cst_28 {dimension_numbers = #tpu.dot_dimension_numbers<[1], [0], [0], [1], [0, 0, 1, 1], [], []>} : vector<12x72xbf16>, vector<72x256xbf16>, vector<12x256xf32> -> vector<12x256xf32>
    %104 = arith.addf %64, %103 : vector<12x256xf32>
    %c0_29 = arith.constant 0 : index
    %c0_30 = arith.constant 0 : index
    %105 = vector.load %arg6[%c0_29, %c0_30] : memref<12x12xbf16, #tpu.memory_space<vmem>>, vector<12x12xbf16>
    %106 = arith.truncf %104 : vector<12x256xf32> to vector<12x256xbf16>
    %cst_31 = arith.constant dense<0.000000e+00> : vector<12x256xf32>
    %107 = tpu.matmul %105, %106, %cst_31 {dimension_numbers = #tpu.dot_dimension_numbers<[1], [0], [0], [1], [0, 0, 1, 1], [], []>} : vector<12x12xbf16>, vector<12x256xbf16>, vector<12x256xf32> -> vector<12x256xf32>
    %c0_32 = arith.constant 0 : index
    %c0_33 = arith.constant 0 : index
    %108 = vector.load %arg7[%c0_32, %c0_33] : memref<12x1xf32, #tpu.memory_space<vmem>>, vector<12x1xf32>
    %109 = vector.broadcast %108 : vector<12x1xf32> to vector<12x256xf32>
    %110 = arith.addf %107, %109 : vector<12x256xf32>
    %cst_34 = arith.constant 0.000000e+00 : f32
    %111 = vector.broadcast %cst_34 : f32 to vector<12x256xf32>
    %112 = arith.maximumf %110, %111 : vector<12x256xf32>
    %c0_35 = arith.constant 0 : index
    %c0_36 = arith.constant 0 : index
    %c0_37 = arith.constant 0 : index
    %113 = vector.load %arg8[%c0_35, %c0_36, %c0_37] : memref<1x12x256xf32, #tpu.memory_space<vmem>>, vector<1x12x256xf32>
    %114 = vector.shape_cast %113 : vector<1x12x256xf32> to vector<12x256xf32>
    %115 = vector.shape_cast %112 : vector<12x256xf32> to vector<1x12x256xf32>
    tpu.vector_store %arg8[%c0_35, %c0_36, %c0_37], %115 {strides = array<i32>} : memref<1x12x256xf32, #tpu.memory_space<vmem>>, vector<1x12x256xf32>,
    %cst_38 = arith.constant dense<0.000000e+00> : vector<12xf32>
    %116 = vector.multi_reduction <add>, %112, %cst_38 [1] : vector<12x256xf32> to vector<12xf32>
    %117 = vector.shape_cast %116 : vector<12xf32> to vector<12x1xf32>
    %c0_39 = arith.constant 0 : index
    %c0_40 = arith.constant 0 : index
    %c0_41 = arith.constant 0 : index
    %118 = vector.load %arg9[%c0_39, %c0_40, %c0_41] : memref<1x12x1xf32, #tpu.memory_space<vmem>>, vector<1x12x1xf32>
    %119 = vector.shape_cast %118 : vector<1x12x1xf32> to vector<12x1xf32>
    %120 = vector.shape_cast %117 : vector<12x1xf32> to vector<1x12x1xf32>
    tpu.vector_store %arg9[%c0_39, %c0_40, %c0_41], %120 {strides = array<i32>} : memref<1x12x1xf32, #tpu.memory_space<vmem>>, vector<1x12x1xf32>,
    %121 = arith.mulf %112, %112 : vector<12x256xf32>
    %cst_42 = arith.constant dense<0.000000e+00> : vector<12xf32>
    %122 = vector.multi_reduction <add>, %121, %cst_42 [1] : vector<12x256xf32> to vector<12xf32>
    %123 = vector.shape_cast %122 : vector<12xf32> to vector<12x1xf32>
    %c0_43 = arith.constant 0 : index
    %c0_44 = arith.constant 0 : index
    %c0_45 = arith.constant 0 : index
    %124 = vector.load %arg10[%c0_43, %c0_44, %c0_45] : memref<1x12x1xf32, #tpu.memory_space<vmem>>, vector<1x12x1xf32>
    %125 = vector.shape_cast %124 : vector<1x12x1xf32> to vector<12x1xf32>
    %126 = vector.shape_cast %123 : vector<12x1xf32> to vector<1x12x1xf32>
    tpu.vector_store %arg10[%c0_43, %c0_44, %c0_45], %126 {strides = array<i32>} : memref<1x12x1xf32, #tpu.memory_space<vmem>>, vector<1x12x1xf32>,
    return
  }
  func.func @transform_0(%arg0: i32) -> (i32, i32, i32) {
    %c0_i32 = arith.constant 0 : i32
    %c0_i32_0 = arith.constant 0 : i32
    %c0_i32_1 = arith.constant 0 : i32
    return %arg0, %c0_i32, %c0_i32_0 : i32, i32, i32
  }
  func.func @transform_1(%arg0: i32) -> (i32, i32, i32) {
    %c0_i32 = arith.constant 0 : i32
    %c0_i32_0 = arith.constant 0 : i32
    %c0_i32_1 = arith.constant 0 : i32
    return %arg0, %c0_i32, %c0_i32_0 : i32, i32, i32
  }
  func.func @transform_2(%arg0: i32) -> (i32, i32) {
    %c0_i32 = arith.constant 0 : i32
    %c0_i32_0 = arith.constant 0 : i32
    %c0_i32_1 = arith.constant 0 : i32
    return %c0_i32, %c0_i32_0 : i32, i32
  }
  func.func @transform_3(%arg0: i32) -> (i32, i32) {
    %c0_i32 = arith.constant 0 : i32
    %c0_i32_0 = arith.constant 0 : i32
    %c0_i32_1 = arith.constant 0 : i32
    return %c0_i32, %c0_i32_0 : i32, i32
  }
  func.func @transform_4(%arg0: i32) -> (i32, i32) {
    %c0_i32 = arith.constant 0 : i32
    %c0_i32_0 = arith.constant 0 : i32
    %c0_i32_1 = arith.constant 0 : i32
    return %c0_i32, %c0_i32_0 : i32, i32
  }
  func.func @transform_5(%arg0: i32) -> (i32, i32) {
    %c0_i32 = arith.constant 0 : i32
    %c0_i32_0 = arith.constant 0 : i32
    %c0_i32_1 = arith.constant 0 : i32
    return %c0_i32, %c0_i32_0 : i32, i32
  }
  func.func @transform_6(%arg0: i32) -> (i32, i32) {
    %c0_i32 = arith.constant 0 : i32
    %c0_i32_0 = arith.constant 0 : i32
    %c0_i32_1 = arith.constant 0 : i32
    return %c0_i32, %c0_i32_0 : i32, i32
  }
  func.func @transform_7(%arg0: i32) -> (i32, i32, i32) {
    %c0_i32 = arith.constant 0 : i32
    %c0_i32_0 = arith.constant 0 : i32
    %c0_i32_1 = arith.constant 0 : i32
    return %arg0, %c0_i32, %c0_i32_0 : i32, i32, i32
  }
  func.func @transform_8(%arg0: i32) -> (i32, i32, i32) {
    %c0_i32 = arith.constant 0 : i32
    %c0_i32_0 = arith.constant 0 : i32
    %c0_i32_1 = arith.constant 0 : i32
    return %arg0, %c0_i32, %c0_i32_0 : i32, i32, i32
  }
  func.func @transform_9(%arg0: i32) -> (i32, i32, i32) {
    %c0_i32 = arith.constant 0 : i32
    %c0_i32_0 = arith.constant 0 : i32
    %c0_i32_1 = arith.constant 0 : i32
    return %arg0, %c0_i32, %c0_i32_0 : i32, i32, i32
  }
}

module attributes {stable_mosaic.version = 11 : i64} {
  func.func @conv_block_kernel(%arg0: i32, %arg1: memref<1x12x290xf32, #tpu.memory_space<vmem>>, %arg2: memref<1x12x290xf32, #tpu.memory_space<vmem>>, %arg3: memref<12x108xbf16, #tpu.memory_space<vmem>>, %arg4: memref<12x108xbf16, #tpu.memory_space<vmem>>, %arg5: memref<12x1xf32, #tpu.memory_space<vmem>>, %arg6: memref<12x12xbf16, #tpu.memory_space<vmem>>, %arg7: memref<12x1xf32, #tpu.memory_space<vmem>>, %arg8: memref<1x12x256xf32, #tpu.memory_space<vmem>>, %arg9: memref<1x12x1xf32, #tpu.memory_space<vmem>>, %arg10: memref<1x12x1xf32, #tpu.memory_space<vmem>>) attributes {dimension_semantics = [#tpu.dimension_semantics<parallel>], iteration_bounds = array<i64: 2>, scalar_prefetch = 0 : i64, scratch_operands = 0 : i64, tpu.core_type = #tpu.core_type<tc>, window_params = [{transform_indices = @transform_0, window_bounds = array<i64: 1, 12, 290>}, {transform_indices = @transform_1, window_bounds = array<i64: 1, 12, 290>}, {pipeline_mode = #tpu.pipeline_mode<synchronous>, transform_indices = @transform_2, window_bounds = array<i64: 12, 108>}, {pipeline_mode = #tpu.pipeline_mode<synchronous>, transform_indices = @transform_3, window_bounds = array<i64: 12, 108>}, {pipeline_mode = #tpu.pipeline_mode<synchronous>, transform_indices = @transform_4, window_bounds = array<i64: 12, 1>}, {pipeline_mode = #tpu.pipeline_mode<synchronous>, transform_indices = @transform_5, window_bounds = array<i64: 12, 12>}, {pipeline_mode = #tpu.pipeline_mode<synchronous>, transform_indices = @transform_6, window_bounds = array<i64: 12, 1>}, {transform_indices = @transform_7, window_bounds = array<i64: 1, 12, 256>}, {transform_indices = @transform_8, window_bounds = array<i64: 1, 12, 1>}, {transform_indices = @transform_9, window_bounds = array<i64: 1, 12, 1>}]} {
    %0 = tpu.iota {dimensions = array<i32: 1>} : vector<1x256xi32>
    %c16_i32 = arith.constant 16 : i32
    %c0_i32 = arith.constant 0 : i32
    %1 = arith.cmpi eq, %c16_i32, %c0_i32 : i32
    %c1_i32 = arith.constant 1 : i32
    %2 = arith.select %1, %c1_i32, %c16_i32 : i32
    %3 = vector.broadcast %2 : i32 to vector<1x256xi32>
    %4 = arith.remsi %0, %3 : vector<1x256xi32>
    %c0_i32_0 = arith.constant 0 : i32
    %5 = vector.broadcast %c0_i32_0 : i32 to vector<1x256xi32>
    %6 = arith.cmpi ne, %4, %5 : vector<1x256xi32>
    %c0_i32_1 = arith.constant 0 : i32
    %7 = vector.broadcast %c0_i32_1 : i32 to vector<1x256xi32>
    %8 = arith.cmpi slt, %4, %7 : vector<1x256xi32>
    %c0_i32_2 = arith.constant 0 : i32
    %9 = arith.cmpi slt, %2, %c0_i32_2 : i32
    %10 = vector.broadcast %9 : i1 to vector<1x256xi1>
    %11 = vector.broadcast %10 : vector<1x256xi1> to vector<1x256xi1>
    %12 = arith.xori %8, %11 : vector<1x256xi1>
    %13 = arith.andi %12, %6 : vector<1x256xi1>
    %14 = vector.broadcast %2 : i32 to vector<1x256xi32>
    %15 = arith.addi %4, %14 : vector<1x256xi32>
    %16 = arith.select %13, %15, %4 : vector<1x256xi1>, vector<1x256xi32>
    %c1_i32_3 = arith.constant 1 : i32
    %17 = vector.broadcast %c1_i32_3 : i32 to vector<1x256xi32>
    %18 = arith.cmpi sge, %16, %17 : vector<1x256xi32>
    %c14_i32 = arith.constant 14 : i32
    %19 = vector.broadcast %c14_i32 : i32 to vector<1x256xi32>
    %20 = arith.cmpi sle, %16, %19 : vector<1x256xi32>
    %cst = arith.constant 0.000000e+00 : f32
    %21 = vector.broadcast %cst : f32 to vector<12x256xf32>
    %c0 = arith.constant 0 : index
    %c0_4 = arith.constant 0 : index
    %22 = vector.load %arg5[%c0, %c0_4] : memref<12x1xf32, #tpu.memory_space<vmem>>, vector<12x1xf32>
    %23 = vector.broadcast %22 : vector<12x1xf32> to vector<12x256xf32>
    %24 = arith.addf %21, %23 : vector<12x256xf32>
    %c0_5 = arith.constant 0 : index
    %c0_6 = arith.constant 0 : index
    %c0_7 = arith.constant 0 : index
    %25 = vector.load %arg1[%c0_5, %c0_6, %c0_7] : memref<1x12x290xf32, #tpu.memory_space<vmem>>, vector<1x12x290xf32>
    %26 = vector.shape_cast %25 : vector<1x12x290xf32> to vector<12x290xf32>
    %27 = vector.extract_strided_slice %26 {offsets = [0, 0], sizes = [12, 256], strides = [1, 1]} : vector<12x290xf32> to vector<12x256xf32>
    %cst_8 = arith.constant 0.000000e+00 : f32
    %28 = vector.shape_cast %18 : vector<1x256xi1> to vector<1x256xi1>
    %29 = vector.broadcast %28 : vector<1x256xi1> to vector<12x256xi1>
    %30 = vector.broadcast %cst_8 : f32 to vector<12x256xf32>
    %31 = arith.select %29, %27, %30 : vector<12x256xi1>, vector<12x256xf32>
    %32 = vector.extract_strided_slice %26 {offsets = [0, 1], sizes = [12, 256], strides = [1, 1]} : vector<12x290xf32> to vector<12x256xf32>
    %33 = vector.extract_strided_slice %26 {offsets = [0, 2], sizes = [12, 256], strides = [1, 1]} : vector<12x290xf32> to vector<12x256xf32>
    %cst_9 = arith.constant 0.000000e+00 : f32
    %34 = vector.shape_cast %20 : vector<1x256xi1> to vector<1x256xi1>
    %35 = vector.broadcast %34 : vector<1x256xi1> to vector<12x256xi1>
    %36 = vector.broadcast %cst_9 : f32 to vector<12x256xf32>
    %37 = arith.select %35, %33, %36 : vector<12x256xi1>, vector<12x256xf32>
    %38 = vector.extract_strided_slice %26 {offsets = [0, 16], sizes = [12, 256], strides = [1, 1]} : vector<12x290xf32> to vector<12x256xf32>
    %cst_10 = arith.constant 0.000000e+00 : f32
    %39 = vector.shape_cast %18 : vector<1x256xi1> to vector<1x256xi1>
    %40 = vector.broadcast %39 : vector<1x256xi1> to vector<12x256xi1>
    %41 = vector.broadcast %cst_10 : f32 to vector<12x256xf32>
    %42 = arith.select %40, %38, %41 : vector<12x256xi1>, vector<12x256xf32>
    %43 = vector.extract_strided_slice %26 {offsets = [0, 17], sizes = [12, 256], strides = [1, 1]} : vector<12x290xf32> to vector<12x256xf32>
    %44 = vector.extract_strided_slice %26 {offsets = [0, 18], sizes = [12, 256], strides = [1, 1]} : vector<12x290xf32> to vector<12x256xf32>
    %cst_11 = arith.constant 0.000000e+00 : f32
    %45 = vector.shape_cast %20 : vector<1x256xi1> to vector<1x256xi1>
    %46 = vector.broadcast %45 : vector<1x256xi1> to vector<12x256xi1>
    %47 = vector.broadcast %cst_11 : f32 to vector<12x256xf32>
    %48 = arith.select %46, %44, %47 : vector<12x256xi1>, vector<12x256xf32>
    %49 = vector.extract_strided_slice %26 {offsets = [0, 32], sizes = [12, 256], strides = [1, 1]} : vector<12x290xf32> to vector<12x256xf32>
    %cst_12 = arith.constant 0.000000e+00 : f32
    %50 = vector.shape_cast %18 : vector<1x256xi1> to vector<1x256xi1>
    %51 = vector.broadcast %50 : vector<1x256xi1> to vector<12x256xi1>
    %52 = vector.broadcast %cst_12 : f32 to vector<12x256xf32>
    %53 = arith.select %51, %49, %52 : vector<12x256xi1>, vector<12x256xf32>
    %54 = vector.extract_strided_slice %26 {offsets = [0, 33], sizes = [12, 256], strides = [1, 1]} : vector<12x290xf32> to vector<12x256xf32>
    %55 = vector.extract_strided_slice %26 {offsets = [0, 34], sizes = [12, 256], strides = [1, 1]} : vector<12x290xf32> to vector<12x256xf32>
    %cst_13 = arith.constant 0.000000e+00 : f32
    %56 = vector.shape_cast %20 : vector<1x256xi1> to vector<1x256xi1>
    %57 = vector.broadcast %56 : vector<1x256xi1> to vector<12x256xi1>
    %58 = vector.broadcast %cst_13 : f32 to vector<12x256xf32>
    %59 = arith.select %57, %55, %58 : vector<12x256xi1>, vector<12x256xf32>
    %60 = tpu.concatenate %31, %32, %37, %42, %43, %48, %53, %54, %59 in 0 : vector<12x256xf32>, vector<12x256xf32>, vector<12x256xf32>, vector<12x256xf32>, vector<12x256xf32>, vector<12x256xf32>, vector<12x256xf32>, vector<12x256xf32>, vector<12x256xf32> -> vector<108x256xf32>
    %61 = arith.truncf %60 : vector<108x256xf32> to vector<108x256xbf16>
    %c0_14 = arith.constant 0 : index
    %c0_15 = arith.constant 0 : index
    %62 = vector.load %arg3[%c0_14, %c0_15] : memref<12x108xbf16, #tpu.memory_space<vmem>>, vector<12x108xbf16>
    %cst_16 = arith.constant dense<0.000000e+00> : vector<12x256xf32>
    %63 = tpu.matmul %62, %61, %cst_16 {dimension_numbers = #tpu.dot_dimension_numbers<[1], [0], [0], [1], [0, 0, 1, 1], [], []>} : vector<12x108xbf16>, vector<108x256xbf16>, vector<12x256xf32> -> vector<12x256xf32>
    %64 = arith.addf %24, %63 : vector<12x256xf32>
    %c0_17 = arith.constant 0 : index
    %c0_18 = arith.constant 0 : index
    %c0_19 = arith.constant 0 : index
    %65 = vector.load %arg2[%c0_17, %c0_18, %c0_19] : memref<1x12x290xf32, #tpu.memory_space<vmem>>, vector<1x12x290xf32>
    %66 = vector.shape_cast %65 : vector<1x12x290xf32> to vector<12x290xf32>
    %67 = vector.extract_strided_slice %66 {offsets = [0, 0], sizes = [12, 256], strides = [1, 1]} : vector<12x290xf32> to vector<12x256xf32>
    %cst_20 = arith.constant 0.000000e+00 : f32
    %68 = vector.shape_cast %18 : vector<1x256xi1> to vector<1x256xi1>
    %69 = vector.broadcast %68 : vector<1x256xi1> to vector<12x256xi1>
    %70 = vector.broadcast %cst_20 : f32 to vector<12x256xf32>
    %71 = arith.select %69, %67, %70 : vector<12x256xi1>, vector<12x256xf32>
    %72 = vector.extract_strided_slice %66 {offsets = [0, 1], sizes = [12, 256], strides = [1, 1]} : vector<12x290xf32> to vector<12x256xf32>
    %73 = vector.extract_strided_slice %66 {offsets = [0, 2], sizes = [12, 256], strides = [1, 1]} : vector<12x290xf32> to vector<12x256xf32>
    %cst_21 = arith.constant 0.000000e+00 : f32
    %74 = vector.shape_cast %20 : vector<1x256xi1> to vector<1x256xi1>
    %75 = vector.broadcast %74 : vector<1x256xi1> to vector<12x256xi1>
    %76 = vector.broadcast %cst_21 : f32 to vector<12x256xf32>
    %77 = arith.select %75, %73, %76 : vector<12x256xi1>, vector<12x256xf32>
    %78 = vector.extract_strided_slice %66 {offsets = [0, 16], sizes = [12, 256], strides = [1, 1]} : vector<12x290xf32> to vector<12x256xf32>
    %cst_22 = arith.constant 0.000000e+00 : f32
    %79 = vector.shape_cast %18 : vector<1x256xi1> to vector<1x256xi1>
    %80 = vector.broadcast %79 : vector<1x256xi1> to vector<12x256xi1>
    %81 = vector.broadcast %cst_22 : f32 to vector<12x256xf32>
    %82 = arith.select %80, %78, %81 : vector<12x256xi1>, vector<12x256xf32>
    %83 = vector.extract_strided_slice %66 {offsets = [0, 17], sizes = [12, 256], strides = [1, 1]} : vector<12x290xf32> to vector<12x256xf32>
    %84 = vector.extract_strided_slice %66 {offsets = [0, 18], sizes = [12, 256], strides = [1, 1]} : vector<12x290xf32> to vector<12x256xf32>
    %cst_23 = arith.constant 0.000000e+00 : f32
    %85 = vector.shape_cast %20 : vector<1x256xi1> to vector<1x256xi1>
    %86 = vector.broadcast %85 : vector<1x256xi1> to vector<12x256xi1>
    %87 = vector.broadcast %cst_23 : f32 to vector<12x256xf32>
    %88 = arith.select %86, %84, %87 : vector<12x256xi1>, vector<12x256xf32>
    %89 = vector.extract_strided_slice %66 {offsets = [0, 32], sizes = [12, 256], strides = [1, 1]} : vector<12x290xf32> to vector<12x256xf32>
    %cst_24 = arith.constant 0.000000e+00 : f32
    %90 = vector.shape_cast %18 : vector<1x256xi1> to vector<1x256xi1>
    %91 = vector.broadcast %90 : vector<1x256xi1> to vector<12x256xi1>
    %92 = vector.broadcast %cst_24 : f32 to vector<12x256xf32>
    %93 = arith.select %91, %89, %92 : vector<12x256xi1>, vector<12x256xf32>
    %94 = vector.extract_strided_slice %66 {offsets = [0, 33], sizes = [12, 256], strides = [1, 1]} : vector<12x290xf32> to vector<12x256xf32>
    %95 = vector.extract_strided_slice %66 {offsets = [0, 34], sizes = [12, 256], strides = [1, 1]} : vector<12x290xf32> to vector<12x256xf32>
    %cst_25 = arith.constant 0.000000e+00 : f32
    %96 = vector.shape_cast %20 : vector<1x256xi1> to vector<1x256xi1>
    %97 = vector.broadcast %96 : vector<1x256xi1> to vector<12x256xi1>
    %98 = vector.broadcast %cst_25 : f32 to vector<12x256xf32>
    %99 = arith.select %97, %95, %98 : vector<12x256xi1>, vector<12x256xf32>
    %100 = tpu.concatenate %71, %72, %77, %82, %83, %88, %93, %94, %99 in 0 : vector<12x256xf32>, vector<12x256xf32>, vector<12x256xf32>, vector<12x256xf32>, vector<12x256xf32>, vector<12x256xf32>, vector<12x256xf32>, vector<12x256xf32>, vector<12x256xf32> -> vector<108x256xf32>
    %101 = arith.truncf %100 : vector<108x256xf32> to vector<108x256xbf16>
    %c0_26 = arith.constant 0 : index
    %c0_27 = arith.constant 0 : index
    %102 = vector.load %arg4[%c0_26, %c0_27] : memref<12x108xbf16, #tpu.memory_space<vmem>>, vector<12x108xbf16>
    %cst_28 = arith.constant dense<0.000000e+00> : vector<12x256xf32>
    %103 = tpu.matmul %102, %101, %cst_28 {dimension_numbers = #tpu.dot_dimension_numbers<[1], [0], [0], [1], [0, 0, 1, 1], [], []>} : vector<12x108xbf16>, vector<108x256xbf16>, vector<12x256xf32> -> vector<12x256xf32>
    %104 = arith.addf %64, %103 : vector<12x256xf32>
    %c0_29 = arith.constant 0 : index
    %c0_30 = arith.constant 0 : index
    %105 = vector.load %arg6[%c0_29, %c0_30] : memref<12x12xbf16, #tpu.memory_space<vmem>>, vector<12x12xbf16>
    %106 = arith.truncf %104 : vector<12x256xf32> to vector<12x256xbf16>
    %cst_31 = arith.constant dense<0.000000e+00> : vector<12x256xf32>
    %107 = tpu.matmul %105, %106, %cst_31 {dimension_numbers = #tpu.dot_dimension_numbers<[1], [0], [0], [1], [0, 0, 1, 1], [], []>} : vector<12x12xbf16>, vector<12x256xbf16>, vector<12x256xf32> -> vector<12x256xf32>
    %c0_32 = arith.constant 0 : index
    %c0_33 = arith.constant 0 : index
    %108 = vector.load %arg7[%c0_32, %c0_33] : memref<12x1xf32, #tpu.memory_space<vmem>>, vector<12x1xf32>
    %109 = vector.broadcast %108 : vector<12x1xf32> to vector<12x256xf32>
    %110 = arith.addf %107, %109 : vector<12x256xf32>
    %cst_34 = arith.constant 0.000000e+00 : f32
    %111 = vector.broadcast %cst_34 : f32 to vector<12x256xf32>
    %112 = arith.maximumf %110, %111 : vector<12x256xf32>
    %c0_35 = arith.constant 0 : index
    %c0_36 = arith.constant 0 : index
    %c0_37 = arith.constant 0 : index
    %113 = vector.load %arg8[%c0_35, %c0_36, %c0_37] : memref<1x12x256xf32, #tpu.memory_space<vmem>>, vector<1x12x256xf32>
    %114 = vector.shape_cast %113 : vector<1x12x256xf32> to vector<12x256xf32>
    %115 = vector.shape_cast %112 : vector<12x256xf32> to vector<1x12x256xf32>
    tpu.vector_store %arg8[%c0_35, %c0_36, %c0_37], %115 {strides = array<i32>} : memref<1x12x256xf32, #tpu.memory_space<vmem>>, vector<1x12x256xf32>,
    %cst_38 = arith.constant dense<0.000000e+00> : vector<12xf32>
    %116 = vector.multi_reduction <add>, %112, %cst_38 [1] : vector<12x256xf32> to vector<12xf32>
    %117 = vector.shape_cast %116 : vector<12xf32> to vector<12x1xf32>
    %c0_39 = arith.constant 0 : index
    %c0_40 = arith.constant 0 : index
    %c0_41 = arith.constant 0 : index
    %118 = vector.load %arg9[%c0_39, %c0_40, %c0_41] : memref<1x12x1xf32, #tpu.memory_space<vmem>>, vector<1x12x1xf32>
    %119 = vector.shape_cast %118 : vector<1x12x1xf32> to vector<12x1xf32>
    %120 = vector.shape_cast %117 : vector<12x1xf32> to vector<1x12x1xf32>
    tpu.vector_store %arg9[%c0_39, %c0_40, %c0_41], %120 {strides = array<i32>} : memref<1x12x1xf32, #tpu.memory_space<vmem>>, vector<1x12x1xf32>,
    %121 = arith.mulf %112, %112 : vector<12x256xf32>
    %cst_42 = arith.constant dense<0.000000e+00> : vector<12xf32>
    %122 = vector.multi_reduction <add>, %121, %cst_42 [1] : vector<12x256xf32> to vector<12xf32>
    %123 = vector.shape_cast %122 : vector<12xf32> to vector<12x1xf32>
    %c0_43 = arith.constant 0 : index
    %c0_44 = arith.constant 0 : index
    %c0_45 = arith.constant 0 : index
    %124 = vector.load %arg10[%c0_43, %c0_44, %c0_45] : memref<1x12x1xf32, #tpu.memory_space<vmem>>, vector<1x12x1xf32>
    %125 = vector.shape_cast %124 : vector<1x12x1xf32> to vector<12x1xf32>
    %126 = vector.shape_cast %123 : vector<12x1xf32> to vector<1x12x1xf32>
    tpu.vector_store %arg10[%c0_43, %c0_44, %c0_45], %126 {strides = array<i32>} : memref<1x12x1xf32, #tpu.memory_space<vmem>>, vector<1x12x1xf32>,
    return
  }
  func.func @transform_0(%arg0: i32) -> (i32, i32, i32) {
    %c0_i32 = arith.constant 0 : i32
    %c0_i32_0 = arith.constant 0 : i32
    %c0_i32_1 = arith.constant 0 : i32
    return %arg0, %c0_i32, %c0_i32_0 : i32, i32, i32
  }
  func.func @transform_1(%arg0: i32) -> (i32, i32, i32) {
    %c0_i32 = arith.constant 0 : i32
    %c0_i32_0 = arith.constant 0 : i32
    %c0_i32_1 = arith.constant 0 : i32
    return %arg0, %c0_i32, %c0_i32_0 : i32, i32, i32
  }
  func.func @transform_2(%arg0: i32) -> (i32, i32) {
    %c0_i32 = arith.constant 0 : i32
    %c0_i32_0 = arith.constant 0 : i32
    %c0_i32_1 = arith.constant 0 : i32
    return %c0_i32, %c0_i32_0 : i32, i32
  }
  func.func @transform_3(%arg0: i32) -> (i32, i32) {
    %c0_i32 = arith.constant 0 : i32
    %c0_i32_0 = arith.constant 0 : i32
    %c0_i32_1 = arith.constant 0 : i32
    return %c0_i32, %c0_i32_0 : i32, i32
  }
  func.func @transform_4(%arg0: i32) -> (i32, i32) {
    %c0_i32 = arith.constant 0 : i32
    %c0_i32_0 = arith.constant 0 : i32
    %c0_i32_1 = arith.constant 0 : i32
    return %c0_i32, %c0_i32_0 : i32, i32
  }
  func.func @transform_5(%arg0: i32) -> (i32, i32) {
    %c0_i32 = arith.constant 0 : i32
    %c0_i32_0 = arith.constant 0 : i32
    %c0_i32_1 = arith.constant 0 : i32
    return %c0_i32, %c0_i32_0 : i32, i32
  }
  func.func @transform_6(%arg0: i32) -> (i32, i32) {
    %c0_i32 = arith.constant 0 : i32
    %c0_i32_0 = arith.constant 0 : i32
    %c0_i32_1 = arith.constant 0 : i32
    return %c0_i32, %c0_i32_0 : i32, i32
  }
  func.func @transform_7(%arg0: i32) -> (i32, i32, i32) {
    %c0_i32 = arith.constant 0 : i32
    %c0_i32_0 = arith.constant 0 : i32
    %c0_i32_1 = arith.constant 0 : i32
    return %arg0, %c0_i32, %c0_i32_0 : i32, i32, i32
  }
  func.func @transform_8(%arg0: i32) -> (i32, i32, i32) {
    %c0_i32 = arith.constant 0 : i32
    %c0_i32_0 = arith.constant 0 : i32
    %c0_i32_1 = arith.constant 0 : i32
    return %arg0, %c0_i32, %c0_i32_0 : i32, i32, i32
  }
  func.func @transform_9(%arg0: i32) -> (i32, i32, i32) {
    %c0_i32 = arith.constant 0 : i32
    %c0_i32_0 = arith.constant 0 : i32
    %c0_i32_1 = arith.constant 0 : i32
    return %arg0, %c0_i32, %c0_i32_0 : i32, i32, i32
  }
}

module attributes {stable_mosaic.version = 11 : i64} {
  func.func @final_kernel(%arg0: i32, %arg1: memref<1x12x256xf32, #tpu.memory_space<vmem>>, %arg2: memref<3x12xf32, #tpu.memory_space<vmem>>, %arg3: memref<3x1xf32, #tpu.memory_space<vmem>>, %arg4: memref<1x3x256xf32, #tpu.memory_space<vmem>>) attributes {dimension_semantics = [#tpu.dimension_semantics<parallel>], iteration_bounds = array<i64: 2>, scalar_prefetch = 0 : i64, scratch_operands = 0 : i64, tpu.core_type = #tpu.core_type<tc>, window_params = [{transform_indices = @transform_0, window_bounds = array<i64: 1, 12, 256>}, {pipeline_mode = #tpu.pipeline_mode<synchronous>, transform_indices = @transform_1, window_bounds = array<i64: 3, 12>}, {pipeline_mode = #tpu.pipeline_mode<synchronous>, transform_indices = @transform_2, window_bounds = array<i64: 3, 1>}, {transform_indices = @transform_3, window_bounds = array<i64: 1, 3, 256>}]} {
    %c0 = arith.constant 0 : index
    %c0_0 = arith.constant 0 : index
    %0 = vector.load %arg2[%c0, %c0_0] : memref<3x12xf32, #tpu.memory_space<vmem>>, vector<3x12xf32>
    %c0_1 = arith.constant 0 : index
    %c0_2 = arith.constant 0 : index
    %c0_3 = arith.constant 0 : index
    %1 = vector.load %arg1[%c0_1, %c0_2, %c0_3] : memref<1x12x256xf32, #tpu.memory_space<vmem>>, vector<1x12x256xf32>
    %2 = vector.shape_cast %1 : vector<1x12x256xf32> to vector<12x256xf32>
    %cst = arith.constant dense<0.000000e+00> : vector<3x256xf32>
    %3 = tpu.matmul %0, %2, %cst {dimension_numbers = #tpu.dot_dimension_numbers<[1], [0], [0], [1], [0, 0, 1, 1], [], []>} : vector<3x12xf32>, vector<12x256xf32>, vector<3x256xf32> -> vector<3x256xf32>
    %c0_4 = arith.constant 0 : index
    %c0_5 = arith.constant 0 : index
    %4 = vector.load %arg3[%c0_4, %c0_5] : memref<3x1xf32, #tpu.memory_space<vmem>>, vector<3x1xf32>
    %5 = vector.broadcast %4 : vector<3x1xf32> to vector<3x256xf32>
    %6 = arith.addf %3, %5 : vector<3x256xf32>
    %cst_6 = arith.constant dense<0xFF800000> : vector<256xf32>
    %7 = vector.multi_reduction <maximumf>, %6, %cst_6 [0] : vector<3x256xf32> to vector<256xf32>
    %8 = vector.shape_cast %7 : vector<256xf32> to vector<1x256xf32>
    %9 = vector.broadcast %8 : vector<1x256xf32> to vector<3x256xf32>
    %10 = arith.subf %6, %9 : vector<3x256xf32>
    %11 = math.exp %10 : vector<3x256xf32>
    %cst_7 = arith.constant dense<0.000000e+00> : vector<256xf32>
    %12 = vector.multi_reduction <add>, %11, %cst_7 [0] : vector<3x256xf32> to vector<256xf32>
    %13 = vector.shape_cast %12 : vector<256xf32> to vector<1x256xf32>
    %14 = math.log %13 : vector<1x256xf32>
    %15 = vector.broadcast %14 : vector<1x256xf32> to vector<3x256xf32>
    %16 = arith.subf %10, %15 : vector<3x256xf32>
    %c0_8 = arith.constant 0 : index
    %c0_9 = arith.constant 0 : index
    %c0_10 = arith.constant 0 : index
    %17 = vector.load %arg4[%c0_8, %c0_9, %c0_10] : memref<1x3x256xf32, #tpu.memory_space<vmem>>, vector<1x3x256xf32>
    %18 = vector.shape_cast %17 : vector<1x3x256xf32> to vector<3x256xf32>
    %19 = vector.shape_cast %16 : vector<3x256xf32> to vector<1x3x256xf32>
    tpu.vector_store %arg4[%c0_8, %c0_9, %c0_10], %19 {strides = array<i32>} : memref<1x3x256xf32, #tpu.memory_space<vmem>>, vector<1x3x256xf32>,
    return
  }
  func.func @transform_0(%arg0: i32) -> (i32, i32, i32) {
    %c0_i32 = arith.constant 0 : i32
    %c0_i32_0 = arith.constant 0 : i32
    %c0_i32_1 = arith.constant 0 : i32
    return %arg0, %c0_i32, %c0_i32_0 : i32, i32, i32
  }
  func.func @transform_1(%arg0: i32) -> (i32, i32) {
    %c0_i32 = arith.constant 0 : i32
    %c0_i32_0 = arith.constant 0 : i32
    %c0_i32_1 = arith.constant 0 : i32
    return %c0_i32, %c0_i32_0 : i32, i32
  }
  func.func @transform_2(%arg0: i32) -> (i32, i32) {
    %c0_i32 = arith.constant 0 : i32
    %c0_i32_0 = arith.constant 0 : i32
    %c0_i32_1 = arith.constant 0 : i32
    return %c0_i32, %c0_i32_0 : i32, i32
  }
  func.func @transform_3(%arg0: i32) -> (i32, i32, i32) {
    %c0_i32 = arith.constant 0 : i32
    %c0_i32_0 = arith.constant 0 : i32
    %c0_i32_1 = arith.constant 0 : i32
    return %arg0, %c0_i32, %c0_i32_0 : i32, i32, i32
  }
}

</mosaic_0001>

<bundles_post_ra>
// kernel: panelnet_forward.10
= control target key start
LH: loop header
LB: loop body
LE: loop exit
PB: predicated region body
PF: predicated region fallthrough
CT: control target
= control target key end

     0   :  { %s885_s24 = smov 0   ;;  %s1040_s0 = inlined_call_operand.vmem [shape: f32[2,4,290], index: 0, kind: input, shape index: {}]   ;;  %s1041_s1 = inlined_call_operand.vmem [shape: bf16[8,36], index: 1, kind: input, shape index: {}]   ;;  %s1042_s2 = inlined_call_operand.vmem [shape: f32[8,1], index: 2, kind: input, shape index: {}]   ;;  %s1043_s3 = inlined_call_operand.vmem [shape: bf16[8,8], index: 3, kind: input, shape index: {}]   ;;  %s1044_s4 = inlined_call_operand.vmem [shape: f32[8,1], index: 4, kind: input, shape index: {}]   ;;  %s1045_s5 = inlined_call_operand.vmem [shape: f32[2,8,256], index: 5, kind: output, shape index: {0}]   ;;  %s1046_s6 = inlined_call_operand.vmem [shape: f32[2,8,1], index: 6, kind: output, shape index: {1}]   ;;  %s1047_s7 = inlined_call_operand.vmem [shape: f32[2,8,1], index: 7, kind: output, shape index: {2}]  }
   0x1 LB: > { %s750_s25 = sadd.s32 4294967295, %s834_s24   ;;  %p754_p0 = scmp.ge.s32.totalorder %s834_s24, 1  ;;  %s834_s24 = sphi %s885_s24, %s18_s24  }
   0x2   : > { %p242_p1 = scmp.lt.s32.totalorder %s834_s24, 3 }
   0x4   : > { %p243_p2 = pnand %p754_p0, %p242_p1 }
   0x5   : > { %p282_p3 = scmp.lt.s32.totalorder (!%p243_p2), %s750_s25, 1  ;;  %s836_s30 = smov (!%p243_p2), 112  }
   0x6   : > { %246 = sbr.rel (%p243_p2) target bundleno = 613 (0x265), region = 40  ;;  %s837_s8 = smov (!%p243_p2), 126  }
   0x7   : > { %s838_s9 = smov (!%p243_p2), 110   ;;  %s839_s10 = smov (!%p243_p2), 96  }
   0x8   : > { %s840_s11 = smov (!%p243_p2), 94   ;;  %s841_s12 = smov (!%p243_p2), 111  }
   0x9   : > { %s842_s13 = smov (!%p243_p2), 95   ;;  %s843_s14 = smov (!%p243_p2), 127  }
   0xb   : > { %s1057_s25 = smov (!%p282_p3, %s750_s25), 1  ;;  %v301_v40 = vlaneseq  ;;  %vm446_vm0 = vcmask 769024   ;;  %vm538_vm3 = vcmask 1041408   ;;  %vm408_vm4 = vcmask 900096   ;;  %v576_v52 = vld [vmem:[%s1044_s4] sm:$0xff] }
   0xc   : > { %s767_s26 = smul.u32 12, %s1057_s25  ;;  %vm389_vm5 = vcmask 916480   ;;  %vm427_vm6 = vcmask 785408   ;;  %vm513_vm7 = vcmask 777216   ;;  %vm370_vm9 = vcmask 1031168   ;;  %s766_s23 = sshll.u32 %s1057_s25, 4 }
   0xd   : > { %v302_v43 = vand.u32 127, %v301_v40  ;;  %vm489_vm10 = vcmask 908288   ;;  %vm466_vm11 = vcmask 1039360   ;;  %vm518_vm12 = vcmask 1043456   ;;  %s291_s28 = scalar_lea.vmem %s1045_s5, %s766_s23 }
   0xe   : > { %s286_s29 = scalar_lea.vmem %s1040_s0, %s767_s26  ;;  %vm534_vm14 = vcmask 293888   ;;  %vm582_vm15 = vcmask 64512  }
   0xf   : > { %v340_v0 = vld [vmem:[%s286_s29 + $0x8] sm:$0xf]  ;;  %v899_v1 = vld [vmem:[%s286_s29] sm:$0xff]  ;;  %v928_v45 = vadd.s32 128, %v302_v43  ;;  %v308_v50 = vand.u32 15, %v302_v43  ;;  %s758_s29 = sshll.u32 %s1057_s25, 3 }
  0x10   : > { %360 = vst [vmem:[#allocation1 + $0x10] ss:$2 sm:$0xff] %v340_v0 }
  0x11   : > { %346 = vst [vmem:[#allocation1] ss:$2 sm:$0xff] %v899_v1  ;;  %v315_v46 = vand.u32 15, %v928_v45  ;;  %vm939_vm2 = vcmp.le.s32.totalorder %v308_v50, 14  ;;  %vm960_vm8 = vcmp.ge.s32.totalorder %v308_v50, 1 }
  0x13   : > { %vm935_vm1 = vcmp.le.s32.totalorder %v315_v46, 14  ;;  %vm993_vm13 = vcmp.ge.s32.totalorder %v315_v46, 1  ;;  %v533_v46 = vld [vmem:[%s1041_s1] sm:$0xf] }
  0x17   : > { %v363_v2 = vld.sshfl [vmem:[#allocation1 + $0x10] sm:$0xff pattern:$0x75316420] }
  0x18   : > { %379 = vst [vmem:[#allocation1 + $0x10] ss:$2 sm:$0xff] %v340_v0  ;;  %v902_v3 = vld.sshfl [vmem:[#allocation1] sm:$0xff pattern:$0x75316420] }
  0x19   : > { %v904_v4 = vld.sshfl [vmem:[#allocation1 + $0x8] sm:$0xff pattern:$0x75316420] }
  0x1a   : > { %358 = vst [vmem:[#allocation1] ss:$2 sm:$0xff] %v899_v1 }
  0x1f   : > { %v382_v5 = vld.sshfl [vmem:[#allocation1 + $0x10] sm:$0xff pattern:$0x75316420] }
  0x20   : > { %398 = vst [vmem:[#allocation1 + $0x10] ss:$2 sm:$0xff] %v340_v0  ;;  %387 = vrot.lane.b32.xlu2 %v382_v5, %s836_s30  ;;  %v844_v5 = vmov 0  }
  0x21   : > { %v361_v6 = vld.sshfl [vmem:[#allocation1] sm:$0xff pattern:$0x75316420]  ;;  %v362_v7 = vld.sshfl [vmem:[#allocation1 + $0x8] sm:$0xff pattern:$0x75316420]  ;;  %825 = vset.pattern.permute.xlu1 %v844_v5  ;;  %826 = vset.pattern.permute.xlu2 %v844_v5 }
  0x22   : > { %v785_v8 = vpack.i.bf16 %v362_v7, %v361_v6  ;;  %377 = vst [vmem:[#allocation1] ss:$2 sm:$0xff] %v899_v1  ;;  %827 = vset.pattern.permute.xlu0 %v844_v5 }
  0x24   : > { %786 = vrot.lane.b32.xlu0 %v785_v8, %s837_s8 }
  0x27   : > { %v401_v9 = vld.sshfl [vmem:[#allocation1 + $0x10] sm:$0xff pattern:$0x75316420] }
  0x28   : > { %406 = vrot.lane.b32.xlu1 %v401_v9, %s838_s9  ;;  %417 = vst [vmem:[#allocation1 + $0x10] ss:$2 sm:$0xff] %v340_v0 }
  0x29   : > { %v380_v10 = vld.sshfl [vmem:[#allocation1] sm:$0xff pattern:$0x75316420]  ;;  %v381_v11 = vld.sshfl [vmem:[#allocation1 + $0x8] sm:$0xff pattern:$0x75316420] }
  0x2a   : > { %396 = vst [vmem:[#allocation1] ss:$2 sm:$0xff] %v899_v1  ;;  %v790_v12 = vpack.i.bf16 %v381_v11, %v380_v10 }
  0x2f   : > { %v420_v13 = vld.sshfl [vmem:[#allocation1 + $0x10] sm:$0xff pattern:$0x75316420] }
  0x30   : > { %436 = vst [vmem:[#allocation1 + $0x10] ss:$2 sm:$0xff] %v340_v0  ;;  %791 = vrot.lane.b32.xlu1 %v790_v12, %s836_s30  ;;  %425 = vrot.lane.b32.xlu2 %v420_v13, %s839_s10 }
  0x31   : > { %v399_v14 = vld.sshfl [vmem:[#allocation1] sm:$0xff pattern:$0x75316420]  ;;  %v400_v15 = vld.sshfl [vmem:[#allocation1 + $0x8] sm:$0xff pattern:$0x75316420] }
  0x32   : > { %415 = vst [vmem:[#allocation1] ss:$2 sm:$0xff] %v899_v1  ;;  %v795_v16 = vpack.i.bf16 %v400_v15, %v399_v14 }
  0x37   : > { %v439_v17 = vld.sshfl [vmem:[#allocation1 + $0x10] sm:$0xff pattern:$0x75316420] }
  0x38   : > { %456 = vst [vmem:[#allocation1 + $0x11] ss:$2 sm:$0xff] %v340_v0  ;;  %444 = vrot.lane.b32.xlu0 %v439_v17, %s840_s11  ;;  %796 = vrot.lane.b32.xlu1 %v795_v16, %s838_s9  ;;  %s295_s9 = scalar_lea.vmem %s1046_s6, %s758_s29 }
  0x39   : > { %v418_v18 = vld.sshfl [vmem:[#allocation1] sm:$0xff pattern:$0x75316420]  ;;  %v419_v19 = vld.sshfl [vmem:[#allocation1 + $0x8] sm:$0xff pattern:$0x75316420] }
  0x3a   : > { %434 = vst [vmem:[#allocation1] ss:$2 sm:$0xff] %v899_v1  ;;  %v800_v20 = vpack.i.bf16 %v419_v19, %v418_v18 }
  0x3c   : > { %801 = vrot.lane.b32.xlu2 %v800_v20, %s839_s10 }
  0x3f   : > { %v459_v21 = vld.sshfl [vmem:[#allocation1 + $0x10] sm:$0xff pattern:$0x75316420] }
  0x40   : > { %479 = vst [vmem:[#allocation1 + $0x10] ss:$2 sm:$0xff] %v340_v0 }
  0x41   : > { %v437_v22 = vld.sshfl [vmem:[#allocation1] sm:$0xff pattern:$0x75316420]  ;;  %v438_v23 = vld.sshfl [vmem:[#allocation1 + $0x8] sm:$0xff pattern:$0x75316420] }
  0x42   : > { %v805_v24 = vpack.i.bf16 %v438_v23, %v437_v22  ;;  %454 = vst [vmem:[#allocation1 + $0x1] ss:$2 sm:$0xff] %v899_v1 }
  0x44   : > { %806 = vrot.lane.b32.xlu0 %v805_v24, %s840_s11 }
  0x47   : > { %v482_v25 = vld.sshfl [vmem:[#allocation1 + $0x10] sm:$0xff pattern:$0x75316420] }
  0x48   : > { %503 = vst [vmem:[#allocation1 + $0x11] ss:$2 sm:$0xff] %v340_v0  ;;  %487 = vrot.lane.b32.xlu1 %v482_v25, %s841_s12 }
  0x49   : > { %v457_v26 = vld.sshfl [vmem:[#allocation1] sm:$0xff pattern:$0x75316420]  ;;  %v458_v27 = vld.sshfl [vmem:[#allocation1 + $0x8] sm:$0xff pattern:$0x75316420] }
  0x4a   : > { %477 = vst [vmem:[#allocation1] ss:$2 sm:$0xff] %v899_v1  ;;  %v820_v35 = vpack.i.bf16 %v458_v27, %v457_v26 }
  0x4f   : > { %v506_v31 = vld.sshfl [vmem:[#allocation1 + $0x10] sm:$0xff pattern:$0x75316420] }
  0x50   : > { %368 = vrot.lane.b32.xlu1 %v363_v2, %s837_s8  ;;  %v332_v2 = vld [vmem:[%s1042_s2] sm:$0xff] }
  0x51   : > { %v480_v28 = vld.sshfl [vmem:[#allocation1] sm:$0xff pattern:$0x75316420]  ;;  %v481_v29 = vld.sshfl [vmem:[#allocation1 + $0x8] sm:$0xff pattern:$0x75316420] }
  0x52   : > { %v810_v30 = vpack.i.bf16 %v481_v29, %v480_v28  ;;  %501 = vst [vmem:[#allocation1 + $0x1] ss:$2 sm:$0xff] %v899_v1 }
  0x54   : > { %811 = vrot.lane.b32.xlu0 %v810_v30, %s841_s12  ;;  %s299_s12 = scalar_lea.vmem %s1047_s7, %s758_s29 }
  0x58   : > { %335 = vperm.xlu1 %825, %v332_v2  }
  0x59   : > { %v504_v32 = vld.sshfl [vmem:[#allocation1] sm:$0xff pattern:$0x75316420]  ;;  %v505_v33 = vld.sshfl [vmem:[#allocation1 + $0x8] sm:$0xff pattern:$0x75316420] }
  0x5a   : > { %v815_v34 = vpack.i.bf16 %v505_v33, %v504_v32  ;;  %v351_v33 = vsel %vm960_vm8, %v902_v3, 0.0 }
  0x5c   : > { %511 = vrot.lane.b32.xlu0 %v506_v31, %s842_s13  ;;  %816 = vrot.lane.b32.xlu2 %v815_v34, %s842_s13 }
  0x64   : > { %464 = vrot.lane.b32.xlu0 %v459_v21, %s843_s14  ;;  %821 = vrot.lane.b32.xlu2 %v820_v35, %s843_s14 }
  0x6c   : > { %579 = vperm.xlu2 %826, %v576_v52  }
  0x7a   : > { %v916_v36 = vpop.permute.xlu2 %387 }
  0x8a   : > { %v920_v38 = vpop.permute.xlu2 %425 }
  0x96   : > { %v918_v37 = vpop.permute.xlu0 %786  ;;  %v924_v42 = vpop.permute.xlu2 %801 }
  0x97   : > { %v803_v0 = vunpack.i.l.bf16 %v924_v42  ;;  %v804_v8 = vunpack.i.h.bf16 %v924_v42  ;;  %v789_v16 = vunpack.i.h.bf16 %v918_v37  ;;  %v788_v17 = vunpack.i.l.bf16 %v918_v37 }
  0x99   : > { %v428_v13 = vsel %vm427_vm6, %v803_v0, %v804_v8  ;;  %v371_v31 = vsel %vm370_vm9, %v788_v17, %v789_v16  ;;  %v429_v43 = vsel %vm427_vm6, %v804_v8, %v920_v38  ;;  %v573_v8 = vld [vmem:[%s1043_s3] sm:$0xf] }
  0x9a   : > { %v922_v39 = vpop.permute.xlu1 %406  ;;  %v432_v22 = vsel %vm960_vm8, %v428_v13, 0.0  ;;  %v433_v38 = vsel %vm993_vm13, %v429_v43, 0.0 }
  0xa2   : > { %v926_v44 = vpop.permute.xlu1 %791 }
  0xa3   : > { %v794_v6 = vunpack.i.h.bf16 %v926_v44  ;;  %v793_v7 = vunpack.i.l.bf16 %v926_v44 }
  0xa5   : > { %v390_v18 = vsel %vm389_vm5, %v793_v7, %v794_v6  ;;  %v391_v54 = vsel %vm389_vm5, %v794_v6, %v916_v36 }
  0xa6   : > { %v394_v28 = vsel %vm960_vm8, %v390_v18, 0.0 }
  0xa7   : > { %v473_v37 = vrot.slane %v394_v28, 4 }
  0xaa   : > { %v445_v41 = vpop.permute.xlu0 %444  ;;  %v797_v58 = vpop.permute.xlu1 %796 }
  0xab   : > { %v798_v61 = vunpack.i.l.bf16 %v797_v58  ;;  %v799_v1 = vunpack.i.h.bf16 %v797_v58  ;;  %v395_v58 = vsel %vm993_vm13, %v391_v54, 0.0 }
  0xad   : > { %v409_v9 = vsel %vm408_vm4, %v798_v61, %v799_v1  ;;  %v410_v29 = vsel %vm408_vm4, %v799_v1, %v922_v39  ;;  %v375_v39 = vsel %vm939_vm2, %v371_v31, 0.0  ;;  %v474_v61 = vrot.slane %v395_v58, 4 }
  0xae   : > { %v413_v14 = vsel %vm939_vm2, %v409_v9, 0.0  ;;  %v414_v40 = vsel %vm935_vm1, %v410_v29, 0.0 }
  0xaf   : > { %v496_v24 = vrot.slane %v413_v14, 4  ;;  %v497_v44 = vrot.slane %v414_v40, 4 }
  0xb6   : > { %v807_v47 = vpop.permute.xlu0 %806  ;;  %v931_v51 = vpop.permute.xlu2 %816 }
  0xb7   : > { %v809_v48 = vunpack.i.h.bf16 %v807_v47  ;;  %v808_v49 = vunpack.i.l.bf16 %v807_v47  ;;  %v819_v10 = vunpack.i.h.bf16 %v931_v51  ;;  %v818_v11 = vunpack.i.l.bf16 %v931_v51 }
  0xb9   : > { %v448_v53 = vsel %vm446_vm0, %v809_v48, %v445_v41  ;;  %v447_v55 = vsel %vm446_vm0, %v808_v49, %v809_v48  ;;  %v514_v23 = vsel %vm513_vm7, %v818_v11, %v819_v10  ;;  %v521_v48 = vsel %vm518_vm12, %v375_v39, %v473_v37 }
  0xba   : > { %v452_v56 = vsel %vm935_vm1, %v448_v53, 0.0  ;;  %v451_v57 = vsel %vm939_vm2, %v447_v55, 0.0  ;;  %v488_v19 = vpop.permute.xlu1 %487  ;;  %v525_v30 = vsel %vm518_vm12, %v432_v22, %v514_v23  ;;  %vm625_vm0 = vcmask 7168  }
  0xbb   : > { %v532_v59 = vpack.c.bf16 %v452_v56, %v452_v56  ;;  %v531_v60 = vpack.c.bf16 %v451_v57, %v451_v57 }
  0xbd   : > { %v543_v62 = vsel %vm538_vm3, %v532_v59, 0  ;;  %v540_v63 = vsel %vm538_vm3, %v531_v60, 0  ;;  %v352_v59 = vsel %vm993_vm13, %v904_v4, 0.0 }
  0xbe   : > { %563 = vmatpush.bf16.msra.mxu1 %v543_v62  ;;  %550 = vmatpush.bf16.msra.mxu0 %v540_v63  ;;  %v822_v12 = vpop.permute.xlu2 %821 }
  0xbf   : > { %v824_v20 = vunpack.i.h.bf16 %v822_v12  ;;  %v823_v21 = vunpack.i.l.bf16 %v822_v12 }
  0xc1   : > { %v467_v34 = vsel %vm466_vm11, %v823_v21, %v824_v20 }
  0xc2   : > { %v519_v42 = vsel %vm518_vm12, %v351_v33, %v467_v34  ;;  %v369_v50 = vpop.permute.xlu1 %368 }
  0xc3   : > { %v527_v53 = vpack.c.bf16 %v521_v48, %v519_v42  ;;  %v372_v57 = vsel %vm370_vm9, %v789_v16, %v369_v50 }
  0xc4   : > { %v376_v36 = vsel %vm935_vm1, %v372_v57, 0.0 }
  0xc5   : > { %v522_v0 = vsel %vm518_vm12, %v376_v36, %v474_v61 }
  0xc6   : > { %v812_v25 = vpop.permute.xlu0 %811  ;;  %v580_v15 = vpop.permute.xlu2 %579 }
  0xc7   : > { %v814_v26 = vunpack.i.h.bf16 %v812_v25  ;;  %v813_v27 = vunpack.i.l.bf16 %v812_v25 }
  0xc9   : > { %v490_v32 = vsel %vm489_vm10, %v813_v27, %v814_v26  ;;  %v491_v3 = vsel %vm489_vm10, %v814_v26, %v488_v19 }
  0xca   : > { %v523_v35 = vsel %vm518_vm12, %v490_v32, %v496_v24  ;;  %v524_v55 = vsel %vm518_vm12, %v491_v3, %v497_v44  ;;  %v336_v2 = vpop.permute.xlu1 %335 }
  0xcb   : > { %v529_v41 = vpack.c.bf16 %v525_v30, %v523_v35 }
  0xcd   : > { %551 = vmatpush.bf16.msra.mxu0 %v529_v41 }
  0xce   : > { %v512_v47 = vpop.permute.xlu0 %511 }
  0xcf   : > { %v515_v51 = vsel %vm513_vm7, %v819_v10, %v512_v47 }
  0xd0   : > { %v526_v56 = vsel %vm518_vm12, %v433_v38, %v515_v51 }
  0xd1   : > { %552 = vmatpush.bf16.msra.mxu0 %v527_v53  ;;  %v530_v45 = vpack.c.bf16 %v526_v56, %v524_v55 }
  0xd3   : > { %564 = vmatpush.bf16.msra.mxu1 %v530_v45 }
  0xd4   : > { %760 = vmatmul.msk.bf16.vlgmr.msra.gmra.mxu0 %vm534_vm14, %v533_v46 }
  0xd6   : > { %v465_v60 = vpop.permute.xlu0 %464 }
  0xd7   : > { %v468_v62 = vsel %vm466_vm11, %v824_v20, %v465_v60 }
  0xd8   : > { %v520_v63 = vsel %vm518_vm12, %v352_v59, %v468_v62 }
  0xd9   : > { %v528_v1 = vpack.c.bf16 %v522_v0, %v520_v63 }
  0xdb   : > { %565 = vmatpush.bf16.msra.mxu1 %v528_v1 }
  0xde   : > { %761 = vmatmul.msk.bf16.vlgmr.msra.gmra.mxu1 %vm534_vm14, %v533_v46 }
 0x151   : > { %v554_v5 = vpop.f32.mrf.mxu0 }
 0x152   : > { %v571_v6 = vadd.f32 %v554_v5, %v336_v2 }
 0x154   : > { %v574_v4 = vpack.c.bf16 %v571_v6, %v571_v6 }
 0x156   : > { %v587_v7 = vsel %vm518_vm12, %v574_v4, 0 }
 0x157   : > { %599 = vmatpush.bf16.msra.mxu2 %v587_v7 }
 0x159   : > { %v556_v9 = vpop.f32.mrf.mxu0 }
 0x15a   : > { %762 = vmatmul.msk.bf16.vlgmr.msra.gmra.mxu2 %vm582_vm15, %v573_v8 }
 0x15b   : > { %v567_v10 = vpop.f32.mrf.mxu1 }
 0x15c   : > { %v572_v11 = vadd.f32 %v567_v10, %v336_v2 }
 0x15e   : > { %v575_v12 = vpack.c.bf16 %v572_v11, %v572_v11 }
 0x160   : > { %v590_v13 = vsel %vm518_vm12, %v575_v12, 0 }
 0x161   : > { %612 = vmatpush.bf16.msra.mxu3 %v590_v13 }
 0x163   : > { %v569_v14 = vpop.f32.mrf.mxu1 }
 0x164   : > { %763 = vmatmul.msk.bf16.vlgmr.msra.gmra.mxu3 %vm582_vm15, %v573_v8 }
 0x1dd   : > { %v601_v16 = vpop.f32.mrf.mxu2 }
 0x1de   : > { %v602_v17 = vadd.f32 %v601_v16, %v580_v15 }
 0x1e0   : > { %v618_v18 = vmax.f32 %v602_v17, 0.0 }
 0x1e2   : > { %620 = vst [vmem:[%s291_s28] sm:$0xff] %v618_v18  ;;  %v627_v23 = vmul.f32 %v618_v18, %v618_v18 }
 0x1e5   : > { %v603_v19 = vpop.f32.mrf.mxu2 }
 0x1e7   : > { %v614_v20 = vpop.f32.mrf.mxu3 }
 0x1e8   : > { %v615_v21 = vadd.f32 %v614_v20, %v580_v15 }
 0x1ea   : > { %v619_v22 = vmax.f32 %v615_v21, 0.0 }
 0x1ec   : > { %621 = vst [vmem:[%s291_s28 + $0x8] sm:$0xff] %v619_v22  ;;  %v622_v24 = vadd.f32 %v619_v22, %v618_v18  ;;  %v628_v25 = vmul.f32 %v619_v22, %v619_v22 }
 0x1ee   : > { %623 = vadd.xlane.f32.xlu0 %v622_v24  ;;  %v629_v26 = vadd.f32 %v628_v25, %v627_v23 }
 0x1ef   : > { %v616_v27 = vpop.f32.mrf.mxu3 }
 0x1f0   : > { %630 = vadd.xlane.f32.xlu1 %v629_v26 }
 0x261   : > { %v624_v28 = vpop.xlane.xlu0 %623 }
 0x262   : > { %626 = vst.msk [vmem:[%s295_s9] sm:$0xff] %vm625_vm0, %v624_v28 }
 0x263   : > { %v631_v29 = vpop.xlane.xlu1 %630 }
 0x264   : > { %632 = vst.msk [vmem:[%s299_s12] sm:$0xff] %vm625_vm0, %v631_v29 }
 0x265 PF: > { %s18_s24 = sadd.s32 1, %s834_s24  }
 0x266   : > { %p15_p4 = scmp.ge.s32.totalorder %s18_s24, 4  }
 0x268   :  { %17 = sbr.rel (!%p15_p4) target bundleno = 1 (0x1), region = 104 }

// kernel: panelnet_forward.11
= control target key start
LH: loop header
LB: loop body
LE: loop exit
PB: predicated region body
PF: predicated region fallthrough
CT: control target
= control target key end

     0   :  { %s914_s24 = smov 0   ;;  %s1048_s0 = inlined_call_operand.vmem [shape: f32[2,8,290], index: 0, kind: input, shape index: {}]   ;;  %s1049_s1 = inlined_call_operand.vmem [shape: bf16[12,72], index: 1, kind: input, shape index: {}]   ;;  %s1050_s2 = inlined_call_operand.vmem [shape: f32[12,1], index: 2, kind: input, shape index: {}]   ;;  %s1051_s3 = inlined_call_operand.vmem [shape: bf16[12,12], index: 3, kind: input, shape index: {}]   ;;  %s1052_s4 = inlined_call_operand.vmem [shape: f32[12,1], index: 4, kind: input, shape index: {}]   ;;  %s1053_s5 = inlined_call_operand.vmem [shape: f32[2,12,256], index: 5, kind: output, shape index: {0}]   ;;  %s1054_s6 = inlined_call_operand.vmem [shape: f32[2,12,1], index: 6, kind: output, shape index: {1}]   ;;  %s1055_s7 = inlined_call_operand.vmem [shape: f32[2,12,1], index: 7, kind: output, shape index: {2}]  }
   0x1 LB: > { %s739_s25 = sadd.s32 4294967295, %s862_s24   ;;  %p743_p0 = scmp.ge.s32.totalorder %s862_s24, 1  ;;  %s862_s24 = sphi %s914_s24, %s18_s24  }
   0x2   : > { %p242_p1 = scmp.lt.s32.totalorder %s862_s24, 3 }
   0x4   : > { %p243_p2 = pnand %p743_p0, %p242_p1 }
   0x5   : > { %p284_p3 = scmp.lt.s32.totalorder (!%p243_p2), %s739_s25, 1  ;;  %s864_s30 = smov (!%p243_p2), 96  }
   0x6   : > { %246 = sbr.rel (%p243_p2) target bundleno = 587 (0x24b), region = 40  ;;  %s865_s8 = smov (!%p243_p2), 94  }
   0x7   : > { %s866_s9 = smov (!%p243_p2), 95   ;;  %s867_s10 = smov (!%p243_p2), 110  }
   0x8   : > { %s868_s11 = smov (!%p243_p2), 111   ;;  %s869_s12 = smov (!%p243_p2), 126  }
   0x9   : > { %s870_s13 = smov (!%p243_p2), 112   ;;  %s871_s14 = smov (!%p243_p2), 127  }
   0xb   : > { %s1069_s25 = smov (!%p284_p3, %s739_s25), 1  ;;  %v305_v5 = vlaneseq  ;;  %vm424_vm0 = vcmask 769024   ;;  %vm459_vm2 = vcmask 777216   ;;  %vm411_vm3 = vcmask 785408   ;;  %v336_v43 = vld [vmem:[%s1050_s2] sm:$0xff] }
   0xc   : > { %s794_s26 = smul.u32 24, %s1069_s25  ;;  %vm485_vm4 = vcmask 1043456   ;;  %vm872_vm7 = vmmov 1   ;;  %vm448_vm10 = vcmask 908288   ;;  %v337_v44 = vld [vmem:[%s1050_s2 + $0x8] sm:$0xf] }
   0xd   : > { %v306_v6 = vand.u32 127, %v305_v5  ;;  %vm398_vm12 = vcmask 900096   ;;  %v873_v48 = vmov 0   ;;  %v528_v55 = vld [vmem:[%s1052_s4] sm:$0xff]  ;;  %vm437_vm15 = vcmask 1039360  }
   0xe   : > { %s288_s29 = scalar_lea.vmem %s1048_s0, %s794_s26  ;;  %853 = vset.pattern.permute.xlu1 %v873_v48  ;;  %854 = vset.pattern.permute.xlu2 %v873_v48 }
   0xf   : > { %v928_v0 = vld [vmem:[%s288_s29] sm:$0xff]  ;;  %v930_v1 = vld [vmem:[%s288_s29 + $0x8] sm:$0xff]  ;;  %v352_v3 = vld [vmem:[%s288_s29 + $0x10] sm:$0xff]  ;;  %v312_v7 = vand.u32 15, %v306_v6  ;;  %v307_v8 = vadd.s32 128, %v306_v6  ;;  %855 = vset.pattern.permute.xlu0 %v873_v48 }
  0x10   : > { %v818_v2 = vpack.i.bf16 %v930_v1, %v928_v0 }
  0x11   : > { %vm934_vm1 = vcmp.le.s32.totalorder %v312_v7, 14  ;;  %v319_v16 = vand.u32 15, %v307_v8  ;;  %vm941_vm5 = vcmp.ge.s32.totalorder %v312_v7, 1 }
  0x12   : > { %819 = vrot.lane.b32.xlu1 %v818_v2, %s864_s30  ;;  %814 = vrot.lane.b32.xlu0 %v818_v2, %s865_s8  ;;  %vm956_vm8 = vmpackc.low %vm872_vm7, %vm941_vm5 }
  0x13   : > { %824 = vrot.lane.b32.xlu2 %v818_v2, %s866_s9  ;;  %vm948_vm6 = vcmp.le.s32.totalorder %v319_v16, 14  ;;  %vm965_vm9 = vcmp.ge.s32.totalorder %v319_v16, 1  ;;  %vm758_vm13 = vmpackc.low %vm934_vm1, %vm872_vm7  ;;  %v753_v16 = vld [vmem:[%s1049_s1] sm:$0xf] }
  0x14   : > { %vm974_vm11 = vmpackc.low %vm872_vm7, %vm965_vm9 }
  0x15   : > { %vm771_vm14 = vmpackc.low %vm948_vm6, %vm872_vm7 }
  0x16   : > { %vm774_vm7 = vmpackc.low %vm965_vm9, %vm948_vm6  ;;  %vm602_vm9 = vcmask 3072  }
  0x1a   : > { %409 = vrot.lane.b32.xlu1 %v352_v3, %s864_s30  ;;  %422 = vrot.lane.b32.xlu0 %v352_v3, %s865_s8 }
  0x1b   : > { %457 = vrot.lane.b32.xlu2 %v352_v3, %s866_s9 }
  0x22   : > { %829 = vrot.lane.b32.xlu0 %v818_v2, %s867_s10  ;;  %396 = vrot.lane.b32.xlu1 %v352_v3, %s867_s10  ;;  %s789_s10 = sshll.u32 %s1069_s25, 5 }
  0x23   : > { %834 = vrot.lane.b32.xlu2 %v818_v2, %s868_s11 }
  0x2a   : > { %446 = vrot.lane.b32.xlu0 %v352_v3, %s868_s11  ;;  %839 = vrot.lane.b32.xlu1 %v818_v2, %s869_s12 }
  0x2b   : > { %370 = vrot.lane.b32.xlu2 %v352_v3, %s869_s12 }
  0x32   : > { %844 = vrot.lane.b32.xlu0 %v818_v2, %s870_s13  ;;  %383 = vrot.lane.b32.xlu1 %v352_v3, %s870_s13  ;;  %s293_s13 = scalar_lea.vmem %s1053_s5, %s789_s10 }
  0x33   : > { %849 = vrot.lane.b32.xlu2 %v818_v2, %s871_s14 }
  0x3a   : > { %435 = vrot.lane.b32.xlu0 %v352_v3, %s871_s14  ;;  %340 = vperm.xlu1 %853, %v336_v43   ;;  %s790_s14 = sshll.u32 %s1069_s25, 4 }
  0x3b   : > { %345 = vperm.xlu2 %854, %v337_v44   ;;  %s298_s17 = scalar_lea.vmem %s1054_s6, %s790_s14  ;;  %s303_s20 = scalar_lea.vmem %s1055_s7, %s790_s14 }
  0x42   : > { %532 = vperm.xlu1 %853, %v528_v55  }
  0x6d   : > { %v825_v4 = vpop.permute.xlu2 %824 }
  0x6e   : > { %v827_v15 = vunpack.i.h.bf16 %v825_v4  ;;  %v826_v17 = vunpack.i.l.bf16 %v825_v4 }
  0x70   : > { %v460_v26 = vsel %vm459_vm2, %v826_v17, %v827_v15  ;;  %v792_v17 = vld [vmem:[%s1049_s1] sm:$0x30] }
  0x75   : > { %v458_v9 = vpop.permute.xlu2 %457 }
  0x76   : > { %v461_v36 = vsel %vm459_vm2, %v827_v15, %v458_v9  ;;  %vm385_vm2 = vcmask 916480  }
  0x7d   : > { %v835_v32 = vpop.permute.xlu2 %834 }
  0x7e   : > { %v837_v40 = vunpack.i.h.bf16 %v835_v32  ;;  %v836_v41 = vunpack.i.l.bf16 %v835_v32 }
  0x80   : > { %v449_v51 = vsel %vm448_vm10, %v836_v41, %v837_v40 }
  0x84   : > { %v820_v10 = vpop.permute.xlu1 %819  ;;  %v815_v11 = vpop.permute.xlu0 %814 }
  0x85   : > { %v817_v12 = vunpack.i.h.bf16 %v815_v11  ;;  %v816_v13 = vunpack.i.l.bf16 %v815_v11  ;;  %v822_v18 = vunpack.i.h.bf16 %v820_v10  ;;  %v821_v19 = vunpack.i.l.bf16 %v820_v10  ;;  %v371_v52 = vpop.permute.xlu2 %370 }
  0x87   : > { %v425_v20 = vsel %vm424_vm0, %v816_v13, %v817_v12  ;;  %v412_v25 = vsel %vm411_vm3, %v821_v19, %v822_v18 }
  0x88   : > { %v429_v21 = vsel %vm934_vm1, %v425_v20, 0.0  ;;  %v756_v33 = vpack.c.bf16 %v460_v26, %v412_v25  ;;  %v754_v20 = vor.u32 %v792_v17, %v753_v16 }
  0x89   : > { %v472_v22 = vpack.c.bf16 %v429_v21, %v429_v21 }
  0x8b   : > { %v487_v24 = vsel %vm485_vm4, %v472_v22, 0 }
  0x8c   : > { %v410_v28 = vpop.permute.xlu1 %409  ;;  %v423_v29 = vpop.permute.xlu0 %422  ;;  %495 = vmatpush.bf16.msra.mxu0 %v487_v24 }
  0x8d   : > { %v426_v30 = vsel %vm424_vm0, %v817_v12, %v423_v29  ;;  %v413_v38 = vsel %vm411_vm3, %v822_v18, %v410_v28  ;;  %v850_v61 = vpop.permute.xlu2 %849  ;;  %vm372_vm0 = vcmask 1031168   ;;  %vm761_vm3 = vmpackc.low %vm941_vm5, %vm934_vm1  ;;  %vm481_vm1 = vcmask 588800   ;;  %v783_v29 = vld [vmem:[%s1051_s3] sm:$0xf] }
  0x8e   : > { %v430_v34 = vsel %vm948_vm6, %v426_v30, 0.0  ;;  %v769_v45 = vpack.c.bf16 %v461_v36, %v413_v38  ;;  %v852_v62 = vunpack.i.h.bf16 %v850_v61  ;;  %v851_v63 = vunpack.i.l.bf16 %v850_v61  ;;  %v793_v30 = vld [vmem:[%s1051_s3] sm:$0x30] }
  0x8f   : > { %v473_v35 = vpack.c.bf16 %v430_v34, %v430_v34  ;;  %vm549_vm5 = vcmask 1045504   ;;  %v784_v36 = vor.u32 %v793_v30, %v783_v29  ;;  %vm545_vm6 = vcmask 97280  }
  0x90   : > { %757 = vmatpush.bf16.msk.msra.mxu0 %vm956_vm8, %v756_v33  ;;  %v438_v8 = vsel %vm437_vm15, %v851_v63, %v852_v62 }
  0x91   : > { %v490_v39 = vsel %vm485_vm4, %v473_v35, 0  ;;  %v765_v14 = vpack.c.bf16 %v438_v8, %v928_v0  ;;  %v529_v0 = vld [vmem:[%s1052_s4 + $0x8] sm:$0xf] }
  0x92   : > { %509 = vmatpush.bf16.msra.mxu1 %v490_v39  ;;  %537 = vperm.xlu0 %855, %v529_v0  }
  0x94   : > { %v830_v46 = vpop.permute.xlu0 %829  ;;  %v397_v47 = vpop.permute.xlu1 %396 }
  0x95   : > { %v832_v49 = vunpack.i.h.bf16 %v830_v46  ;;  %v831_v50 = vunpack.i.l.bf16 %v830_v46  ;;  %v346_v25 = vpop.permute.xlu2 %345 }
  0x96   : > { %770 = vmatpush.bf16.msk.msra.mxu1 %vm974_vm11, %v769_v45 }
  0x97   : > { %v399_v53 = vsel %vm398_vm12, %v831_v50, %v832_v49  ;;  %v400_v58 = vsel %vm398_vm12, %v832_v49, %v397_v47 }
  0x98   : > { %v759_v54 = vpack.c.bf16 %v399_v53, %v449_v51 }
  0x9a   : > { %760 = vmatpush.bf16.msk.msra.mxu0 %vm758_vm13, %v759_v54 }
  0x9c   : > { %v447_v56 = vpop.permute.xlu0 %446  ;;  %v840_v57 = vpop.permute.xlu1 %839 }
  0x9d   : > { %v450_v59 = vsel %vm448_vm10, %v837_v40, %v447_v56  ;;  %v842_v2 = vunpack.i.h.bf16 %v840_v57  ;;  %v841_v3 = vunpack.i.l.bf16 %v840_v57 }
  0x9e   : > { %v772_v60 = vpack.c.bf16 %v400_v58, %v450_v59 }
  0x9f   : > { %v374_v9 = vsel %vm372_vm0, %v842_v2, %v371_v52  ;;  %v373_v11 = vsel %vm372_vm0, %v841_v3, %v842_v2 }
  0xa0   : > { %773 = vmatpush.bf16.msk.msra.mxu1 %vm771_vm14, %v772_v60 }
  0xa4   : > { %v845_v4 = vpop.permute.xlu0 %844  ;;  %v384_v5 = vpop.permute.xlu1 %383 }
  0xa5   : > { %v847_v6 = vunpack.i.h.bf16 %v845_v4  ;;  %v846_v7 = vunpack.i.l.bf16 %v845_v4 }
  0xa7   : > { %v387_v10 = vsel %vm385_vm2, %v847_v6, %v384_v5  ;;  %v386_v12 = vsel %vm385_vm2, %v846_v7, %v847_v6 }
  0xa8   : > { %v775_v13 = vpack.c.bf16 %v387_v10, %v374_v9  ;;  %v762_v15 = vpack.c.bf16 %v386_v12, %v373_v11 }
  0xaa   : > { %763 = vmatpush.bf16.msk.msra.mxu0 %vm761_vm3, %v762_v15  ;;  %776 = vmatpush.bf16.msk.msra.mxu1 %vm774_vm7, %v775_v13 }
  0xac   : > { %v436_v18 = vpop.permute.xlu0 %435  ;;  %v341_v24 = vpop.permute.xlu1 %340 }
  0xad   : > { %v439_v19 = vsel %vm437_vm15, %v852_v62, %v436_v18 }
  0xae   : > { %v778_v21 = vpack.c.bf16 %v439_v19, %v930_v1  ;;  %766 = vmatpush.bf16.msk.msra.mxu0 %vm956_vm8, %v765_v14  ;;  %vm600_vm8 = vcmask 7168  }
  0xb0   : > { %779 = vmatpush.bf16.msk.msra.mxu1 %vm974_vm11, %v778_v21 }
  0xb1   : > { %767 = vmatmul.msk.bf16.vlgmr.msra.gmra.mxu0 %vm481_vm1, %v754_v20 }
  0xb3   : > { %780 = vmatmul.msk.bf16.vlgmr.msra.gmra.mxu1 %vm481_vm1, %v754_v20 }
  0xb4   : > { %v533_v38 = vpop.permute.xlu1 %532 }
 0x104   : > { %v538_v45 = vpop.permute.xlu0 %537 }
 0x12e   : > { %v501_v22 = vpop.f32.mrf.mxu0 }
 0x12f   : > { %v520_v1 = vadd.f32 %v501_v22, %v341_v24 }
 0x130   : > { %v515_v23 = vpop.f32.mrf.mxu1 }
 0x131   : > { %v521_v31 = vadd.f32 %v515_v23, %v341_v24 }
 0x136   : > { %v503_v26 = vpop.f32.mrf.mxu0 }
 0x137   : > { %v522_v27 = vadd.f32 %v503_v26, %v346_v25 }
 0x138   : > { %v517_v28 = vpop.f32.mrf.mxu1 }
 0x139   : > { %v523_v32 = vadd.f32 %v517_v28, %v346_v25  ;;  %v526_v33 = vpack.c.bf16 %v522_v27, %v520_v1 }
 0x13b   : > { %v551_v34 = vsel %vm549_vm5, %v526_v33, 0  ;;  %v527_v35 = vpack.c.bf16 %v523_v32, %v521_v31 }
 0x13c   : > { %563 = vmatpush.bf16.msra.mxu2 %v551_v34 }
 0x13d   : > { %v554_v37 = vsel %vm549_vm5, %v527_v35, 0 }
 0x13e   : > { %577 = vmatpush.bf16.msra.mxu3 %v554_v37 }
 0x13f   : > { %785 = vmatmul.msk.bf16.vlgmr.msra.gmra.mxu2 %vm545_vm6, %v784_v36 }
 0x141   : > { %786 = vmatmul.msk.bf16.vlgmr.msra.gmra.mxu3 %vm545_vm6, %v784_v36 }
 0x1c2   : > { %v565_v39 = vpop.f32.mrf.mxu2 }
 0x1c3   : > { %v566_v40 = vadd.f32 %v565_v39, %v533_v38 }
 0x1c4   : > { %v579_v41 = vpop.f32.mrf.mxu3 }
 0x1c5   : > { %v584_v42 = vmax.f32 %v566_v40, 0.0  ;;  %v580_v43 = vadd.f32 %v579_v41, %v533_v38 }
 0x1c7   : > { %588 = vst [vmem:[%s293_s13] sm:$0xff] %v584_v42  ;;  %v585_v44 = vmax.f32 %v580_v43, 0.0  ;;  %v604_v47 = vmul.f32 %v584_v42, %v584_v42 }
 0x1c9   : > { %589 = vst [vmem:[%s293_s13 + $0x8] sm:$0xff] %v585_v44  ;;  %v592_v46 = vadd.f32 %v585_v44, %v584_v42  ;;  %v605_v48 = vmul.f32 %v585_v44, %v585_v44 }
 0x1ca   : > { %v567_v49 = vpop.f32.mrf.mxu2 }
 0x1cb   : > { %v568_v50 = vadd.f32 %v567_v49, %v538_v45  ;;  %593 = vadd.xlane.f32.xlu2 %v592_v46  ;;  %v608_v51 = vadd.f32 %v605_v48, %v604_v47 }
 0x1cc   : > { %v581_v52 = vpop.f32.mrf.mxu3 }
 0x1cd   : > { %v586_v53 = vmax.f32 %v568_v50, 0.0  ;;  %v582_v54 = vadd.f32 %v581_v52, %v538_v45  ;;  %609 = vadd.xlane.f32.xlu0 %v608_v51 }
 0x1cf   : > { %590 = vst [vmem:[%s293_s13 + $0x10] sm:$0xf] %v586_v53  ;;  %v587_v55 = vmax.f32 %v582_v54, 0.0  ;;  %v606_v56 = vmul.f32 %v586_v53, %v586_v53  ;;  %v595_v57 = vsel %vm485_vm4, %v586_v53, 0.0 }
 0x1d1   : > { %591 = vst [vmem:[%s293_s13 + $0x18] sm:$0xf] %v587_v55  ;;  %v596_v58 = vsel %vm485_vm4, %v587_v55, 0.0  ;;  %v607_v59 = vmul.f32 %v587_v55, %v587_v55  ;;  %v611_v61 = vsel %vm485_vm4, %v606_v56, 0.0 }
 0x1d2   : > { %v597_v60 = vadd.f32 %v596_v58, %v595_v57 }
 0x1d3   : > { %v612_v62 = vsel %vm485_vm4, %v607_v59, 0.0 }
 0x1d4   : > { %598 = vadd.xlane.f32.xlu1 %v597_v60  ;;  %v613_v63 = vadd.f32 %v612_v62, %v611_v61 }
 0x1d6   : > { %614 = vadd.xlane.f32.xlu2 %v613_v63 }
 0x23e   : > { %v594_v2 = vpop.xlane.xlu2 %593 }
 0x23f   : > { %601 = vst.msk [vmem:[%s298_s17] sm:$0xff] %vm600_vm8, %v594_v2 }
 0x240   : > { %v610_v3 = vpop.xlane.xlu0 %609 }
 0x241   : > { %616 = vst.msk [vmem:[%s303_s20] sm:$0xff] %vm600_vm8, %v610_v3 }
 0x247   : > { %v599_v4 = vpop.xlane.xlu1 %598 }
 0x248   : > { %603 = vst.msk [vmem:[%s298_s17 + $0x8] sm:$0xf] %vm602_vm9, %v599_v4 }
 0x249   : > { %v615_v5 = vpop.xlane.xlu2 %614 }
 0x24a   : > { %617 = vst.msk [vmem:[%s303_s20 + $0x8] sm:$0xf] %vm602_vm9, %v615_v5 }
 0x24b PF: > { %s18_s24 = sadd.s32 1, %s862_s24  }
 0x24c   : > { %p15_p4 = scmp.ge.s32.totalorder %s18_s24, 4  }
 0x24e   :  { %17 = sbr.rel (!%p15_p4) target bundleno = 1 (0x1), region = 94 }

// kernel: panelnet_forward.12
= control target key start
LH: loop header
LB: loop body
LE: loop exit
PB: predicated region body
PF: predicated region fallthrough
CT: control target
= control target key end

     0   :  { %s795_s24 = smov 0   ;;  %s904_s0 = inlined_call_operand.vmem [shape: f32[2,12,82], index: 0, kind: input, shape index: {}]   ;;  %s905_s1 = inlined_call_operand.vmem [shape: bf16[16,108], index: 1, kind: input, shape index: {}]   ;;  %s906_s2 = inlined_call_operand.vmem [shape: f32[16,1], index: 2, kind: input, shape index: {}]   ;;  %s907_s3 = inlined_call_operand.vmem [shape: bf16[16,16], index: 3, kind: input, shape index: {}]   ;;  %s908_s4 = inlined_call_operand.vmem [shape: f32[16,1], index: 4, kind: input, shape index: {}]   ;;  %s909_s5 = inlined_call_operand.vmem [shape: f32[2,16,64], index: 5, kind: output, shape index: {0}]   ;;  %s910_s6 = inlined_call_operand.vmem [shape: f32[2,16,1], index: 6, kind: output, shape index: {1}]   ;;  %s911_s7 = inlined_call_operand.vmem [shape: f32[2,16,1], index: 7, kind: output, shape index: {2}]  }
   0x1 LB: > { %s646_s25 = sadd.s32 4294967295, %s743_s24   ;;  %p650_p0 = scmp.ge.s32.totalorder %s743_s24, 1  ;;  %s743_s24 = sphi %s795_s24, %s18_s24  }
   0x2   : > { %p242_p1 = scmp.lt.s32.totalorder %s743_s24, 3 }
   0x4   : > { %p243_p2 = pnand %p650_p0, %p242_p1 }
   0x5   : > { %p284_p3 = scmp.lt.s32.totalorder (!%p243_p2), %s646_s25, 1  ;;  %s745_s30 = smov (!%p243_p2), 110  }
   0x6   : > { %246 = sbr.rel (%p243_p2) target bundleno = 569 (0x239), region = 40  ;;  %s746_s8 = smov (!%p243_p2), 119  }
   0x7   : > { %s747_s9 = smov (!%p243_p2), 111   ;;  %s748_s10 = smov (!%p243_p2), 112  }
   0x8   : > { %s749_s11 = smov (!%p243_p2), 120   ;;  %s750_s12 = smov (!%p243_p2), 118  }
   0x9   : > { %s751_s13 = smov (!%p243_p2), 126   ;;  %s752_s14 = smov (!%p243_p2), 127  }
   0xb   : > { %s917_s25 = smov (!%p284_p3, %s646_s25), 1  ;;  %vm385_vm0 = vcmask 1043456   ;;  %v305_v8 = vlaneseq  ;;  %vm443_vm2 = vcmask 1045504   ;;  %v321_v22 = vld [vmem:[%s906_s2] sm:$0xff]  ;;  %v322_v23 = vld [vmem:[%s906_s2 + $0x8] sm:$0xff]  ;;  %v753_v26 = vmov 0  }
   0xc   : > { %s803_s26 = sshll.u32 %s917_s25, 4  ;;  %734 = vset.pattern.permute.xlu1 %v753_v26  ;;  %735 = vset.pattern.permute.xlu2 %v753_v26  ;;  %v467_v42 = vld [vmem:[%s908_s4 + $0x8] sm:$0xff]  ;;  %vm754_vm4 = vmmov 1   ;;  %vm439_vm8 = vcmask 883712   ;;  %vm483_vm9 = vcmask 130048   ;;  %vm503_vm10 = vcmask 523264  }
   0xd   : > { %s288_s29 = scalar_lea.vmem %s904_s0, %s803_s26  ;;  %v306_v9 = vand.u32 127, %v305_v8  ;;  %736 = vset.pattern.permute.xlu0 %v753_v26  ;;  %vm512_vm11 = vcmask 7168  }
   0xe   : > { %v809_v0 = vld [vmem:[%s288_s29] sm:$0xff]  ;;  %v811_v1 = vld [vmem:[%s288_s29 + $0x8] sm:$0xf] }
   0xf   : > { %v704_v2 = vpack.i.bf16 %v811_v1, %v809_v0  ;;  %v386_v3 = vrot.slane %v809_v0, 4  ;;  %v387_v4 = vrot.slane %v811_v1, 4  ;;  %v724_v5 = vpack.i.bf16 %v809_v0, %v811_v1 }
  0x10   : > { %v311_v10 = vand.u32 7, %v306_v9 }
  0x11   : > { %705 = vrot.lane.b32.xlu0 %v704_v2, %s745_s30  ;;  %v388_v6 = vsel %vm385_vm0, %v386_v3, %v387_v4  ;;  %725 = vrot.lane.b32.xlu2 %v724_v5, %s746_s8  ;;  %v466_v4 = vld [vmem:[%s908_s4] sm:$0xff]  ;;  %s293_s8 = scalar_lea.vmem %s909_s5, %s803_s26 }
  0x12   : > { %v714_v7 = vpack.i.bf16 %v388_v6, %v386_v3  ;;  %vm822_vm1 = vcmp.le.s32.totalorder %v311_v10, 6  ;;  %vm836_vm3 = vcmp.ge.s32.totalorder %v311_v10, 1 }
  0x13   : > { %vm663_vm5 = vmpackc.low %vm836_vm3, %vm754_vm4  ;;  %v340_v61 = vsel %vm836_vm3, %v811_v1, 0.0 }
  0x14   : > { %715 = vrot.lane.b32.xlu1 %v714_v7, %s747_s9  ;;  %vm666_vm6 = vmpackc.low %vm822_vm1, %vm754_vm4 }
  0x15   : > { %vm669_vm7 = vmpackc.low %vm754_vm4, %vm836_vm3 }
  0x19   : > { %710 = vrot.lane.b32.xlu0 %v724_v5, %s748_s10  ;;  %730 = vrot.lane.b32.xlu2 %v704_v2, %s749_s11  ;;  %s298_s11 = scalar_lea.vmem %s910_s6, %s803_s26 }
  0x1c   : > { %720 = vrot.lane.b32.xlu1 %v704_v2, %s750_s12 }
  0x21   : > { %347 = vrot.lane.b32.xlu0 %v811_v1, %s751_s13  ;;  %391 = vrot.lane.b32.xlu2 %v388_v6, %s752_s14  ;;  %v684_v1 = vld [vmem:[%s905_s1] sm:$0xff] }
  0x24   : > { %345 = vrot.lane.b32.xlu1 %v809_v0, %s751_s13 }
  0x29   : > { %389 = vrot.lane.b32.xlu0 %v386_v3, %s752_s14  ;;  %330 = vperm.xlu2 %735, %v322_v23   ;;  %s303_s14 = scalar_lea.vmem %s911_s7, %s803_s26 }
  0x2c   : > { %325 = vperm.xlu1 %734, %v321_v22  }
  0x31   : > { %470 = vperm.xlu0 %736, %v466_v4  }
  0x34   : > { %475 = vperm.xlu1 %734, %v467_v42  }
  0x6b   : > { %v726_v11 = vpop.permute.xlu2 %725 }
  0x6c   : > { %v727_v47 = vunpack.i.l.bf16 %v726_v11  ;;  %v728_v54 = vunpack.i.h.bf16 %v726_v11  ;;  %v685_v11 = vld [vmem:[%s907_s3] sm:$0xff] }
  0x73   : > { %v731_v21 = vpop.permute.xlu2 %730 }
  0x74   : > { %v733_v29 = vunpack.i.h.bf16 %v731_v21  ;;  %v732_v30 = vunpack.i.l.bf16 %v731_v21 }
  0x76   : > { %v360_v40 = vsel %vm836_vm3, %v733_v29, 0.0  ;;  %v359_v41 = vsel %vm836_vm3, %v732_v30, 0.0 }
  0x77   : > { %v398_v48 = vrot.slane %v360_v40, 4  ;;  %v397_v49 = vrot.slane %v359_v41, 4 }
  0x79   : > { %v399_v55 = vsel %vm385_vm0, %v397_v49, %v398_v48 }
  0x7b   : > { %v392_v59 = vpop.permute.xlu2 %391 }
  0x83   : > { %v706_v12 = vpop.permute.xlu0 %705  ;;  %v331_v6 = vpop.permute.xlu2 %330 }
  0x84   : > { %v708_v14 = vunpack.i.h.bf16 %v706_v12  ;;  %v707_v15 = vunpack.i.l.bf16 %v706_v12 }
  0x86   : > { %v716_v16 = vpop.permute.xlu1 %715  ;;  %v383_v17 = vsel %vm822_vm1, %v707_v15, 0.0  ;;  %v384_v18 = vsel %vm822_vm1, %v708_v14, 0.0 }
  0x87   : > { %v431_v19 = vpack.c.bf16 %v384_v18, %v383_v17  ;;  %v717_v28 = vunpack.i.l.bf16 %v716_v16  ;;  %v718_v31 = vunpack.i.h.bf16 %v716_v16 }
  0x89   : > { %v445_v20 = vsel %vm443_vm2, %v431_v19, 0 }
  0x8a   : > { %448 = vmatpush.bf16.msra.mxu0 %v445_v20 }
  0x8b   : > { %v711_v25 = vpop.permute.xlu0 %710 }
  0x8c   : > { %v712_v27 = vunpack.i.l.bf16 %v711_v25  ;;  %v713_v45 = vunpack.i.h.bf16 %v711_v25 }
  0x8e   : > { %v376_v32 = vsel %vm836_vm3, %v712_v27, 0.0  ;;  %v721_v33 = vpop.permute.xlu1 %720 }
  0x8f   : > { %v723_v34 = vunpack.i.h.bf16 %v721_v33  ;;  %v722_v35 = vunpack.i.l.bf16 %v721_v33  ;;  %v424_v36 = vsel %vm385_vm0, %v376_v32, %v717_v28 }
  0x90   : > { %v430_v37 = vpack.c.bf16 %v718_v31, %v424_v36 }
  0x91   : > { %v368_v38 = vsel %vm822_vm1, %v723_v34, 0.0  ;;  %v367_v39 = vsel %vm822_vm1, %v722_v35, 0.0 }
  0x92   : > { %v411_v43 = vrot.slane %v368_v38, 4  ;;  %v410_v44 = vrot.slane %v367_v39, 4  ;;  %449 = vmatpush.bf16.msra.mxu0 %v430_v37 }
  0x93   : > { %v348_v46 = vpop.permute.xlu0 %347 }
  0x94   : > { %v412_v50 = vsel %vm385_vm0, %v410_v44, %v411_v43  ;;  %v352_v52 = vsel %vm822_vm1, %v348_v46, 0.0  ;;  %v423_v53 = vsel %vm385_vm0, %v727_v47, %v410_v44 }
  0x95   : > { %v664_v51 = vpack.c.bf16 %v713_v45, %v412_v50  ;;  %v422_v56 = vsel %vm385_vm0, %v352_v52, %v397_v49  ;;  %v428_v57 = vpack.c.bf16 %v423_v53, %v728_v54 }
  0x96   : > { %v427_v58 = vpack.c.bf16 %v399_v55, %v422_v56  ;;  %v346_v60 = vpop.permute.xlu1 %345 }
  0x97   : > { %665 = vmatpush.bf16.msk.msra.mxu0 %vm663_vm5, %v664_v51  ;;  %v667_v63 = vpack.c.bf16 %v346_v60, %v392_v59 }
  0x9b   : > { %451 = vmatpush.bf16.msra.mxu0 %v428_v57  ;;  %v390_v62 = vpop.permute.xlu0 %389 }
  0x9c   : > { %v421_v2 = vsel %vm385_vm0, %v340_v61, %v390_v62 }
  0x9d   : > { %v670_v3 = vpack.c.bf16 %v421_v2, %v809_v0 }
  0x9e   : > { %v326_v0 = vpop.permute.xlu1 %325 }
  0x9f   : > { %452 = vmatpush.bf16.msra.mxu0 %v427_v58 }
  0xa3   : > { %668 = vmatpush.bf16.msk.msra.mxu0 %vm666_vm6, %v667_v63  ;;  %v471_v12 = vpop.permute.xlu0 %470 }
  0xa6   : > { %v476_v19 = vpop.permute.xlu1 %475 }
  0xa7   : > { %671 = vmatpush.bf16.msk.msra.mxu0 %vm669_vm7, %v670_v3 }
  0xaa   : > { %672 = vmatmul.msk.bf16.vlgmr.msra.gmra.mxu0 %vm439_vm8, %v684_v1 }
 0x127   : > { %v456_v5 = vpop.f32.mrf.mxu0 }
 0x128   : > { %v461_v8 = vadd.f32 %v456_v5, %v326_v0 }
 0x12f   : > { %v458_v7 = vpop.f32.mrf.mxu0 }
 0x130   : > { %v462_v9 = vadd.f32 %v458_v7, %v331_v6 }
 0x132   : > { %v465_v10 = vpack.c.bf16 %v462_v9, %v461_v8 }
 0x134   : > { %494 = vmatpush.bf16.msra.mxu1 %v465_v10 }
 0x137   : > { %677 = vmatmul.msk.bf16.vlgmr.msra.gmra.mxu1 %vm483_vm9, %v685_v11 }
 0x1b4   : > { %v496_v13 = vpop.f32.mrf.mxu1 }
 0x1b5   : > { %v497_v14 = vadd.f32 %v496_v13, %v471_v12 }
 0x1b7   : > { %v501_v15 = vmax.f32 %v497_v14, 0.0 }
 0x1b9   : > { %504 = vst.msk [vmem:[%s293_s8] sm:$0xff] %vm503_vm10, %v501_v15  ;;  %v506_v16 = vsel %vm503_vm10, %v501_v15, 0.0  ;;  %v515_v17 = vmul.f32 %v501_v15, %v501_v15 }
 0x1ba   : > { %507 = vadd.xlane.f32.xlu2 %v506_v16 }
 0x1bb   : > { %v517_v18 = vsel %vm503_vm10, %v515_v17, 0.0 }
 0x1bc   : > { %v498_v20 = vpop.f32.mrf.mxu1  ;;  %518 = vadd.xlane.f32.xlu0 %v517_v18 }
 0x1bd   : > { %v499_v21 = vadd.f32 %v498_v20, %v476_v19 }
 0x1bf   : > { %v502_v22 = vmax.f32 %v499_v21, 0.0 }
 0x1c1   : > { %505 = vst.msk [vmem:[%s293_s8 + $0x8] sm:$0xff] %vm503_vm10, %v502_v22  ;;  %v509_v23 = vsel %vm503_vm10, %v502_v22, 0.0  ;;  %v516_v24 = vmul.f32 %v502_v22, %v502_v22 }
 0x1c2   : > { %510 = vadd.xlane.f32.xlu1 %v509_v23 }
 0x1c3   : > { %v520_v25 = vsel %vm503_vm10, %v516_v24, 0.0 }
 0x1c4   : > { %521 = vadd.xlane.f32.xlu2 %v520_v25 }
 0x22d   : > { %v508_v26 = vpop.xlane.xlu2 %507 }
 0x22e   : > { %513 = vst.msk [vmem:[%s298_s11] sm:$0xff] %vm512_vm11, %v508_v26 }
 0x22f   : > { %v519_v27 = vpop.xlane.xlu0 %518 }
 0x230   : > { %523 = vst.msk [vmem:[%s303_s14] sm:$0xff] %vm512_vm11, %v519_v27 }
 0x235   : > { %v511_v28 = vpop.xlane.xlu1 %510 }
 0x236   : > { %514 = vst.msk [vmem:[%s298_s11 + $0x8] sm:$0xff] %vm512_vm11, %v511_v28 }
 0x237   : > { %v522_v29 = vpop.xlane.xlu2 %521 }
 0x238   : > { %524 = vst.msk [vmem:[%s303_s14 + $0x8] sm:$0xff] %vm512_vm11, %v522_v29 }
 0x239 PF: > { %s18_s24 = sadd.s32 1, %s743_s24  }
 0x23a   : > { %p15_p4 = scmp.ge.s32.totalorder %s18_s24, 4  }
 0x23c   :  { %17 = sbr.rel (!%p15_p4) target bundleno = 1 (0x1), region = 94 }

// kernel: panelnet_forward.13
= control target key start
LH: loop header
LB: loop body
LE: loop exit
PB: predicated region body
PF: predicated region fallthrough
CT: control target
= control target key end

     0   :  { %s876_s24 = smov 0   ;;  %s1001_s0 = inlined_call_operand.vmem [shape: f32[2,16,26], index: 0, kind: input, shape index: {}]   ;;  %s1002_s1 = inlined_call_operand.vmem [shape: bf16[20,144], index: 1, kind: input, shape index: {}]   ;;  %s1003_s2 = inlined_call_operand.vmem [shape: f32[20,1], index: 2, kind: input, shape index: {}]   ;;  %s1004_s3 = inlined_call_operand.vmem [shape: bf16[20,20], index: 3, kind: input, shape index: {}]   ;;  %s1005_s4 = inlined_call_operand.vmem [shape: f32[20,1], index: 4, kind: input, shape index: {}]   ;;  %s1006_s5 = inlined_call_operand.vmem [shape: f32[2,20,16], index: 5, kind: output, shape index: {0}]   ;;  %s1007_s6 = inlined_call_operand.vmem [shape: f32[2,20,1], index: 6, kind: output, shape index: {1}]   ;;  %s1008_s7 = inlined_call_operand.vmem [shape: f32[2,20,1], index: 7, kind: output, shape index: {2}]  }
   0x1 LB: > { %s700_s25 = sadd.s32 4294967295, %s825_s24   ;;  %p704_p0 = scmp.ge.s32.totalorder %s825_s24, 1  ;;  %s825_s24 = sphi %s876_s24, %s18_s24  }
   0x2   : > { %p242_p1 = scmp.lt.s32.totalorder %s825_s24, 3 }
   0x4   : > { %p243_p2 = pnand %p704_p0, %p242_p1 }
   0x5   : > { %p284_p3 = scmp.lt.s32.totalorder (!%p243_p2), %s700_s25, 1  ;;  %s827_s30 = smov (!%p243_p2), 119  }
   0x6   : > { %246 = sbr.rel (%p243_p2) target bundleno = 595 (0x253), region = 40  ;;  %s828_s8 = smov (!%p243_p2), 122  }
   0x7   : > { %s829_s9 = smov (!%p243_p2), 124   ;;  %s830_s10 = smov (!%p243_p2), 120  }
   0x8   : > { %s831_s11 = smov (!%p243_p2), 123   ;;  %s832_s12 = smov (!%p243_p2), 118  }
   0x9   : > { %s833_s13 = smov (!%p243_p2), 126   ;;  %s834_s14 = smov (!%p243_p2), 127  }
   0xb   : > { %s1014_s25 = smov (!%p284_p3, %s700_s25), 1  ;;  %v305_v3 = vlaneseq  ;;  %v747_v10 = vld [vmem:[%s1002_s1 + $0x4] sm:$0xf]  ;;  %v714_v11 = vld [vmem:[%s1002_s1 + $0x8] sm:$0xf0]  ;;  %vm437_vm2 = vcmask 130048  }
   0xc   : > { %s746_s26 = sshll.u32 %s1014_s25, 4  ;;  %v717_v14 = vor.u32 %v747_v10, %v714_v11  ;;  %v914_v19 = vld [vmem:[%s1002_s1 + $0x10] sm:$0x33]  ;;  %v321_v24 = vld [vmem:[%s1003_s2] sm:$0xff]  ;;  %v322_v25 = vld [vmem:[%s1003_s2 + $0x8] sm:$0xff]  ;;  %v835_v28 = vmov 0  }
   0xd   : > { %s288_s29 = scalar_lea.vmem %s1001_s0, %s746_s26  ;;  %v306_v5 = vand.u32 127, %v305_v3  ;;  %v430_v20 = vunpack.c.h.b16 %v914_v19  ;;  %817 = vset.pattern.permute.xlu0 %v835_v28  ;;  %v323_v29 = vld [vmem:[%s1003_s2 + $0x10] sm:$0xf]  ;;  %818 = vset.pattern.permute.xlu1 %v835_v28  ;;  %v489_v38 = vld [vmem:[%s1005_s4 + $0x8] sm:$0xff]  ;;  %v488_v40 = vld [vmem:[%s1005_s4] sm:$0xff]  ;;  %v429_v53 = vunpack.c.l.b16 %v914_v19  ;;  %vm521_vm5 = vcmask 1041408  }
   0xe   : > { %v890_v0 = vld [vmem:[%s288_s29] sm:$0xff]  ;;  %v892_v1 = vld [vmem:[%s288_s29 + $0x8] sm:$0xff]  ;;  %816 = vset.pattern.permute.xlu2 %v835_v28  ;;  %v490_v51 = vld [vmem:[%s1005_s4 + $0x10] sm:$0xf]  ;;  %vm514_vm6 = vcmask 162816   ;;  %s978_s20 = smul.u32 24, %s1014_s25 }
   0xf   : > { %v776_v2 = vpack.i.bf16 %v892_v1, %v890_v0  ;;  %v311_v6 = vand.u32 3, %v306_v5  ;;  %v434_v22 = vpack.c.b16 %v430_v20, %v430_v20  ;;  %v731_v54 = vpack.c.bf16 %v892_v1, %v890_v0  ;;  %v712_v55 = vld [vmem:[%s1002_s1] sm:$0xf]  ;;  %v748_v56 = vld [vmem:[%s1002_s1 + $0x4] sm:$0xf0] }
  0x10   : > { %v713_v57 = vor.u32 %v748_v56, %v712_v55  ;;  %v433_v58 = vpack.c.b16 %v429_v53, %v429_v53  ;;  %s293_s23 = scalar_lea.vmem %s1006_s5, %s978_s20  ;;  %vm548_vm7 = vcmask 125952   ;;  %s298_s27 = scalar_lea.vmem %s1007_s6, %s978_s20  ;;  %vm559_vm8 = vcmask 7168  }
  0x11   : > { %777 = vrot.lane.b32.xlu0 %v776_v2, %s827_s30  ;;  %787 = vrot.lane.b32.xlu1 %v776_v2, %s828_s8  ;;  %vm320_vm0 = vcmp.le.s32.totalorder %v311_v6, 2  ;;  %vm319_vm3 = vcmp.ge.s32.totalorder %v311_v6, 1  ;;  %s303_s30 = scalar_lea.vmem %s1008_s7, %s978_s20  ;;  %vm562_vm9 = vcmask 3072  }
  0x12   : > { %797 = vrot.lane.b32.xlu2 %v776_v2, %s829_s9  ;;  %vm904_vm1 = vmpackc.low %vm320_vm0, %vm320_vm0 }
  0x13   : > { %vm927_vm4 = vmpackc.low %vm319_vm3, %vm319_vm3 }
  0x19   : > { %782 = vrot.lane.b32.xlu0 %v776_v2, %s830_s10  ;;  %792 = vrot.lane.b32.xlu1 %v776_v2, %s831_s11 }
  0x1a   : > { %802 = vrot.lane.b32.xlu2 %v776_v2, %s832_s12 }
  0x21   : > { %807 = vrot.lane.b32.xlu0 %v776_v2, %s833_s13  ;;  %812 = vrot.lane.b32.xlu1 %v776_v2, %s834_s14 }
  0x22   : > { %336 = vperm.xlu2 %816, %v323_v29  }
  0x29   : > { %326 = vperm.xlu0 %817, %v321_v24   ;;  %331 = vperm.xlu1 %818, %v322_v25  }
  0x2a   : > { %493 = vperm.xlu2 %816, %v488_v40  }
  0x31   : > { %498 = vperm.xlu1 %818, %v489_v38  }
  0x32   : > { %503 = vperm.xlu2 %816, %v490_v51  }
  0x6c   : > { %v896_v4 = vpop.permute.xlu2 %797 }
  0x6d   : > { %v800_v42 = vunpack.i.h.bf16 %v896_v4  ;;  %v799_v43 = vunpack.i.l.bf16 %v896_v4 }
  0x6f   : > { %v725_v47 = vpack.c.bf16 %v800_v42, %v799_v43 }
  0x74   : > { %v803_v7 = vpop.permute.xlu2 %802 }
  0x75   : > { %v805_v8 = vunpack.i.h.bf16 %v803_v7  ;;  %v804_v9 = vunpack.i.l.bf16 %v803_v7 }
  0x77   : > { %v734_v12 = vpack.c.bf16 %v805_v8, %v804_v9 }
  0x79   : > { %735 = vmatpush.bf16.msk.msra.mxu1 %vm904_vm1, %v734_v12 }
  0x7c   : > { %736 = vmatmul.msk.bf16.vlgmr.msra.gmra.mxu1 %vm437_vm2, %v717_v14  ;;  %v337_v2 = vpop.permute.xlu2 %336 }
  0x83   : > { %v778_v15 = vpop.permute.xlu0 %777  ;;  %v788_v16 = vpop.permute.xlu1 %787 }
  0x84   : > { %v780_v17 = vunpack.i.h.bf16 %v778_v15  ;;  %v779_v18 = vunpack.i.l.bf16 %v778_v15  ;;  %v790_v32 = vunpack.i.h.bf16 %v788_v16  ;;  %v789_v33 = vunpack.i.l.bf16 %v788_v16  ;;  %v749_v15 = vld [vmem:[%s1004_s3] sm:$0xff]  ;;  %v485_v16 = vld [vmem:[%s1004_s3 + $0x8] sm:$0x3]  ;;  %v494_v19 = vpop.permute.xlu2 %493 }
  0x86   : > { %v417_v21 = vpack.c.bf16 %v780_v17, %v779_v18  ;;  %v722_v37 = vpack.c.bf16 %v790_v32, %v789_v33  ;;  %v511_v17 = vunpack.c.l.b16 %v485_v16 }
  0x88   : > { %444 = vmatpush.bf16.msra.mxu0 %v417_v21  ;;  %750 = vmatpush.bf16.msra.mxu3 %v417_v21  ;;  %v513_v18 = vpack.c.b16 %v511_v17, %v511_v17 }
  0x8b   : > { %v783_v23 = vpop.permute.xlu0 %782  ;;  %v793_v31 = vpop.permute.xlu1 %792 }
  0x8c   : > { %v785_v26 = vunpack.i.h.bf16 %v783_v23  ;;  %v784_v27 = vunpack.i.l.bf16 %v783_v23  ;;  %737 = vmatmul.msk.bf16.gmra.mxu1 %vm437_vm2, %v434_v22  ;;  %v795_v35 = vunpack.i.h.bf16 %v793_v31  ;;  %v794_v36 = vunpack.i.l.bf16 %v793_v31  ;;  %v504_v31 = vpop.permute.xlu2 %503 }
  0x8e   : > { %v719_v34 = vpack.c.bf16 %v785_v26, %v784_v27  ;;  %v414_v39 = vpack.c.bf16 %v795_v35, %v794_v36 }
  0x90   : > { %720 = vmatpush.bf16.msk.msra.mxu0 %vm927_vm4, %v719_v34  ;;  %751 = vmatpush.bf16.msk.msra.mxu3 %vm927_vm4, %v719_v34 }
  0x93   : > { %v808_v41 = vpop.permute.xlu0 %807  ;;  %v813_v46 = vpop.permute.xlu1 %812 }
  0x94   : > { %723 = vmatpush.bf16.msk.msra.mxu0 %vm904_vm1, %v722_v37  ;;  %752 = vmatpush.bf16.msk.msra.mxu3 %vm904_vm1, %v722_v37  ;;  %v810_v44 = vunpack.i.h.bf16 %v808_v41  ;;  %v809_v45 = vunpack.i.l.bf16 %v808_v41  ;;  %v815_v49 = vunpack.i.h.bf16 %v813_v46  ;;  %v814_v50 = vunpack.i.l.bf16 %v813_v46 }
  0x96   : > { %v728_v48 = vpack.c.bf16 %v810_v44, %v809_v45  ;;  %v411_v52 = vpack.c.bf16 %v815_v49, %v814_v50 }
  0x98   : > { %447 = vmatpush.bf16.msra.mxu0 %v414_v39  ;;  %753 = vmatpush.bf16.msra.mxu3 %v414_v39 }
  0x9b   : > { %v327_v7 = vpop.permute.xlu0 %326  ;;  %v332_v8 = vpop.permute.xlu1 %331 }
  0x9c   : > { %726 = vmatpush.bf16.msk.msra.mxu0 %vm927_vm4, %v725_v47  ;;  %754 = vmatpush.bf16.msk.msra.mxu3 %vm927_vm4, %v725_v47 }
  0xa0   : > { %729 = vmatpush.bf16.msk.msra.mxu0 %vm904_vm1, %v728_v48  ;;  %755 = vmatpush.bf16.msk.msra.mxu3 %vm904_vm1, %v728_v48 }
  0xa3   : > { %v499_v24 = vpop.permute.xlu1 %498 }
  0xa4   : > { %450 = vmatpush.bf16.msra.mxu0 %v411_v52  ;;  %756 = vmatpush.bf16.msra.mxu3 %v411_v52 }
  0xa8   : > { %732 = vmatpush.bf16.msk.msra.mxu0 %vm927_vm4, %v731_v54  ;;  %757 = vmatpush.bf16.msk.msra.mxu3 %vm927_vm4, %v731_v54 }
  0xab   : > { %452 = vmatmul.bf16.vlgmr.msra.gmra.mxu0 %v713_v57  ;;  %457 = vmatmul.bf16.vlgmr.msra.gmra.mxu3 %v433_v58 }
  0xf9   : > { %v471_v59 = vpop.f32.mrf.mxu1 }
 0x101   : > { %v473_v60 = vpop.f32.mrf.mxu1 }
 0x109   : > { %v476_v61 = vpop.f32.mrf.mxu1 }
 0x111   : > { %v478_v62 = vpop.f32.mrf.mxu1 }
 0x128   : > { %v453_v63 = vpop.f32.mrf.mxu0 }
 0x129   : > { %v472_v6 = vadd.f32 %v471_v59, %v453_v63 }
 0x12b   : > { %v480_v12 = vadd.f32 %v472_v6, %v327_v7 }
 0x12e   : > { %v458_v0 = vpop.f32.mrf.mxu3 }
 0x12f   : > { %v477_v1 = vadd.f32 %v476_v61, %v458_v0 }
 0x130   : > { %v455_v3 = vpop.f32.mrf.mxu0 }
 0x131   : > { %v474_v4 = vadd.f32 %v473_v60, %v455_v3  ;;  %v482_v5 = vadd.f32 %v477_v1, %v337_v2 }
 0x133   : > { %v487_v9 = vpack.c.bf16 %v482_v5, %v482_v5  ;;  %v481_v10 = vadd.f32 %v474_v4, %v332_v8 }
 0x135   : > { %v523_v11 = vsel %vm521_vm5, %v487_v9, 0  ;;  %v486_v14 = vpack.c.bf16 %v481_v10, %v480_v12 }
 0x136   : > { %v460_v13 = vpop.f32.mrf.mxu3  ;;  %531 = vmatpush.bf16.msra.mxu2 %v523_v11 }
 0x13a   : > { %532 = vmatpush.bf16.msra.mxu2 %v486_v14 }
 0x13d   : > { %742 = vmatmul.msk.bf16.vlgmr.msra.gmra.mxu2 %vm514_vm6, %v749_v15 }
 0x14d   : > { %743 = vmatmul.msk.bf16.gmra.mxu2 %vm514_vm6, %v513_v18 }
 0x1c0   : > { %v534_v20 = vpop.f32.mrf.mxu2 }
 0x1c1   : > { %v535_v21 = vadd.f32 %v534_v20, %v494_v19 }
 0x1c3   : > { %v543_v22 = vmax.f32 %v535_v21, 0.0 }
 0x1c5   : > { %546 = vst.msk [vmem:[%s293_s23] sm:$0xff] %vm437_vm2, %v543_v22  ;;  %v550_v23 = vsel %vm437_vm2, %v543_v22, 0.0  ;;  %v564_v39 = vmul.f32 %v543_v22, %v543_v22 }
 0x1c6   : > { %551 = vadd.xlane.f32.xlu0 %v550_v23 }
 0x1c7   : > { %v567_v40 = vsel %vm437_vm2, %v564_v39, 0.0 }
 0x1c8   : > { %v536_v25 = vpop.f32.mrf.mxu2 }
 0x1c9   : > { %v537_v26 = vadd.f32 %v536_v25, %v499_v24 }
 0x1cb   : > { %v544_v27 = vmax.f32 %v537_v26, 0.0 }
 0x1cd   : > { %547 = vst.msk [vmem:[%s293_s23 + $0x8] sm:$0xff] %vm437_vm2, %v544_v27  ;;  %v553_v28 = vsel %vm437_vm2, %v544_v27, 0.0  ;;  %v565_v29 = vmul.f32 %v544_v27, %v544_v27 }
 0x1ce   : > { %554 = vadd.xlane.f32.xlu1 %v553_v28 }
 0x1cf   : > { %v570_v30 = vsel %vm437_vm2, %v565_v29, 0.0 }
 0x1d0   : > { %v539_v32 = vpop.f32.mrf.mxu2  ;;  %571 = vadd.xlane.f32.xlu0 %v570_v30 }
 0x1d1   : > { %v540_v33 = vadd.f32 %v539_v32, %v504_v31 }
 0x1d3   : > { %v545_v34 = vmax.f32 %v540_v33, 0.0 }
 0x1d5   : > { %v556_v35 = vsel %vm548_vm7, %v545_v34, 0.0  ;;  %549 = vst.msk [vmem:[%s293_s23 + $0x10] sm:$0xf] %vm548_vm7, %v545_v34  ;;  %v566_v36 = vmul.f32 %v545_v34, %v545_v34 }
 0x1d6   : > { %557 = vadd.xlane.f32.xlu2 %v556_v35 }
 0x1d7   : > { %v573_v37 = vsel %vm548_vm7, %v566_v36, 0.0 }
 0x1d8   : > { %v541_v38 = vpop.f32.mrf.mxu2  ;;  %574 = vadd.xlane.f32.xlu1 %v573_v37 }
 0x1de   : > { %568 = vadd.xlane.f32.xlu2 %v567_v40 }
 0x239   : > { %v552_v41 = vpop.xlane.xlu0 %551 }
 0x23a   : > { %560 = vst.msk [vmem:[%s298_s27] sm:$0xff] %vm559_vm8, %v552_v41 }
 0x241   : > { %v555_v42 = vpop.xlane.xlu1 %554 }
 0x242   : > { %561 = vst.msk [vmem:[%s298_s27 + $0x8] sm:$0xff] %vm559_vm8, %v555_v42 }
 0x243   : > { %v572_v43 = vpop.xlane.xlu0 %571 }
 0x244   : > { %577 = vst.msk [vmem:[%s303_s30 + $0x8] sm:$0xff] %vm559_vm8, %v572_v43 }
 0x249   : > { %v558_v44 = vpop.xlane.xlu2 %557 }
 0x24a   : > { %563 = vst.msk [vmem:[%s298_s27 + $0x10] sm:$0xf] %vm562_vm9, %v558_v44 }
 0x24b   : > { %v575_v45 = vpop.xlane.xlu1 %574 }
 0x24c   : > { %578 = vst.msk [vmem:[%s303_s30 + $0x10] sm:$0xf] %vm562_vm9, %v575_v45 }
 0x251   : > { %v569_v46 = vpop.xlane.xlu2 %568 }
 0x252   : > { %576 = vst.msk [vmem:[%s303_s30] sm:$0xff] %vm559_vm8, %v569_v46 }
 0x253 PF: > { %s18_s24 = sadd.s32 1, %s825_s24  }
 0x254   : > { %p15_p4 = scmp.ge.s32.totalorder %s18_s24, 4  }
 0x256   :  { %17 = sbr.rel (!%p15_p4) target bundleno = 1 (0x1), region = 94 }

// kernel: panelnet_forward.14
= control target key start
LH: loop header
LB: loop body
LE: loop exit
PB: predicated region body
PF: predicated region fallthrough
CT: control target
= control target key end

     0   :  { %s912_s24 = smov 0   ;;  %s1092_s0 = inlined_call_operand.vmem [shape: f32[2,20,10], index: 0, kind: input, shape index: {}]   ;;  %s1093_s1 = inlined_call_operand.vmem [shape: bf16[20,180], index: 1, kind: input, shape index: {}]   ;;  %s1094_s2 = inlined_call_operand.vmem [shape: f32[20,1], index: 2, kind: input, shape index: {}]   ;;  %s1095_s3 = inlined_call_operand.vmem [shape: bf16[20,20], index: 3, kind: input, shape index: {}]   ;;  %s1096_s4 = inlined_call_operand.vmem [shape: f32[20,1], index: 4, kind: input, shape index: {}]   ;;  %s1097_s5 = inlined_call_operand.vmem [shape: f32[2,20,4], index: 5, kind: output, shape index: {0}]   ;;  %s1098_s6 = inlined_call_operand.vmem [shape: f32[2,20,1], index: 6, kind: output, shape index: {1}]   ;;  %s1099_s7 = inlined_call_operand.vmem [shape: f32[2,20,1], index: 7, kind: output, shape index: {2}]  }
   0x1 LB: > { %s750_s25 = sadd.s32 4294967295, %s862_s24   ;;  %p754_p0 = scmp.ge.s32.totalorder %s862_s24, 1  ;;  %s862_s24 = sphi %s912_s24, %s18_s24  }
   0x2   : > { %p242_p1 = scmp.lt.s32.totalorder %s862_s24, 3 }
   0x4   : > { %p243_p2 = pnand %p754_p0, %p242_p1 }
   0x5   : > { %p284_p3 = scmp.lt.s32.totalorder (!%p243_p2), %s750_s25, 1  ;;  %s864_s30 = smov (!%p243_p2), 124  }
   0x6   : > { %246 = sbr.rel (%p243_p2) target bundleno = 596 (0x254), region = 40  ;;  %s865_s8 = smov (!%p243_p2), 125  }
   0x7   : > { %s866_s9 = smov (!%p243_p2), 126   ;;  %s867_s10 = smov (!%p243_p2), 122  }
   0x8   : > { %s868_s11 = smov (!%p243_p2), 123   ;;  %s869_s12 = smov (!%p243_p2), 127  }
   0xb   : > { %s1105_s25 = smov (!%p284_p3, %s750_s25), 1  ;;  %vm397_vm0 = vcmask 1043456   ;;  %v305_v13 = vlaneseq  ;;  %vm870_vm3 = vmmov 1   ;;  %vm493_vm5 = vcmask 1041408   ;;  %v323_v57 = vld [vmem:[%s1094_s2 + $0x10] sm:$0xf] }
   0xc   : > { %s920_s26 = smul.u32 24, %s1105_s25  ;;  %v321_v58 = vld [vmem:[%s1094_s2] sm:$0xff]  ;;  %v871_v61 = vmov 0   ;;  %vm486_vm10 = vcmask 424960   ;;  %vm567_vm12 = vcmask 162816   ;;  %vm595_vm13 = vcmask 31744  }
   0xd   : > { %v306_v14 = vand.u32 127, %v305_v13  ;;  %853 = vset.pattern.permute.xlu0 %v871_v61  ;;  %854 = vset.pattern.permute.xlu1 %v871_v61  ;;  %vm598_vm14 = vcmask 27648   ;;  %vm609_vm15 = vcmask 7168  }
   0xe   : > { %s288_s29 = scalar_lea.vmem %s1092_s0, %s920_s26  ;;  %855 = vset.pattern.permute.xlu2 %v871_v61  ;;  %s293_s20 = scalar_lea.vmem %s1097_s5, %s920_s26 }
   0xf   : > { %v926_v0 = vld [vmem:[%s288_s29 + $0x8] sm:$0xff]  ;;  %v928_v1 = vld [vmem:[%s288_s29 + $0x10] sm:$0xf]  ;;  %v930_v2 = vld [vmem:[%s288_s29] sm:$0xff]  ;;  %v311_v16 = vand.u32 1, %v306_v14  ;;  %s298_s23 = scalar_lea.vmem %s1098_s6, %s920_s26  ;;  %s303_s28 = scalar_lea.vmem %s1099_s7, %s920_s26 }
  0x10   : > { %v823_v3 = vpack.i.bf16 %v928_v1, %v926_v0  ;;  %v828_v4 = vpack.i.bf16 %v930_v2, %v928_v1  ;;  %v838_v5 = vpack.i.bf16 %v926_v0, %v930_v2  ;;  %v398_v6 = vrot.slane %v930_v2, 4 }
  0x11   : > { %v399_v7 = vrot.slane %v926_v0, 4  ;;  %v401_v8 = vrot.slane %v928_v1, 4  ;;  %vm949_vm1 = vcmp.le.s32.totalorder %v311_v16, 0  ;;  %vm965_vm2 = vcmp.ge.s32.totalorder %v311_v16, 1 }
  0x12   : > { %824 = vrot.lane.b32.xlu0 %v823_v3, %s864_s30  ;;  %829 = vrot.lane.b32.xlu1 %v828_v4, %s865_s8  ;;  %vm767_vm4 = vmpackc.low %vm965_vm2, %vm870_vm3  ;;  %v322_v3 = vld [vmem:[%s1094_s2 + $0x8] sm:$0xff] }
  0x13   : > { %839 = vrot.lane.b32.xlu2 %v838_v5, %s866_s9  ;;  %v400_v9 = vsel %vm397_vm0, %v398_v6, %v399_v7  ;;  %v402_v10 = vsel %vm397_vm0, %v399_v7, %v401_v8  ;;  %vm779_vm6 = vmpackc.low %vm949_vm1, %vm949_vm1  ;;  %v543_v8 = vld [vmem:[%s1096_s4 + $0x10] sm:$0xf] }
  0x14   : > { %v843_v11 = vpack.i.bf16 %v402_v10, %v400_v9  ;;  %v848_v12 = vpack.i.bf16 %v398_v6, %v402_v10  ;;  %vm770_vm7 = vmpackc.low %vm870_vm3, %vm949_vm1 }
  0x15   : > { %vm782_vm8 = vmpackc.low %vm870_vm3, %vm965_vm2 }
  0x16   : > { %vm773_vm9 = vmpackc.low %vm949_vm1, %vm870_vm3 }
  0x17   : > { %vm776_vm11 = vmpackc.low %vm965_vm2, %vm965_vm2 }
  0x1a   : > { %834 = vrot.lane.b32.xlu1 %v828_v4, %s867_s10  ;;  %370 = vrot.lane.b32.xlu0 %v930_v2, %s864_s30 }
  0x1b   : > { %359 = vrot.lane.b32.xlu2 %v928_v1, %s866_s9 }
  0x22   : > { %387 = vrot.lane.b32.xlu1 %v926_v0, %s867_s10  ;;  %425 = vrot.lane.b32.xlu0 %v926_v0, %s865_s8 }
  0x23   : > { %844 = vrot.lane.b32.xlu2 %v843_v11, %s868_s11 }
  0x2a   : > { %849 = vrot.lane.b32.xlu1 %v848_v12, %s869_s12  ;;  %443 = vrot.lane.b32.xlu0 %v398_v6, %s868_s11 }
  0x2b   : > { %405 = vrot.lane.b32.xlu2 %v400_v9, %s869_s12  ;;  %v541_v9 = vld [vmem:[%s1096_s4] sm:$0xff] }
  0x32   : > { %336 = vperm.xlu0 %853, %v323_v57   ;;  %326 = vperm.xlu1 %854, %v321_v58  }
  0x33   : > { %331 = vperm.xlu2 %855, %v322_v3  }
  0x3a   : > { %556 = vperm.xlu0 %853, %v543_v8   ;;  %546 = vperm.xlu1 %854, %v541_v9  }
  0x6d   : > { %v947_v15 = vpop.permute.xlu2 %839 }
  0x6e   : > { %v842_v28 = vunpack.i.h.bf16 %v947_v15  ;;  %v841_v32 = vunpack.i.l.bf16 %v947_v15  ;;  %v777_v15 = vpack.c.bf16 %v926_v0, %v930_v2 }
  0x70   : > { %v368_v38 = vsel %vm965_vm2, %v842_v28, 0.0  ;;  %v367_v44 = vsel %vm965_vm2, %v841_v32, 0.0 }
  0x71   : > { %v416_v47 = vrot.slane %v368_v38, 4  ;;  %v415_v52 = vrot.slane %v367_v44, 4 }
  0x73   : > { %v417_v62 = vsel %vm397_vm0, %v415_v52, %v416_v47 }
  0x75   : > { %v360_v26 = vpop.permute.xlu2 %359 }
  0x76   : > { %v369_v39 = vsel %vm965_vm2, %v360_v26, 0.0  ;;  %v366_v4 = vsel %vm949_vm1, %v360_v26, 0.0 }
  0x77   : > { %v418_v48 = vrot.slane %v369_v39, 4  ;;  %v453_v7 = vsel %vm397_vm0, %v366_v4, %v415_v52 }
  0x78   : > { %v771_v16 = vpack.c.bf16 %v453_v7, %v842_v28 }
  0x79   : > { %v419_v63 = vsel %vm397_vm0, %v416_v47, %v418_v48 }
  0x7a   : > { %v460_v6 = vpack.c.bf16 %v419_v63, %v417_v62 }
  0x7d   : > { %v845_v46 = vpop.permute.xlu2 %844 }
  0x7e   : > { %v847_v55 = vunpack.i.h.bf16 %v845_v46  ;;  %v846_v56 = vunpack.i.l.bf16 %v845_v46 }
  0x80   : > { %v465_v5 = vpack.c.bf16 %v847_v55, %v846_v56 }
  0x84   : > { %v953_v18 = vpop.permute.xlu0 %824  ;;  %v830_v19 = vpop.permute.xlu1 %829 }
  0x85   : > { %v827_v20 = vunpack.i.h.bf16 %v953_v18  ;;  %v826_v21 = vunpack.i.l.bf16 %v953_v18  ;;  %v831_v36 = vunpack.i.l.bf16 %v830_v19  ;;  %v832_v50 = vunpack.i.h.bf16 %v830_v19  ;;  %v795_v19 = vld [vmem:[%s1093_s1 + $0x4] sm:$0xf]  ;;  %v406_v28 = vpop.permute.xlu2 %405 }
  0x87   : > { %v381_v22 = vsel %vm949_vm1, %v827_v20, 0.0  ;;  %v380_v23 = vsel %vm949_vm1, %v826_v21, 0.0  ;;  %v384_v10 = vsel %vm965_vm2, %v827_v20, 0.0  ;;  %v763_v20 = vld [vmem:[%s1093_s1 + $0x8] sm:$0xf0] }
  0x88   : > { %v438_v24 = vrot.slane %v381_v22, 4  ;;  %v436_v25 = vrot.slane %v380_v23, 4  ;;  %v766_v26 = vor.u32 %v795_v19, %v763_v20 }
  0x8a   : > { %v439_v31 = vsel %vm397_vm0, %v436_v25, %v438_v24  ;;  %v542_v24 = vld [vmem:[%s1096_s4 + $0x8] sm:$0xff] }
  0x8b   : > { %551 = vperm.xlu2 %855, %v542_v24  }
  0x8c   : > { %v835_v29 = vpop.permute.xlu1 %834  ;;  %v371_v30 = vpop.permute.xlu0 %370 }
  0x8d   : > { %v836_v33 = vunpack.i.l.bf16 %v835_v29  ;;  %v379_v34 = vsel %vm949_vm1, %v371_v30, 0.0  ;;  %v768_v35 = vpack.c.bf16 %v371_v30, %v439_v31  ;;  %v837_v51 = vunpack.i.h.bf16 %v835_v29  ;;  %v761_v30 = vld [vmem:[%s1093_s1] sm:$0xf]  ;;  %v796_v31 = vld [vmem:[%s1093_s1 + $0x4] sm:$0xf0] }
  0x8e   : > { %v435_v37 = vrot.slane %v379_v34, 4 }
  0x8f   : > { %769 = vmatpush.bf16.msk.msra.mxu0 %vm767_vm4, %v768_v35  ;;  %798 = vmatpush.bf16.msk.msra.mxu3 %vm767_vm4, %v768_v35  ;;  %v396_v40 = vsel %vm949_vm1, %v836_v33, 0.0 }
  0x90   : > { %v437_v41 = vsel %vm397_vm0, %v435_v37, %v436_v25  ;;  %v454_v42 = vsel %vm397_vm0, %v831_v36, %v435_v37  ;;  %v467_v43 = vpack.c.bf16 %v396_v40, %v396_v40  ;;  %v349_v25 = vsel %vm965_vm2, %v928_v1, 0.0  ;;  %v470_v1 = vld [vmem:[%s1093_s1 + $0x10] sm:$0x33] }
  0x91   : > { %v462_v45 = vpack.c.bf16 %v437_v41, %v454_v42  ;;  %v478_v17 = vunpack.c.l.b16 %v470_v1  ;;  %v479_v34 = vunpack.c.h.b16 %v470_v1 }
  0x92   : > { %v495_v49 = vsel %vm493_vm5, %v467_v43, 0 }
  0x93   : > { %498 = vmatpush.bf16.msra.mxu0 %v462_v45  ;;  %799 = vmatpush.bf16.msra.mxu3 %v462_v45  ;;  %v482_v33 = vpack.c.b16 %v478_v17, %v478_v17  ;;  %v483_v0 = vpack.c.b16 %v479_v34, %v479_v34  ;;  %v332_v45 = vpop.permute.xlu2 %331 }
  0x94   : > { %519 = vmatpush.bf16.msra.mxu1 %v495_v49  ;;  %v388_v53 = vpop.permute.xlu1 %387  ;;  %v426_v54 = vpop.permute.xlu0 %425 }
  0x95   : > { %v780_v59 = vpack.c.bf16 %v388_v53, %v837_v51  ;;  %v461_v60 = vpack.c.bf16 %v426_v54, %v832_v50  ;;  %v797_v53 = vld [vmem:[%s1095_s3] sm:$0xff]  ;;  %v538_v54 = vld [vmem:[%s1095_s3 + $0x8] sm:$0x3] }
  0x96   : > { %v564_v55 = vunpack.c.l.b16 %v538_v54 }
  0x97   : > { %499 = vmatpush.bf16.msra.mxu0 %v461_v60  ;;  %800 = vmatpush.bf16.msra.mxu3 %v461_v60 }
  0x98   : > { %781 = vmatpush.bf16.msk.msra.mxu1 %vm779_vm6, %v780_v59  ;;  %v566_v56 = vpack.c.b16 %v564_v55, %v564_v55 }
  0x9b   : > { %500 = vmatpush.bf16.msra.mxu0 %v460_v6  ;;  %801 = vmatpush.bf16.msra.mxu3 %v460_v6 }
  0x9c   : > { %v850_v11 = vpop.permute.xlu1 %849  ;;  %v444_v12 = vpop.permute.xlu0 %443  ;;  %521 = vmatpush.bf16.msra.mxu1 %v465_v5 }
  0x9d   : > { %v851_v13 = vunpack.i.l.bf16 %v850_v11  ;;  %v455_v14 = vsel %vm397_vm0, %v384_v10, %v444_v12  ;;  %v852_v22 = vunpack.i.h.bf16 %v850_v11 }
  0x9e   : > { %v783_v23 = vpack.c.bf16 %v455_v14, %v826_v21 }
  0x9f   : > { %772 = vmatpush.bf16.msk.msra.mxu0 %vm770_vm7, %v771_v16  ;;  %802 = vmatpush.bf16.msk.msra.mxu3 %vm770_vm7, %v771_v16  ;;  %v774_v18 = vpack.c.bf16 %v841_v32, %v851_v13  ;;  %v452_v21 = vsel %vm397_vm0, %v349_v25, %v852_v22  ;;  %v762_v32 = vor.u32 %v796_v31, %v761_v30  ;;  %vm612_vm0 = vcmask 3072  }
  0xa0   : > { %784 = vmatpush.bf16.msk.msra.mxu1 %vm782_vm8, %v783_v23  ;;  %v457_v29 = vpack.c.bf16 %v406_v28, %v452_v21 }
  0xa3   : > { %775 = vmatpush.bf16.msk.msra.mxu0 %vm773_vm9, %v774_v18  ;;  %803 = vmatpush.bf16.msk.msra.mxu3 %vm773_vm9, %v774_v18 }
  0xa4   : > { %785 = vmatmul.msk.bf16.vlgmr.msra.gmra.mxu1 %vm486_vm10, %v766_v26  ;;  %v337_v40 = vpop.permute.xlu0 %336  ;;  %v327_v44 = vpop.permute.xlu1 %326 }
  0xa7   : > { %503 = vmatpush.bf16.msra.mxu0 %v457_v29  ;;  %804 = vmatpush.bf16.msra.mxu3 %v457_v29 }
  0xab   : > { %778 = vmatpush.bf16.msk.msra.mxu0 %vm776_vm11, %v777_v15  ;;  %805 = vmatpush.bf16.msk.msra.mxu3 %vm776_vm11, %v777_v15 }
  0xac   : > { %v547_v57 = vpop.permute.xlu1 %546  ;;  %v557_v7 = vpop.permute.xlu0 %556 }
  0xae   : > { %505 = vmatmul.bf16.vlgmr.msra.gmra.mxu0 %v762_v32  ;;  %510 = vmatmul.bf16.vlgmr.msra.gmra.mxu3 %v482_v33 }
  0xb4   : > { %786 = vmatmul.msk.bf16.gmra.mxu1 %vm486_vm10, %v483_v0 }
  0xe5   : > { %v552_v61 = vpop.permute.xlu2 %551 }
 0x121   : > { %v524_v2 = vpop.f32.mrf.mxu1 }
 0x129   : > { %v526_v35 = vpop.f32.mrf.mxu1 }
 0x12b   : > { %v506_v36 = vpop.f32.mrf.mxu0 }
 0x12c   : > { %v525_v43 = vadd.f32 %v524_v2, %v506_v36 }
 0x12e   : > { %v533_v49 = vadd.f32 %v525_v43, %v327_v44 }
 0x131   : > { %v529_v37 = vpop.f32.mrf.mxu1  ;;  %v511_v38 = vpop.f32.mrf.mxu3 }
 0x132   : > { %v530_v39 = vadd.f32 %v529_v37, %v511_v38 }
 0x133   : > { %v508_v27 = vpop.f32.mrf.mxu0 }
 0x134   : > { %v527_v41 = vadd.f32 %v526_v35, %v508_v27  ;;  %v535_v42 = vadd.f32 %v530_v39, %v337_v40 }
 0x136   : > { %v540_v46 = vpack.c.bf16 %v535_v42, %v535_v42  ;;  %v534_v47 = vadd.f32 %v527_v41, %v332_v45 }
 0x138   : > { %v575_v48 = vsel %vm493_vm5, %v540_v46, 0  ;;  %v539_v52 = vpack.c.bf16 %v534_v47, %v533_v49 }
 0x139   : > { %v531_v50 = vpop.f32.mrf.mxu1  ;;  %v513_v51 = vpop.f32.mrf.mxu3  ;;  %583 = vmatpush.bf16.msra.mxu2 %v575_v48 }
 0x13d   : > { %584 = vmatpush.bf16.msra.mxu2 %v539_v52 }
 0x140   : > { %791 = vmatmul.msk.bf16.vlgmr.msra.gmra.mxu2 %vm567_vm12, %v797_v53 }
 0x150   : > { %792 = vmatmul.msk.bf16.gmra.mxu2 %vm567_vm12, %v566_v56 }
 0x1c3   : > { %v586_v58 = vpop.f32.mrf.mxu2 }
 0x1c4   : > { %v587_v59 = vadd.f32 %v586_v58, %v547_v57 }
 0x1c6   : > { %596 = vst.msk [vmem:[%s293_s20] sm:$0xff] %vm595_vm13, %v587_v59  ;;  %v600_v60 = vsel %vm595_vm13, %v587_v59, 0.0  ;;  %v614_v6 = vmul.f32 %v587_v59, %v587_v59 }
 0x1c7   : > { %601 = vadd.xlane.f32.xlu1 %v600_v60 }
 0x1c8   : > { %v617_v11 = vsel %vm595_vm13, %v614_v6, 0.0 }
 0x1cb   : > { %v588_v62 = vpop.f32.mrf.mxu2 }
 0x1cc   : > { %v589_v63 = vadd.f32 %v588_v62, %v552_v61 }
 0x1ce   : > { %597 = vst.msk [vmem:[%s293_s20 + $0x8] sm:$0xff] %vm595_vm13, %v589_v63  ;;  %v603_v3 = vsel %vm595_vm13, %v589_v63, 0.0  ;;  %v615_v4 = vmul.f32 %v589_v63, %v589_v63 }
 0x1cf   : > { %604 = vadd.xlane.f32.xlu2 %v603_v3 }
 0x1d0   : > { %v620_v5 = vsel %vm595_vm13, %v615_v4, 0.0 }
 0x1d1   : > { %621 = vadd.xlane.f32.xlu1 %v620_v5 }
 0x1d3   : > { %v591_v8 = vpop.f32.mrf.mxu2 }
 0x1d4   : > { %v592_v9 = vadd.f32 %v591_v8, %v557_v7 }
 0x1d6   : > { %v606_v10 = vsel %vm598_vm14, %v592_v9, 0.0  ;;  %599 = vst.msk [vmem:[%s293_s20 + $0x10] sm:$0xf] %vm598_vm14, %v592_v9  ;;  %v616_v12 = vmul.f32 %v592_v9, %v592_v9 }
 0x1d7   : > { %607 = vadd.xlane.f32.xlu0 %v606_v10  ;;  %618 = vadd.xlane.f32.xlu2 %v617_v11 }
 0x1d8   : > { %v623_v14 = vsel %vm598_vm14, %v616_v12, 0.0 }
 0x1db   : > { %v593_v13 = vpop.f32.mrf.mxu2 }
 0x1df   : > { %624 = vadd.xlane.f32.xlu2 %v623_v14 }
 0x23a   : > { %v602_v16 = vpop.xlane.xlu1 %601 }
 0x23b   : > { %610 = vst.msk [vmem:[%s298_s23] sm:$0xff] %vm609_vm15, %v602_v16 }
 0x242   : > { %v605_v19 = vpop.xlane.xlu2 %604 }
 0x243   : > { %611 = vst.msk [vmem:[%s298_s23 + $0x8] sm:$0xff] %vm609_vm15, %v605_v19 }
 0x244   : > { %v622_v20 = vpop.xlane.xlu1 %621 }
 0x245   : > { %627 = vst.msk [vmem:[%s303_s28 + $0x8] sm:$0xff] %vm609_vm15, %v622_v20 }
 0x24a   : > { %v608_v22 = vpop.xlane.xlu0 %607  ;;  %v619_v23 = vpop.xlane.xlu2 %618 }
 0x24b   : > { %613 = vst.msk [vmem:[%s298_s23 + $0x10] sm:$0xf] %vm612_vm0, %v608_v22 }
 0x24c   : > { %626 = vst.msk [vmem:[%s303_s28] sm:$0xff] %vm609_vm15, %v619_v23 }
 0x252   : > { %v625_v24 = vpop.xlane.xlu2 %624 }
 0x253   : > { %628 = vst.msk [vmem:[%s303_s28 + $0x10] sm:$0xf] %vm612_vm0, %v625_v24 }
 0x254 PF: > { %s18_s24 = sadd.s32 1, %s862_s24  }
 0x255   : > { %p15_p4 = scmp.ge.s32.totalorder %s18_s24, 4  }
 0x257   :  { %17 = sbr.rel (!%p15_p4) target bundleno = 1 (0x1), region = 94 }

// kernel: panelnet_forward.15
= control target key start
LH: loop header
LB: loop body
LE: loop exit
PB: predicated region body
PF: predicated region fallthrough
CT: control target
= control target key end

     0   :  { %s1274_s30 = smov 0   ;;  %s1523_s0 = inlined_call_operand.vmem [shape: f32[2,20,26], index: 0, kind: input, shape index: {}]   ;;  %s1524_s1 = inlined_call_operand.vmem [shape: f32[2,20,26], index: 1, kind: input, shape index: {}]   ;;  %s1525_s2 = inlined_call_operand.vmem [shape: bf16[16,180], index: 2, kind: input, shape index: {}]   ;;  %s1526_s3 = inlined_call_operand.vmem [shape: bf16[16,180], index: 3, kind: input, shape index: {}]   ;;  %s1527_s4 = inlined_call_operand.vmem [shape: f32[16,1], index: 4, kind: input, shape index: {}]   ;;  %s1528_s5 = inlined_call_operand.vmem [shape: bf16[16,16], index: 5, kind: input, shape index: {}]   ;;  %s1529_s6 = inlined_call_operand.vmem [shape: f32[16,1], index: 6, kind: input, shape index: {}]   ;;  %s1530_s7 = inlined_call_operand.vmem [shape: f32[2,16,16], index: 7, kind: output, shape index: {0}]   ;;  %s1531_s8 = inlined_call_operand.vmem [shape: f32[2,16,1], index: 8, kind: output, shape index: {1}]   ;;  %s1532_s9 = inlined_call_operand.vmem [shape: f32[2,16,1], index: 9, kind: output, shape index: {2}]  }
   0x1 LB: > { %s982_s10 = sadd.s32 4294967295, %s1212_s30   ;;  %p986_p0 = scmp.ge.s32.totalorder %s1212_s30, 1  ;;  %s1212_s30 = sphi %s1274_s30, %s20_s30  }
   0x2   : > { %p302_p1 = scmp.lt.s32.totalorder %s1212_s30, 3 }
   0x4   : > { %p303_p2 = pnand %p986_p0, %p302_p1 }
   0x5   : > { %p353_p3 = scmp.lt.s32.totalorder (!%p303_p2), %s982_s10, 1  ;;  %s1214_s18 = smov (!%p303_p2), 122  }
   0x6   : > { %306 = sbr.rel (%p303_p2) target bundleno = 604 (0x25c), region = 48  ;;  %s1215_s19 = smov (!%p303_p2), 123  }
   0x7   : > { %s1216_s20 = smov (!%p303_p2), 120   ;;  %s1217_s21 = smov (!%p303_p2), 124  }
   0x8   : > { %s1218_s22 = smov (!%p303_p2), 126   ;;  %s1219_s23 = smov (!%p303_p2), 118  }
   0x9   : > { %s1220_s24 = smov (!%p303_p2), 127   ;;  %s1221_s25 = smov (!%p303_p2), 119  }
   0xb   : > { %s1544_s10 = smov (!%p353_p3, %s982_s10), 1  ;;  %vm482_vm0 = vcmask 1043456   ;;  %v379_v33 = vlaneseq  ;;  %vm568_vm2 = vcmask 1041408   ;;  %vm1222_vm4 = vmmov 1   ;;  %v999_v56 = vld [vmem:[%s1525_s2 + $0x8] sm:$0xf0] }
   0xc   : > { %s1064_s11 = smul.u32 24, %s1544_s10  ;;  %vm564_vm11 = vcmask 424960   ;;  %vm808_vm12 = vcmask 130048   ;;  %vm836_vm13 = vcmask 7168  }
   0xd   : > { %v380_v34 = vand.u32 127, %v379_v33 }
   0xe   : > { %s362_s14 = scalar_lea.vmem %s1524_s1, %s1064_s11  ;;  %s357_s17 = scalar_lea.vmem %s1523_s0, %s1064_s11 }
   0xf   : > { %v1291_v0 = vld [vmem:[%s362_s14 + $0x8] sm:$0xff]  ;;  %v1293_v1 = vld [vmem:[%s362_s14 + $0x10] sm:$0xf]  ;;  %v1295_v2 = vld [vmem:[%s357_s17] sm:$0xff]  ;;  %v385_v36 = vand.u32 3, %v380_v34 }
  0x10   : > { %v1083_v3 = vpack.i.bf16 %v1293_v1, %v1291_v0  ;;  %v1299_v4 = vld [vmem:[%s362_s14] sm:$0xff]  ;;  %v1303_v6 = vld [vmem:[%s357_s17 + $0x10] sm:$0xf]  ;;  %v1307_v8 = vld [vmem:[%s357_s17 + $0x8] sm:$0xff]  ;;  %v1113_v11 = vpack.i.bf16 %v1295_v2, %v1293_v1  ;;  %v1133_v13 = vpack.i.bf16 %v1291_v0, %v1293_v1  ;;  %v672_v15 = vrot.slane %v1291_v0, 4  ;;  %s1056_s14 = sshll.u32 %s1544_s10, 4 }
  0x11   : > { %v1093_v5 = vpack.i.bf16 %v1295_v2, %v1299_v4  ;;  %v1103_v7 = vpack.i.bf16 %v1303_v6, %v1293_v1  ;;  %v1088_v9 = vpack.i.bf16 %v1303_v6, %v1307_v8  ;;  %v1108_v10 = vpack.i.bf16 %v1291_v0, %v1299_v4  ;;  %s367_s17 = scalar_lea.vmem %s1530_s7, %s1056_s14 }
  0x12   : > { %1084 = vrot.lane.b32.xlu0 %v1083_v3, %s1214_s18  ;;  %v1128_v12 = vpack.i.bf16 %v1307_v8, %v1295_v2  ;;  %v1143_v14 = vpack.i.bf16 %v1307_v8, %v1303_v6  ;;  %v674_v16 = vrot.slane %v1293_v1, 4  ;;  %v484_v17 = vrot.slane %v1307_v8, 4 }
  0x13   : > { %1094 = vrot.lane.b32.xlu1 %v1093_v5, %s1214_s18  ;;  %1104 = vrot.lane.b32.xlu2 %v1103_v7, %s1215_s19  ;;  %v486_v18 = vrot.slane %v1303_v6, 4  ;;  %v671_v19 = vrot.slane %v1299_v4, 4  ;;  %v483_v25 = vrot.slane %v1295_v2, 4  ;;  %vm1338_vm1 = vcmp.le.s32.totalorder %v385_v36, 2 }
  0x14   : > { %v675_v20 = vsel %vm482_vm0, %v672_v15, %v674_v16  ;;  %vm1352_vm3 = vcmp.ge.s32.totalorder %v385_v36, 1  ;;  %vm1015_vm6 = vmpackc.low %vm1338_vm1, %vm1338_vm1 }
  0x15   : > { %v487_v21 = vsel %vm482_vm0, %v484_v17, %v486_v18  ;;  %v1158_v22 = vpack.i.bf16 %v671_v19, %v675_v20  ;;  %v673_v23 = vsel %vm482_vm0, %v671_v19, %v672_v15  ;;  %v485_v27 = vsel %vm482_vm0, %v483_v25, %v484_v17  ;;  %vm1367_vm5 = vmpackc.low %vm1352_vm3, %vm1222_vm4 }
  0x16   : > { %v1168_v24 = vpack.i.bf16 %v673_v23, %v487_v21  ;;  %v1173_v26 = vpack.i.bf16 %v675_v20, %v673_v23  ;;  %v1183_v28 = vpack.i.bf16 %v485_v27, %v483_v25  ;;  %v1188_v29 = vpack.i.bf16 %v485_v27, %v671_v19  ;;  %vm1413_vm7 = vmpackc.low %vm1222_vm4, %vm1338_vm1 }
  0x17   : > { %v1193_v30 = vpack.i.bf16 %v483_v25, %v487_v21  ;;  %vm1436_vm8 = vmpackc.low %vm1338_vm1, %vm1222_vm4 }
  0x18   : > { %vm1012_vm9 = vmpackc.low %vm1352_vm3, %vm1352_vm3 }
  0x19   : > { %vm1018_vm10 = vmpackc.low %vm1222_vm4, %vm1352_vm3 }
  0x1a   : > { %1089 = vrot.lane.b32.xlu0 %v1088_v9, %s1214_s18 }
  0x1b   : > { %1099 = vrot.lane.b32.xlu1 %v1093_v5, %s1216_s20  ;;  %1109 = vrot.lane.b32.xlu2 %v1108_v10, %s1217_s21 }
  0x22   : > { %1114 = vrot.lane.b32.xlu0 %v1113_v11, %s1217_s21 }
  0x23   : > { %1119 = vrot.lane.b32.xlu1 %v1108_v10, %s1215_s19  ;;  %1124 = vrot.lane.b32.xlu2 %v1088_v9, %s1217_s21 }
  0x2a   : > { %1129 = vrot.lane.b32.xlu0 %v1128_v12, %s1215_s19  ;;  %s372_s19 = scalar_lea.vmem %s1531_s8, %s1056_s14 }
  0x2b   : > { %1134 = vrot.lane.b32.xlu1 %v1133_v13, %s1218_s22  ;;  %1139 = vrot.lane.b32.xlu2 %v1103_v7, %s1219_s23 }
  0x32   : > { %1144 = vrot.lane.b32.xlu0 %v1143_v14, %s1218_s22 }
  0x33   : > { %1149 = vrot.lane.b32.xlu1 %v1093_v5, %s1218_s22  ;;  %1154 = vrot.lane.b32.xlu2 %v1108_v10, %s1219_s23  ;;  %s377_s22 = scalar_lea.vmem %s1532_s9, %s1056_s14 }
  0x3a   : > { %1159 = vrot.lane.b32.xlu0 %v1158_v22, %s1220_s24 }
  0x3b   : > { %1164 = vrot.lane.b32.xlu1 %v1128_v12, %s1219_s23  ;;  %1169 = vrot.lane.b32.xlu2 %v1168_v24, %s1220_s24 }
  0x42   : > { %1174 = vrot.lane.b32.xlu0 %v1173_v26, %s1221_s25 }
  0x43   : > { %1179 = vrot.lane.b32.xlu1 %v1133_v13, %s1216_s20  ;;  %1184 = vrot.lane.b32.xlu2 %v1183_v28, %s1220_s24 }
  0x4a   : > { %1189 = vrot.lane.b32.xlu0 %v1188_v29, %s1221_s25 }
  0x4b   : > { %1194 = vrot.lane.b32.xlu1 %v1193_v30, %s1221_s25  ;;  %1199 = vrot.lane.b32.xlu2 %v1143_v14, %s1216_s20 }
  0x6d   : > { %v1334_v31 = vpop.permute.xlu2 %1104 }
  0x6e   : > { %v1106_v61 = vunpack.i.l.bf16 %v1334_v31  ;;  %v1107_v26 = vunpack.i.h.bf16 %v1334_v31 }
  0x75   : > { %v1110_v32 = vpop.permute.xlu2 %1109 }
  0x76   : > { %v1112_v57 = vunpack.i.h.bf16 %v1110_v32  ;;  %v1111_v9 = vunpack.i.l.bf16 %v1110_v32 }
  0x78   : > { %v633_v18 = vsel %vm1352_vm3, %v1112_v57, 0.0  ;;  %v632_v29 = vsel %vm1352_vm3, %v1111_v9, 0.0 }
  0x79   : > { %v689_v32 = vrot.slane %v633_v18, 4 }
  0x7d   : > { %v1336_v35 = vpop.permute.xlu2 %1124 }
  0x7e   : > { %v1127_v36 = vunpack.i.h.bf16 %v1336_v35 }
  0x84   : > { %v1085_v38 = vpop.permute.xlu0 %1084 }
  0x85   : > { %v1087_v39 = vunpack.i.h.bf16 %v1085_v38  ;;  %v1086_v40 = vunpack.i.l.bf16 %v1085_v38  ;;  %v1095_v41 = vpop.permute.xlu1 %1094  ;;  %v1140_v43 = vpop.permute.xlu2 %1139  ;;  %v1126_v38 = vunpack.i.l.bf16 %v1336_v35  ;;  %v445_v35 = vsel %vm1352_vm3, %v1127_v36, 0.0 }
  0x86   : > { %v1096_v42 = vunpack.i.l.bf16 %v1095_v41  ;;  %v1142_v46 = vunpack.i.h.bf16 %v1140_v43  ;;  %v1141_v47 = vunpack.i.l.bf16 %v1140_v43  ;;  %v1097_v49 = vunpack.i.h.bf16 %v1095_v41 }
  0x87   : > { %v646_v44 = vsel %vm1338_vm1, %v1087_v39, 0.0  ;;  %v645_v45 = vsel %vm1338_vm1, %v1086_v40, 0.0 }
  0x88   : > { %v711_v48 = vrot.slane %v646_v44, 4  ;;  %v481_v50 = vsel %vm1338_vm1, %v1142_v46, 0.0  ;;  %v670_v51 = vsel %vm1338_vm1, %v1141_v47, 0.0  ;;  %v709_v52 = vrot.slane %v645_v45, 4 }
  0x89   : > { %v644_v53 = vsel %vm1338_vm1, %v1096_v42, 0.0  ;;  %v552_v54 = vpack.c.bf16 %v481_v50, %v481_v50  ;;  %v740_v55 = vpack.c.bf16 %v670_v51, %v670_v51  ;;  %v455_v7 = vsel %vm1338_vm1, %v1097_v49, 0.0 }
  0x8a   : > { %v708_v62 = vrot.slane %v644_v53, 4  ;;  %v712_v11 = vsel %vm482_vm0, %v709_v52, %v711_v48  ;;  %v520_v27 = vrot.slane %v455_v7, 4  ;;  %v688_v42 = vrot.slane %v632_v29, 4  ;;  %v395_v29 = vld [vmem:[%s1527_s4] sm:$0xff] }
  0x8b   : > { %v570_v59 = vsel %vm568_vm2, %v552_v54, 0  ;;  %v756_v60 = vsel %vm568_vm2, %v740_v55, 0  ;;  %v444_v50 = vsel %vm1352_vm3, %v1126_v38, 0.0  ;;  %v503_v55 = vrot.slane %v445_v35, 4 }
  0x8c   : > { %v1090_v58 = vpop.permute.xlu0 %1089  ;;  %590 = vmatpush.bf16.msra.mxu1 %v570_v59  ;;  %776 = vmatpush.bf16.msra.mxu3 %v756_v60  ;;  %v710_v23 = vsel %vm482_vm0, %v708_v62, %v709_v52  ;;  %v727_v24 = vsel %vm482_vm0, %v1106_v61, %v708_v62  ;;  %v539_v45 = vsel %vm482_vm0, %v1107_v26, %v520_v27  ;;  %v501_v57 = vrot.slane %v444_v50, 4  ;;  %v997_v50 = vld [vmem:[%s1525_s2] sm:$0xf] }
  0x8d   : > { %v1092_v63 = vunpack.i.h.bf16 %v1090_v58  ;;  %v1091_v3 = vunpack.i.l.bf16 %v1090_v58  ;;  %v1100_v5 = vpop.permute.xlu1 %1099  ;;  %v1155_v12 = vpop.permute.xlu2 %1154  ;;  %v735_v34 = vpack.c.bf16 %v710_v23, %v727_v24  ;;  %v690_v52 = vsel %vm482_vm0, %v688_v42, %v689_v32 }
  0x8e   : > { %v1101_v10 = vunpack.i.l.bf16 %v1100_v5  ;;  %v1157_v16 = vunpack.i.h.bf16 %v1155_v12  ;;  %v1156_v17 = vunpack.i.l.bf16 %v1155_v12  ;;  %v1102_v22 = vunpack.i.h.bf16 %v1100_v5 }
  0x8f   : > { %v457_v13 = vsel %vm1338_vm1, %v1092_v63, 0.0  ;;  %v456_v14 = vsel %vm1338_vm1, %v1091_v3, 0.0  ;;  %v1013_v35 = vpack.c.bf16 %v1307_v8, %v1295_v2  ;;  %v1024_v2 = vld [vmem:[%s1526_s3] sm:$0xf]  ;;  %v1062_v8 = vld [vmem:[%s1526_s3 + $0x4] sm:$0xf0] }
  0x90   : > { %v523_v19 = vrot.slane %v457_v13, 4  ;;  %v521_v20 = vrot.slane %v456_v14, 4  ;;  %v1031_v21 = vpack.c.bf16 %v1101_v10, %v712_v11  ;;  %v1043_v25 = vpack.c.bf16 %v1157_v16, %v1156_v17  ;;  %v1026_v13 = vld [vmem:[%s1526_s3 + $0x8] sm:$0xf0] }
  0x91   : > { %v504_v11 = vsel %vm482_vm0, %v501_v57, %v503_v55  ;;  %v1040_v55 = vpack.c.bf16 %v1291_v0, %v1299_v4 }
  0x92   : > { %1032 = vmatpush.bf16.msk.msra.mxu2 %vm1367_vm5, %v1031_v21  ;;  %v524_v28 = vsel %vm482_vm0, %v521_v20, %v523_v19  ;;  %1044 = vmatpush.bf16.msk.msra.mxu3 %vm1015_vm6, %v1043_v25  ;;  %v522_v31 = vsel %vm482_vm0, %v520_v27, %v521_v20  ;;  %v416_v27 = vsel %vm1352_vm3, %v1303_v6, 0.0 }
  0x93   : > { %v1004_v30 = vpack.c.bf16 %v1102_v22, %v524_v28  ;;  %v547_v47 = vpack.c.bf16 %v522_v31, %v539_v45  ;;  %v396_v28 = vld [vmem:[%s1527_s4 + $0x8] sm:$0xff] }
  0x94   : > { %v1115_v33 = vpop.permute.xlu0 %1114 }
  0x95   : > { %v1117_v39 = vunpack.i.h.bf16 %v1115_v33  ;;  %v1116_v40 = vunpack.i.l.bf16 %v1115_v33  ;;  %v1120_v41 = vpop.permute.xlu1 %1119  ;;  %1005 = vmatpush.bf16.msk.msra.mxu0 %vm1367_vm5, %v1004_v30  ;;  %v1170_v63 = vpop.permute.xlu2 %1169  ;;  %v1223_v30 = vmov 0  }
  0x96   : > { %v1122_v43 = vunpack.i.h.bf16 %v1120_v41  ;;  %v1121_v44 = vunpack.i.l.bf16 %v1120_v41  ;;  %759 = vmatpush.bf16.msra.mxu2 %v735_v34  ;;  %v1171_v23 = vunpack.i.l.bf16 %v1170_v63  ;;  %1204 = vset.pattern.permute.xlu1 %v1223_v30  ;;  %v607_v34 = vsel %vm1352_vm3, %v1293_v1, 0.0 }
  0x97   : > { %v634_v46 = vsel %vm1352_vm3, %v1116_v40, 0.0  ;;  %v443_v51 = vsel %vm1352_vm3, %v1117_v39, 0.0  ;;  %1203 = vset.pattern.permute.xlu0 %v1223_v30  ;;  %404 = vperm.xlu1 %1204, %v396_v28  }
  0x98   : > { %v691_v48 = vrot.slane %v634_v46, 4  ;;  %v734_v49 = vpack.c.bf16 %v1122_v43, %v1121_v44  ;;  %v500_v58 = vrot.slane %v443_v51, 4  ;;  %399 = vperm.xlu0 %1203, %v395_v29   ;;  %1205 = vset.pattern.permute.xlu2 %v1223_v30  ;;  %v1172_v44 = vunpack.i.h.bf16 %v1170_v63  ;;  %v1060_v51 = vld [vmem:[%s1525_s2 + $0x4] sm:$0xf0] }
  0x99   : > { %573 = vmatpush.bf16.msra.mxu0 %v547_v47 }
  0x9a   : > { %760 = vmatpush.bf16.msra.mxu2 %v734_v49  ;;  %v692_v53 = vsel %vm482_vm0, %v689_v32, %v691_v48  ;;  %v502_v10 = vsel %vm482_vm0, %v500_v58, %v501_v57  ;;  %v792_v48 = vld [vmem:[%s1529_s6 + $0x8] sm:$0xff] }
  0x9b   : > { %v733_v54 = vpack.c.bf16 %v692_v53, %v690_v52  ;;  %v545_v15 = vpack.c.bf16 %v504_v11, %v502_v10 }
  0x9c   : > { %v1130_v59 = vpop.permute.xlu0 %1129 }
  0x9d   : > { %v1132_v60 = vunpack.i.h.bf16 %v1130_v59  ;;  %v1131_v61 = vunpack.i.l.bf16 %v1130_v59  ;;  %v1135_v62 = vpop.permute.xlu1 %1134  ;;  %v1185_v19 = vpop.permute.xlu2 %1184 }
  0x9e   : > { %v1137_v3 = vunpack.i.h.bf16 %v1135_v62  ;;  %v1136_v5 = vunpack.i.l.bf16 %v1135_v62  ;;  %761 = vmatpush.bf16.msra.mxu2 %v733_v54  ;;  %v1186_v24 = vunpack.i.l.bf16 %v1185_v19  ;;  %v1187_v32 = vunpack.i.h.bf16 %v1185_v19 }
  0x9f   : > { %v546_v7 = vpack.c.bf16 %v1132_v60, %v1131_v61  ;;  %800 = vperm.xlu1 %1204, %v792_v48   ;;  %v1025_v60 = vor.u32 %v1062_v8, %v1024_v2 }
  0xa0   : > { %v622_v9 = vsel %vm1338_vm1, %v1136_v5, 0.0  ;;  %v537_v31 = vsel %vm482_vm0, %v416_v27, %v1186_v24 }
  0xa1   : > { %v726_v12 = vsel %vm482_vm0, %v622_v9, %v688_v42  ;;  %574 = vmatpush.bf16.msra.mxu0 %v546_v7  ;;  %v542_v46 = vpack.c.bf16 %v1187_v32, %v537_v31 }
  0xa2   : > { %v1034_v14 = vpack.c.bf16 %v726_v12, %v1137_v3  ;;  %v1061_v12 = vld [vmem:[%s1526_s3 + $0x4] sm:$0xf] }
  0xa3   : > { %v1029_v19 = vor.u32 %v1061_v12, %v1026_v13 }
  0xa4   : > { %1035 = vmatpush.bf16.msk.msra.mxu2 %vm1413_vm7, %v1034_v14  ;;  %v1145_v16 = vpop.permute.xlu0 %1144 }
  0xa5   : > { %v1146_v17 = vunpack.i.l.bf16 %v1145_v16  ;;  %v1150_v18 = vpop.permute.xlu1 %1149  ;;  %575 = vmatpush.bf16.msra.mxu0 %v545_v15  ;;  %v1147_v20 = vunpack.i.h.bf16 %v1145_v16  ;;  %v1200_v57 = vpop.permute.xlu2 %1199 }
  0xa6   : > { %v1152_v26 = vunpack.i.h.bf16 %v1150_v18  ;;  %v1151_v36 = vunpack.i.l.bf16 %v1150_v18  ;;  %v1201_v0 = vunpack.i.l.bf16 %v1200_v57  ;;  %v1202_v15 = vunpack.i.h.bf16 %v1200_v57 }
  0xa7   : > { %v433_v21 = vsel %vm1338_vm1, %v1146_v17, 0.0 }
  0xa8   : > { %v538_v22 = vsel %vm482_vm0, %v433_v21, %v500_v58  ;;  %v1010_v38 = vpack.c.bf16 %v1152_v26, %v1171_v23  ;;  %v998_v58 = vor.u32 %v1060_v51, %v997_v50  ;;  %v469_v5 = vsel %vm1352_vm3, %v1201_v0, 0.0  ;;  %v791_v23 = vld [vmem:[%s1529_s6] sm:$0xff] }
  0xa9   : > { %v1007_v25 = vpack.c.bf16 %v538_v22, %v1147_v20  ;;  %v1059_v20 = vld [vmem:[%s1525_s2 + $0x4] sm:$0xf]  ;;  %795 = vperm.xlu2 %1205, %v791_v23  }
  0xaa   : > { %v1002_v22 = vor.u32 %v1059_v20, %v999_v56 }
  0xab   : > { %1008 = vmatpush.bf16.msk.msra.mxu0 %vm1413_vm7, %v1007_v25 }
  0xac   : > { %v1160_v33 = vpop.permute.xlu0 %1159 }
  0xad   : > { %v1162_v39 = vunpack.i.h.bf16 %v1160_v33  ;;  %v1161_v40 = vunpack.i.l.bf16 %v1160_v33  ;;  %v1165_v41 = vpop.permute.xlu1 %1164 }
  0xae   : > { %v1167_v42 = vunpack.i.h.bf16 %v1165_v41  ;;  %v1166_v43 = vunpack.i.l.bf16 %v1165_v41 }
  0xaf   : > { %v1037_v45 = vpack.c.bf16 %v1151_v36, %v1161_v40  ;;  %1011 = vmatpush.bf16.msk.msra.mxu0 %vm1436_vm8, %v1010_v38  ;;  %v725_v1 = vsel %vm482_vm0, %v607_v34, %v1162_v39 }
  0xb0   : > { %v1016_v47 = vpack.c.bf16 %v1167_v42, %v1166_v43  ;;  %v730_v49 = vpack.c.bf16 %v1172_v44, %v725_v1  ;;  %v1063_v44 = vld [vmem:[%s1528_s5] sm:$0xff] }
  0xb1   : > { %1038 = vmatpush.bf16.msk.msra.mxu2 %vm1436_vm8, %v1037_v45 }
  0xb2   : > { %1017 = vmatpush.bf16.msk.msra.mxu1 %vm1015_vm6, %v1016_v47 }
  0xb3   : > { %578 = vmatpush.bf16.msra.mxu0 %v542_v46 }
  0xb4   : > { %v1175_v52 = vpop.permute.xlu0 %1174 }
  0xb5   : > { %v1177_v53 = vunpack.i.h.bf16 %v1175_v52  ;;  %v1176_v54 = vunpack.i.l.bf16 %v1175_v52  ;;  %v1180_v37 = vpop.permute.xlu1 %1179  ;;  %764 = vmatpush.bf16.msra.mxu2 %v730_v49 }
  0xb6   : > { %v1181_v4 = vunpack.i.l.bf16 %v1180_v37  ;;  %v1182_v7 = vunpack.i.h.bf16 %v1180_v37 }
  0xb7   : > { %v738_v59 = vpack.c.bf16 %v1177_v53, %v1176_v54  ;;  %1014 = vmatpush.bf16.msk.msra.mxu0 %vm1012_vm9, %v1013_v35 }
  0xb8   : > { %v658_v9 = vsel %vm1352_vm3, %v1181_v4, 0.0 }
  0xb9   : > { %778 = vmatpush.bf16.msra.mxu3 %v738_v59  ;;  %1041 = vmatpush.bf16.msk.msra.mxu2 %vm1012_vm9, %v1040_v55 }
  0xba   : > { %580 = vmatmul.bf16.vlgmr.msra.gmra.mxu0 %v998_v58 }
  0xbc   : > { %v1190_v61 = vpop.permute.xlu0 %1189  ;;  %766 = vmatmul.bf16.vlgmr.msra.gmra.mxu2 %v1025_v60 }
  0xbd   : > { %v1195_v62 = vpop.permute.xlu1 %1194  ;;  %v1192_v63 = vunpack.i.h.bf16 %v1190_v61  ;;  %v1191_v3 = vunpack.i.l.bf16 %v1190_v61 }
  0xbe   : > { %v1197_v10 = vunpack.i.h.bf16 %v1195_v62  ;;  %v1196_v11 = vunpack.i.l.bf16 %v1195_v62 }
  0xbf   : > { %v728_v14 = vsel %vm482_vm0, %v658_v9, %v1191_v3 }
  0xc0   : > { %v550_v16 = vpack.c.bf16 %v1196_v11, %v1192_v63  ;;  %v1046_v17 = vpack.c.bf16 %v728_v14, %v1182_v7  ;;  %v540_v18 = vsel %vm482_vm0, %v469_v5, %v1197_v10 }
  0xc1   : > { %v1019_v21 = vpack.c.bf16 %v540_v18, %v1202_v15 }
  0xc2   : > { %592 = vmatpush.bf16.msra.mxu1 %v550_v16  ;;  %1047 = vmatpush.bf16.msk.msra.mxu3 %vm1018_vm10, %v1046_v17 }
  0xc5   : > { %1048 = vmatmul.msk.bf16.vlgmr.msra.gmra.mxu3 %vm564_vm11, %v1029_v19 }
  0xc6   : > { %1020 = vmatpush.bf16.msk.msra.mxu1 %vm1018_vm10, %v1019_v21 }
  0xc9   : > { %1021 = vmatmul.msk.bf16.vlgmr.msra.gmra.mxu1 %vm564_vm11, %v1002_v22 }
 0x103   : > { %v796_v45 = vpop.permute.xlu2 %795 }
 0x109   : > { %v405_v33 = vpop.permute.xlu1 %404 }
 0x10a   : > { %v400_v29 = vpop.permute.xlu0 %399 }
 0x111   : > { %v801_v50 = vpop.permute.xlu1 %800 }
 0x137   : > { %v581_v24 = vpop.f32.mrf.mxu0 }
 0x13f   : > { %v767_v25 = vpop.f32.mrf.mxu2  ;;  %v583_v30 = vpop.f32.mrf.mxu0 }
 0x146   : > { %v595_v26 = vpop.f32.mrf.mxu1 }
 0x147   : > { %v596_v28 = vadd.f32 %v595_v26, %v581_v24  ;;  %v769_v36 = vpop.f32.mrf.mxu2 }
 0x148   : > { %v781_v27 = vpop.f32.mrf.mxu3 }
 0x149   : > { %v600_v6 = vadd.f32 %v596_v28, %v400_v29  ;;  %v782_v34 = vadd.f32 %v781_v27, %v767_v25 }
 0x14b   : > { %v786_v41 = vadd.f32 %v782_v34, %v600_v6 }
 0x14e   : > { %v597_v32 = vpop.f32.mrf.mxu1 }
 0x14f   : > { %v598_v31 = vadd.f32 %v597_v32, %v583_v30 }
 0x150   : > { %v783_v38 = vpop.f32.mrf.mxu3 }
 0x151   : > { %v601_v39 = vadd.f32 %v598_v31, %v405_v33  ;;  %v784_v40 = vadd.f32 %v783_v38, %v769_v36 }
 0x153   : > { %v787_v42 = vadd.f32 %v784_v40, %v601_v39 }
 0x155   : > { %v790_v43 = vpack.c.bf16 %v787_v42, %v786_v41 }
 0x157   : > { %819 = vmatpush.bf16.msrb.mxu1 %v790_v43 }
 0x15a   : > { %1053 = vmatmul.msk.bf16.vlgmr.msrb.gmra.mxu1 %vm808_vm12, %v1063_v44 }
 0x1d7   : > { %v821_v46 = vpop.f32.mrf.mxu1 }
 0x1d8   : > { %v822_v47 = vadd.f32 %v821_v46, %v796_v45 }
 0x1da   : > { %v826_v1 = vmax.f32 %v822_v47, 0.0 }
 0x1dc   : > { %828 = vst.msk [vmem:[%s367_s17] sm:$0xff] %vm808_vm12, %v826_v1  ;;  %v830_v48 = vsel %vm808_vm12, %v826_v1, 0.0  ;;  %v839_v49 = vmul.f32 %v826_v1, %v826_v1 }
 0x1dd   : > { %831 = vadd.xlane.f32.xlu2 %v830_v48 }
 0x1de   : > { %v841_v35 = vsel %vm808_vm12, %v839_v49, 0.0 }
 0x1df   : > { %v823_v51 = vpop.f32.mrf.mxu1  ;;  %842 = vadd.xlane.f32.xlu1 %v841_v35 }
 0x1e0   : > { %v824_v52 = vadd.f32 %v823_v51, %v801_v50 }
 0x1e2   : > { %v827_v53 = vmax.f32 %v824_v52, 0.0 }
 0x1e4   : > { %829 = vst.msk [vmem:[%s367_s17 + $0x8] sm:$0xff] %vm808_vm12, %v827_v53  ;;  %v833_v54 = vsel %vm808_vm12, %v827_v53, 0.0  ;;  %v840_v37 = vmul.f32 %v827_v53, %v827_v53 }
 0x1e5   : > { %834 = vadd.xlane.f32.xlu0 %v833_v54 }
 0x1e6   : > { %v844_v55 = vsel %vm808_vm12, %v840_v37, 0.0 }
 0x1e7   : > { %845 = vadd.xlane.f32.xlu2 %v844_v55 }
 0x250   : > { %v832_v2 = vpop.xlane.xlu2 %831 }
 0x251   : > { %837 = vst.msk [vmem:[%s372_s19] sm:$0xff] %vm836_vm13, %v832_v2 }
 0x252   : > { %v843_v8 = vpop.xlane.xlu1 %842 }
 0x253   : > { %847 = vst.msk [vmem:[%s377_s22] sm:$0xff] %vm836_vm13, %v843_v8 }
 0x258   : > { %v835_v57 = vpop.xlane.xlu0 %834 }
 0x259   : > { %838 = vst.msk [vmem:[%s372_s19 + $0x8] sm:$0xff] %vm836_vm13, %v835_v57 }
 0x25a   : > { %v846_v58 = vpop.xlane.xlu2 %845 }
 0x25b   : > { %848 = vst.msk [vmem:[%s377_s22 + $0x8] sm:$0xff] %vm836_vm13, %v846_v58 }
 0x25c PF: > { %s20_s30 = sadd.s32 1, %s1212_s30  }
 0x25d   : > { %p17_p4 = scmp.ge.s32.totalorder %s20_s30, 4  }
 0x25f   :  { %19 = sbr.rel (!%p17_p4) target bundleno = 1 (0x1), region = 105 }

// kernel: panelnet_forward.16
= control target key start
LH: loop header
LB: loop body
LE: loop exit
PB: predicated region body
PF: predicated region fallthrough
CT: control target
= control target key end

     0   :  { %s1102_s30 = smov 0   ;;  %s1235_s0 = inlined_call_operand.vmem [shape: f32[2,16,82], index: 0, kind: input, shape index: {}]   ;;  %s1236_s1 = inlined_call_operand.vmem [shape: f32[2,16,82], index: 1, kind: input, shape index: {}]   ;;  %s1237_s2 = inlined_call_operand.vmem [shape: bf16[12,144], index: 2, kind: input, shape index: {}]   ;;  %s1238_s3 = inlined_call_operand.vmem [shape: bf16[12,144], index: 3, kind: input, shape index: {}]   ;;  %s1239_s4 = inlined_call_operand.vmem [shape: f32[12,1], index: 4, kind: input, shape index: {}]   ;;  %s1240_s5 = inlined_call_operand.vmem [shape: bf16[12,12], index: 5, kind: input, shape index: {}]   ;;  %s1241_s6 = inlined_call_operand.vmem [shape: f32[12,1], index: 6, kind: input, shape index: {}]   ;;  %s1242_s7 = inlined_call_operand.vmem [shape: f32[2,12,64], index: 7, kind: output, shape index: {0}]   ;;  %s1243_s8 = inlined_call_operand.vmem [shape: f32[2,12,1], index: 8, kind: output, shape index: {1}]   ;;  %s1244_s9 = inlined_call_operand.vmem [shape: f32[2,12,1], index: 9, kind: output, shape index: {2}]  }
   0x1 LB: > { %s849_s10 = sadd.s32 4294967295, %s1041_s30   ;;  %p853_p0 = scmp.ge.s32.totalorder %s1041_s30, 1  ;;  %s1041_s30 = sphi %s1102_s30, %s20_s30  }
   0x2   : > { %p302_p1 = scmp.lt.s32.totalorder %s1041_s30, 3 }
   0x4   : > { %p303_p2 = pnand %p853_p0, %p302_p1 }
   0x5   : > { %p353_p3 = scmp.lt.s32.totalorder (!%p303_p2), %s849_s10, 1  ;;  %s1043_s18 = smov (!%p303_p2), 112  }
   0x6   : > { %306 = sbr.rel (%p303_p2) target bundleno = 583 (0x247), region = 48  ;;  %s1044_s19 = smov (!%p303_p2), 111  }
   0x7   : > { %s1045_s20 = smov (!%p303_p2), 118   ;;  %s1046_s21 = smov (!%p303_p2), 119  }
   0x8   : > { %s1047_s22 = smov (!%p303_p2), 120   ;;  %s1048_s23 = smov (!%p303_p2), 126  }
   0x9   : > { %s1049_s24 = smov (!%p303_p2), 127   ;;  %s1050_s25 = smov (!%p303_p2), 110  }
   0xb   : > { %s1250_s10 = smov (!%p353_p3, %s849_s10), 1  ;;  %v379_v8 = vlaneseq  ;;  %v932_v34 = vld [vmem:[%s1238_s3 + $0x4] sm:$0xf]  ;;  %v895_v35 = vld [vmem:[%s1238_s3 + $0x8] sm:$0x30]  ;;  %vm497_vm4 = vcmask 130048  }
   0xc   : > { %s1110_s11 = sshll.u32 %s1250_s10, 4  ;;  %v898_v40 = vor.u32 %v932_v34, %v895_v35  ;;  %v395_v47 = vld [vmem:[%s1239_s4] sm:$0xff]  ;;  %v396_v48 = vld [vmem:[%s1239_s4 + $0x8] sm:$0xf]  ;;  %v1051_v53 = vmov 0   ;;  %vm672_vm5 = vcmask 1045504  }
   0xd   : > { %s362_s14 = scalar_lea.vmem %s1236_s1, %s1110_s11  ;;  %s357_s17 = scalar_lea.vmem %s1235_s0, %s1110_s11  ;;  %v380_v10 = vand.u32 127, %v379_v8  ;;  %1032 = vset.pattern.permute.xlu1 %v1051_v53  ;;  %1033 = vset.pattern.permute.xlu2 %v1051_v53  ;;  %v652_v62 = vld [vmem:[%s1241_s6 + $0x8] sm:$0xf]  ;;  %v651_v21 = vld [vmem:[%s1241_s6] sm:$0xff]  ;;  %vm668_vm6 = vcmask 97280   ;;  %vm692_vm7 = vcmask 523264  }
   0xe   : > { %v1116_v0 = vld [vmem:[%s362_s14] sm:$0xff]  ;;  %v1118_v1 = vld [vmem:[%s362_s14 + $0x8] sm:$0xff]  ;;  %1034 = vset.pattern.permute.xlu0 %v1051_v53  ;;  %vm694_vm8 = vcmask 519168   ;;  %vm702_vm9 = vcmask 7168   ;;  %vm704_vm10 = vcmask 3072  }
   0xf   : > { %v962_v2 = vpack.i.bf16 %v1118_v1, %v1116_v0  ;;  %v1126_v3 = vld [vmem:[%s357_s17] sm:$0xff]  ;;  %v1128_v4 = vld [vmem:[%s357_s17 + $0x8] sm:$0xff]  ;;  %v385_v11 = vand.u32 7, %v380_v10 }
  0x10   : > { %v967_v5 = vpack.i.bf16 %v1128_v4, %v1126_v3 }
  0x11   : > { %963 = vrot.lane.b32.xlu1 %v962_v2, %s1043_s18  ;;  %953 = vrot.lane.b32.xlu0 %v962_v2, %s1044_s19  ;;  %vm393_vm0 = vcmp.ge.s32.totalorder %v385_v11, 1  ;;  %vm394_vm2 = vcmp.le.s32.totalorder %v385_v11, 6 }
  0x12   : > { %973 = vrot.lane.b32.xlu2 %v962_v2, %s1045_s20  ;;  %vm1136_vm1 = vmpackc.low %vm393_vm0, %vm393_vm0 }
  0x13   : > { %vm1142_vm3 = vmpackc.low %vm394_vm2, %vm394_vm2 }
  0x19   : > { %968 = vrot.lane.b32.xlu1 %v967_v5, %s1043_s18  ;;  %958 = vrot.lane.b32.xlu0 %v967_v5, %s1044_s19  ;;  %s367_s18 = scalar_lea.vmem %s1242_s7, %s1110_s11 }
  0x1a   : > { %978 = vrot.lane.b32.xlu2 %v967_v5, %s1045_s20 }
  0x21   : > { %988 = vrot.lane.b32.xlu1 %v967_v5, %s1046_s21  ;;  %983 = vrot.lane.b32.xlu0 %v962_v2, %s1046_s21  ;;  %s372_s21 = scalar_lea.vmem %s1243_s8, %s1110_s11 }
  0x22   : > { %993 = vrot.lane.b32.xlu2 %v962_v2, %s1047_s22 }
  0x29   : > { %1003 = vrot.lane.b32.xlu1 %v962_v2, %s1048_s23  ;;  %998 = vrot.lane.b32.xlu0 %v967_v5, %s1047_s22 }
  0x2a   : > { %1008 = vrot.lane.b32.xlu2 %v967_v5, %s1048_s23 }
  0x31   : > { %1018 = vrot.lane.b32.xlu1 %v967_v5, %s1049_s24  ;;  %1013 = vrot.lane.b32.xlu0 %v962_v2, %s1049_s24  ;;  %s377_s24 = scalar_lea.vmem %s1244_s9, %s1110_s11 }
  0x32   : > { %1023 = vrot.lane.b32.xlu2 %v962_v2, %s1050_s25 }
  0x39   : > { %1028 = vrot.lane.b32.xlu0 %v967_v5, %s1050_s25  ;;  %399 = vperm.xlu1 %1032, %v395_v47  }
  0x3a   : > { %404 = vperm.xlu2 %1033, %v396_v48   ;;  %v920_v48 = vld [vmem:[%s1240_s5] sm:$0xf] }
  0x41   : > { %660 = vperm.xlu1 %1032, %v652_v62   ;;  %655 = vperm.xlu0 %1034, %v651_v21  }
  0x6c   : > { %v974_v6 = vpop.permute.xlu2 %973 }
  0x6d   : > { %v976_v22 = vunpack.i.h.bf16 %v974_v6  ;;  %v975_v23 = vunpack.i.l.bf16 %v974_v6 }
  0x6f   : > { %v903_v36 = vpack.c.bf16 %v976_v22, %v975_v23  ;;  %v931_v22 = vld [vmem:[%s1237_s2 + $0x4] sm:$0x30]  ;;  %v893_v23 = vld [vmem:[%s1238_s3] sm:$0xf] }
  0x74   : > { %v979_v7 = vpop.permute.xlu2 %978 }
  0x75   : > { %v981_v41 = vunpack.i.h.bf16 %v979_v7  ;;  %v980_v42 = vunpack.i.l.bf16 %v979_v7 }
  0x77   : > { %v876_v54 = vpack.c.bf16 %v981_v41, %v980_v42 }
  0x7c   : > { %v1132_v9 = vpop.permute.xlu2 %993 }
  0x7d   : > { %v996_v43 = vunpack.i.h.bf16 %v1132_v9  ;;  %v995_v44 = vunpack.i.l.bf16 %v1132_v9 }
  0x7f   : > { %v906_v56 = vpack.c.bf16 %v996_v43, %v995_v44 }
  0x83   : > { %v964_v12 = vpop.permute.xlu1 %963  ;;  %v954_v13 = vpop.permute.xlu0 %953 }
  0x84   : > { %v966_v14 = vunpack.i.h.bf16 %v964_v12  ;;  %v965_v15 = vunpack.i.l.bf16 %v964_v12  ;;  %v956_v16 = vunpack.i.h.bf16 %v954_v13  ;;  %v955_v17 = vunpack.i.l.bf16 %v954_v13  ;;  %v1134_v18 = vpop.permute.xlu2 %1008 }
  0x85   : > { %v1011_v58 = vunpack.i.h.bf16 %v1134_v18  ;;  %v1010_v59 = vunpack.i.l.bf16 %v1134_v18  ;;  %v866_v18 = vld [vmem:[%s1237_s2] sm:$0xf] }
  0x86   : > { %v602_v19 = vpack.c.bf16 %v956_v16, %v955_v17  ;;  %v900_v20 = vpack.c.bf16 %v966_v14, %v965_v15 }
  0x87   : > { %v882_v9 = vpack.c.bf16 %v1011_v58, %v1010_v59 }
  0x88   : > { %618 = vmatpush.bf16.msra.mxu2 %v602_v19  ;;  %v885_v19 = vpack.c.bf16 %v1128_v4, %v1126_v3 }
  0x8b   : > { %v969_v24 = vpop.permute.xlu1 %968  ;;  %v959_v25 = vpop.permute.xlu0 %958 }
  0x8c   : > { %v971_v26 = vunpack.i.h.bf16 %v969_v24  ;;  %v970_v27 = vunpack.i.l.bf16 %v969_v24  ;;  %v961_v28 = vunpack.i.h.bf16 %v959_v25  ;;  %v960_v29 = vunpack.i.l.bf16 %v959_v25  ;;  %901 = vmatpush.bf16.msk.msra.mxu2 %vm1136_vm1, %v900_v20  ;;  %v1024_v30 = vpop.permute.xlu2 %1023  ;;  %v933_v24 = vld [vmem:[%s1238_s3 + $0x4] sm:$0x30] }
  0x8d   : > { %v1026_v32 = vunpack.i.h.bf16 %v1024_v30  ;;  %v1025_v33 = vunpack.i.l.bf16 %v1024_v30  ;;  %v912_v20 = vpack.c.bf16 %v1118_v1, %v1116_v0  ;;  %v930_v0 = vld [vmem:[%s1237_s2 + $0x4] sm:$0xf]  ;;  %v868_v1 = vld [vmem:[%s1237_s2 + $0x8] sm:$0x30] }
  0x8e   : > { %v484_v37 = vpack.c.bf16 %v961_v28, %v960_v29  ;;  %v873_v39 = vpack.c.bf16 %v971_v26, %v970_v27  ;;  %v867_v26 = vor.u32 %v931_v22, %v866_v18  ;;  %v894_v27 = vor.u32 %v933_v24, %v893_v23 }
  0x8f   : > { %v915_v38 = vpack.c.bf16 %v1026_v32, %v1025_v33  ;;  %v871_v29 = vor.u32 %v930_v0, %v868_v1 }
  0x90   : > { %501 = vmatpush.bf16.msra.mxu0 %v484_v37  ;;  %904 = vmatpush.bf16.msk.msra.mxu2 %vm1142_vm3, %v903_v36 }
  0x91   : > { %916 = vmatpush.bf16.msk.msra.mxu3 %vm1142_vm3, %v915_v38 }
  0x93   : > { %v989_v45 = vpop.permute.xlu1 %988  ;;  %v984_v46 = vpop.permute.xlu0 %983 }
  0x94   : > { %v991_v49 = vunpack.i.h.bf16 %v989_v45  ;;  %v990_v50 = vunpack.i.l.bf16 %v989_v45  ;;  %v986_v51 = vunpack.i.h.bf16 %v984_v46  ;;  %v985_v52 = vunpack.i.l.bf16 %v984_v46  ;;  %874 = vmatpush.bf16.msk.msra.mxu0 %vm1136_vm1, %v873_v39  ;;  %917 = vmatmul.msk.bf16.vlgmr.msra.gmra.mxu3 %vm497_vm4, %v898_v40  ;;  %v405_v37 = vpop.permute.xlu2 %404 }
  0x96   : > { %v599_v55 = vpack.c.bf16 %v986_v51, %v985_v52  ;;  %v481_v57 = vpack.c.bf16 %v991_v49, %v990_v50  ;;  %v934_v49 = vld [vmem:[%s1240_s5] sm:$0x30] }
  0x97   : > { %v921_v52 = vor.u32 %v934_v49, %v920_v48 }
  0x98   : > { %877 = vmatpush.bf16.msk.msra.mxu0 %vm1142_vm3, %v876_v54  ;;  %621 = vmatpush.bf16.msra.mxu2 %v599_v55 }
  0x9b   : > { %v1004_v60 = vpop.permute.xlu1 %1003  ;;  %v999_v61 = vpop.permute.xlu0 %998 }
  0x9c   : > { %v1006_v63 = vunpack.i.h.bf16 %v1004_v60  ;;  %v1005_v2 = vunpack.i.l.bf16 %v1004_v60  ;;  %v1001_v5 = vunpack.i.h.bf16 %v999_v61  ;;  %v1000_v6 = vunpack.i.l.bf16 %v999_v61  ;;  %504 = vmatpush.bf16.msra.mxu0 %v481_v57  ;;  %907 = vmatpush.bf16.msk.msra.mxu2 %vm1136_vm1, %v906_v56 }
  0x9e   : > { %v909_v7 = vpack.c.bf16 %v1006_v63, %v1005_v2  ;;  %v879_v8 = vpack.c.bf16 %v1001_v5, %v1000_v6 }
  0xa0   : > { %880 = vmatpush.bf16.msk.msra.mxu0 %vm1136_vm1, %v879_v8  ;;  %910 = vmatpush.bf16.msk.msra.mxu2 %vm1142_vm3, %v909_v7 }
  0xa3   : > { %v1019_v10 = vpop.permute.xlu1 %1018  ;;  %v1014_v11 = vpop.permute.xlu0 %1013 }
  0xa4   : > { %v1021_v12 = vunpack.i.h.bf16 %v1019_v10  ;;  %v1020_v13 = vunpack.i.l.bf16 %v1019_v10  ;;  %v1016_v14 = vunpack.i.h.bf16 %v1014_v11  ;;  %v1015_v15 = vunpack.i.l.bf16 %v1014_v11  ;;  %883 = vmatpush.bf16.msk.msra.mxu0 %vm1142_vm3, %v882_v9 }
  0xa6   : > { %v478_v16 = vpack.c.bf16 %v1021_v12, %v1020_v13  ;;  %v596_v17 = vpack.c.bf16 %v1016_v14, %v1015_v15 }
  0xa8   : > { %507 = vmatpush.bf16.msra.mxu0 %v478_v16  ;;  %624 = vmatpush.bf16.msra.mxu2 %v596_v17 }
  0xab   : > { %v1029_v25 = vpop.permute.xlu0 %1028  ;;  %v400_v36 = vpop.permute.xlu1 %399 }
  0xac   : > { %v1031_v28 = vunpack.i.h.bf16 %v1029_v25  ;;  %v1030_v3 = vunpack.i.l.bf16 %v1029_v25  ;;  %886 = vmatpush.bf16.msk.msra.mxu0 %vm1136_vm1, %v885_v19  ;;  %913 = vmatpush.bf16.msk.msra.mxu2 %vm1136_vm1, %v912_v20 }
  0xae   : > { %v888_v4 = vpack.c.bf16 %v1031_v28, %v1030_v3 }
  0xaf   : > { %509 = vmatmul.bf16.vlgmr.msra.gmra.mxu0 %v867_v26  ;;  %626 = vmatmul.bf16.vlgmr.msra.gmra.mxu2 %v894_v27 }
  0xb0   : > { %889 = vmatpush.bf16.msk.msra.mxu1 %vm1142_vm3, %v888_v4 }
  0xb3   : > { %890 = vmatmul.msk.bf16.vlgmr.msra.gmra.mxu1 %vm497_vm4, %v871_v29  ;;  %v656_v53 = vpop.permute.xlu0 %655  ;;  %v661_v60 = vpop.permute.xlu1 %660 }
 0x117   : > { %v641_v32 = vpop.f32.mrf.mxu3 }
 0x11f   : > { %v643_v42 = vpop.f32.mrf.mxu3 }
 0x12c   : > { %v510_v30 = vpop.f32.mrf.mxu0 }
 0x130   : > { %v524_v33 = vpop.f32.mrf.mxu1 }
 0x131   : > { %v525_v35 = vadd.f32 %v524_v33, %v510_v30 }
 0x132   : > { %v627_v34 = vpop.f32.mrf.mxu2 }
 0x133   : > { %v529_v40 = vadd.f32 %v525_v35, %v400_v36  ;;  %v642_v41 = vadd.f32 %v641_v32, %v627_v34 }
 0x134   : > { %v512_v38 = vpop.f32.mrf.mxu0 }
 0x135   : > { %v646_v46 = vadd.f32 %v642_v41, %v529_v40 }
 0x138   : > { %v526_v39 = vpop.f32.mrf.mxu1 }
 0x139   : > { %v527_v31 = vadd.f32 %v526_v39, %v512_v38 }
 0x13a   : > { %v629_v43 = vpop.f32.mrf.mxu2 }
 0x13b   : > { %v530_v44 = vadd.f32 %v527_v31, %v405_v37  ;;  %v644_v45 = vadd.f32 %v643_v42, %v629_v43 }
 0x13d   : > { %v647_v47 = vadd.f32 %v644_v45, %v530_v44 }
 0x13f   : > { %v650_v50 = vpack.c.bf16 %v647_v47, %v646_v46 }
 0x141   : > { %v674_v51 = vsel %vm672_vm5, %v650_v50, 0 }
 0x142   : > { %683 = vmatpush.bf16.msrb.mxu1 %v674_v51 }
 0x145   : > { %922 = vmatmul.msk.bf16.vlgmr.msrb.gmra.mxu1 %vm668_vm6, %v921_v52 }
 0x1c2   : > { %v685_v54 = vpop.f32.mrf.mxu1 }
 0x1c3   : > { %v686_v55 = vadd.f32 %v685_v54, %v656_v53 }
 0x1c5   : > { %v690_v56 = vmax.f32 %v686_v55, 0.0 }
 0x1c7   : > { %v696_v57 = vsel %vm692_vm7, %v690_v56, 0.0  ;;  %693 = vst.msk [vmem:[%s367_s18] sm:$0xff] %vm692_vm7, %v690_v56  ;;  %v706_v58 = vmul.f32 %v690_v56, %v690_v56 }
 0x1c8   : > { %697 = vadd.xlane.f32.xlu2 %v696_v57 }
 0x1c9   : > { %v708_v59 = vsel %vm692_vm7, %v706_v58, 0.0 }
 0x1ca   : > { %v687_v61 = vpop.f32.mrf.mxu1  ;;  %709 = vadd.xlane.f32.xlu0 %v708_v59 }
 0x1cb   : > { %v688_v62 = vadd.f32 %v687_v61, %v661_v60 }
 0x1cd   : > { %v691_v63 = vmax.f32 %v688_v62, 0.0 }
 0x1cf   : > { %v699_v2 = vsel %vm694_vm8, %v691_v63, 0.0  ;;  %695 = vst.msk [vmem:[%s367_s18 + $0x8] sm:$0xf] %vm694_vm8, %v691_v63  ;;  %v707_v5 = vmul.f32 %v691_v63, %v691_v63 }
 0x1d0   : > { %700 = vadd.xlane.f32.xlu1 %v699_v2 }
 0x1d1   : > { %v711_v6 = vsel %vm694_vm8, %v707_v5, 0.0 }
 0x1d2   : > { %712 = vadd.xlane.f32.xlu2 %v711_v6 }
 0x23b   : > { %v698_v7 = vpop.xlane.xlu2 %697 }
 0x23c   : > { %703 = vst.msk [vmem:[%s372_s21] sm:$0xff] %vm702_vm9, %v698_v7 }
 0x23d   : > { %v710_v8 = vpop.xlane.xlu0 %709 }
 0x23e   : > { %714 = vst.msk [vmem:[%s377_s24] sm:$0xff] %vm702_vm9, %v710_v8 }
 0x243   : > { %v701_v9 = vpop.xlane.xlu1 %700 }
 0x244   : > { %705 = vst.msk [vmem:[%s372_s21 + $0x8] sm:$0xf] %vm704_vm10, %v701_v9 }
 0x245   : > { %v713_v10 = vpop.xlane.xlu2 %712 }
 0x246   : > { %715 = vst.msk [vmem:[%s377_s24 + $0x8] sm:$0xf] %vm704_vm10, %v713_v10 }
 0x247 PF: > { %s20_s30 = sadd.s32 1, %s1041_s30  }
 0x248   : > { %p17_p4 = scmp.ge.s32.totalorder %s20_s30, 4  }
 0x24a   :  { %19 = sbr.rel (!%p17_p4) target bundleno = 1 (0x1), region = 105 }

// kernel: panelnet_forward.18
= control target key start
LH: loop header
LB: loop body
LE: loop exit
PB: predicated region body
PF: predicated region fallthrough
CT: control target
= control target key end

     0   :  { %s1461_s30 = smov 0   ;;  %s1819_s0 = inlined_call_operand.vmem [shape: f32[2,12,290], index: 0, kind: input, shape index: {}]   ;;  %s1820_s1 = inlined_call_operand.vmem [shape: f32[2,8,290], index: 1, kind: input, shape index: {}]   ;;  %s1821_s2 = inlined_call_operand.vmem [shape: bf16[12,108], index: 2, kind: input, shape index: {}]   ;;  %s1822_s3 = inlined_call_operand.vmem [shape: bf16[12,72], index: 3, kind: input, shape index: {}]   ;;  %s1823_s4 = inlined_call_operand.vmem [shape: f32[12,1], index: 4, kind: input, shape index: {}]   ;;  %s1824_s5 = inlined_call_operand.vmem [shape: bf16[12,12], index: 5, kind: input, shape index: {}]   ;;  %s1825_s6 = inlined_call_operand.vmem [shape: f32[12,1], index: 6, kind: input, shape index: {}]   ;;  %s1826_s7 = inlined_call_operand.vmem [shape: f32[2,12,256], index: 7, kind: output, shape index: {0}]   ;;  %s1827_s8 = inlined_call_operand.vmem [shape: f32[2,12,1], index: 8, kind: output, shape index: {1}]   ;;  %s1828_s9 = inlined_call_operand.vmem [shape: f32[2,12,1], index: 9, kind: output, shape index: {2}]  }
   0x1 LB: > { %s1129_s10 = sadd.s32 4294967295, %s1399_s30   ;;  %p1133_p0 = scmp.ge.s32.totalorder %s1399_s30, 1  ;;  %s1399_s30 = sphi %s1461_s30, %s20_s30  }
   0x2   : > { %p302_p1 = scmp.lt.s32.totalorder %s1399_s30, 3 }
   0x4   : > { %p303_p2 = pnand %p1133_p0, %p302_p1 }
   0x5   : > { %p353_p3 = scmp.lt.s32.totalorder (!%p303_p2), %s1129_s10, 1  ;;  %s1401_s16 = smov (!%p303_p2), 94  }
   0x6   : > { %306 = sbr.rel (%p303_p2) target bundleno = 655 (0x28f), region = 48  ;;  %s1402_s20 = smov (!%p303_p2), 96  }
   0x7   : > { %s1403_s21 = smov (!%p303_p2), 95   ;;  %s1404_s22 = smov (!%p303_p2), 110  }
   0x8   : > { %s1405_s23 = smov (!%p303_p2), 111   ;;  %s1406_s24 = smov (!%p303_p2), 112  }
   0x9   : > { %s1407_s25 = smov (!%p303_p2), 126   ;;  %s1408_s26 = smov (!%p303_p2), 127  }
   0xb   : > { %s1846_s10 = smov (!%p353_p3, %s1129_s10), 1  ;;  %vm573_vm0 = vcmask 1043456   ;;  %v379_v31 = vlaneseq  ;;  %vm560_vm1 = vcmask 769024   ;;  %vm707_vm4 = vcmask 1045504   ;;  %v907_v57 = vld [vmem:[%s1825_s6] sm:$0xff] }
   0xc   : > { %s1210_s11 = smul.u32 48, %s1846_s10  ;;  %vm510_vm5 = vcmask 900096   ;;  %vm535_vm6 = vcmask 785408   ;;  %vm665_vm9 = vcmask 777216   ;;  %vm1409_vm10 = vmmov 1   ;;  %s1204_s28 = sshll.u32 %s1846_s10, 5 }
   0xd   : > { %s1211_s15 = smul.u32 24, %s1846_s10  ;;  %v1534_v34 = vand.u32 127, %v379_v31  ;;  %vm630_vm15 = vcmask 908288   ;;  %s367_s12 = scalar_lea.vmem %s1826_s7, %s1204_s28 }
   0xe   : > { %s357_s14 = scalar_lea.vmem %s1819_s0, %s1210_s11  ;;  %s1205_s13 = sshll.u32 %s1846_s10, 4 }
   0xf   : > { %v1476_v0 = vld [vmem:[%s357_s14 + $0x20] sm:$0xf]  ;;  %v1478_v1 = vld [vmem:[%s357_s14 + $0x28] sm:$0xf]  ;;  %s362_s19 = scalar_lea.vmem %s1820_s1, %s1211_s15  ;;  %v1497_v7 = vld [vmem:[%s357_s14 + $0x18] sm:$0xf] }
  0x10   : > { %v1480_v2 = vld [vmem:[%s357_s14] sm:$0xff]  ;;  %v1240_v3 = vpack.i.bf16 %v1478_v1, %v1476_v0  ;;  %v1484_v4 = vld [vmem:[%s357_s14 + $0x8] sm:$0xff]  ;;  %v426_v10 = vld [vmem:[%s357_s14 + $0x10] sm:$0xff]  ;;  %v1245_v11 = vpack.i.bf16 %v1476_v0, %v1497_v7  ;;  %v577_v14 = vrot.slane %v1497_v7, 4  ;;  %v579_v22 = vrot.slane %v1476_v0, 4 }
  0x11   : > { %v1250_v5 = vpack.i.bf16 %v1480_v2, %v1478_v1  ;;  %v1490_v6 = vpack.i.bf16 %v1484_v4, %v1480_v2  ;;  %v1499_v8 = vld [vmem:[%s362_s19] sm:$0xff]  ;;  %v1501_v9 = vld [vmem:[%s362_s19 + $0x8] sm:$0xff]  ;;  %v1235_v13 = vpack.i.bf16 %v1497_v7, %v426_v10  ;;  %v574_v15 = vrot.slane %v1480_v2, 4  ;;  %v748_v21 = vld [vmem:[%s362_s19 + $0x10] sm:$0xff]  ;;  %s377_s19 = scalar_lea.vmem %s1828_s9, %s1205_s13 }
  0x12   : > { %1241 = vrot.lane.b32.xlu1 %v1240_v3, %s1401_s16  ;;  %v1255_v12 = vpack.i.bf16 %v1501_v9, %v1499_v8  ;;  %v575_v16 = vrot.slane %v1484_v4, 4  ;;  %v1513_v18 = vrot.slane %v426_v10, 4  ;;  %v581_v23 = vrot.slane %v1478_v1, 4 }
  0x13   : > { %1251 = vrot.lane.b32.xlu2 %v1250_v5, %s1402_s20  ;;  %1231 = vrot.lane.b32.xlu0 %v1490_v6, %s1401_s16  ;;  %v578_v17 = vsel %vm573_vm0, %v574_v15, %v577_v14  ;;  %v1290_v26 = vpack.i.bf16 %v426_v10, %v1484_v4  ;;  %v1350_v28 = vpack.i.bf16 %v1499_v8, %v1478_v1  ;;  %v386_v35 = vand.u32 15, %v1534_v34 }
  0x14   : > { %v1260_v19 = vpack.i.bf16 %v575_v16, %v574_v15  ;;  %v1265_v20 = vpack.i.bf16 %v578_v17, %v1513_v18  ;;  %v580_v24 = vsel %vm573_vm0, %v575_v16, %v579_v22  ;;  %v582_v25 = vsel %vm573_vm0, %v1513_v18, %v581_v23 }
  0x15   : > { %v1285_v27 = vpack.i.bf16 %v582_v25, %v580_v24  ;;  %v1355_v29 = vpack.i.bf16 %v748_v21, %v1501_v9  ;;  %v1370_v30 = vpack.i.bf16 %v580_v24, %v578_v17  ;;  %v1375_v33 = vpack.i.bf16 %v1499_v8, %v582_v25 }
  0x16   : > { %vm1539_vm2 = vcmp.le.s32.totalorder %v386_v35, 14  ;;  %v381_v48 = vadd.s32 128, %v1534_v34  ;;  %vm1591_vm8 = vcmp.ge.s32.totalorder %v386_v35, 1 }
  0x17   : > { %vm1146_vm11 = vmpackc.low %vm1591_vm8, %vm1409_vm10 }
  0x18   : > { %v393_v49 = vand.u32 15, %v381_v48  ;;  %vm1632_vm13 = vmpackc.low %vm1409_vm10, %vm1591_vm8 }
  0x1a   : > { %1246 = vrot.lane.b32.xlu1 %v1245_v11, %s1402_s20  ;;  %vm1553_vm3 = vcmp.le.s32.totalorder %v393_v49, 14  ;;  %vm1582_vm7 = vcmp.ge.s32.totalorder %v393_v49, 1 }
  0x1b   : > { %1256 = vrot.lane.b32.xlu2 %v1255_v12, %s1401_s16  ;;  %1236 = vrot.lane.b32.xlu0 %v1235_v13, %s1401_s16  ;;  %vm1156_vm12 = vmpackc.low %vm1582_vm7, %vm1409_vm10 }
  0x1c   : > { %vm1644_vm14 = vmpackc.low %vm1409_vm10, %vm1582_vm7 }
  0x22   : > { %1261 = vrot.lane.b32.xlu1 %v1260_v19, %s1403_s21 }
  0x23   : > { %1266 = vrot.lane.b32.xlu2 %v1265_v20, %s1403_s21  ;;  %806 = vrot.lane.b32.xlu0 %v748_v21, %s1401_s16  ;;  %s372_s16 = scalar_lea.vmem %s1827_s8, %s1205_s13 }
  0x2a   : > { %1276 = vrot.lane.b32.xlu1 %v1235_v13, %s1404_s22 }
  0x2b   : > { %1281 = vrot.lane.b32.xlu2 %v1240_v3, %s1404_s22  ;;  %1271 = vrot.lane.b32.xlu0 %v1490_v6, %s1404_s22 }
  0x32   : > { %1291 = vrot.lane.b32.xlu1 %v1290_v26, %s1402_s20 }
  0x33   : > { %1296 = vrot.lane.b32.xlu2 %v1255_v12, %s1402_s20  ;;  %1286 = vrot.lane.b32.xlu0 %v1285_v27, %s1403_s21 }
  0x3a   : > { %1301 = vrot.lane.b32.xlu1 %v1255_v12, %s1403_s21 }
  0x3b   : > { %838 = vrot.lane.b32.xlu2 %v748_v21, %s1403_s21  ;;  %794 = vrot.lane.b32.xlu0 %v748_v21, %s1402_s20 }
  0x42   : > { %1311 = vrot.lane.b32.xlu1 %v1250_v5, %s1405_s23 }
  0x43   : > { %1316 = vrot.lane.b32.xlu2 %v1490_v6, %s1406_s24  ;;  %1306 = vrot.lane.b32.xlu0 %v1245_v11, %s1405_s23 }
  0x4a   : > { %1326 = vrot.lane.b32.xlu1 %v1240_v3, %s1406_s24 }
  0x4b   : > { %1331 = vrot.lane.b32.xlu2 %v1290_v26, %s1405_s23  ;;  %1321 = vrot.lane.b32.xlu0 %v1235_v13, %s1406_s24 }
  0x52   : > { %782 = vrot.lane.b32.xlu1 %v748_v21, %s1404_s22 }
  0x53   : > { %1341 = vrot.lane.b32.xlu2 %v1255_v12, %s1405_s23  ;;  %1336 = vrot.lane.b32.xlu0 %v1255_v12, %s1404_s22 }
  0x5a   : > { %1346 = vrot.lane.b32.xlu1 %v1245_v11, %s1407_s25 }
  0x5b   : > { %1351 = vrot.lane.b32.xlu2 %v1350_v28, %s1407_s25  ;;  %828 = vrot.lane.b32.xlu0 %v748_v21, %s1405_s23 }
  0x62   : > { %1361 = vrot.lane.b32.xlu1 %v1255_v12, %s1406_s24 }
  0x63   : > { %770 = vrot.lane.b32.xlu2 %v748_v21, %s1406_s24  ;;  %1356 = vrot.lane.b32.xlu0 %v1355_v29, %s1407_s25 }
  0x6a   : > { %452 = vrot.lane.b32.xlu1 %v426_v10, %s1407_s25 }
  0x6b   : > { %1371 = vrot.lane.b32.xlu2 %v1370_v30, %s1408_s26  ;;  %1366 = vrot.lane.b32.xlu0 %v1490_v6, %s1407_s25 }
  0x6d   : > { %v1531_v32 = vpop.permute.xlu2 %1251 }
  0x72   : > { %1381 = vrot.lane.b32.xlu1 %v1355_v29, %s1408_s26 }
  0x73   : > { %1386 = vrot.lane.b32.xlu2 %v1260_v19, %s1408_s26  ;;  %1376 = vrot.lane.b32.xlu0 %v1375_v33, %s1408_s26 }
  0x75   : > { %v1257_v36 = vpop.permute.xlu2 %1256 }
  0x76   : > { %v1259_v37 = vunpack.i.h.bf16 %v1257_v36  ;;  %v1258_v38 = vunpack.i.l.bf16 %v1257_v36  ;;  %v1253_v36 = vunpack.i.l.bf16 %v1531_v32 }
  0x78   : > { %v808_v40 = vsel %vm560_vm1, %v1258_v38, %v1259_v37 }
  0x79   : > { %v812_v41 = vsel %vm1539_vm2, %v808_v40, 0.0 }
  0x7a   : > { %v852_v42 = vpack.c.bf16 %v812_v41, %v812_v41 }
  0x7b   : > { %587 = vrot.lane.b32.xlu0 %v1513_v18, %s1408_s26 }
  0x7c   : > { %v866_v43 = vsel %vm573_vm0, %v852_v42, 0 }
  0x7d   : > { %v1548_v44 = vpop.permute.xlu2 %1266  ;;  %874 = vmatpush.bf16.msra.mxu2 %v866_v43 }
  0x84   : > { %v1242_v45 = vpop.permute.xlu1 %1241 }
  0x85   : > { %v1282_v46 = vpop.permute.xlu2 %1281  ;;  %v1232_v47 = vpop.permute.xlu0 %1231  ;;  %v1244_v50 = vunpack.i.h.bf16 %v1242_v45  ;;  %v1243_v51 = vunpack.i.l.bf16 %v1242_v45  ;;  %v1144_v45 = vld [vmem:[%s1821_s2] sm:$0xf] }
  0x86   : > { %v1234_v52 = vunpack.i.h.bf16 %v1232_v47  ;;  %v1233_v53 = vunpack.i.l.bf16 %v1232_v47  ;;  %v1284_v20 = vunpack.i.h.bf16 %v1282_v46  ;;  %v1283_v21 = vunpack.i.l.bf16 %v1282_v46 }
  0x87   : > { %v564_v61 = vsel %vm560_vm1, %v1243_v51, %v1244_v50  ;;  %v1254_v50 = vunpack.i.h.bf16 %v1531_v32 }
  0x88   : > { %v561_v60 = vsel %vm560_vm1, %v1233_v53, %v1234_v52  ;;  %v572_v6 = vsel %vm1553_vm3, %v564_v61, 0.0  ;;  %v514_v26 = vsel %vm510_vm5, %v1283_v21, %v1284_v20 }
  0x89   : > { %v569_v1 = vsel %vm1539_vm2, %v561_v60, 0.0  ;;  %v522_v42 = vsel %vm1553_vm3, %v514_v26, 0.0 }
  0x8c   : > { %v1247_v54 = vpop.permute.xlu1 %1246 }
  0x8d   : > { %v1551_v55 = vpop.permute.xlu2 %1296  ;;  %v1237_v56 = vpop.permute.xlu0 %1236  ;;  %v1249_v25 = vunpack.i.h.bf16 %v1247_v54  ;;  %v1248_v29 = vunpack.i.l.bf16 %v1247_v54 }
  0x8e   : > { %v1239_v58 = vunpack.i.h.bf16 %v1237_v56  ;;  %v1238_v59 = vunpack.i.l.bf16 %v1237_v56 }
  0x8f   : > { %v538_v48 = vsel %vm535_vm6, %v1248_v29, %v1249_v25  ;;  %v539_v49 = vsel %vm535_vm6, %v1249_v25, %v1253_v36  ;;  %v908_v29 = vld [vmem:[%s1825_s6 + $0x8] sm:$0xf] }
  0x90   : > { %v563_v62 = vsel %vm560_vm1, %v1239_v58, %v1243_v51  ;;  %v562_v63 = vsel %vm560_vm1, %v1234_v52, %v1238_v59  ;;  %v1269_v51 = vunpack.i.h.bf16 %v1548_v44  ;;  %v647_v52 = vrot.slane %v522_v42, 4 }
  0x91   : > { %v571_v3 = vsel %vm1539_vm2, %v563_v62, 0.0  ;;  %v570_v5 = vsel %vm1553_vm3, %v562_v63, 0.0  ;;  %v546_v32 = vsel %vm1591_vm8, %v538_v48, 0.0 }
  0x92   : > { %v694_v10 = vpack.c.bf16 %v571_v3, %v569_v1  ;;  %v695_v11 = vpack.c.bf16 %v572_v6, %v570_v5 }
  0x94   : > { %v709_v12 = vsel %vm707_vm4, %v694_v10, 0  ;;  %v712_v13 = vsel %vm707_vm4, %v695_v11, 0  ;;  %v1262_v14 = vpop.permute.xlu1 %1261 }
  0x95   : > { %v1571_v15 = vpop.permute.xlu2 %838  ;;  %v807_v16 = vpop.permute.xlu0 %806  ;;  %715 = vmatpush.bf16.msra.mxu0 %v709_v12  ;;  %729 = vmatpush.bf16.msra.mxu1 %v712_v13  ;;  %v1264_v38 = vunpack.i.h.bf16 %v1262_v14  ;;  %v1263_v40 = vunpack.i.l.bf16 %v1262_v14 }
  0x96   : > { %v809_v17 = vsel %vm560_vm1, %v1259_v37, %v807_v16  ;;  %v1268_v37 = vunpack.i.l.bf16 %v1548_v44  ;;  %v547_v44 = vsel %vm1582_vm7, %v539_v49, 0.0  ;;  %vm485_vm1 = vcmask 916480  }
  0x97   : > { %v813_v18 = vsel %vm1553_vm3, %v809_v17, 0.0  ;;  %v666_v53 = vsel %vm665_vm9, %v1263_v40, %v1264_v38  ;;  %v1299_v17 = vunpack.i.h.bf16 %v1551_v55 }
  0x98   : > { %v853_v19 = vpack.c.bf16 %v813_v18, %v813_v18  ;;  %v667_v54 = vsel %vm665_vm9, %v1264_v38, %v1268_v37  ;;  %v680_v5 = vsel %vm573_vm0, %v546_v32, %v666_v53  ;;  %v1298_v18 = vunpack.i.l.bf16 %v1551_v55 }
  0x99   : > { %v681_v6 = vsel %vm573_vm0, %v547_v44, %v667_v54 }
  0x9a   : > { %v869_v22 = vsel %vm573_vm0, %v853_v19, 0 }
  0x9b   : > { %888 = vmatpush.bf16.msra.mxu3 %v869_v22 }
  0x9c   : > { %v1277_v23 = vpop.permute.xlu1 %1276 }
  0x9d   : > { %v1577_v24 = vpop.permute.xlu2 %1316  ;;  %v1272_v27 = vpop.permute.xlu0 %1271  ;;  %v1279_v28 = vunpack.i.h.bf16 %v1277_v23  ;;  %v1278_v33 = vunpack.i.l.bf16 %v1277_v23 }
  0x9e   : > { %v1274_v30 = vunpack.i.h.bf16 %v1272_v27  ;;  %v1273_v31 = vunpack.i.l.bf16 %v1272_v27 }
  0x9f   : > { %v513_v43 = vsel %vm510_vm5, %v1279_v28, %v1283_v21 }
  0xa0   : > { %v511_v46 = vsel %vm510_vm5, %v1273_v31, %v1274_v30  ;;  %v512_v47 = vsel %vm510_vm5, %v1274_v30, %v1278_v33  ;;  %v521_v34 = vsel %vm1539_vm2, %v513_v43, 0.0  ;;  %v796_v30 = vsel %vm535_vm6, %v1298_v18, %v1299_v17 }
  0xa1   : > { %v519_v56 = vsel %vm1539_vm2, %v511_v46, 0.0  ;;  %v520_v58 = vsel %vm1553_vm3, %v512_v47, 0.0  ;;  %v645_v3 = vrot.slane %v521_v34, 4 }
  0xa2   : > { %v643_v10 = vrot.slane %v519_v56, 4  ;;  %v644_v11 = vrot.slane %v520_v58, 4 }
  0xa4   : > { %v1292_v35 = vpop.permute.xlu1 %1291  ;;  %v646_v22 = vsel %vm573_vm0, %v643_v10, %v645_v3  ;;  %v648_v23 = vsel %vm573_vm0, %v644_v11, %v647_v52 }
  0xa5   : > { %v1287_v59 = vpop.permute.xlu0 %1286  ;;  %v1294_v62 = vunpack.i.h.bf16 %v1292_v35  ;;  %v1293_v63 = vunpack.i.l.bf16 %v1292_v35  ;;  %v1332_v1 = vpop.permute.xlu2 %1331 }
  0xa6   : > { %v1289_v60 = vunpack.i.h.bf16 %v1287_v59  ;;  %v1288_v61 = vunpack.i.l.bf16 %v1287_v59  ;;  %v1334_v43 = vunpack.i.h.bf16 %v1332_v1  ;;  %v1333_v46 = vunpack.i.l.bf16 %v1332_v1 }
  0xa7   : > { %v536_v19 = vsel %vm535_vm6, %v1254_v50, %v1293_v63  ;;  %v537_v20 = vsel %vm535_vm6, %v1293_v63, %v1294_v62 }
  0xa8   : > { %v668_v12 = vsel %vm665_vm9, %v1269_v51, %v1288_v61  ;;  %v669_v13 = vsel %vm665_vm9, %v1288_v61, %v1289_v60  ;;  %v1147_v27 = vpack.c.bf16 %v536_v19, %v646_v22  ;;  %v1157_v28 = vpack.c.bf16 %v537_v20, %v648_v23 }
  0xa9   : > { %v692_v14 = vpack.c.bf16 %v668_v12, %v680_v5  ;;  %v693_v16 = vpack.c.bf16 %v669_v13, %v681_v6 }
  0xab   : > { %716 = vmatpush.bf16.msra.mxu0 %v692_v14  ;;  %730 = vmatpush.bf16.msra.mxu1 %v693_v16 }
  0xac   : > { %v1302_v21 = vpop.permute.xlu1 %1301 }
  0xad   : > { %v795_v55 = vpop.permute.xlu0 %794  ;;  %v1304_v25 = vunpack.i.h.bf16 %v1302_v21  ;;  %v1303_v26 = vunpack.i.l.bf16 %v1302_v21  ;;  %v1637_v31 = vpop.permute.xlu2 %1341  ;;  %v1168_v21 = vld [vmem:[%s1822_s3] sm:$0xf] }
  0xae   : > { %v797_v33 = vsel %vm535_vm6, %v1299_v17, %v795_v55  ;;  %v1344_v63 = vunpack.i.h.bf16 %v1637_v31  ;;  %v1343_v1 = vunpack.i.l.bf16 %v1637_v31  ;;  %vm1675_vm6 = vmpackc.low %vm1539_vm2, %vm1409_vm10 }
  0xaf   : > { %1148 = vmatpush.bf16.msk.msra.mxu0 %vm1146_vm11, %v1147_v27  ;;  %1158 = vmatpush.bf16.msk.msra.mxu1 %vm1156_vm12, %v1157_v28  ;;  %v840_v36 = vsel %vm665_vm9, %v1303_v26, %v1304_v25  ;;  %v841_v38 = vsel %vm665_vm9, %v1304_v25, %v1571_v15  ;;  %v632_v15 = vsel %vm630_vm15, %v1333_v46, %v1334_v43  ;;  %vm460_vm9 = vcmask 1031168   ;;  %vm1699_vm11 = vmpackc.low %vm1553_vm3, %vm1409_vm10 }
  0xb0   : > { %v1171_v40 = vpack.c.bf16 %v840_v36, %v796_v30  ;;  %v1184_v42 = vpack.c.bf16 %v841_v38, %v797_v33  ;;  %v830_v18 = vsel %vm630_vm15, %v1343_v1, %v1344_v63  ;;  %v411_v1 = vld [vmem:[%s1823_s4 + $0x8] sm:$0xf]  ;;  %vm1189_vm10 = vmpackc.low %vm1582_vm7, %vm1553_vm3  ;;  %vm980_vm12 = vcmask 3072  }
  0xb2   : > { %1172 = vmatpush.bf16.msk.msra.mxu2 %vm1632_vm13, %v1171_v40  ;;  %1185 = vmatpush.bf16.msk.msra.mxu3 %vm1644_vm14, %v1184_v42 }
  0xb4   : > { %v1312_v47 = vpop.permute.xlu1 %1311 }
  0xb5   : > { %v1307_v48 = vpop.permute.xlu0 %1306  ;;  %v1314_v49 = vunpack.i.h.bf16 %v1312_v47  ;;  %v1313_v50 = vunpack.i.l.bf16 %v1312_v47  ;;  %v1658_v54 = vpop.permute.xlu2 %1351 }
  0xb6   : > { %v1309_v51 = vunpack.i.h.bf16 %v1307_v48  ;;  %v1308_v52 = vunpack.i.l.bf16 %v1307_v48  ;;  %v1353_v27 = vunpack.i.l.bf16 %v1658_v54 }
  0xb7   : > { %v631_v34 = vsel %vm630_vm15, %v1314_v49, %v1333_v46 }
  0xb8   : > { %v633_v35 = vsel %vm630_vm15, %v1308_v52, %v1309_v51  ;;  %v634_v53 = vsel %vm630_vm15, %v1309_v51, %v1313_v50 }
  0xb9   : > { %v678_v56 = vsel %vm573_vm0, %v633_v35, %v643_v10  ;;  %v679_v58 = vsel %vm573_vm0, %v634_v53, %v644_v11  ;;  %v1319_v10 = vunpack.i.h.bf16 %v1577_v24  ;;  %v1318_v11 = vunpack.i.l.bf16 %v1577_v24 }
  0xba   : > { %v688_v59 = vpack.c.bf16 %v678_v56, %v631_v34  ;;  %v689_v32 = vpack.c.bf16 %v679_v58, %v632_v15 }
  0xbb   : > { %v486_v22 = vsel %vm485_vm1, %v1318_v11, %v1319_v10  ;;  %v1410_v11 = vmov 0  }
  0xbc   : > { %718 = vmatpush.bf16.msra.mxu0 %v688_v59  ;;  %732 = vmatpush.bf16.msra.mxu1 %v689_v32  ;;  %v1327_v44 = vpop.permute.xlu1 %1326  ;;  %v494_v30 = vsel %vm1591_vm8, %v486_v22, 0.0 }
  0xbd   : > { %v1322_v60 = vpop.permute.xlu0 %1321  ;;  %v1329_v61 = vunpack.i.h.bf16 %v1327_v44  ;;  %v1328_v62 = vunpack.i.l.bf16 %v1327_v44  ;;  %v1664_v3 = vpop.permute.xlu2 %770  ;;  %v608_v51 = vrot.slane %v494_v30, 4  ;;  %1390 = vset.pattern.permute.xlu1 %v1410_v11  ;;  %1391 = vset.pattern.permute.xlu2 %v1410_v11 }
  0xbe   : > { %v1324_v5 = vunpack.i.h.bf16 %v1322_v60  ;;  %v1323_v6 = vunpack.i.l.bf16 %v1322_v60  ;;  %419 = vperm.xlu2 %1391, %v411_v1   ;;  %1392 = vset.pattern.permute.xlu0 %v1410_v11  ;;  %v1209_v11 = vld [vmem:[%s1824_s5] sm:$0x30] }
  0xbf   : > { %v489_v14 = vsel %vm485_vm1, %v1328_v62, %v1329_v61  ;;  %916 = vperm.xlu0 %1392, %v908_v29  }
  0xc0   : > { %v487_v19 = vsel %vm485_vm1, %v1319_v10, %v1323_v6  ;;  %v488_v20 = vsel %vm485_vm1, %v1324_v5, %v1328_v62  ;;  %v497_v55 = vsel %vm1582_vm7, %v489_v14, 0.0  ;;  %v1354_v5 = vunpack.i.h.bf16 %v1658_v54 }
  0xc1   : > { %v496_v25 = vsel %vm1591_vm8, %v488_v20, 0.0  ;;  %v495_v26 = vsel %vm1582_vm7, %v487_v19, 0.0  ;;  %v612_v31 = vrot.slane %v497_v55, 4  ;;  %v436_v55 = vsel %vm1591_vm8, %v1497_v7, 0.0  ;;  %v1207_v7 = vld [vmem:[%s1821_s2] sm:$0x30] }
  0xc2   : > { %v610_v42 = vrot.slane %v496_v25, 4  ;;  %v609_v43 = vrot.slane %v495_v26, 4 }
  0xc4   : > { %v783_v12 = vpop.permute.xlu1 %782  ;;  %v611_v35 = vsel %vm573_vm0, %v608_v51, %v610_v42  ;;  %v613_v56 = vsel %vm573_vm0, %v609_v43, %v612_v31 }
  0xc5   : > { %v1337_v13 = vpop.permute.xlu0 %1336  ;;  %v1692_v33 = vpop.permute.xlu2 %1371 }
  0xc6   : > { %v1339_v16 = vunpack.i.h.bf16 %v1337_v13  ;;  %v1338_v17 = vunpack.i.l.bf16 %v1337_v13  ;;  %v1373_v20 = vunpack.i.l.bf16 %v1692_v33 }
  0xc8   : > { %v784_v24 = vsel %vm510_vm5, %v1338_v17, %v1339_v16  ;;  %v785_v46 = vsel %vm510_vm5, %v1339_v16, %v783_v12  ;;  %vm1176_vm5 = vmpackc.low %vm1591_vm8, %vm1539_vm2  ;;  %vm861_vm8 = vcmask 588800  }
  0xc9   : > { %v1174_v23 = vpack.c.bf16 %v784_v24, %v830_v18 }
  0xcb   : > { %1175 = vmatpush.bf16.msk.msra.mxu2 %vm1675_vm6, %v1174_v23 }
  0xcc   : > { %v1347_v28 = vpop.permute.xlu1 %1346 }
  0xcd   : > { %v829_v36 = vpop.permute.xlu0 %828  ;;  %v1349_v38 = vunpack.i.h.bf16 %v1347_v28  ;;  %v1348_v40 = vunpack.i.l.bf16 %v1347_v28  ;;  %v1722_v10 = vpop.permute.xlu2 %1386 }
  0xce   : > { %v831_v47 = vsel %vm630_vm15, %v1344_v63, %v829_v36  ;;  %v410_v63 = vld [vmem:[%s1823_s4] sm:$0xff]  ;;  %v1389_v18 = vunpack.i.h.bf16 %v1722_v10  ;;  %v1388_v19 = vunpack.i.l.bf16 %v1722_v10 }
  0xcf   : > { %v1187_v49 = vpack.c.bf16 %v785_v46, %v831_v47  ;;  %v463_v50 = vsel %vm460_vm9, %v1348_v40, %v1349_v38  ;;  %v464_v52 = vsel %vm460_vm9, %v1349_v38, %v1353_v27  ;;  %414 = vperm.xlu1 %1390, %v410_v63   ;;  %v1145_v47 = vor.u32 %v1207_v7, %v1144_v45  ;;  %v1198_v10 = vld [vmem:[%s1824_s5] sm:$0xf] }
  0xd0   : > { %v471_v34 = vsel %vm1539_vm2, %v463_v50, 0.0  ;;  %v472_v15 = vsel %vm1553_vm3, %v464_v52, 0.0  ;;  %vm595_vm2 = vcmask 1039360   ;;  %vm703_vm3 = vcmask 883712  }
  0xd1   : > { %1188 = vmatpush.bf16.msk.msra.mxu3 %vm1699_vm11, %v1187_v49  ;;  %v676_v53 = vsel %vm573_vm0, %v471_v34, %v608_v51  ;;  %v677_v58 = vsel %vm573_vm0, %v472_v15, %v609_v43  ;;  %v596_v23 = vsel %vm595_vm2, %v1388_v19, %v1389_v18 }
  0xd2   : > { %v686_v59 = vpack.c.bf16 %v611_v35, %v676_v53  ;;  %v687_v32 = vpack.c.bf16 %v613_v56, %v677_v58  ;;  %v674_v30 = vsel %vm573_vm0, %v436_v55, %v596_v23 }
  0xd4   : > { %v1362_v44 = vpop.permute.xlu1 %1361  ;;  %719 = vmatpush.bf16.msra.mxu0 %v686_v59  ;;  %733 = vmatpush.bf16.msra.mxu1 %v687_v32 }
  0xd5   : > { %v1357_v60 = vpop.permute.xlu0 %1356  ;;  %v1364_v61 = vunpack.i.h.bf16 %v1362_v44  ;;  %v1363_v62 = vunpack.i.l.bf16 %v1362_v44 }
  0xd6   : > { %v1359_v6 = vunpack.i.h.bf16 %v1357_v60  ;;  %v1358_v12 = vunpack.i.l.bf16 %v1357_v60 }
  0xd7   : > { %v772_v13 = vsel %vm485_vm1, %v1363_v62, %v1364_v61  ;;  %v773_v14 = vsel %vm485_vm1, %v1364_v61, %v1664_v3  ;;  %v1374_v3 = vunpack.i.h.bf16 %v1692_v33  ;;  %911 = vperm.xlu1 %1390, %v907_v57   ;;  %v1153_v33 = vpack.c.bf16 %v674_v30, %v1480_v2  ;;  %v1208_v2 = vld [vmem:[%s1822_s3] sm:$0x30] }
  0xd8   : > { %v760_v54 = vsel %vm460_vm9, %v1354_v5, %v1358_v12  ;;  %v761_v16 = vsel %vm460_vm9, %v1358_v12, %v1359_v6  ;;  %v1169_v53 = vor.u32 %v1208_v2, %v1168_v21 }
  0xd9   : > { %v1177_v17 = vpack.c.bf16 %v772_v13, %v760_v54  ;;  %v1190_v39 = vpack.c.bf16 %v773_v14, %v761_v16  ;;  %v598_v27 = vsel %vm595_vm2, %v1373_v20, %v1374_v3 }
  0xdb   : > { %1178 = vmatpush.bf16.msk.msra.mxu2 %vm1176_vm5, %v1177_v17  ;;  %1191 = vmatpush.bf16.msk.msra.mxu3 %vm1189_vm10, %v1190_v39  ;;  %v1199_v39 = vor.u32 %v1209_v11, %v1198_v10 }
  0xdc   : > { %v453_v24 = vpop.permute.xlu1 %452 }
  0xdd   : > { %v1367_v22 = vpop.permute.xlu0 %1366 }
  0xde   : > { %v1369_v25 = vunpack.i.h.bf16 %v1367_v22  ;;  %v1368_v26 = vunpack.i.l.bf16 %v1367_v22 }
  0xe0   : > { %v461_v28 = vsel %vm460_vm9, %v1368_v26, %v1369_v25  ;;  %v462_v50 = vsel %vm460_vm9, %v1369_v25, %v453_v24 }
  0xe1   : > { %v1150_v31 = vpack.c.bf16 %v461_v28, %v598_v27 }
  0xe3   : > { %1151 = vmatpush.bf16.msk.msra.mxu0 %vm1675_vm6, %v1150_v31 }
  0xe4   : > { %v1382_v36 = vpop.permute.xlu1 %1381 }
  0xe5   : > { %v1377_v38 = vpop.permute.xlu0 %1376  ;;  %v1384_v40 = vunpack.i.h.bf16 %v1382_v36  ;;  %v1383_v42 = vunpack.i.l.bf16 %v1382_v36 }
  0xe6   : > { %v1379_v43 = vunpack.i.h.bf16 %v1377_v38  ;;  %v1378_v46 = vunpack.i.l.bf16 %v1377_v38 }
  0xe7   : > { %1154 = vmatpush.bf16.msk.msra.mxu0 %vm1632_vm13, %v1153_v33  ;;  %v821_v49 = vsel %vm595_vm2, %v1383_v42, %v1384_v40 }
  0xe8   : > { %v599_v51 = vsel %vm595_vm2, %v1374_v3, %v1378_v46  ;;  %v820_v52 = vsel %vm595_vm2, %v1379_v43, %v1383_v42  ;;  %v1193_v34 = vpack.c.bf16 %v821_v49, %v1501_v9  ;;  %v437_v9 = vsel %vm1582_vm7, %v1476_v0, 0.0 }
  0xe9   : > { %v1160_v15 = vpack.c.bf16 %v462_v50, %v599_v51  ;;  %v1180_v35 = vpack.c.bf16 %v820_v52, %v1499_v8  ;;  %vm924_vm7 = vcmask 97280  }
  0xea   : > { %1194 = vmatpush.bf16.msk.msra.mxu3 %vm1644_vm14, %v1193_v34  ;;  %1155 = vmatmul.msk.bf16.vlgmr.msra.gmra.mxu0 %vm703_vm3, %v1145_v47 }
  0xeb   : > { %1161 = vmatpush.bf16.msk.msra.mxu1 %vm1699_vm11, %v1160_v15  ;;  %1181 = vmatpush.bf16.msk.msra.mxu2 %vm1632_vm13, %v1180_v35 }
  0xed   : > { %v588_v56 = vpop.permute.xlu0 %587  ;;  %1195 = vmatmul.msk.bf16.vlgmr.msra.gmra.mxu3 %vm861_vm8, %v1169_v53 }
  0xee   : > { %v597_v8 = vsel %vm595_vm2, %v1389_v18, %v588_v56  ;;  %1182 = vmatmul.msk.bf16.vlgmr.msra.gmra.mxu2 %vm861_vm8, %v1169_v53 }
  0xef   : > { %v675_v58 = vsel %vm573_vm0, %v437_v9, %v597_v8 }
  0xf0   : > { %v1163_v59 = vpack.c.bf16 %v675_v58, %v1484_v4 }
  0xf2   : > { %1164 = vmatpush.bf16.msk.msra.mxu1 %vm1644_vm14, %v1163_v59 }
  0xf5   : > { %1165 = vmatmul.msk.bf16.vlgmr.msra.gmra.mxu1 %vm703_vm3, %v1145_v47 }
 0x118   : > { %v420_v60 = vpop.permute.xlu2 %419 }
 0x131   : > { %v917_v25 = vpop.permute.xlu0 %916 }
 0x141   : > { %v415_v44 = vpop.permute.xlu1 %414 }
 0x149   : > { %v912_v3 = vpop.permute.xlu1 %911 }
 0x167   : > { %v723_v0 = vpop.f32.mrf.mxu0 }
 0x168   : > { %v742_v62 = vadd.f32 %v723_v0, %v415_v44 }
 0x16f   : > { %v725_v61 = vpop.f32.mrf.mxu0 }
 0x170   : > { %v894_v48 = vpop.f32.mrf.mxu3  ;;  %v744_v63 = vadd.f32 %v725_v61, %v420_v60 }
 0x171   : > { %v880_v41 = vpop.f32.mrf.mxu2 }
 0x172   : > { %v737_v32 = vpop.f32.mrf.mxu1  ;;  %v899_v37 = vadd.f32 %v880_v41, %v742_v62 }
 0x173   : > { %v743_v4 = vadd.f32 %v737_v32, %v415_v44 }
 0x175   : > { %v900_v54 = vadd.f32 %v894_v48, %v743_v4 }
 0x178   : > { %v896_v13 = vpop.f32.mrf.mxu3 }
 0x179   : > { %v882_v1 = vpop.f32.mrf.mxu2 }
 0x17a   : > { %v901_v5 = vadd.f32 %v882_v1, %v744_v63  ;;  %v739_v6 = vpop.f32.mrf.mxu1 }
 0x17b   : > { %v745_v12 = vadd.f32 %v739_v6, %v420_v60 }
 0x17c   : > { %v905_v14 = vpack.c.bf16 %v901_v5, %v899_v37 }
 0x17d   : > { %v902_v16 = vadd.f32 %v896_v13, %v745_v12 }
 0x17e   : > { %v929_v17 = vsel %vm707_vm4, %v905_v14, 0 }
 0x17f   : > { %941 = vmatpush.bf16.msrb.mxu2 %v929_v17  ;;  %v906_v18 = vpack.c.bf16 %v902_v16, %v900_v54 }
 0x181   : > { %v932_v19 = vsel %vm707_vm4, %v906_v18, 0  ;;  %vm978_vm4 = vcmask 7168  }
 0x182   : > { %1200 = vmatmul.msk.bf16.vlgmr.msrb.gmra.mxu2 %vm924_vm7, %v1199_v39  ;;  %955 = vmatpush.bf16.msrb.mxu3 %v932_v19 }
 0x185   : > { %1201 = vmatmul.msk.bf16.vlgmr.msrb.gmra.mxu3 %vm924_vm7, %v1199_v39 }
 0x205   : > { %v943_v20 = vpop.f32.mrf.mxu2 }
 0x206   : > { %v944_v24 = vadd.f32 %v943_v20, %v912_v3 }
 0x208   : > { %v962_v57 = vmax.f32 %v944_v24, 0.0  ;;  %v957_v22 = vpop.f32.mrf.mxu3 }
 0x209   : > { %v958_v23 = vadd.f32 %v957_v22, %v912_v3 }
 0x20a   : > { %966 = vst [vmem:[%s367_s12] sm:$0xff] %v962_v57  ;;  %v982_v27 = vmul.f32 %v962_v57, %v962_v57 }
 0x20b   : > { %v963_v55 = vmax.f32 %v958_v23, 0.0 }
 0x20d   : > { %967 = vst [vmem:[%s367_s12 + $0x8] sm:$0xff] %v963_v55  ;;  %v970_v26 = vadd.f32 %v963_v55, %v962_v57  ;;  %v983_v28 = vmul.f32 %v963_v55, %v963_v55  ;;  %v945_v30 = vpop.f32.mrf.mxu2 }
 0x20e   : > { %v946_v31 = vadd.f32 %v945_v30, %v917_v25 }
 0x20f   : > { %971 = vadd.xlane.f32.xlu2 %v970_v26  ;;  %v986_v33 = vadd.f32 %v983_v28, %v982_v27 }
 0x210   : > { %v964_v45 = vmax.f32 %v946_v31, 0.0  ;;  %v959_v7 = vpop.f32.mrf.mxu3 }
 0x211   : > { %987 = vadd.xlane.f32.xlu0 %v986_v33  ;;  %v960_v36 = vadd.f32 %v959_v7, %v917_v25 }
 0x212   : > { %968 = vst [vmem:[%s367_s12 + $0x10] sm:$0xf] %v964_v45  ;;  %v984_v40 = vmul.f32 %v964_v45, %v964_v45  ;;  %v973_v42 = vsel %vm573_vm0, %v964_v45, 0.0 }
 0x213   : > { %v965_v38 = vmax.f32 %v960_v36, 0.0 }
 0x214   : > { %v989_v21 = vsel %vm573_vm0, %v984_v40, 0.0 }
 0x215   : > { %969 = vst [vmem:[%s367_s12 + $0x18] sm:$0xf] %v965_v38  ;;  %v974_v43 = vsel %vm573_vm0, %v965_v38, 0.0  ;;  %v985_v46 = vmul.f32 %v965_v38, %v965_v38 }
 0x216   : > { %v975_v47 = vadd.f32 %v974_v43, %v973_v42 }
 0x217   : > { %v990_v2 = vsel %vm573_vm0, %v985_v46, 0.0 }
 0x218   : > { %976 = vadd.xlane.f32.xlu1 %v975_v47  ;;  %v991_v49 = vadd.f32 %v990_v2, %v989_v21 }
 0x21a   : > { %992 = vadd.xlane.f32.xlu2 %v991_v49 }
 0x282   : > { %v972_v50 = vpop.xlane.xlu2 %971 }
 0x283   : > { %979 = vst.msk [vmem:[%s372_s16] sm:$0xff] %vm978_vm4, %v972_v50 }
 0x284   : > { %v988_v51 = vpop.xlane.xlu0 %987 }
 0x285   : > { %994 = vst.msk [vmem:[%s377_s19] sm:$0xff] %vm978_vm4, %v988_v51 }
 0x28b   : > { %v977_v52 = vpop.xlane.xlu1 %976 }
 0x28c   : > { %981 = vst.msk [vmem:[%s372_s16 + $0x8] sm:$0xf] %vm980_vm12, %v977_v52 }
 0x28d   : > { %v993_v34 = vpop.xlane.xlu2 %992 }
 0x28e   : > { %995 = vst.msk [vmem:[%s377_s19 + $0x8] sm:$0xf] %vm980_vm12, %v993_v34 }
 0x28f PF: > { %s20_s30 = sadd.s32 1, %s1399_s30  }
 0x290   : > { %p17_p4 = scmp.ge.s32.totalorder %s20_s30, 4  }
 0x292   :  { %19 = sbr.rel (!%p17_p4) target bundleno = 1 (0x1), region = 105 }

// kernel: panelnet_forward.19
= control target key start
LH: loop header
LB: loop body
LE: loop exit
PB: predicated region body
PF: predicated region fallthrough
CT: control target
= control target key end

     0   :  { %s399_s12 = smov 0   ;;  %s433_s0 = inlined_call_operand.vmem [shape: f32[2,12,256], index: 0, kind: input, shape index: {}]   ;;  %s434_s1 = inlined_call_operand.vmem [shape: f32[3,12], index: 1, kind: input, shape index: {}]   ;;  %s435_s2 = inlined_call_operand.vmem [shape: f32[3,1], index: 2, kind: input, shape index: {}]   ;;  %s436_s3 = inlined_call_operand.vmem [shape: f32[2,3,256], index: 3, kind: output, shape index: {}]  }
   0x1 LB: > { %s335_s13 = sadd.s32 4294967295, %s376_s12   ;;  %p339_p0 = scmp.ge.s32.totalorder %s376_s12, 1  ;;  %s376_s12 = sphi %s399_s12, %s13_s12  }
   0x2   : > { %p137_p1 = scmp.lt.s32.totalorder %s376_s12, 3 }
   0x4   : > { %p138_p2 = pnand %p339_p0, %p137_p1 }
   0x5   : > { %p161_p3 = scmp.lt.s32.totalorder (!%p138_p2), %s335_s13, 1 }
   0x6   : > { %141 = sbr.rel (%p138_p2) target bundleno = 199 (0xc7), region = 32 }
   0xb   : > { %v378_v0 = vmov 0   ;;  %v176_v1 = vld [vmem:[%s435_s2] sm:$0x7]  ;;  %s438_s13 = smov (!%p161_p3, %s335_s13), 1  ;;  %vm186_vm0 = vcmask 1043456   ;;  %vm182_vm1 = vcmask 97280  }
   0xc   : > { %361 = vset.pattern.permute.xlu0 %v378_v0  ;;  %s350_s16 = sshll.u32 %s438_s13, 5  ;;  %v171_v6 = vld [vmem:[%s434_s1] sm:$0x7]  ;;  %vm233_vm2 = vcmask 1042432   ;;  %s351_s22 = sshll.u32 %s438_s13, 3 }
   0xd   : > { %179 = vperm.xlu0 %361, %v176_v1   ;;  %s165_s19 = scalar_lea.vmem %s433_s0, %s350_s16  ;;  %s170_s25 = scalar_lea.vmem %s436_s3, %s351_s22 }
   0xe   : > { %v174_v2 = vld [vmem:[%s165_s19 + $0x10] sm:$0xf]  ;;  %v175_v3 = vld [vmem:[%s165_s19 + $0x18] sm:$0xf]  ;;  %v172_v4 = vld [vmem:[%s165_s19] sm:$0xff] }
   0xf   : > { %344 = vmatpush.msk.msra.mxu0 %vm186_vm0, %v174_v2  ;;  %346 = vmatpush.msk.msra.mxu1 %vm186_vm0, %v175_v3  ;;  %v173_v5 = vld [vmem:[%s165_s19 + $0x8] sm:$0xff] }
  0x11   : > { %208 = vmatpush.msra.mxu0 %v172_v4  ;;  %228 = vmatpush.msra.mxu1 %v173_v5 }
  0x12   : > { %345 = vmatmul.msk.f32.vlgmr.msra.gmra.mxu0 %vm182_vm1, %v171_v6  ;;  %347 = vmatmul.msk.f32.vlgmr.msra.gmra.mxu1 %vm182_vm1, %v171_v6 }
  0x7f   : > { %v180_v7 = vpop.permute.xlu0 %179 }
  0x8f   : > { %v210_v8 = vpop.f32.mrf.mxu0  ;;  %v230_v9 = vpop.f32.mrf.mxu1 }
  0x90   : > { %v211_v10 = vadd.f32 %v210_v8, %v180_v7  ;;  %v231_v11 = vadd.f32 %v230_v9, %v180_v7 }
  0x92   : > { %v234_v12 = vsel %vm233_vm2, %v211_v10, -inf  ;;  %v241_v13 = vsel %vm233_vm2, %v231_v11, -inf }
  0x93   : > { %v235_v14 = vrot.slane %v234_v12, 4  ;;  %v242_v15 = vrot.slane %v241_v13, 4 }
  0x95   : > { %v236_v16 = vmax.f32 %v234_v12, %v235_v14  ;;  %v243_v17 = vmax.f32 %v241_v13, %v242_v15 }
  0x97   : > { %v237_v18 = vrot.slane %v236_v16, 2  ;;  %v244_v19 = vrot.slane %v243_v17, 2 }
  0x99   : > { %v238_v20 = vmax.f32 %v236_v16, %v237_v18  ;;  %v245_v21 = vmax.f32 %v243_v17, %v244_v19 }
  0x9b   : > { %v239_v22 = vrot.slane %v238_v20, 1  ;;  %v246_v23 = vrot.slane %v245_v21, 1 }
  0x9d   : > { %v240_v24 = vmax.f32 %v238_v20, %v239_v22  ;;  %v247_v25 = vmax.f32 %v245_v21, %v246_v23 }
  0x9f   : > { %v248_v26 = vsub.f32 %v211_v10, %v240_v24  ;;  %v249_v27 = vsub.f32 %v231_v11, %v247_v25 }
  0xa1   : > { %v250_v28 = vmul.f32 1.442695, %v248_v26  ;;  %v252_v29 = vmul.f32 1.442695, %v249_v27 }
  0xa3   : > { %362 = vpow2.f32 %v250_v28 }
  0xa4   : > { %364 = vpow2.f32 %v252_v29 }
  0xa9   : > { %v363_v30 = vpop.eup %362 }
  0xaa   : > { %v365_v31 = vpop.eup %364  ;;  %v254_v32 = vsel %vm233_vm2, %v363_v30, 0.0 }
  0xab   : > { %v255_v33 = vrot.slane %v254_v32, 4  ;;  %v261_v34 = vsel %vm233_vm2, %v365_v31, 0.0 }
  0xac   : > { %v262_v35 = vrot.slane %v261_v34, 4 }
  0xad   : > { %v256_v36 = vadd.f32 %v255_v33, %v254_v32 }
  0xae   : > { %v263_v37 = vadd.f32 %v262_v35, %v261_v34 }
  0xaf   : > { %v257_v38 = vrot.slane %v256_v36, 2 }
  0xb0   : > { %v264_v39 = vrot.slane %v263_v37, 2 }
  0xb1   : > { %v258_v40 = vadd.f32 %v257_v38, %v256_v36 }
  0xb2   : > { %v265_v41 = vadd.f32 %v264_v39, %v263_v37 }
  0xb3   : > { %v259_v42 = vrot.slane %v258_v40, 1 }
  0xb4   : > { %v266_v43 = vrot.slane %v265_v41, 1 }
  0xb5   : > { %v260_v44 = vadd.f32 %v259_v42, %v258_v40 }
  0xb6   : > { %v267_v45 = vadd.f32 %v266_v43, %v265_v41 }
  0xb7   : > { %366 = vlog2.f32 %v260_v44 }
  0xb8   : > { %368 = vlog2.f32 %v267_v45 }
  0xbd   : > { %v367_v46 = vpop.eup %366 }
  0xbe   : > { %v369_v47 = vpop.eup %368  ;;  %v269_v48 = vmul.f32 0.6931472, %v367_v46 }
  0xbf   : > { %v271_v49 = vmul.f32 0.6931472, %v369_v47 }
  0xc0   : > { %v272_v51 = vsub.f32 %v248_v26, %v269_v48 }
  0xc1   : > { %v273_v50 = vsub.f32 %v249_v27, %v271_v49 }
  0xc3   : > { %v276_v52 = vrot.slane %v273_v50, 4 }
  0xc5   : > { %v277_v53 = vsel %vm186_vm0, %v272_v51, %v276_v52 }
  0xc6   : > { %279 = vst [vmem:[%s170_s25] sm:$0x77] %v277_v53 }
  0xc7 PF: > { %s13_s12 = sadd.s32 1, %s376_s12  }
  0xc8   : > { %p10_p4 = scmp.ge.s32.totalorder %s13_s12, 4  }
  0xca   :  { %12 = sbr.rel (!%p10_p4) target bundleno = 1 (0x1), region = 62 }

// kernel: panelnet_forward.17
= control target key start
LH: loop header
LB: loop body
LE: loop exit
PB: predicated region body
PF: predicated region fallthrough
CT: control target
= control target key end

     0   :  { %s1680_s30 = smov 0   ;;  %s2234_s0 = inlined_call_operand.vmem [shape: f32[2,12,290], index: 0, kind: input, shape index: {}]   ;;  %s2235_s1 = inlined_call_operand.vmem [shape: f32[2,12,290], index: 1, kind: input, shape index: {}]   ;;  %s2236_s2 = inlined_call_operand.vmem [shape: bf16[12,108], index: 2, kind: input, shape index: {}]   ;;  %s2237_s3 = inlined_call_operand.vmem [shape: bf16[12,108], index: 3, kind: input, shape index: {}]   ;;  %s2238_s4 = inlined_call_operand.vmem [shape: f32[12,1], index: 4, kind: input, shape index: {}]   ;;  %s2239_s5 = inlined_call_operand.vmem [shape: bf16[12,12], index: 5, kind: input, shape index: {}]   ;;  %s2240_s6 = inlined_call_operand.vmem [shape: f32[12,1], index: 6, kind: input, shape index: {}]   ;;  %s2241_s7 = inlined_call_operand.vmem [shape: f32[2,12,256], index: 7, kind: output, shape index: {0}]   ;;  %s2242_s8 = inlined_call_operand.vmem [shape: f32[2,12,1], index: 8, kind: output, shape index: {1}]   ;;  %s2243_s9 = inlined_call_operand.vmem [shape: f32[2,12,1], index: 9, kind: output, shape index: {2}]  }
   0x1 LB: > { %s1275_s10 = sadd.s32 4294967295, %s1618_s30   ;;  %p1279_p0 = scmp.ge.s32.totalorder %s1618_s30, 1  ;;  %s1618_s30 = sphi %s1680_s30, %s20_s30  }
   0x2   : > { %p302_p1 = scmp.lt.s32.totalorder %s1618_s30, 3 }
   0x4   : > { %p303_p2 = pnand %p1279_p0, %p302_p1 }
   0x5   : > { %p353_p3 = scmp.lt.s32.totalorder (!%p303_p2), %s1275_s10, 1  ;;  %s1620_s18 = smov (!%p303_p2), 94  }
   0x6   : > { %306 = sbr.rel (%p303_p2) target bundleno = 670 (0x29e), region = 48  ;;  %s1621_s19 = smov (!%p303_p2), 96  }
   0x7   : > { %s1622_s20 = smov (!%p303_p2), 95   ;;  %s1623_s21 = smov (!%p303_p2), 110  }
   0x8   : > { %s1624_s22 = smov (!%p303_p2), 111   ;;  %s1625_s23 = smov (!%p303_p2), 112  }
   0x9   : > { %s1626_s24 = smov (!%p303_p2), 126   ;;  %s1627_s25 = smov (!%p303_p2), 127  }
   0xb   : > { %s2265_s10 = smov (!%p353_p3, %s1275_s10), 1  ;;  %vm573_vm0 = vcmask 1043456   ;;  %v379_v53 = vlaneseq  ;;  %vm560_vm1 = vcmask 769024   ;;  %vm707_vm4 = vcmask 1045504  }
   0xc   : > { %s1350_s11 = smul.u32 48, %s2265_s10  ;;  %vm535_vm5 = vcmask 785408   ;;  %vm665_vm7 = vcmask 777216   ;;  %vm510_vm9 = vcmask 900096   ;;  %vm630_vm10 = vcmask 908288   ;;  %s1344_s27 = sshll.u32 %s2265_s10, 5 }
   0xd   : > { %v1857_v56 = vand.u32 127, %v379_v53  ;;  %vm1628_vm11 = vmmov 1   ;;  %vm485_vm14 = vcmask 916480   ;;  %vm460_vm15 = vcmask 1031168   ;;  %s1345_s12 = sshll.u32 %s2265_s10, 4 }
   0xe   : > { %s362_s14 = scalar_lea.vmem %s2235_s1, %s1350_s11  ;;  %s357_s17 = scalar_lea.vmem %s2234_s0, %s1350_s11 }
   0xf   : > { %v1697_v0 = vld [vmem:[%s362_s14 + $0x20] sm:$0xf]  ;;  %v1699_v1 = vld [vmem:[%s362_s14 + $0x28] sm:$0xf]  ;;  %v1709_v5 = vld [vmem:[%s357_s17 + $0x10] sm:$0xff]  ;;  %v1862_v58 = vadd.s32 128, %v1857_v56  ;;  %s367_s11 = scalar_lea.vmem %s2241_s7, %s1344_s27  ;;  %s372_s15 = scalar_lea.vmem %s2242_s8, %s1345_s12 }
  0x10   : > { %v1701_v2 = vld [vmem:[%s362_s14] sm:$0xff]  ;;  %v1705_v3 = vpack.i.bf16 %v1699_v1, %v1697_v0  ;;  %v1707_v4 = vld [vmem:[%s362_s14 + $0x8] sm:$0xff]  ;;  %v1711_v6 = vld [vmem:[%s357_s17 + $0x18] sm:$0xf]  ;;  %v887_v27 = vrot.slane %v1697_v0, 4  ;;  %v889_v28 = vrot.slane %v1699_v1, 4 }
  0x11   : > { %v1715_v7 = vpack.i.bf16 %v1707_v4, %v1701_v2  ;;  %v1719_v8 = vpack.i.bf16 %v1711_v6, %v1709_v5  ;;  %v1722_v9 = vld [vmem:[%s362_s14 + $0x10] sm:$0xff]  ;;  %v1726_v10 = vld [vmem:[%s357_s17] sm:$0xff]  ;;  %v1728_v11 = vld [vmem:[%s357_s17 + $0x8] sm:$0xff]  ;;  %v1752_v18 = vrot.slane %v1701_v2, 4  ;;  %v1755_v19 = vrot.slane %v1707_v4, 4 }
  0x12   : > { %1380 = vrot.lane.b32.xlu1 %v1705_v3, %s1620_s18  ;;  %v1730_v12 = vld [vmem:[%s362_s14 + $0x18] sm:$0xf]  ;;  %v1732_v13 = vld [vmem:[%s357_s17 + $0x20] sm:$0xf]  ;;  %v1734_v14 = vld [vmem:[%s357_s17 + $0x28] sm:$0xf]  ;;  %v1738_v15 = vpack.i.bf16 %v1728_v11, %v1726_v10  ;;  %v1404_v20 = vpack.i.bf16 %v1711_v6, %v1699_v1  ;;  %v1479_v44 = vpack.i.bf16 %v1726_v10, %v1722_v9  ;;  %v1494_v45 = vpack.i.bf16 %v1709_v5, %v1728_v11 }
  0x13   : > { %1370 = vrot.lane.b32.xlu0 %v1715_v7, %s1620_s18  ;;  %1390 = vrot.lane.b32.xlu2 %v1719_v8, %s1620_s18  ;;  %v1742_v16 = vpack.i.bf16 %v1730_v12, %v1722_v9  ;;  %v1746_v17 = vpack.i.bf16 %v1734_v14, %v1732_v13  ;;  %v1399_v21 = vpack.i.bf16 %v1697_v0, %v1730_v12  ;;  %v885_v23 = vrot.slane %v1730_v12, 4 }
  0x14   : > { %v1409_v22 = vpack.i.bf16 %v1755_v19, %v1752_v18  ;;  %v1768_v24 = vrot.slane %v1722_v9, 4  ;;  %v888_v29 = vsel %vm573_vm0, %v1755_v19, %v887_v27  ;;  %v1789_v32 = vrot.slane %v1726_v10, 4 }
  0x15   : > { %v1772_v25 = vsel %vm573_vm0, %v1752_v18, %v885_v23  ;;  %v577_v33 = vrot.slane %v1711_v6, 4  ;;  %v1794_v34 = vrot.slane %v1709_v5, 4  ;;  %v1800_v35 = vrot.slane %v1728_v11, 4 }
  0x16   : > { %v1414_v26 = vpack.i.bf16 %v1772_v25, %v1768_v24  ;;  %v1785_v30 = vsel %vm573_vm0, %v1768_v24, %v889_v28  ;;  %v579_v39 = vrot.slane %v1732_v13, 4  ;;  %v581_v40 = vrot.slane %v1734_v14, 4 }
  0x17   : > { %v1434_v31 = vpack.i.bf16 %v1785_v30, %v888_v29  ;;  %v1804_v36 = vsel %vm573_vm0, %v1789_v32, %v577_v33  ;;  %v1444_v38 = vpack.i.bf16 %v1800_v35, %v1789_v32  ;;  %v1489_v46 = vpack.i.bf16 %v1701_v2, %v1699_v1 }
  0x18   : > { %v1449_v37 = vpack.i.bf16 %v1804_v36, %v1794_v34  ;;  %v1817_v41 = vsel %vm573_vm0, %v1800_v35, %v579_v39  ;;  %v1821_v42 = vsel %vm573_vm0, %v1794_v34, %v581_v40  ;;  %v1514_v47 = vpack.i.bf16 %v1722_v9, %v1707_v4 }
  0x19   : > { %v1469_v43 = vpack.i.bf16 %v1821_v42, %v1817_v41  ;;  %v1529_v48 = vpack.i.bf16 %v1732_v13, %v1711_v6  ;;  %v1534_v49 = vpack.i.bf16 %v1726_v10, %v1734_v14  ;;  %v1574_v52 = vpack.i.bf16 %v888_v29, %v1772_v25 }
  0x1a   : > { %1385 = vrot.lane.b32.xlu1 %v1738_v15, %s1620_s18  ;;  %v1584_v55 = vpack.i.bf16 %v1768_v24, %v1755_v19  ;;  %v1579_v57 = vpack.i.bf16 %v1752_v18, %v1785_v30  ;;  %v1594_v62 = vpack.i.bf16 %v1817_v41, %v1804_v36  ;;  %v1599_v63 = vpack.i.bf16 %v1789_v32, %v1821_v42 }
  0x1b   : > { %1375 = vrot.lane.b32.xlu0 %v1742_v16, %s1620_s18  ;;  %1395 = vrot.lane.b32.xlu2 %v1746_v17, %s1620_s18  ;;  %v386_v1 = vand.u32 15, %v1857_v56  ;;  %v1604_v9 = vpack.i.bf16 %v1794_v34, %v1800_v35  ;;  %s377_s18 = scalar_lea.vmem %s2243_s9, %s1345_s12 }
  0x1d   : > { %vm1878_vm2 = vcmp.le.s32.totalorder %v386_v1, 14  ;;  %vm1924_vm6 = vcmp.ge.s32.totalorder %v386_v1, 1 }
  0x1e   : > { %vm1993_vm12 = vmpackc.low %vm1924_vm6, %vm1628_vm11 }
  0x22   : > { %1405 = vrot.lane.b32.xlu1 %v1404_v20, %s1621_s19 }
  0x23   : > { %1400 = vrot.lane.b32.xlu0 %v1399_v21, %s1621_s19  ;;  %1410 = vrot.lane.b32.xlu2 %v1409_v22, %s1622_s20 }
  0x2a   : > { %1420 = vrot.lane.b32.xlu1 %v1715_v7, %s1623_s21 }
  0x2b   : > { %1415 = vrot.lane.b32.xlu0 %v1414_v26, %s1622_s20  ;;  %1425 = vrot.lane.b32.xlu2 %v1742_v16, %s1623_s21 }
  0x32   : > { %1435 = vrot.lane.b32.xlu1 %v1434_v31, %s1622_s20 }
  0x33   : > { %1430 = vrot.lane.b32.xlu0 %v1705_v3, %s1623_s21  ;;  %1440 = vrot.lane.b32.xlu2 %v1746_v17, %s1621_s19 }
  0x3a   : > { %1450 = vrot.lane.b32.xlu1 %v1449_v37, %s1622_s20 }
  0x3b   : > { %1455 = vrot.lane.b32.xlu2 %v1738_v15, %s1623_s21  ;;  %1445 = vrot.lane.b32.xlu0 %v1444_v38, %s1622_s20 }
  0x42   : > { %1465 = vrot.lane.b32.xlu1 %v1746_v17, %s1623_s21 }
  0x43   : > { %1470 = vrot.lane.b32.xlu2 %v1469_v43, %s1622_s20  ;;  %1460 = vrot.lane.b32.xlu0 %v1719_v8, %s1623_s21 }
  0x4a   : > { %1480 = vrot.lane.b32.xlu1 %v1479_v44, %s1621_s19 }
  0x4b   : > { %1485 = vrot.lane.b32.xlu2 %v1399_v21, %s1624_s22  ;;  %1475 = vrot.lane.b32.xlu0 %v1715_v7, %s1621_s19 }
  0x52   : > { %1495 = vrot.lane.b32.xlu1 %v1494_v45, %s1621_s19 }
  0x53   : > { %1500 = vrot.lane.b32.xlu2 %v1715_v7, %s1625_s23  ;;  %1490 = vrot.lane.b32.xlu0 %v1489_v46, %s1624_s22 }
  0x5a   : > { %1510 = vrot.lane.b32.xlu1 %v1705_v3, %s1625_s23  ;;  %v393_v3 = vand.u32 15, %v1862_v58 }
  0x5b   : > { %1515 = vrot.lane.b32.xlu2 %v1514_v47, %s1624_s22  ;;  %1505 = vrot.lane.b32.xlu0 %v1742_v16, %s1625_s23 }
  0x5c   : > { %vm1885_vm3 = vcmp.le.s32.totalorder %v393_v3, 14  ;;  %vm1931_vm8 = vcmp.ge.s32.totalorder %v393_v3, 1 }
  0x5d   : > { %vm2007_vm13 = vmpackc.low %vm1931_vm8, %vm1628_vm11 }
  0x62   : > { %1525 = vrot.lane.b32.xlu1 %v1404_v20, %s1626_s24 }
  0x63   : > { %1530 = vrot.lane.b32.xlu2 %v1529_v48, %s1624_s22  ;;  %1520 = vrot.lane.b32.xlu0 %v1399_v21, %s1626_s24 }
  0x6a   : > { %1540 = vrot.lane.b32.xlu1 %v1738_v15, %s1625_s23 }
  0x6b   : > { %1535 = vrot.lane.b32.xlu0 %v1534_v49, %s1624_s22  ;;  %1545 = vrot.lane.b32.xlu2 %v1719_v8, %s1625_s23 }
  0x6d   : > { %v1391_v50 = vpop.permute.xlu2 %1390 }
  0x6e   : > { %v1393_v5 = vunpack.i.h.bf16 %v1391_v50  ;;  %v1392_v25 = vunpack.i.l.bf16 %v1391_v50 }
  0x72   : > { %1555 = vrot.lane.b32.xlu1 %v1494_v45, %s1624_s22 }
  0x73   : > { %1550 = vrot.lane.b32.xlu0 %v1746_v17, %s1625_s23  ;;  %1560 = vrot.lane.b32.xlu2 %v1746_v17, %s1626_s24 }
  0x75   : > { %v1396_v51 = vpop.permute.xlu2 %1395 }
  0x76   : > { %v1397_v8 = vunpack.i.l.bf16 %v1396_v51 }
  0x78   : > { %v563_v18 = vsel %vm560_vm1, %v1393_v5, %v1397_v8 }
  0x79   : > { %v571_v31 = vsel %vm1878_vm2, %v563_v18, 0.0 }
  0x7a   : > { %1570 = vrot.lane.b32.xlu1 %v1479_v44, %s1626_s24 }
  0x7b   : > { %1565 = vrot.lane.b32.xlu0 %v1715_v7, %s1626_s24  ;;  %1575 = vrot.lane.b32.xlu2 %v1574_v52, %s1627_s25  ;;  %v1398_v7 = vunpack.i.h.bf16 %v1396_v51 }
  0x7d   : > { %v1853_v54 = vpop.permute.xlu2 %1410  ;;  %v564_v19 = vsel %vm560_vm1, %v1397_v8, %v1398_v7 }
  0x7e   : > { %v572_v32 = vsel %vm1885_vm3, %v564_v19, 0.0  ;;  %v1413_v5 = vunpack.i.h.bf16 %v1853_v54  ;;  %v1412_v7 = vunpack.i.l.bf16 %v1853_v54 }
  0x80   : > { %v971_v1 = vsel %vm665_vm7, %v1412_v7, %v1413_v5 }
  0x82   : > { %1585 = vrot.lane.b32.xlu1 %v1584_v55, %s1627_s25 }
  0x83   : > { %1580 = vrot.lane.b32.xlu0 %v1579_v57, %s1627_s25  ;;  %1590 = vrot.lane.b32.xlu2 %v1494_v45, %s1626_s24 }
  0x84   : > { %v1381_v59 = vpop.permute.xlu1 %1380 }
  0x85   : > { %v1371_v60 = vpop.permute.xlu0 %1370  ;;  %v1864_v61 = vpop.permute.xlu2 %1425  ;;  %v1383_v14 = vunpack.i.h.bf16 %v1381_v59  ;;  %v1382_v15 = vunpack.i.l.bf16 %v1381_v59 }
  0x86   : > { %v1373_v16 = vunpack.i.h.bf16 %v1371_v60  ;;  %v1372_v17 = vunpack.i.l.bf16 %v1371_v60 }
  0x87   : > { %v873_v24 = vsel %vm560_vm1, %v1382_v15, %v1383_v14 }
  0x88   : > { %v870_v22 = vsel %vm560_vm1, %v1372_v17, %v1373_v16  ;;  %v881_v35 = vsel %vm1885_vm3, %v873_v24, 0.0 }
  0x89   : > { %v878_v34 = vsel %vm1878_vm2, %v870_v22, 0.0 }
  0x8a   : > { %1600 = vrot.lane.b32.xlu1 %v1599_v63, %s1627_s25 }
  0x8b   : > { %1595 = vrot.lane.b32.xlu0 %v1594_v62, %s1627_s25  ;;  %1605 = vrot.lane.b32.xlu2 %v1604_v9, %s1627_s25  ;;  %v1290_v9 = vld [vmem:[%s2236_s2] sm:$0xf] }
  0x8c   : > { %v1386_v20 = vpop.permute.xlu1 %1385 }
  0x8d   : > { %v1376_v26 = vpop.permute.xlu0 %1375  ;;  %v1388_v27 = vunpack.i.h.bf16 %v1386_v20  ;;  %v1387_v28 = vunpack.i.l.bf16 %v1386_v20  ;;  %v1894_v33 = vpop.permute.xlu2 %1440 }
  0x8e   : > { %v1378_v29 = vunpack.i.h.bf16 %v1376_v26  ;;  %v1377_v30 = vunpack.i.l.bf16 %v1376_v26 }
  0x8f   : > { %v561_v36 = vsel %vm560_vm1, %v1387_v28, %v1388_v27  ;;  %v562_v37 = vsel %vm560_vm1, %v1388_v27, %v1392_v25 }
  0x90   : > { %v872_v38 = vsel %vm560_vm1, %v1378_v29, %v1382_v15  ;;  %v871_v39 = vsel %vm560_vm1, %v1373_v16, %v1377_v30  ;;  %v569_v40 = vsel %vm1878_vm2, %v561_v36, 0.0  ;;  %v570_v41 = vsel %vm1885_vm3, %v562_v37, 0.0 }
  0x91   : > { %v880_v42 = vsel %vm1878_vm2, %v872_v38, 0.0  ;;  %v879_v43 = vsel %vm1885_vm3, %v871_v39, 0.0  ;;  %v694_v44 = vpack.c.bf16 %v571_v31, %v569_v40  ;;  %v695_v45 = vpack.c.bf16 %v572_v32, %v570_v41 }
  0x92   : > { %v999_v46 = vpack.c.bf16 %v880_v42, %v878_v34  ;;  %v1000_v47 = vpack.c.bf16 %v881_v35, %v879_v43  ;;  %v1443_v30 = vunpack.i.h.bf16 %v1894_v33  ;;  %v1442_v31 = vunpack.i.l.bf16 %v1894_v33 }
  0x93   : > { %v709_v48 = vsel %vm707_vm4, %v694_v44, 0  ;;  %v712_v49 = vsel %vm707_vm4, %v695_v45, 0  ;;  %vm595_vm1 = vcmask 1039360  }
  0x94   : > { %v1012_v50 = vsel %vm707_vm4, %v999_v46, 0  ;;  %v1015_v51 = vsel %vm707_vm4, %v1000_v47, 0  ;;  %v1406_v52 = vpop.permute.xlu1 %1405  ;;  %715 = vmatpush.bf16.msra.mxu0 %v709_v48  ;;  %729 = vmatpush.bf16.msra.mxu1 %v712_v49  ;;  %v539_v42 = vsel %vm535_vm5, %v1442_v31, %v1443_v30 }
  0x95   : > { %v1401_v53 = vpop.permute.xlu0 %1400  ;;  %1018 = vmatpush.bf16.msra.mxu2 %v1012_v50  ;;  %1032 = vmatpush.bf16.msra.mxu3 %v1015_v51  ;;  %v1916_v55 = vpop.permute.xlu2 %1455  ;;  %v1407_v63 = vunpack.i.l.bf16 %v1406_v52  ;;  %v1408_v32 = vunpack.i.h.bf16 %v1406_v52  ;;  %v547_v48 = vsel %vm1931_vm8, %v539_v42, 0.0 }
  0x96   : > { %v1403_v59 = vunpack.i.h.bf16 %v1401_v53  ;;  %v1402_v60 = vunpack.i.l.bf16 %v1401_v53 }
  0x97   : > { %v538_v41 = vsel %vm535_vm5, %v1408_v32, %v1442_v31 }
  0x98   : > { %v848_v14 = vsel %vm535_vm5, %v1402_v60, %v1403_v59  ;;  %v849_v17 = vsel %vm535_vm5, %v1403_v59, %v1407_v63  ;;  %v546_v46 = vsel %vm1924_vm6, %v538_v41, 0.0  ;;  %v1427_v59 = vunpack.i.l.bf16 %v1864_v61 }
  0x99   : > { %v856_v56 = vsel %vm1924_vm6, %v848_v14, 0.0  ;;  %v857_v58 = vsel %vm1931_vm8, %v849_v17, 0.0 }
  0x9a   : > { %v985_v25 = vsel %vm573_vm0, %v856_v56, %v971_v1 }
  0x9c   : > { %v1918_v57 = vpop.permute.xlu1 %1420 }
  0x9d   : > { %v1416_v62 = vpop.permute.xlu0 %1415  ;;  %v1471_v15 = vpop.permute.xlu2 %1470  ;;  %v1423_v60 = vunpack.i.h.bf16 %v1918_v57  ;;  %v1422_v7 = vunpack.i.l.bf16 %v1918_v57 }
  0x9e   : > { %v1417_v8 = vunpack.i.l.bf16 %v1416_v62  ;;  %v1418_v19 = vunpack.i.h.bf16 %v1416_v62  ;;  %v1473_v34 = vunpack.i.h.bf16 %v1471_v15  ;;  %v1472_v35 = vunpack.i.l.bf16 %v1471_v15 }
  0x9f   : > { %v822_v56 = vsel %vm510_vm9, %v1422_v7, %v1423_v60 }
  0xa0   : > { %v972_v18 = vsel %vm665_vm7, %v1413_v5, %v1417_v8  ;;  %v669_v33 = vsel %vm665_vm7, %v1472_v35, %v1473_v34  ;;  %v1428_v5 = vunpack.i.h.bf16 %v1864_v61 }
  0xa1   : > { %v986_v27 = vsel %vm573_vm0, %v857_v58, %v972_v18  ;;  %v1458_v58 = vunpack.i.h.bf16 %v1916_v55 }
  0xa4   : > { %v1436_v54 = vpop.permute.xlu1 %1435 }
  0xa5   : > { %v1431_v20 = vpop.permute.xlu0 %1430  ;;  %v1438_v22 = vunpack.i.h.bf16 %v1436_v54  ;;  %v1437_v24 = vunpack.i.l.bf16 %v1436_v54  ;;  %v1948_v37 = vpop.permute.xlu2 %1485  ;;  %v823_v54 = vsel %vm510_vm9, %v1423_v60, %v1427_v59 }
  0xa6   : > { %v1433_v50 = vunpack.i.h.bf16 %v1431_v20  ;;  %v1432_v51 = vunpack.i.l.bf16 %v1431_v20  ;;  %v831_v20 = vsel %vm1885_vm3, %v823_v54, 0.0  ;;  %v1487_v41 = vunpack.i.l.bf16 %v1948_v37 }
  0xa7   : > { %v973_v3 = vsel %vm665_vm7, %v1418_v19, %v1437_v24  ;;  %v974_v26 = vsel %vm665_vm7, %v1437_v24, %v1438_v22 }
  0xa8   : > { %v997_v28 = vpack.c.bf16 %v973_v3, %v985_v25  ;;  %v998_v29 = vpack.c.bf16 %v974_v26, %v986_v27  ;;  %v824_v14 = vsel %vm510_vm9, %v1428_v5, %v1432_v51  ;;  %v825_v15 = vsel %vm510_vm9, %v1432_v51, %v1433_v50 }
  0xa9   : > { %v832_v61 = vsel %vm1878_vm2, %v824_v14, 0.0  ;;  %v833_v57 = vsel %vm1885_vm3, %v825_v15, 0.0  ;;  %v1457_v3 = vunpack.i.l.bf16 %v1916_v55  ;;  %v830_v25 = vsel %vm1878_vm2, %v822_v56, 0.0 }
  0xaa   : > { %1019 = vmatpush.bf16.msra.mxu2 %v997_v28  ;;  %1033 = vmatpush.bf16.msra.mxu3 %v998_v29  ;;  %v951_v26 = vrot.slane %v832_v61, 4  ;;  %v953_v27 = vrot.slane %v833_v57, 4  ;;  %v950_v28 = vrot.slane %v831_v20, 4  ;;  %v949_v31 = vrot.slane %v830_v25, 4 }
  0xab   : > { %v1488_v55 = vunpack.i.h.bf16 %v1948_v37 }
  0xac   : > { %v1451_v36 = vpop.permute.xlu1 %1450 }
  0xad   : > { %v1446_v38 = vpop.permute.xlu0 %1445  ;;  %v1453_v39 = vunpack.i.h.bf16 %v1451_v36  ;;  %v1452_v40 = vunpack.i.l.bf16 %v1451_v36  ;;  %v1970_v1 = vpop.permute.xlu2 %1500  ;;  %v939_v5 = vsel %vm630_vm10, %v1487_v41, %v1488_v55 }
  0xae   : > { %v1448_v43 = vunpack.i.h.bf16 %v1446_v38  ;;  %v1447_v44 = vunpack.i.l.bf16 %v1446_v38  ;;  %v511_v38 = vsel %vm510_vm9, %v1457_v3, %v1458_v58  ;;  %v983_v57 = vsel %vm573_vm0, %v939_v5, %v949_v31 }
  0xaf   : > { %v668_v45 = vsel %vm665_vm7, %v1453_v39, %v1472_v35 }
  0xb0   : > { %v666_v47 = vsel %vm665_vm7, %v1447_v44, %v1448_v43  ;;  %v667_v49 = vsel %vm665_vm7, %v1448_v43, %v1452_v40  ;;  %v952_v44 = vsel %vm573_vm0, %v949_v31, %v951_v26  ;;  %vm703_vm7 = vcmask 883712  }
  0xb1   : > { %v680_v52 = vsel %vm573_vm0, %v546_v46, %v666_v47  ;;  %v681_v53 = vsel %vm573_vm0, %v547_v48, %v667_v49 }
  0xb2   : > { %v692_v62 = vpack.c.bf16 %v668_v45, %v680_v52  ;;  %v693_v63 = vpack.c.bf16 %v669_v33, %v681_v53  ;;  %v954_v45 = vsel %vm573_vm0, %v950_v28, %v953_v27  ;;  %v519_v52 = vsel %vm1878_vm2, %v511_v38, 0.0 }
  0xb3   : > { %v1503_v38 = vunpack.i.h.bf16 %v1970_v1 }
  0xb4   : > { %716 = vmatpush.bf16.msra.mxu0 %v692_v62  ;;  %730 = vmatpush.bf16.msra.mxu1 %v693_v63  ;;  %v1466_v8 = vpop.permute.xlu1 %1465 }
  0xb5   : > { %v1461_v17 = vpop.permute.xlu0 %1460  ;;  %v1468_v18 = vunpack.i.h.bf16 %v1466_v8  ;;  %v1467_v19 = vunpack.i.l.bf16 %v1466_v8  ;;  %v1516_v49 = vpop.permute.xlu2 %1515  ;;  %v2021_v8 = vrot.slane %v519_v52, 4 }
  0xb6   : > { %v1463_v22 = vunpack.i.h.bf16 %v1461_v17  ;;  %v1462_v24 = vunpack.i.l.bf16 %v1461_v17  ;;  %v1518_v53 = vunpack.i.h.bf16 %v1516_v49  ;;  %v1517_v59 = vunpack.i.l.bf16 %v1516_v49 }
  0xb7   : > { %v514_v29 = vsel %vm510_vm9, %v1467_v19, %v1468_v18 }
  0xb8   : > { %v512_v32 = vsel %vm510_vm9, %v1458_v58, %v1462_v24  ;;  %v513_v34 = vsel %vm510_vm9, %v1463_v22, %v1467_v19  ;;  %v522_v42 = vsel %vm1885_vm3, %v514_v29, 0.0  ;;  %v938_v18 = vsel %vm630_vm10, %v1517_v59, %v1518_v53  ;;  %vm2164_vm9 = vmpackc.low %vm1628_vm11, %vm1931_vm8 }
  0xb9   : > { %v520_v33 = vsel %vm1885_vm3, %v512_v32, 0.0  ;;  %v521_v37 = vsel %vm1878_vm2, %v513_v34, 0.0  ;;  %v647_v63 = vrot.slane %v522_v42, 4 }
  0xba   : > { %v2014_v60 = vrot.slane %v520_v33, 4  ;;  %v645_v62 = vrot.slane %v521_v37, 4 }
  0xbc   : > { %v1481_v30 = vpop.permute.xlu1 %1480  ;;  %v646_v20 = vsel %vm573_vm0, %v2021_v8, %v645_v62  ;;  %v648_v24 = vsel %vm573_vm0, %v2014_v60, %v647_v63 }
  0xbd   : > { %v1476_v35 = vpop.permute.xlu0 %1475  ;;  %v1482_v36 = vunpack.i.l.bf16 %v1481_v30  ;;  %v1483_v14 = vunpack.i.h.bf16 %v1481_v30  ;;  %v1531_v31 = vpop.permute.xlu2 %1530 }
  0xbe   : > { %v1478_v39 = vunpack.i.h.bf16 %v1476_v35  ;;  %v1477_v40 = vunpack.i.l.bf16 %v1476_v35 }
  0xc0   : > { %v846_v46 = vsel %vm535_vm5, %v1477_v40, %v1478_v39  ;;  %v847_v48 = vsel %vm535_vm5, %v1478_v39, %v1482_v36 }
  0xc1   : > { %v1317_v50 = vpack.c.bf16 %v846_v46, %v952_v44  ;;  %v1327_v51 = vpack.c.bf16 %v847_v48, %v954_v45 }
  0xc3   : > { %1318 = vmatpush.bf16.msk.msra.mxu2 %vm1993_vm12, %v1317_v50  ;;  %1328 = vmatpush.bf16.msk.msra.mxu3 %vm2007_vm13, %v1327_v51 }
  0xc4   : > { %v1496_v7 = vpop.permute.xlu1 %1495 }
  0xc5   : > { %v1491_v15 = vpop.permute.xlu0 %1490  ;;  %v1498_v17 = vunpack.i.h.bf16 %v1496_v7  ;;  %v1497_v54 = vunpack.i.l.bf16 %v1496_v7  ;;  %v2046_v45 = vpop.permute.xlu2 %1545 }
  0xc6   : > { %v1493_v56 = vunpack.i.h.bf16 %v1491_v15  ;;  %v1492_v61 = vunpack.i.l.bf16 %v1491_v15 }
  0xc7   : > { %v536_v19 = vsel %vm535_vm5, %v1483_v14, %v1497_v54  ;;  %v537_v22 = vsel %vm535_vm5, %v1497_v54, %v1498_v17  ;;  %vm2112_vm5 = vmpackc.low %vm1878_vm2, %vm1628_vm11 }
  0xc8   : > { %v1293_v58 = vpack.c.bf16 %v536_v19, %v646_v20  ;;  %v1303_v3 = vpack.c.bf16 %v537_v22, %v648_v24  ;;  %v937_v25 = vsel %vm630_vm10, %v1493_v56, %v1517_v59  ;;  %v940_v26 = vsel %vm630_vm10, %v1488_v55, %v1492_v61 }
  0xc9   : > { %v993_v27 = vpack.c.bf16 %v983_v57, %v937_v25  ;;  %v984_v29 = vsel %vm573_vm0, %v940_v26, %v950_v28  ;;  %v1502_v55 = vunpack.i.l.bf16 %v1970_v1  ;;  %v1533_v57 = vunpack.i.h.bf16 %v1531_v31 }
  0xca   : > { %1294 = vmatpush.bf16.msk.msra.mxu0 %vm1993_vm12, %v1293_v58  ;;  %1304 = vmatpush.bf16.msk.msra.mxu1 %vm2007_vm13, %v1303_v3  ;;  %v994_v30 = vpack.c.bf16 %v984_v29, %v938_v18  ;;  %v1532_v19 = vunpack.i.l.bf16 %v1531_v31  ;;  %v1547_v20 = vunpack.i.l.bf16 %v2046_v45 }
  0xcb   : > { %1021 = vmatpush.bf16.msra.mxu2 %v993_v27  ;;  %v798_v43 = vsel %vm485_vm14, %v1502_v55, %v1503_v38 }
  0xcc   : > { %1035 = vmatpush.bf16.msra.mxu3 %v994_v30  ;;  %v1511_v32 = vpop.permute.xlu1 %1510  ;;  %v806_v48 = vsel %vm1924_vm6, %v798_v43, 0.0 }
  0xcd   : > { %v1506_v34 = vpop.permute.xlu0 %1505  ;;  %v1513_v35 = vunpack.i.h.bf16 %v1511_v32  ;;  %v1512_v36 = vunpack.i.l.bf16 %v1511_v32  ;;  %v915_v62 = vrot.slane %v806_v48, 4  ;;  %v1561_v22 = vpop.permute.xlu2 %1560  ;;  %v633_v32 = vsel %vm630_vm10, %v1532_v19, %v1533_v57 }
  0xce   : > { %v1508_v28 = vunpack.i.h.bf16 %v1506_v34  ;;  %v1507_v39 = vunpack.i.l.bf16 %v1506_v34  ;;  %v1563_v25 = vunpack.i.h.bf16 %v1561_v22  ;;  %v1562_v27 = vunpack.i.l.bf16 %v1561_v22 }
  0xcf   : > { %v801_v40 = vsel %vm485_vm14, %v1512_v36, %v1513_v35  ;;  %v678_v55 = vsel %vm573_vm0, %v633_v32, %v2021_v8  ;;  %v1053_v32 = vld [vmem:[%s2240_s6] sm:$0xff] }
  0xd0   : > { %v799_v41 = vsel %vm485_vm14, %v1503_v38, %v1507_v39  ;;  %v800_v42 = vsel %vm485_vm14, %v1508_v28, %v1512_v36  ;;  %v809_v44 = vsel %vm1931_vm8, %v801_v40, 0.0  ;;  %v464_v31 = vsel %vm460_vm15, %v1562_v27, %v1563_v25 }
  0xd1   : > { %v808_v33 = vsel %vm1924_vm6, %v800_v42, 0.0  ;;  %v807_v1 = vsel %vm1931_vm8, %v799_v41, 0.0  ;;  %v919_v49 = vrot.slane %v809_v44, 4  ;;  %v1548_v36 = vunpack.i.h.bf16 %v2046_v45 }
  0xd2   : > { %v917_v52 = vrot.slane %v808_v33, 4  ;;  %v916_v53 = vrot.slane %v807_v1, 4  ;;  %v472_v44 = vsel %vm1885_vm3, %v464_v31, 0.0 }
  0xd4   : > { %v1526_v37 = vpop.permute.xlu1 %1525  ;;  %v918_v14 = vsel %vm573_vm0, %v915_v62, %v917_v52  ;;  %v920_v17 = vsel %vm573_vm0, %v916_v53, %v919_v49 }
  0xd5   : > { %v1521_v46 = vpop.permute.xlu0 %1520  ;;  %v1527_v47 = vunpack.i.l.bf16 %v1526_v37  ;;  %v1528_v34 = vunpack.i.h.bf16 %v1526_v37  ;;  %v2079_v33 = vpop.permute.xlu2 %1575 }
  0xd6   : > { %v1523_v50 = vunpack.i.h.bf16 %v1521_v46  ;;  %v1522_v51 = vunpack.i.l.bf16 %v1521_v46 }
  0xd7   : > { %v463_v37 = vsel %vm460_vm15, %v1528_v34, %v1562_v27 }
  0xd8   : > { %v776_v59 = vsel %vm460_vm15, %v1522_v51, %v1523_v50  ;;  %v777_v63 = vsel %vm460_vm15, %v1523_v50, %v1527_v47 }
  0xd9   : > { %v784_v5 = vsel %vm1878_vm2, %v776_v59, 0.0  ;;  %v785_v7 = vsel %vm1885_vm3, %v777_v63, 0.0  ;;  %v1578_v59 = vunpack.i.h.bf16 %v2079_v33 }
  0xda   : > { %v981_v15 = vsel %vm573_vm0, %v784_v5, %v915_v62  ;;  %v982_v54 = vsel %vm573_vm0, %v785_v7, %v916_v53  ;;  %v471_v62 = vsel %vm1878_vm2, %v463_v37, 0.0  ;;  %v1577_v5 = vunpack.i.l.bf16 %v2079_v33  ;;  %vm2134_vm2 = vmpackc.low %vm1885_vm3, %vm1628_vm11  ;;  %v1314_v33 = vld [vmem:[%s2237_s3] sm:$0xf] }
  0xdb   : > { %v991_v56 = vpack.c.bf16 %v918_v14, %v981_v15  ;;  %v992_v61 = vpack.c.bf16 %v920_v17, %v982_v54  ;;  %v410_v15 = vld [vmem:[%s2238_s4] sm:$0xff]  ;;  %v411_v17 = vld [vmem:[%s2238_s4 + $0x8] sm:$0xf]  ;;  %vm2149_vm3 = vmpackc.low %vm1628_vm11, %vm1924_vm6 }
  0xdc   : > { %v1541_v18 = vpop.permute.xlu1 %1540  ;;  %v905_v25 = vsel %vm595_vm1, %v1577_v5, %v1578_v59 }
  0xdd   : > { %v1536_v24 = vpop.permute.xlu0 %1535  ;;  %v1543_v58 = vunpack.i.h.bf16 %v1541_v18  ;;  %v1542_v3 = vunpack.i.l.bf16 %v1541_v18  ;;  %1022 = vmatpush.bf16.msra.mxu2 %v991_v56  ;;  %1036 = vmatpush.bf16.msra.mxu3 %v992_v61  ;;  %v1629_v56 = vmov 0  }
  0xde   : > { %v1537_v26 = vunpack.i.l.bf16 %v1536_v24  ;;  %v1538_v40 = vunpack.i.h.bf16 %v1536_v24  ;;  %1610 = vset.pattern.permute.xlu1 %v1629_v56  ;;  %1609 = vset.pattern.permute.xlu0 %v1629_v56 }
  0xdf   : > { %v487_v29 = vsel %vm485_vm14, %v1543_v58, %v1547_v20  ;;  %v486_v30 = vsel %vm485_vm14, %v1542_v3, %v1543_v58  ;;  %414 = vperm.xlu0 %1609, %v410_v15   ;;  %419 = vperm.xlu1 %1610, %v411_v17  }
  0xe0   : > { %v634_v35 = vsel %vm630_vm10, %v1533_v57, %v1537_v26  ;;  %v494_v28 = vsel %vm1924_vm6, %v486_v30, 0.0  ;;  %v495_v39 = vsel %vm1931_vm8, %v487_v29, 0.0  ;;  %1611 = vset.pattern.permute.xlu2 %v1629_v56  ;;  %v1591_v26 = vpop.permute.xlu2 %1590 }
  0xe1   : > { %v679_v8 = vsel %vm573_vm0, %v634_v35, %v2014_v60  ;;  %v608_v48 = vrot.slane %v494_v28, 4  ;;  %v609_v49 = vrot.slane %v495_v39, 4  ;;  %v754_v28 = vsel %vm1924_vm6, %v1730_v12, 0.0 }
  0xe3   : > { %v676_v54 = vsel %vm573_vm0, %v471_v62, %v608_v48  ;;  %v677_v19 = vsel %vm573_vm0, %v472_v44, %v609_v49 }
  0xe4   : > { %v1556_v38 = vpop.permute.xlu1 %1555 }
  0xe5   : > { %v1551_v41 = vpop.permute.xlu0 %1550  ;;  %v1558_v42 = vunpack.i.h.bf16 %v1556_v38  ;;  %v1557_v43 = vunpack.i.l.bf16 %v1556_v38 }
  0xe6   : > { %v1553_v45 = vunpack.i.h.bf16 %v1551_v41  ;;  %v1552_v1 = vunpack.i.l.bf16 %v1551_v41 }
  0xe7   : > { %v631_v46 = vsel %vm630_vm10, %v1538_v40, %v1557_v43  ;;  %v632_v47 = vsel %vm630_vm10, %v1557_v43, %v1558_v42  ;;  %1057 = vperm.xlu1 %1610, %v1053_v32   ;;  %v755_v40 = vsel %vm1931_vm8, %v1697_v0, 0.0  ;;  %v1348_v0 = vld [vmem:[%s2237_s3] sm:$0x30] }
  0xe8   : > { %v488_v50 = vsel %vm485_vm14, %v1548_v36, %v1552_v1  ;;  %v489_v51 = vsel %vm485_vm14, %v1552_v1, %v1553_v45  ;;  %v688_v52 = vpack.c.bf16 %v678_v55, %v631_v46  ;;  %v689_v53 = vpack.c.bf16 %v679_v8, %v632_v47  ;;  %v1606_v12 = vpop.permute.xlu2 %1605 }
  0xe9   : > { %v496_v60 = vsel %vm1924_vm6, %v488_v50, 0.0  ;;  %v497_v63 = vsel %vm1931_vm8, %v489_v51, 0.0  ;;  %v1608_v8 = vunpack.i.h.bf16 %v1606_v12  ;;  %v1593_v47 = vunpack.i.h.bf16 %v1591_v26 }
  0xea   : > { %718 = vmatpush.bf16.msra.mxu0 %v688_v52  ;;  %732 = vmatpush.bf16.msra.mxu1 %v689_v53  ;;  %v610_v7 = vrot.slane %v496_v60, 4  ;;  %v612_v14 = vrot.slane %v497_v63, 4  ;;  %v1592_v50 = vunpack.i.l.bf16 %v1591_v26  ;;  %v437_v53 = vsel %vm1931_vm8, %v1732_v13, 0.0 }
  0xeb   : > { %v436_v13 = vsel %vm1924_vm6, %v1711_v6, 0.0  ;;  %vm1070_vm6 = vcmask 97280   ;;  %vm1126_vm8 = vcmask 3072  }
  0xec   : > { %v2103_v61 = vpop.permute.xlu1 %1570  ;;  %v611_v57 = vsel %vm573_vm0, %v608_v48, %v610_v7  ;;  %v613_v18 = vsel %vm573_vm0, %v609_v49, %v612_v14  ;;  %v1607_v48 = vunpack.i.l.bf16 %v1606_v12  ;;  %v1315_v49 = vor.u32 %v1348_v0, %v1314_v33 }
  0xed   : > { %v1566_v20 = vpop.permute.xlu0 %1565  ;;  %v686_v22 = vpack.c.bf16 %v611_v57, %v676_v54  ;;  %v687_v24 = vpack.c.bf16 %v613_v18, %v677_v19  ;;  %v1572_v34 = vunpack.i.l.bf16 %v2103_v61  ;;  %v1573_v51 = vunpack.i.h.bf16 %v2103_v61  ;;  %v1347_v19 = vld [vmem:[%s2236_s2] sm:$0x30] }
  0xee   : > { %v1568_v58 = vunpack.i.h.bf16 %v1566_v20  ;;  %v1567_v3 = vunpack.i.l.bf16 %v1566_v20  ;;  %v462_v17 = vsel %vm460_vm15, %v1592_v50, %v1593_v47 }
  0xef   : > { %719 = vmatpush.bf16.msra.mxu0 %v686_v22  ;;  %733 = vmatpush.bf16.msra.mxu1 %v687_v24  ;;  %v461_v16 = vsel %vm460_vm15, %v1573_v51, %v1592_v50  ;;  %v1291_v22 = vor.u32 %v1347_v19, %v1290_v9 }
  0xf0   : > { %v774_v29 = vsel %vm460_vm15, %v1567_v3, %v1568_v58  ;;  %v775_v43 = vsel %vm460_vm15, %v1568_v58, %v1572_v34 }
  0xf1   : > { %v1320_v30 = vpack.c.bf16 %v774_v29, %v905_v25 }
  0xf3   : > { %1321 = vmatpush.bf16.msk.msra.mxu2 %vm2112_vm5, %v1320_v30 }
  0xf4   : > { %v1586_v31 = vpop.permute.xlu1 %1585 }
  0xf5   : > { %v1581_v35 = vpop.permute.xlu0 %1580  ;;  %v1588_v21 = vunpack.i.h.bf16 %v1586_v31  ;;  %v1587_v36 = vunpack.i.l.bf16 %v1586_v31 }
  0xf6   : > { %v1583_v38 = vunpack.i.h.bf16 %v1581_v35  ;;  %v1582_v55 = vunpack.i.l.bf16 %v1581_v35 }
  0xf7   : > { %v904_v39 = vsel %vm595_vm1, %v1587_v36, %v1588_v21 }
  0xf8   : > { %v903_v41 = vsel %vm595_vm1, %v1583_v38, %v1587_v36  ;;  %v906_v44 = vsel %vm595_vm1, %v1578_v59, %v1582_v55  ;;  %v980_v46 = vsel %vm573_vm0, %v755_v40, %v904_v39  ;;  %v597_v59 = vsel %vm595_vm1, %v1607_v48, %v1608_v8  ;;  %v1338_v39 = vld [vmem:[%s2239_s5] sm:$0xf]  ;;  %v1349_v40 = vld [vmem:[%s2239_s5] sm:$0x30] }
  0xf9   : > { %v1330_v45 = vpack.c.bf16 %v775_v43, %v906_v44  ;;  %v979_v1 = vsel %vm573_vm0, %v754_v28, %v903_v41  ;;  %v1333_v5 = vpack.c.bf16 %v980_v46, %v1707_v4  ;;  %v675_v56 = vsel %vm573_vm0, %v437_v53, %v597_v59 }
  0xfa   : > { %v1323_v37 = vpack.c.bf16 %v979_v1, %v1701_v2  ;;  %v1309_v6 = vpack.c.bf16 %v675_v56, %v1728_v11  ;;  %v1054_v11 = vld [vmem:[%s2240_s6 + $0x8] sm:$0xf]  ;;  %v1339_v12 = vor.u32 %v1349_v40, %v1338_v39 }
  0xfb   : > { %1331 = vmatpush.bf16.msk.msra.mxu3 %vm2134_vm2, %v1330_v45  ;;  %1062 = vperm.xlu2 %1611, %v1054_v11  }
  0xfc   : > { %1324 = vmatpush.bf16.msk.msra.mxu2 %vm2149_vm3, %v1323_v37  ;;  %v1601_v52 = vpop.permute.xlu1 %1600 }
  0xfd   : > { %v1596_v62 = vpop.permute.xlu0 %1595  ;;  %v1603_v60 = vunpack.i.h.bf16 %v1601_v52  ;;  %v1602_v63 = vunpack.i.l.bf16 %v1601_v52 }
  0xfe   : > { %v1598_v7 = vunpack.i.h.bf16 %v1596_v62  ;;  %v1597_v14 = vunpack.i.l.bf16 %v1596_v62 }
  0xff   : > { %v596_v15 = vsel %vm595_vm1, %v1603_v60, %v1607_v48  ;;  %1325 = vmatmul.msk.bf16.vlgmr.msra.gmra.mxu2 %vm703_vm7, %v1315_v49  ;;  %1334 = vmatpush.bf16.msk.msra.mxu3 %vm2164_vm9, %v1333_v5 }
 0x100   : > { %v598_v54 = vsel %vm595_vm1, %v1597_v14, %v1598_v7  ;;  %v599_v4 = vsel %vm595_vm1, %v1598_v7, %v1602_v63  ;;  %v674_v18 = vsel %vm573_vm0, %v436_v13, %v596_v15 }
 0x101   : > { %v1296_v61 = vpack.c.bf16 %v461_v16, %v598_v54  ;;  %v1306_v57 = vpack.c.bf16 %v462_v17, %v599_v4  ;;  %v1299_v20 = vpack.c.bf16 %v674_v18, %v1726_v10 }
 0x102   : > { %1335 = vmatmul.msk.bf16.vlgmr.msra.gmra.mxu3 %vm703_vm7, %v1315_v49 }
 0x103   : > { %1297 = vmatpush.bf16.msk.msra.mxu0 %vm2112_vm5, %v1296_v61  ;;  %1307 = vmatpush.bf16.msk.msra.mxu1 %vm2134_vm2, %v1306_v57 }
 0x107   : > { %1300 = vmatpush.bf16.msk.msra.mxu0 %vm2149_vm3, %v1299_v20  ;;  %1310 = vmatpush.bf16.msk.msra.mxu1 %vm2164_vm9, %v1309_v6 }
 0x10a   : > { %1301 = vmatmul.msk.bf16.vlgmr.msra.gmra.mxu0 %vm703_vm7, %v1291_v22  ;;  %1311 = vmatmul.msk.bf16.vlgmr.msra.gmra.mxu1 %vm703_vm7, %v1291_v22 }
 0x151   : > { %v415_v25 = vpop.permute.xlu0 %414  ;;  %v420_v26 = vpop.permute.xlu1 %419 }
 0x155   : > { %v1063_v49 = vpop.permute.xlu2 %1062 }
 0x159   : > { %v1058_v33 = vpop.permute.xlu1 %1057 }
 0x182   : > { %v1026_v24 = vpop.f32.mrf.mxu2 }
 0x185   : > { %v1040_v58 = vpop.f32.mrf.mxu3 }
 0x187   : > { %v723_v3 = vpop.f32.mrf.mxu0  ;;  %v737_v10 = vpop.f32.mrf.mxu1 }
 0x188   : > { %v742_v27 = vadd.f32 %v723_v3, %v415_v25  ;;  %v743_v29 = vadd.f32 %v737_v10, %v415_v25 }
 0x18a   : > { %v1028_v35 = vpop.f32.mrf.mxu2  ;;  %v1045_v36 = vadd.f32 %v1026_v24, %v742_v27  ;;  %v1046_v38 = vadd.f32 %v1040_v58, %v743_v29 }
 0x18d   : > { %v1042_v21 = vpop.f32.mrf.mxu3 }
 0x18f   : > { %v725_v30 = vpop.f32.mrf.mxu0  ;;  %v739_v32 = vpop.f32.mrf.mxu1 }
 0x190   : > { %v744_v34 = vadd.f32 %v725_v30, %v420_v26  ;;  %v745_v31 = vadd.f32 %v739_v32, %v420_v26 }
 0x192   : > { %v1047_v55 = vadd.f32 %v1028_v35, %v744_v34  ;;  %v1048_v28 = vadd.f32 %v1042_v21, %v745_v31 }
 0x194   : > { %v1051_v41 = vpack.c.bf16 %v1047_v55, %v1045_v36  ;;  %v1052_v42 = vpack.c.bf16 %v1048_v28, %v1046_v38 }
 0x196   : > { %v1075_v43 = vsel %vm707_vm4, %v1051_v41, 0  ;;  %v1078_v44 = vsel %vm707_vm4, %v1052_v42, 0  ;;  %vm1124_vm4 = vcmask 7168  }
 0x197   : > { %1087 = vmatpush.bf16.msrb.mxu0 %v1075_v43  ;;  %1101 = vmatpush.bf16.msrb.mxu1 %v1078_v44 }
 0x19a   : > { %1340 = vmatmul.msk.bf16.vlgmr.msrb.gmra.mxu0 %vm1070_vm6, %v1339_v12  ;;  %1341 = vmatmul.msk.bf16.vlgmr.msrb.gmra.mxu1 %vm1070_vm6, %v1339_v12 }
 0x217   : > { %v1089_v0 = vpop.f32.mrf.mxu0  ;;  %v1103_v45 = vpop.f32.mrf.mxu1 }
 0x218   : > { %v1090_v23 = vadd.f32 %v1089_v0, %v1058_v33  ;;  %v1104_v1 = vadd.f32 %v1103_v45, %v1058_v33 }
 0x21a   : > { %v1108_v8 = vmax.f32 %v1090_v23, 0.0  ;;  %v1109_v37 = vmax.f32 %v1104_v1, 0.0 }
 0x21c   : > { %1112 = vst [vmem:[%s367_s11] sm:$0xff] %v1108_v8  ;;  %v1116_v46 = vadd.f32 %v1109_v37, %v1108_v8  ;;  %v1128_v47 = vmul.f32 %v1108_v8, %v1108_v8  ;;  %v1129_v48 = vmul.f32 %v1109_v37, %v1109_v37 }
 0x21d   : > { %1113 = vst [vmem:[%s367_s11 + $0x8] sm:$0xff] %v1109_v37 }
 0x21e   : > { %1117 = vadd.xlane.f32.xlu2 %v1116_v46  ;;  %v1132_v50 = vadd.f32 %v1129_v48, %v1128_v47 }
 0x21f   : > { %v1091_v51 = vpop.f32.mrf.mxu0  ;;  %v1105_v52 = vpop.f32.mrf.mxu1 }
 0x220   : > { %1133 = vadd.xlane.f32.xlu1 %v1132_v50  ;;  %v1092_v2 = vadd.f32 %v1091_v51, %v1063_v49  ;;  %v1106_v53 = vadd.f32 %v1105_v52, %v1063_v49 }
 0x222   : > { %v1110_v59 = vmax.f32 %v1092_v2, 0.0  ;;  %v1111_v62 = vmax.f32 %v1106_v53, 0.0 }
 0x224   : > { %1114 = vst [vmem:[%s367_s11 + $0x10] sm:$0xf] %v1110_v59  ;;  %v1119_v60 = vsel %vm573_vm0, %v1110_v59, 0.0  ;;  %v1120_v63 = vsel %vm573_vm0, %v1111_v62, 0.0  ;;  %v1130_v5 = vmul.f32 %v1110_v59, %v1110_v59  ;;  %v1131_v7 = vmul.f32 %v1111_v62, %v1111_v62 }
 0x225   : > { %1115 = vst [vmem:[%s367_s11 + $0x18] sm:$0xf] %v1111_v62  ;;  %v1121_v14 = vadd.f32 %v1120_v63, %v1119_v60 }
 0x226   : > { %v1135_v15 = vsel %vm573_vm0, %v1130_v5, 0.0  ;;  %v1136_v17 = vsel %vm573_vm0, %v1131_v7, 0.0 }
 0x227   : > { %1122 = vadd.xlane.f32.xlu0 %v1121_v14  ;;  %v1137_v13 = vadd.f32 %v1136_v17, %v1135_v15 }
 0x229   : > { %1138 = vadd.xlane.f32.xlu2 %v1137_v13 }
 0x291   : > { %v1118_v16 = vpop.xlane.xlu2 %1117 }
 0x292   : > { %1125 = vst.msk [vmem:[%s372_s15] sm:$0xff] %vm1124_vm4, %v1118_v16 }
 0x293   : > { %v1134_v54 = vpop.xlane.xlu1 %1133 }
 0x294   : > { %1140 = vst.msk [vmem:[%s377_s18] sm:$0xff] %vm1124_vm4, %v1134_v54 }
 0x29a   : > { %v1123_v4 = vpop.xlane.xlu0 %1122 }
 0x29b   : > { %1127 = vst.msk [vmem:[%s372_s15 + $0x8] sm:$0xf] %vm1126_vm8, %v1123_v4 }
 0x29c   : > { %v1139_v56 = vpop.xlane.xlu2 %1138 }
 0x29d   : > { %1141 = vst.msk [vmem:[%s377_s18 + $0x8] sm:$0xf] %vm1126_vm8, %v1139_v56 }
 0x29e PF: > { %s20_s30 = sadd.s32 1, %s1618_s30  }
 0x29f   : > { %p17_p4 = scmp.ge.s32.totalorder %s20_s30, 4  }
 0x2a1   :  { %19 = sbr.rel (!%p17_p4) target bundleno = 1 (0x1), region = 105 }

</bundles_post_ra>
